<compile_context>
chip_gen: v7x
topology: tpu7x:2x2x1
jax: 0.10.0
libtpu: 0.0.40
codegen_flags: <defaults>
</compile_context>

<pallas_src>
import functools
import math

import jax
import jax.numpy as jnp
import numpy as np
from jax import lax
from jax.experimental import pallas as pl
from jax.experimental.pallas import tpu as pltpu


# ----------------------------------------------------------------------------------
# Layer configuration: (Cout, Cin, K, stride, pad, groups, n_cout_tiles)
# ----------------------------------------------------------------------------------
LAYER_CFG = [
    (16,    1,    15, 1, 7,  1,   1),
    (64,    16,   41, 4, 20, 4,   1),
    (256,   64,   41, 4, 20, 16,  2),
    (1024,  256,  41, 4, 20, 64,  8),
    (1024,  1024, 41, 4, 20, 256, 8),
    (1024,  1024, 5,  1, 2,  1,   4),
]
POST_CFG = (1, 1024, 3, 1, 1, 1, 1)


# ----------------------------------------------------------------------------------
# Pallas kernel: one grid step = one Cout tile, whole batch (B folded into matmul M).
# ----------------------------------------------------------------------------------
def _conv1d_kernel(x_ref, w_ref, b_ref, o_ref, *, neg_slope, vpu_reduce):
    """x_ref: (M, KC) bf16  im2col'd activations (M = B*T_out, KC = K*Cin_per_tile)
       w_ref: (KC, N_t) bf16 weight tile  — or (1, KC) when vpu_reduce (Cout == 1)
       b_ref: (1, N_t)  f32
       o_ref: (M, N_t)  bf16 output tile (post bias + optional leaky_relu)"""
    x = x_ref[...]
    if vpu_reduce:
        # conv_post: Cout == 1 -> VPU elementwise multiply + XLU lane reduction
        # instead of an N=1 MXU matmul (1/128-1/256 column occupancy).
        acc = jnp.sum(x.astype(jnp.float32) * w_ref[...].astype(jnp.float32),
                      axis=-1, keepdims=True)
    else:
        acc = jnp.dot(x, w_ref[...], preferred_element_type=jnp.float32)
    y = acc + b_ref[...]
    if neg_slope is not None:
        y = jnp.where(y > 0, y, neg_slope * y)
    o_ref[...] = y.astype(o_ref.dtype)


def conv1d_pallas(x_nlc, w_tiles, bias_t, *, K, stride, pad, neg_slope=None,
                  vpu_reduce=False):
    """Conv1d (grouped convs via tile-local block-diag weights) + bias (+ leaky_relu).

    x_nlc:   (B, T_in, Cin)  activations (cast to bf16 at the kernel boundary)
    w_tiles: (n_ct, K*cin_pt, N_t) bf16    (or (1, 1, K*Cin) for the VPU-reduce conv_post)
    bias_t:  (n_ct, 1, N_t)  f32
    returns  (B, T_out, n_ct*N_t) bf16
    """
    B, T_in, Cin = x_nlc.shape
    if vpu_reduce:
        n_ct, _, KC = w_tiles.shape
        N_t = 1
    else:
        n_ct, KC, N_t = w_tiles.shape
    Cout = n_ct * N_t
    S = stride
    T_pad = T_in + 2 * pad
    assert T_pad >= K, "input too short for this discriminator scale"
    T_out = (T_pad - K) // S + 1
    M = B * T_out
    cin_pt = KC // K
    split_cin = cin_pt != Cin              # grouped layer whose Cin is sliced per Cout tile

    # Wrapper-side im2col: gather the K taps onto the contraction (lane) axis so the kernel
    # is a single large MXU dot per Cout tile (contraction K*cin_pt instead of cin_pt, and
    # no per-tap unaligned sublane window reads inside the kernel).
    xb = jnp.pad(x_nlc.astype(jnp.bfloat16), ((0, 0), (pad, pad), (0, 0)))
    wins = [xb[:, k:k + (T_out - 1) * S + 1:S, :] for k in range(K)]   # K x (B, T_out, Cin)
    cols = jnp.stack(wins, axis=2)                                     # (B, T_out, K, Cin)
    if split_cin:
        # Per-Cout-tile contiguous Cin slices (k-major, channel-minor flattening).
        xcol = cols.reshape(B, T_out, K, n_ct, cin_pt)
        xcol = jnp.transpose(xcol, (3, 0, 1, 2, 4)).reshape(n_ct, M, KC)
        x_idx = lambda j: (j, 0, 0)
    else:
        xcol = cols.reshape(1, M, KC)
        x_idx = lambda j: (0, 0, 0)

    w_block = (None, 1, KC) if vpu_reduce else (None, KC, N_t)

    # Per-layer VMEM budget: double-buffered blocks + slack (fits v7x's 64 MiB with headroom).
    blk_bytes = 2 * (M * KC * 2 + KC * N_t * 2 + N_t * 4 + M * N_t * 2)
    vmem_limit = int(max(4 << 20, min(32 << 20, blk_bytes + (2 << 20))))

    kern = functools.partial(_conv1d_kernel, neg_slope=neg_slope, vpu_reduce=vpu_reduce)
    out = pl.pallas_call(
        kern,
        out_shape=jax.ShapeDtypeStruct((M, Cout), jnp.bfloat16),
        grid_spec=pltpu.PrefetchScalarGridSpec(
            num_scalar_prefetch=0,
            grid=(n_ct,),                          # batch folded into M -> each weight tile DMA'd once
            in_specs=[
                pl.BlockSpec((None, M, KC), x_idx),
                pl.BlockSpec(w_block, lambda j: (j, 0, 0)),
                pl.BlockSpec((None, 1, N_t), lambda j: (j, 0, 0)),
            ],
            out_specs=pl.BlockSpec((M, N_t), lambda j: (0, j)),
        ),
        compiler_params=pltpu.CompilerParams(
            # "parallel" on the Cout-tile axis: a 2-TC split (v7x) lands on disjoint weight
            # tiles, so no weight tile is fetched twice.  No-op on single-TC v5e/v6e.
            dimension_semantics=("parallel",),
            vmem_limit_bytes=vmem_limit,
        ),
    )(xcol, w_tiles, bias_t)
    return out.reshape(B, T_out, Cout)


# ----------------------------------------------------------------------------------
# Parameter preparation
# ----------------------------------------------------------------------------------
def prep_weight_tiles(w, groups, n_ct):
    """PyTorch-layout conv weight (Cout, Cin/groups, K) -> (n_ct, K*cin_pt, N_t) im2col tiles.
    For grouped convs the block-diagonal expansion happens only WITHIN each Cout tile, so the
    weight inflation is groups_per_tile x, not groups x."""
    Cout, Cin_g, K = w.shape
    N_t = Cout // n_ct
    if groups == 1:
        wt = jnp.transpose(w.reshape(n_ct, N_t, Cin_g, K), (0, 3, 2, 1))  # (n_ct, K, Cin, N_t)
        return wt.reshape(n_ct, K * Cin_g, N_t)
    Cout_g = Cout // groups
    gpt = N_t // Cout_g                    # groups per Cout tile
    cin_pt = gpt * Cin_g
    wr = w.reshape(n_ct, gpt, Cout_g, Cin_g, K)
    val = jnp.transpose(wr, (1, 0, 4, 3, 2))          # (gpt, n_ct, K, Cin_g, Cout_g)
    dense = jnp.zeros((n_ct, K, gpt, Cin_g, gpt, Cout_g), w.dtype)
    idx = jnp.arange(gpt)
    dense = dense.at[:, :, idx, :, idx, :].set(val)   # tile-local block diagonal
    return dense.reshape(n_ct, K * cin_pt, N_t)


def prep_post_weight(w):
    """(1, Cin, K) -> (1, 1, K*Cin) lane-major weight vector for the VPU-reduce conv_post."""
    _, Cin, K = w.shape
    return jnp.transpose(w[0], (1, 0)).reshape(1, 1, K * Cin)   # k-major, channel-minor


def init_params(key):
    """Deterministic synthetic params (weight_norm at init == plain weight)."""
    params = []
    for (Cout, Cin, K, stride, pad, groups, n_ct) in LAYER_CFG + [POST_CFG]:
        key, kw, kb = jax.random.split(key, 3)
        fan_in = (Cin // groups) * K
        w = jax.random.normal(kw, (Cout, Cin // groups, K), jnp.float32) / math.sqrt(fan_in)
        b = 0.1 * jax.random.normal(kb, (Cout,), jnp.float32)
        wt = prep_post_weight(w) if Cout == 1 else prep_weight_tiles(w, groups, n_ct)
        params.append({
            "w": w, "b": b,                                     # for the XLA reference
            "wt": wt.astype(jnp.bfloat16),
            "bt": b.reshape(n_ct, 1, Cout // n_ct).astype(jnp.float32),
        })
    return params


# ----------------------------------------------------------------------------------
# Forward passes
# ----------------------------------------------------------------------------------
def discriminator_s_forward(x_ncl, params):
    """Pallas forward.  x_ncl: (B, 1, T) float32 (PyTorch NCL layout).
    Returns (x_flat f32, fmap) where fmap entries are the raw NLC bf16 layer outputs
    (same values as the PyTorch module's fmap; transpose/cast lazily at the loss)."""
    x = jnp.transpose(x_ncl, (0, 2, 1))        # NCL -> NLC once; the chain stays bf16 NLC
    fmap = []
    cfgs = LAYER_CFG + [POST_CFG]
    for i, (cfg, p) in enumerate(zip(cfgs, params)):
        Cout, _, K, stride, pad, _, _ = cfg
        last = i == len(cfgs) - 1
        x = conv1d_pallas(x, p["wt"], p["bt"], K=K, stride=stride, pad=pad,
                          neg_slope=None if last else 0.1, vpu_reduce=(Cout == 1))
        fmap.append(x)                          # NLC bf16, no per-layer relayout round trip
    x_flat = x.astype(jnp.float32).reshape(x.shape[0], -1)   # == torch.flatten(x, 1, -1)
    return x_flat, fmap


def reference_forward(x_ncl, params):
    """Pure-XLA reference (grouped lax.conv).  Quantizes inputs / weights / per-layer
    activations to bf16 exactly like the Pallas path so the comparison isolates kernel math."""
    q = lambda a: a.astype(jnp.bfloat16).astype(jnp.float32)
    cfgs = LAYER_CFG + [POST_CFG]
    x = x_ncl
    fmap = []
    for i, (cfg, p) in enumerate(zip(cfgs, params)):
        _, _, _, stride, pad, groups, _ = cfg
        y = lax.conv_general_dilated(
            q(x), q(p["w"]), window_strides=(stride,), padding=[(pad, pad)],
            dimension_numbers=("NCH", "OIH", "NCH"),
            feature_group_count=groups, precision=lax.Precision.HIGHEST,
        ) + p["b"][None, :, None]
        if i < len(cfgs) - 1:
            y = jnp.where(y > 0, y, 0.1 * y)
        x = q(y)
        fmap.append(x)                          # NCL f32 (bf16-quantized values)
    return x.reshape(x.shape[0], -1), fmap


# ----------------------------------------------------------------------------------
if __name__ == "__main__":
    key = jax.random.PRNGKey(0)
    kx, kp = jax.random.split(key)

    B, T = 2, 256
    x = jax.random.normal(kx, (B, 1, T), jnp.float32)   # (batch, 1 channel, time)
    params = init_params(kp)

    out, fmap = jax.jit(discriminator_s_forward)(x, params)
    out = jax.block_until_ready(out)

    # Correctness check vs. an XLA grouped-conv reference with matched bf16 quantization.
    # Tolerances cover f32 accumulation-order / bf16 rounding-boundary differences between
    # the im2col MXU dots and XLA's conv; real indexing/grouping bugs give O(0.1-1) errors.
    ref_out, ref_fmap = jax.jit(reference_forward)(x, params)
    np.testing.assert_allclose(np.asarray(out), np.asarray(ref_out), rtol=5e-2, atol=5e-3)
    for a, b in zip(fmap, ref_fmap):
        a_ncl = np.asarray(jnp.transpose(a, (0, 2, 1)).astype(jnp.float32))  # NLC bf16 -> NCL f32
        assert a_ncl.shape == b.shape, (a_ncl.shape, b.shape)
        np.testing.assert_allclose(a_ncl, np.asarray(b), rtol=5e-2, atol=5e-3)

    assert out.shape == (B, 1)
    assert len(fmap) == 7
    print("KERNEL_OK")
</pallas_src>

<mosaic_0001>
module attributes {stable_mosaic.version = 11 : i64} {
  func.func @_conv1d_kernel(%arg0: i32, %arg1: memref<1x512x15xbf16, #tpu.memory_space<vmem>>, %arg2: memref<1x15x16xbf16, #tpu.memory_space<vmem>>, %arg3: memref<1x1x16xf32, #tpu.memory_space<vmem>>, %arg4: memref<512x16xbf16, #tpu.memory_space<vmem>>) attributes {dimension_semantics = [#tpu.dimension_semantics<parallel>], iteration_bounds = array<i64: 1>, scalar_prefetch = 0 : i64, scratch_operands = 0 : i64, tpu.core_type = #tpu.core_type<tc>, window_params = [{pipeline_mode = #tpu.pipeline_mode<synchronous>, transform_indices = @transform_0, window_bounds = array<i64: 1, 512, 15>}, {transform_indices = @transform_1, window_bounds = array<i64: 1, 15, 16>}, {transform_indices = @transform_2, window_bounds = array<i64: 1, 1, 16>}, {transform_indices = @transform_3, window_bounds = array<i64: 512, 16>}]} {
    %c0 = arith.constant 0 : index
    %c0_0 = arith.constant 0 : index
    %c0_1 = arith.constant 0 : index
    %0 = vector.load %arg1[%c0, %c0_0, %c0_1] : memref<1x512x15xbf16, #tpu.memory_space<vmem>>, vector<1x512x15xbf16>
    %1 = vector.shape_cast %0 : vector<1x512x15xbf16> to vector<512x15xbf16>
    %c0_2 = arith.constant 0 : index
    %c0_3 = arith.constant 0 : index
    %c0_4 = arith.constant 0 : index
    %2 = vector.load %arg2[%c0_2, %c0_3, %c0_4] : memref<1x15x16xbf16, #tpu.memory_space<vmem>>, vector<1x15x16xbf16>
    %3 = vector.shape_cast %2 : vector<1x15x16xbf16> to vector<15x16xbf16>
    %cst = arith.constant dense<0.000000e+00> : vector<512x16xf32>
    %4 = tpu.matmul %1, %3, %cst {dimension_numbers = #tpu.dot_dimension_numbers<[1], [0], [0], [1], [0, 0, 1, 1], [], []>} : vector<512x15xbf16>, vector<15x16xbf16>, vector<512x16xf32> -> vector<512x16xf32>
    %c0_5 = arith.constant 0 : index
    %c0_6 = arith.constant 0 : index
    %c0_7 = arith.constant 0 : index
    %5 = vector.load %arg3[%c0_5, %c0_6, %c0_7] : memref<1x1x16xf32, #tpu.memory_space<vmem>>, vector<1x1x16xf32>
    %6 = vector.shape_cast %5 : vector<1x1x16xf32> to vector<1x16xf32>
    %7 = vector.broadcast %6 : vector<1x16xf32> to vector<512x16xf32>
    %8 = arith.addf %4, %7 : vector<512x16xf32>
    %cst_8 = arith.constant 0.000000e+00 : f32
    %9 = vector.broadcast %cst_8 : f32 to vector<512x16xf32>
    %10 = arith.cmpf ogt, %8, %9 : vector<512x16xf32>
    %cst_9 = arith.constant 1.000000e-01 : f32
    %11 = vector.broadcast %cst_9 : f32 to vector<512x16xf32>
    %12 = arith.mulf %11, %8 : vector<512x16xf32>
    %13 = arith.select %10, %8, %12 : vector<512x16xi1>, vector<512x16xf32>
    %14 = arith.truncf %13 : vector<512x16xf32> to vector<512x16xbf16>
    %c0_10 = arith.constant 0 : index
    %c0_11 = arith.constant 0 : index
    %15 = vector.load %arg4[%c0_10, %c0_11] : memref<512x16xbf16, #tpu.memory_space<vmem>>, vector<512x16xbf16>
    tpu.vector_store %arg4[%c0_10, %c0_11], %14 {strides = array<i32>} : memref<512x16xbf16, #tpu.memory_space<vmem>>, vector<512x16xbf16>,
    return
  }
  func.func @transform_0(%arg0: i32) -> (i32, i32, i32) {
    %c0_i32 = arith.constant 0 : i32
    %c0_i32_0 = arith.constant 0 : i32
    %c0_i32_1 = arith.constant 0 : i32
    %c0_i32_2 = arith.constant 0 : i32
    return %c0_i32, %c0_i32_0, %c0_i32_1 : i32, i32, i32
  }
  func.func @transform_1(%arg0: i32) -> (i32, i32, i32) {
    %c0_i32 = arith.constant 0 : i32
    %c0_i32_0 = arith.constant 0 : i32
    %c0_i32_1 = arith.constant 0 : i32
    return %arg0, %c0_i32, %c0_i32_0 : i32, i32, i32
  }
  func.func @transform_2(%arg0: i32) -> (i32, i32, i32) {
    %c0_i32 = arith.constant 0 : i32
    %c0_i32_0 = arith.constant 0 : i32
    %c0_i32_1 = arith.constant 0 : i32
    return %arg0, %c0_i32, %c0_i32_0 : i32, i32, i32
  }
  func.func @transform_3(%arg0: i32) -> (i32, i32) {
    %c0_i32 = arith.constant 0 : i32
    %c0_i32_0 = arith.constant 0 : i32
    return %c0_i32, %arg0 : i32, i32
  }
}

module attributes {stable_mosaic.version = 11 : i64} {
  func.func @_conv1d_kernel(%arg0: i32, %arg1: memref<1x128x656xbf16, #tpu.memory_space<vmem>>, %arg2: memref<1x656x64xbf16, #tpu.memory_space<vmem>>, %arg3: memref<1x1x64xf32, #tpu.memory_space<vmem>>, %arg4: memref<128x64xbf16, #tpu.memory_space<vmem>>) attributes {dimension_semantics = [#tpu.dimension_semantics<parallel>], iteration_bounds = array<i64: 1>, scalar_prefetch = 0 : i64, scratch_operands = 0 : i64, tpu.core_type = #tpu.core_type<tc>, window_params = [{pipeline_mode = #tpu.pipeline_mode<synchronous>, transform_indices = @transform_0, window_bounds = array<i64: 1, 128, 656>}, {transform_indices = @transform_1, window_bounds = array<i64: 1, 656, 64>}, {transform_indices = @transform_2, window_bounds = array<i64: 1, 1, 64>}, {transform_indices = @transform_3, window_bounds = array<i64: 128, 64>}]} {
    %c0 = arith.constant 0 : index
    %c0_0 = arith.constant 0 : index
    %c0_1 = arith.constant 0 : index
    %0 = vector.load %arg1[%c0, %c0_0, %c0_1] : memref<1x128x656xbf16, #tpu.memory_space<vmem>>, vector<1x128x656xbf16>
    %1 = vector.shape_cast %0 : vector<1x128x656xbf16> to vector<128x656xbf16>
    %c0_2 = arith.constant 0 : index
    %c0_3 = arith.constant 0 : index
    %c0_4 = arith.constant 0 : index
    %2 = vector.load %arg2[%c0_2, %c0_3, %c0_4] : memref<1x656x64xbf16, #tpu.memory_space<vmem>>, vector<1x656x64xbf16>
    %3 = vector.shape_cast %2 : vector<1x656x64xbf16> to vector<656x64xbf16>
    %cst = arith.constant dense<0.000000e+00> : vector<128x64xf32>
    %4 = tpu.matmul %1, %3, %cst {dimension_numbers = #tpu.dot_dimension_numbers<[1], [0], [0], [1], [0, 0, 1, 1], [], []>} : vector<128x656xbf16>, vector<656x64xbf16>, vector<128x64xf32> -> vector<128x64xf32>
    %c0_5 = arith.constant 0 : index
    %c0_6 = arith.constant 0 : index
    %c0_7 = arith.constant 0 : index
    %5 = vector.load %arg3[%c0_5, %c0_6, %c0_7] : memref<1x1x64xf32, #tpu.memory_space<vmem>>, vector<1x1x64xf32>
    %6 = vector.shape_cast %5 : vector<1x1x64xf32> to vector<1x64xf32>
    %7 = vector.broadcast %6 : vector<1x64xf32> to vector<128x64xf32>
    %8 = arith.addf %4, %7 : vector<128x64xf32>
    %cst_8 = arith.constant 0.000000e+00 : f32
    %9 = vector.broadcast %cst_8 : f32 to vector<128x64xf32>
    %10 = arith.cmpf ogt, %8, %9 : vector<128x64xf32>
    %cst_9 = arith.constant 1.000000e-01 : f32
    %11 = vector.broadcast %cst_9 : f32 to vector<128x64xf32>
    %12 = arith.mulf %11, %8 : vector<128x64xf32>
    %13 = arith.select %10, %8, %12 : vector<128x64xi1>, vector<128x64xf32>
    %14 = arith.truncf %13 : vector<128x64xf32> to vector<128x64xbf16>
    %c0_10 = arith.constant 0 : index
    %c0_11 = arith.constant 0 : index
    %15 = vector.load %arg4[%c0_10, %c0_11] : memref<128x64xbf16, #tpu.memory_space<vmem>>, vector<128x64xbf16>
    tpu.vector_store %arg4[%c0_10, %c0_11], %14 {strides = array<i32>} : memref<128x64xbf16, #tpu.memory_space<vmem>>, vector<128x64xbf16>,
    return
  }
  func.func @transform_0(%arg0: i32) -> (i32, i32, i32) {
    %c0_i32 = arith.constant 0 : i32
    %c0_i32_0 = arith.constant 0 : i32
    %c0_i32_1 = arith.constant 0 : i32
    %c0_i32_2 = arith.constant 0 : i32
    return %c0_i32, %c0_i32_0, %c0_i32_1 : i32, i32, i32
  }
  func.func @transform_1(%arg0: i32) -> (i32, i32, i32) {
    %c0_i32 = arith.constant 0 : i32
    %c0_i32_0 = arith.constant 0 : i32
    %c0_i32_1 = arith.constant 0 : i32
    return %arg0, %c0_i32, %c0_i32_0 : i32, i32, i32
  }
  func.func @transform_2(%arg0: i32) -> (i32, i32, i32) {
    %c0_i32 = arith.constant 0 : i32
    %c0_i32_0 = arith.constant 0 : i32
    %c0_i32_1 = arith.constant 0 : i32
    return %arg0, %c0_i32, %c0_i32_0 : i32, i32, i32
  }
  func.func @transform_3(%arg0: i32) -> (i32, i32) {
    %c0_i32 = arith.constant 0 : i32
    %c0_i32_0 = arith.constant 0 : i32
    return %c0_i32, %arg0 : i32, i32
  }
}

module attributes {stable_mosaic.version = 11 : i64} {
  func.func @_conv1d_kernel(%arg0: i32, %arg1: memref<1x32x1312xbf16, #tpu.memory_space<vmem>>, %arg2: memref<1x1312x128xbf16, #tpu.memory_space<vmem>>, %arg3: memref<1x1x128xf32, #tpu.memory_space<vmem>>, %arg4: memref<32x128xbf16, #tpu.memory_space<vmem>>) attributes {dimension_semantics = [#tpu.dimension_semantics<parallel>], iteration_bounds = array<i64: 2>, scalar_prefetch = 0 : i64, scratch_operands = 0 : i64, tpu.core_type = #tpu.core_type<tc>, window_params = [{transform_indices = @transform_0, window_bounds = array<i64: 1, 32, 1312>}, {transform_indices = @transform_1, window_bounds = array<i64: 1, 1312, 128>}, {transform_indices = @transform_2, window_bounds = array<i64: 1, 1, 128>}, {transform_indices = @transform_3, window_bounds = array<i64: 32, 128>}]} {
    %c0 = arith.constant 0 : index
    %c0_0 = arith.constant 0 : index
    %c0_1 = arith.constant 0 : index
    %0 = vector.load %arg1[%c0, %c0_0, %c0_1] : memref<1x32x1312xbf16, #tpu.memory_space<vmem>>, vector<1x32x1312xbf16>
    %1 = vector.shape_cast %0 : vector<1x32x1312xbf16> to vector<32x1312xbf16>
    %c0_2 = arith.constant 0 : index
    %c0_3 = arith.constant 0 : index
    %c0_4 = arith.constant 0 : index
    %2 = vector.load %arg2[%c0_2, %c0_3, %c0_4] : memref<1x1312x128xbf16, #tpu.memory_space<vmem>>, vector<1x1312x128xbf16>
    %3 = vector.shape_cast %2 : vector<1x1312x128xbf16> to vector<1312x128xbf16>
    %cst = arith.constant dense<0.000000e+00> : vector<32x128xf32>
    %4 = tpu.matmul %1, %3, %cst {dimension_numbers = #tpu.dot_dimension_numbers<[1], [0], [0], [1], [0, 0, 1, 1], [], []>} : vector<32x1312xbf16>, vector<1312x128xbf16>, vector<32x128xf32> -> vector<32x128xf32>
    %c0_5 = arith.constant 0 : index
    %c0_6 = arith.constant 0 : index
    %c0_7 = arith.constant 0 : index
    %5 = vector.load %arg3[%c0_5, %c0_6, %c0_7] : memref<1x1x128xf32, #tpu.memory_space<vmem>>, vector<1x1x128xf32>
    %6 = vector.shape_cast %5 : vector<1x1x128xf32> to vector<1x128xf32>
    %7 = vector.broadcast %6 : vector<1x128xf32> to vector<32x128xf32>
    %8 = arith.addf %4, %7 : vector<32x128xf32>
    %cst_8 = arith.constant 0.000000e+00 : f32
    %9 = vector.broadcast %cst_8 : f32 to vector<32x128xf32>
    %10 = arith.cmpf ogt, %8, %9 : vector<32x128xf32>
    %cst_9 = arith.constant 1.000000e-01 : f32
    %11 = vector.broadcast %cst_9 : f32 to vector<32x128xf32>
    %12 = arith.mulf %11, %8 : vector<32x128xf32>
    %13 = arith.select %10, %8, %12 : vector<32x128xi1>, vector<32x128xf32>
    %14 = arith.truncf %13 : vector<32x128xf32> to vector<32x128xbf16>
    %c0_10 = arith.constant 0 : index
    %c0_11 = arith.constant 0 : index
    %15 = vector.load %arg4[%c0_10, %c0_11] : memref<32x128xbf16, #tpu.memory_space<vmem>>, vector<32x128xbf16>
    tpu.vector_store %arg4[%c0_10, %c0_11], %14 {strides = array<i32>} : memref<32x128xbf16, #tpu.memory_space<vmem>>, vector<32x128xbf16>,
    return
  }
  func.func @transform_0(%arg0: i32) -> (i32, i32, i32) {
    %c0_i32 = arith.constant 0 : i32
    %c0_i32_0 = arith.constant 0 : i32
    %c0_i32_1 = arith.constant 0 : i32
    return %arg0, %c0_i32, %c0_i32_0 : i32, i32, i32
  }
  func.func @transform_1(%arg0: i32) -> (i32, i32, i32) {
    %c0_i32 = arith.constant 0 : i32
    %c0_i32_0 = arith.constant 0 : i32
    %c0_i32_1 = arith.constant 0 : i32
    return %arg0, %c0_i32, %c0_i32_0 : i32, i32, i32
  }
  func.func @transform_2(%arg0: i32) -> (i32, i32, i32) {
    %c0_i32 = arith.constant 0 : i32
    %c0_i32_0 = arith.constant 0 : i32
    %c0_i32_1 = arith.constant 0 : i32
    return %arg0, %c0_i32, %c0_i32_0 : i32, i32, i32
  }
  func.func @transform_3(%arg0: i32) -> (i32, i32) {
    %c0_i32 = arith.constant 0 : i32
    %c0_i32_0 = arith.constant 0 : i32
    return %c0_i32, %arg0 : i32, i32
  }
}

module attributes {stable_mosaic.version = 11 : i64} {
  func.func @_conv1d_kernel(%arg0: i32, %arg1: memref<1x8x1312xbf16, #tpu.memory_space<vmem>>, %arg2: memref<1x1312x128xbf16, #tpu.memory_space<vmem>>, %arg3: memref<1x1x128xf32, #tpu.memory_space<vmem>>, %arg4: memref<8x128xbf16, #tpu.memory_space<vmem>>) attributes {dimension_semantics = [#tpu.dimension_semantics<parallel>], iteration_bounds = array<i64: 8>, scalar_prefetch = 0 : i64, scratch_operands = 0 : i64, tpu.core_type = #tpu.core_type<tc>, window_params = [{transform_indices = @transform_0, window_bounds = array<i64: 1, 8, 1312>}, {transform_indices = @transform_1, window_bounds = array<i64: 1, 1312, 128>}, {transform_indices = @transform_2, window_bounds = array<i64: 1, 1, 128>}, {transform_indices = @transform_3, window_bounds = array<i64: 8, 128>}]} {
    %c0 = arith.constant 0 : index
    %c0_0 = arith.constant 0 : index
    %c0_1 = arith.constant 0 : index
    %0 = vector.load %arg1[%c0, %c0_0, %c0_1] : memref<1x8x1312xbf16, #tpu.memory_space<vmem>>, vector<1x8x1312xbf16>
    %1 = vector.shape_cast %0 : vector<1x8x1312xbf16> to vector<8x1312xbf16>
    %c0_2 = arith.constant 0 : index
    %c0_3 = arith.constant 0 : index
    %c0_4 = arith.constant 0 : index
    %2 = vector.load %arg2[%c0_2, %c0_3, %c0_4] : memref<1x1312x128xbf16, #tpu.memory_space<vmem>>, vector<1x1312x128xbf16>
    %3 = vector.shape_cast %2 : vector<1x1312x128xbf16> to vector<1312x128xbf16>
    %cst = arith.constant dense<0.000000e+00> : vector<8x128xf32>
    %4 = tpu.matmul %1, %3, %cst {dimension_numbers = #tpu.dot_dimension_numbers<[1], [0], [0], [1], [0, 0, 1, 1], [], []>} : vector<8x1312xbf16>, vector<1312x128xbf16>, vector<8x128xf32> -> vector<8x128xf32>
    %c0_5 = arith.constant 0 : index
    %c0_6 = arith.constant 0 : index
    %c0_7 = arith.constant 0 : index
    %5 = vector.load %arg3[%c0_5, %c0_6, %c0_7] : memref<1x1x128xf32, #tpu.memory_space<vmem>>, vector<1x1x128xf32>
    %6 = vector.shape_cast %5 : vector<1x1x128xf32> to vector<1x128xf32>
    %7 = vector.broadcast %6 : vector<1x128xf32> to vector<8x128xf32>
    %8 = arith.addf %4, %7 : vector<8x128xf32>
    %cst_8 = arith.constant 0.000000e+00 : f32
    %9 = vector.broadcast %cst_8 : f32 to vector<8x128xf32>
    %10 = arith.cmpf ogt, %8, %9 : vector<8x128xf32>
    %cst_9 = arith.constant 1.000000e-01 : f32
    %11 = vector.broadcast %cst_9 : f32 to vector<8x128xf32>
    %12 = arith.mulf %11, %8 : vector<8x128xf32>
    %13 = arith.select %10, %8, %12 : vector<8x128xi1>, vector<8x128xf32>
    %14 = arith.truncf %13 : vector<8x128xf32> to vector<8x128xbf16>
    %c0_10 = arith.constant 0 : index
    %c0_11 = arith.constant 0 : index
    %15 = vector.load %arg4[%c0_10, %c0_11] : memref<8x128xbf16, #tpu.memory_space<vmem>>, vector<8x128xbf16>
    tpu.vector_store %arg4[%c0_10, %c0_11], %14 {strides = array<i32>} : memref<8x128xbf16, #tpu.memory_space<vmem>>, vector<8x128xbf16>,
    return
  }
  func.func @transform_0(%arg0: i32) -> (i32, i32, i32) {
    %c0_i32 = arith.constant 0 : i32
    %c0_i32_0 = arith.constant 0 : i32
    %c0_i32_1 = arith.constant 0 : i32
    return %arg0, %c0_i32, %c0_i32_0 : i32, i32, i32
  }
  func.func @transform_1(%arg0: i32) -> (i32, i32, i32) {
    %c0_i32 = arith.constant 0 : i32
    %c0_i32_0 = arith.constant 0 : i32
    %c0_i32_1 = arith.constant 0 : i32
    return %arg0, %c0_i32, %c0_i32_0 : i32, i32, i32
  }
  func.func @transform_2(%arg0: i32) -> (i32, i32, i32) {
    %c0_i32 = arith.constant 0 : i32
    %c0_i32_0 = arith.constant 0 : i32
    %c0_i32_1 = arith.constant 0 : i32
    return %arg0, %c0_i32, %c0_i32_0 : i32, i32, i32
  }
  func.func @transform_3(%arg0: i32) -> (i32, i32) {
    %c0_i32 = arith.constant 0 : i32
    %c0_i32_0 = arith.constant 0 : i32
    return %c0_i32, %arg0 : i32, i32
  }
}

module attributes {stable_mosaic.version = 11 : i64} {
  func.func @_conv1d_kernel(%arg0: i32, %arg1: memref<1x2x5248xbf16, #tpu.memory_space<vmem>>, %arg2: memref<1x5248x128xbf16, #tpu.memory_space<vmem>>, %arg3: memref<1x1x128xf32, #tpu.memory_space<vmem>>, %arg4: memref<2x128xbf16, #tpu.memory_space<vmem>>) attributes {dimension_semantics = [#tpu.dimension_semantics<parallel>], iteration_bounds = array<i64: 8>, scalar_prefetch = 0 : i64, scratch_operands = 0 : i64, tpu.core_type = #tpu.core_type<tc>, window_params = [{transform_indices = @transform_0, window_bounds = array<i64: 1, 2, 5248>}, {transform_indices = @transform_1, window_bounds = array<i64: 1, 5248, 128>}, {transform_indices = @transform_2, window_bounds = array<i64: 1, 1, 128>}, {transform_indices = @transform_3, window_bounds = array<i64: 2, 128>}]} {
    %c0 = arith.constant 0 : index
    %c0_0 = arith.constant 0 : index
    %c0_1 = arith.constant 0 : index
    %0 = vector.load %arg1[%c0, %c0_0, %c0_1] : memref<1x2x5248xbf16, #tpu.memory_space<vmem>>, vector<1x2x5248xbf16>
    %1 = vector.shape_cast %0 : vector<1x2x5248xbf16> to vector<2x5248xbf16>
    %c0_2 = arith.constant 0 : index
    %c0_3 = arith.constant 0 : index
    %c0_4 = arith.constant 0 : index
    %2 = vector.load %arg2[%c0_2, %c0_3, %c0_4] : memref<1x5248x128xbf16, #tpu.memory_space<vmem>>, vector<1x5248x128xbf16>
    %3 = vector.shape_cast %2 : vector<1x5248x128xbf16> to vector<5248x128xbf16>
    %cst = arith.constant dense<0.000000e+00> : vector<2x128xf32>
    %4 = tpu.matmul %1, %3, %cst {dimension_numbers = #tpu.dot_dimension_numbers<[1], [0], [0], [1], [0, 0, 1, 1], [], []>} : vector<2x5248xbf16>, vector<5248x128xbf16>, vector<2x128xf32> -> vector<2x128xf32>
    %c0_5 = arith.constant 0 : index
    %c0_6 = arith.constant 0 : index
    %c0_7 = arith.constant 0 : index
    %5 = vector.load %arg3[%c0_5, %c0_6, %c0_7] : memref<1x1x128xf32, #tpu.memory_space<vmem>>, vector<1x1x128xf32>
    %6 = vector.shape_cast %5 : vector<1x1x128xf32> to vector<1x128xf32>
    %7 = vector.broadcast %6 : vector<1x128xf32> to vector<2x128xf32>
    %8 = arith.addf %4, %7 : vector<2x128xf32>
    %cst_8 = arith.constant 0.000000e+00 : f32
    %9 = vector.broadcast %cst_8 : f32 to vector<2x128xf32>
    %10 = arith.cmpf ogt, %8, %9 : vector<2x128xf32>
    %cst_9 = arith.constant 1.000000e-01 : f32
    %11 = vector.broadcast %cst_9 : f32 to vector<2x128xf32>
    %12 = arith.mulf %11, %8 : vector<2x128xf32>
    %13 = arith.select %10, %8, %12 : vector<2x128xi1>, vector<2x128xf32>
    %14 = arith.truncf %13 : vector<2x128xf32> to vector<2x128xbf16>
    %c0_10 = arith.constant 0 : index
    %c0_11 = arith.constant 0 : index
    %15 = vector.load %arg4[%c0_10, %c0_11] : memref<2x128xbf16, #tpu.memory_space<vmem>>, vector<2x128xbf16>
    tpu.vector_store %arg4[%c0_10, %c0_11], %14 {strides = array<i32>} : memref<2x128xbf16, #tpu.memory_space<vmem>>, vector<2x128xbf16>,
    return
  }
  func.func @transform_0(%arg0: i32) -> (i32, i32, i32) {
    %c0_i32 = arith.constant 0 : i32
    %c0_i32_0 = arith.constant 0 : i32
    %c0_i32_1 = arith.constant 0 : i32
    return %arg0, %c0_i32, %c0_i32_0 : i32, i32, i32
  }
  func.func @transform_1(%arg0: i32) -> (i32, i32, i32) {
    %c0_i32 = arith.constant 0 : i32
    %c0_i32_0 = arith.constant 0 : i32
    %c0_i32_1 = arith.constant 0 : i32
    return %arg0, %c0_i32, %c0_i32_0 : i32, i32, i32
  }
  func.func @transform_2(%arg0: i32) -> (i32, i32, i32) {
    %c0_i32 = arith.constant 0 : i32
    %c0_i32_0 = arith.constant 0 : i32
    %c0_i32_1 = arith.constant 0 : i32
    return %arg0, %c0_i32, %c0_i32_0 : i32, i32, i32
  }
  func.func @transform_3(%arg0: i32) -> (i32, i32) {
    %c0_i32 = arith.constant 0 : i32
    %c0_i32_0 = arith.constant 0 : i32
    return %c0_i32, %arg0 : i32, i32
  }
}

module attributes {stable_mosaic.version = 11 : i64} {
  func.func @_conv1d_kernel(%arg0: i32, %arg1: memref<1x2x5120xbf16, #tpu.memory_space<vmem>>, %arg2: memref<1x5120x256xbf16, #tpu.memory_space<vmem>>, %arg3: memref<1x1x256xf32, #tpu.memory_space<vmem>>, %arg4: memref<2x256xbf16, #tpu.memory_space<vmem>>) attributes {dimension_semantics = [#tpu.dimension_semantics<parallel>], iteration_bounds = array<i64: 4>, scalar_prefetch = 0 : i64, scratch_operands = 0 : i64, tpu.core_type = #tpu.core_type<tc>, window_params = [{pipeline_mode = #tpu.pipeline_mode<synchronous>, transform_indices = @transform_0, window_bounds = array<i64: 1, 2, 5120>}, {transform_indices = @transform_1, window_bounds = array<i64: 1, 5120, 256>}, {transform_indices = @transform_2, window_bounds = array<i64: 1, 1, 256>}, {transform_indices = @transform_3, window_bounds = array<i64: 2, 256>}]} {
    %c0 = arith.constant 0 : index
    %c0_0 = arith.constant 0 : index
    %c0_1 = arith.constant 0 : index
    %0 = vector.load %arg1[%c0, %c0_0, %c0_1] : memref<1x2x5120xbf16, #tpu.memory_space<vmem>>, vector<1x2x5120xbf16>
    %1 = vector.shape_cast %0 : vector<1x2x5120xbf16> to vector<2x5120xbf16>
    %c0_2 = arith.constant 0 : index
    %c0_3 = arith.constant 0 : index
    %c0_4 = arith.constant 0 : index
    %2 = vector.load %arg2[%c0_2, %c0_3, %c0_4] : memref<1x5120x256xbf16, #tpu.memory_space<vmem>>, vector<1x5120x256xbf16>
    %3 = vector.shape_cast %2 : vector<1x5120x256xbf16> to vector<5120x256xbf16>
    %cst = arith.constant dense<0.000000e+00> : vector<2x256xf32>
    %4 = tpu.matmul %1, %3, %cst {dimension_numbers = #tpu.dot_dimension_numbers<[1], [0], [0], [1], [0, 0, 1, 1], [], []>} : vector<2x5120xbf16>, vector<5120x256xbf16>, vector<2x256xf32> -> vector<2x256xf32>
    %c0_5 = arith.constant 0 : index
    %c0_6 = arith.constant 0 : index
    %c0_7 = arith.constant 0 : index
    %5 = vector.load %arg3[%c0_5, %c0_6, %c0_7] : memref<1x1x256xf32, #tpu.memory_space<vmem>>, vector<1x1x256xf32>
    %6 = vector.shape_cast %5 : vector<1x1x256xf32> to vector<1x256xf32>
    %7 = vector.broadcast %6 : vector<1x256xf32> to vector<2x256xf32>
    %8 = arith.addf %4, %7 : vector<2x256xf32>
    %cst_8 = arith.constant 0.000000e+00 : f32
    %9 = vector.broadcast %cst_8 : f32 to vector<2x256xf32>
    %10 = arith.cmpf ogt, %8, %9 : vector<2x256xf32>
    %cst_9 = arith.constant 1.000000e-01 : f32
    %11 = vector.broadcast %cst_9 : f32 to vector<2x256xf32>
    %12 = arith.mulf %11, %8 : vector<2x256xf32>
    %13 = arith.select %10, %8, %12 : vector<2x256xi1>, vector<2x256xf32>
    %14 = arith.truncf %13 : vector<2x256xf32> to vector<2x256xbf16>
    %c0_10 = arith.constant 0 : index
    %c0_11 = arith.constant 0 : index
    %15 = vector.load %arg4[%c0_10, %c0_11] : memref<2x256xbf16, #tpu.memory_space<vmem>>, vector<2x256xbf16>
    tpu.vector_store %arg4[%c0_10, %c0_11], %14 {strides = array<i32>} : memref<2x256xbf16, #tpu.memory_space<vmem>>, vector<2x256xbf16>,
    return
  }
  func.func @transform_0(%arg0: i32) -> (i32, i32, i32) {
    %c0_i32 = arith.constant 0 : i32
    %c0_i32_0 = arith.constant 0 : i32
    %c0_i32_1 = arith.constant 0 : i32
    %c0_i32_2 = arith.constant 0 : i32
    return %c0_i32, %c0_i32_0, %c0_i32_1 : i32, i32, i32
  }
  func.func @transform_1(%arg0: i32) -> (i32, i32, i32) {
    %c0_i32 = arith.constant 0 : i32
    %c0_i32_0 = arith.constant 0 : i32
    %c0_i32_1 = arith.constant 0 : i32
    return %arg0, %c0_i32, %c0_i32_0 : i32, i32, i32
  }
  func.func @transform_2(%arg0: i32) -> (i32, i32, i32) {
    %c0_i32 = arith.constant 0 : i32
    %c0_i32_0 = arith.constant 0 : i32
    %c0_i32_1 = arith.constant 0 : i32
    return %arg0, %c0_i32, %c0_i32_0 : i32, i32, i32
  }
  func.func @transform_3(%arg0: i32) -> (i32, i32) {
    %c0_i32 = arith.constant 0 : i32
    %c0_i32_0 = arith.constant 0 : i32
    return %c0_i32, %arg0 : i32, i32
  }
}

module attributes {stable_mosaic.version = 11 : i64} {
  func.func @_conv1d_kernel(%arg0: i32, %arg1: memref<1x2x3072xbf16, #tpu.memory_space<vmem>>, %arg2: memref<1x1x3072xbf16, #tpu.memory_space<vmem>>, %arg3: memref<1x1x1xf32, #tpu.memory_space<vmem>>, %arg4: memref<2x1xbf16, #tpu.memory_space<vmem>>) attributes {dimension_semantics = [#tpu.dimension_semantics<parallel>], iteration_bounds = array<i64: 1>, scalar_prefetch = 0 : i64, scratch_operands = 0 : i64, tpu.core_type = #tpu.core_type<tc>, window_params = [{pipeline_mode = #tpu.pipeline_mode<synchronous>, transform_indices = @transform_0, window_bounds = array<i64: 1, 2, 3072>}, {transform_indices = @transform_1, window_bounds = array<i64: 1, 1, 3072>}, {transform_indices = @transform_2, window_bounds = array<i64: 1, 1, 1>}, {transform_indices = @transform_3, window_bounds = array<i64: 2, 1>}]} {
    %c0 = arith.constant 0 : index
    %c0_0 = arith.constant 0 : index
    %c0_1 = arith.constant 0 : index
    %0 = vector.load %arg1[%c0, %c0_0, %c0_1] : memref<1x2x3072xbf16, #tpu.memory_space<vmem>>, vector<1x2x3072xbf16>
    %1 = vector.shape_cast %0 : vector<1x2x3072xbf16> to vector<2x3072xbf16>
    %2 = arith.extf %1 : vector<2x3072xbf16> to vector<2x3072xf32>
    %c0_2 = arith.constant 0 : index
    %c0_3 = arith.constant 0 : index
    %c0_4 = arith.constant 0 : index
    %3 = vector.load %arg2[%c0_2, %c0_3, %c0_4] : memref<1x1x3072xbf16, #tpu.memory_space<vmem>>, vector<1x1x3072xbf16>
    %4 = vector.shape_cast %3 : vector<1x1x3072xbf16> to vector<1x3072xbf16>
    %5 = arith.extf %4 : vector<1x3072xbf16> to vector<1x3072xf32>
    %6 = vector.broadcast %5 : vector<1x3072xf32> to vector<2x3072xf32>
    %7 = arith.mulf %2, %6 : vector<2x3072xf32>
    %cst = arith.constant dense<0.000000e+00> : vector<2xf32>
    %8 = vector.multi_reduction <add>, %7, %cst [1] : vector<2x3072xf32> to vector<2xf32>
    %9 = vector.shape_cast %8 : vector<2xf32> to vector<2x1xf32>
    %c0_5 = arith.constant 0 : index
    %c0_6 = arith.constant 0 : index
    %c0_7 = arith.constant 0 : index
    %10 = vector.load %arg3[%c0_5, %c0_6, %c0_7] : memref<1x1x1xf32, #tpu.memory_space<vmem>>, vector<1x1x1xf32>
    %11 = vector.shape_cast %10 : vector<1x1x1xf32> to vector<1x1xf32>
    %12 = vector.broadcast %11 : vector<1x1xf32> to vector<2x1xf32>
    %13 = arith.addf %9, %12 : vector<2x1xf32>
    %14 = arith.truncf %13 : vector<2x1xf32> to vector<2x1xbf16>
    %c0_8 = arith.constant 0 : index
    %c0_9 = arith.constant 0 : index
    %15 = vector.load %arg4[%c0_8, %c0_9] : memref<2x1xbf16, #tpu.memory_space<vmem>>, vector<2x1xbf16>
    tpu.vector_store %arg4[%c0_8, %c0_9], %14 {strides = array<i32>} : memref<2x1xbf16, #tpu.memory_space<vmem>>, vector<2x1xbf16>,
    return
  }
  func.func @transform_0(%arg0: i32) -> (i32, i32, i32) {
    %c0_i32 = arith.constant 0 : i32
    %c0_i32_0 = arith.constant 0 : i32
    %c0_i32_1 = arith.constant 0 : i32
    %c0_i32_2 = arith.constant 0 : i32
    return %c0_i32, %c0_i32_0, %c0_i32_1 : i32, i32, i32
  }
  func.func @transform_1(%arg0: i32) -> (i32, i32, i32) {
    %c0_i32 = arith.constant 0 : i32
    %c0_i32_0 = arith.constant 0 : i32
    %c0_i32_1 = arith.constant 0 : i32
    return %arg0, %c0_i32, %c0_i32_0 : i32, i32, i32
  }
  func.func @transform_2(%arg0: i32) -> (i32, i32, i32) {
    %c0_i32 = arith.constant 0 : i32
    %c0_i32_0 = arith.constant 0 : i32
    %c0_i32_1 = arith.constant 0 : i32
    return %arg0, %c0_i32, %c0_i32_0 : i32, i32, i32
  }
  func.func @transform_3(%arg0: i32) -> (i32, i32) {
    %c0_i32 = arith.constant 0 : i32
    %c0_i32_0 = arith.constant 0 : i32
    return %c0_i32, %arg0 : i32, i32
  }
}

</mosaic_0001>

<bundles_post_ra>
// kernel: discriminator_s_forward.7
= control target key start
LH: loop header
LB: loop body
LE: loop exit
PB: predicated region body
PF: predicated region fallthrough
CT: control target
= control target key end

     0   :  { %8 = vsyncpa [#allocation3], 0  ;;  %s2150_s0 = inlined_call_operand.vmem [shape: bf16[1,512,15], index: 0, kind: input, shape index: {}]   ;;  %s2151_s1 = inlined_call_operand.hbm [shape: bf16[1,15,16], index: 1, kind: input, shape index: {}]   ;;  %s2152_s2 = inlined_call_operand.hbm [shape: f32[1,1,16], index: 2, kind: input, shape index: {}]   ;;  %s2153_s3 = inlined_call_operand.vmem [shape: bf16[512,16], index: 3, kind: output, shape index: {}]  }
   0x1   :  { %9 = vsyncpa [#allocation5], 0  ;;  %s1572_s12 = smov [#allocation2]   ;;  %s1524_s16 = scalar_lea.hbm %s2151_s1, 128 }
   0x2   :  { %s17_s13 = sshll.u32 %s1572_s12, 4  ;;  %p1525_p0 = scmp.ne.s32.totalorder %s2151_s1, %s1524_s16  ;;  %s18_s13 = int_to_ptr.vmem [resolvable:$true] %s17_s13 }
   0x3   :  { %p1528_p1 = scmp.lt.u32.totalorder %s1524_s16, %s2151_s1 }
   0x5   :  { %p1530_p2 = pnand %p1528_p1, %p1525_p0 }
   0x7   :  { %1533 = shalt.err (!%p1530_p2)
}
   0x8   :  { %s1534_s21 = scalar_lea.vmem %s18_s13, 128  ;;  %p1539_p4 = scmp.lt.s32.totalorder %s18_s13, %s18_s13 }
   0x9   :  { %p1535_p3 = scmp.ne.s32.totalorder %s18_s13, %s1534_s21  ;;  %p1540_p5 = scmp.lt.s32.totalorder %s1534_s21, %s1534_s21 }
   0xb   :  { %p1541_p6 = por %p1540_p5, %p1539_p4 }
   0xd   :  { %p1542_p7 = pnand %p1541_p6, %p1535_p3 }
   0xf   :  { %1545 = shalt.err (!%p1542_p7)
}
  0x10   :  { %s1573_s22 = smov 64   ;;  %s1574_s23 = smov 4  }
  0x11   :  { %23 = dma.hbm_to_vmem [thread:$0]  %s2151_s1, 128, %s18_s13, [#allocation3], %s1573_s22, %s1573_s22, %s1574_s23  }
  0x12   :  { %s1575_s26 = smov [#allocation4]   ;;  %s1546_s30 = scalar_lea.hbm %s2152_s2, 16 }
  0x13   :  { %s30_s27 = sshll.u32 %s1575_s26, 4  ;;  %p1547_p8 = scmp.ne.s32.totalorder %s2152_s2, %s1546_s30  ;;  %s31_s27 = int_to_ptr.vmem [resolvable:$true] %s30_s27 }
  0x14   :  { %p1550_p9 = scmp.lt.u32.totalorder %s1546_s30, %s2152_s2 }
  0x16   :  { %p1552_p10 = pnand %p1550_p9, %p1547_p8 }
  0x18   :  { %1555 = shalt.err (!%p1552_p10)
}
  0x19   :  { %s1556_s8 = scalar_lea.vmem %s31_s27, 16  ;;  %s1560_s1 = scalar_lea.vmem %s31_s27, 32 }
  0x1a   :  { %p1557_p11 = scmp.ne.s32.totalorder %s31_s27, %s1556_s8  ;;  %p1561_p12 = scmp.lt.s32.totalorder %s31_s27, %s31_s27 }
  0x1b   :  { %p1562_p13 = scmp.lt.s32.totalorder %s1560_s1, %s1556_s8 }
  0x1d   :  { %p1563_p0 = por %p1562_p13, %p1561_p12 }
  0x1f   :  { %p1564_p1 = pnand %p1563_p0, %p1557_p11 }
  0x21   :  { %1567 = shalt.err (!%p1564_p1)
}
  0x22   :  { %33 = dma.hbm_to_vmem [thread:$0]  %s2152_s2, 16, %s31_s27, [#allocation5]  }
  0x23   :  { %1568 = dma.done.wait [#allocation3], 128  }
  0x24   :  { %1569 = vsyncadd [#allocation3], 4294967168 }
  0x25   :  { %1570 = dma.done.wait [#allocation5], 16  }
  0x26   :  { %1571 = vsyncadd [#allocation5], 4294967280  ;;  %vm376_vm0 = vcmask 1046528   ;;  %vm377_vm1 = vcmask 1047552   ;;  %v1576_v0 = vmov 65535   ;;  %v1491_v3 = vld [vmem:[#allocation2] sm:$0xff]  }
  0x27   :  { %v378_v1 = vsel %vm376_vm0, 4294967295, %v1576_v0  ;;  %vm279_vm2 = vcmask 121856   ;;  %v1492_v4 = vld [vmem:[%s2150_s0] sm:$0xff]   ;;  %v1494_v7 = vld [vmem:[%s2150_s0 + $0x8] sm:$0xff]   ;;  %v1496_v9 = vld [vmem:[%s2150_s0 + $0x10] sm:$0xff]   ;;  %vm1120_vm3 = vcmask 125952  }
  0x28   :  { %v379_v2 = vsel %vm377_vm1, %v378_v1, 0  ;;  %v1493_v6 = vld [vmem:[%s2150_s0 + $0x80] sm:$0xff]   ;;  %1420 = vmatprep.mubr.msk.bf16.mxu0 %vm279_vm2, %v1492_v4  ;;  %v1495_v8 = vld [vmem:[%s2150_s0 + $0x88] sm:$0xff]   ;;  %v1497_v10 = vld [vmem:[%s2150_s0 + $0x90] sm:$0xff]  }
  0x29   :  { %v381_v5 = vand.u32 %v1491_v3, %v379_v2  ;;  %1452 = vmatprep.mubr.msk.bf16.mxu1 %vm279_vm2, %v1493_v6  ;;  %v1498_v11 = vld [vmem:[%s2150_s0 + $0x18] sm:$0xff]   ;;  %v1500_v13 = vld [vmem:[%s2150_s0 + $0x20] sm:$0xff]   ;;  %v1502_v15 = vld [vmem:[%s2150_s0 + $0x28] sm:$0xff]  }
  0x2a   :  { %v1499_v12 = vld [vmem:[%s2150_s0 + $0x98] sm:$0xff]   ;;  %v1501_v14 = vld [vmem:[%s2150_s0 + $0xa0] sm:$0xff]   ;;  %v1503_v16 = vld [vmem:[%s2150_s0 + $0xa8] sm:$0xff]  }
  0x2b   :  { %1418 = vmatprep.subr.bf16.mxu0 %v381_v5  ;;  %1484 = vmatprep.subr.bf16.mxu1 %v381_v5  ;;  %v1504_v17 = vld [vmem:[%s2150_s0 + $0x30] sm:$0xff]   ;;  %v1506_v19 = vld [vmem:[%s2150_s0 + $0x38] sm:$0xff]   ;;  %v1508_v21 = vld [vmem:[%s2150_s0 + $0x40] sm:$0xff]  }
  0x2c   :  { %1419 = vmatpush3.bf16.msra.mxu0 %v381_v5  ;;  %1485 = vmatpush3.bf16.msra.mxu1 %v381_v5  ;;  %v1505_v18 = vld [vmem:[%s2150_s0 + $0xb0] sm:$0xff]   ;;  %v1507_v20 = vld [vmem:[%s2150_s0 + $0xb8] sm:$0xff]   ;;  %v1509_v22 = vld [vmem:[%s2150_s0 + $0xc0] sm:$0xff]  }
  0x2d   :  { %v1510_v23 = vld [vmem:[%s2150_s0 + $0x48] sm:$0xff]   ;;  %v1512_v25 = vld [vmem:[%s2150_s0 + $0x50] sm:$0xff]   ;;  %v1514_v27 = vld [vmem:[%s2150_s0 + $0x58] sm:$0xff]  }
  0x2e   :  { %v1511_v24 = vld [vmem:[%s2150_s0 + $0xc8] sm:$0xff]   ;;  %v1513_v26 = vld [vmem:[%s2150_s0 + $0xd0] sm:$0xff]   ;;  %v1515_v28 = vld [vmem:[%s2150_s0 + $0xd8] sm:$0xff]  }
  0x2f   :  { %1421 = vmatmul.mubr.msk.bf16.vlgmr.msra.gmra.mrb[0].mxu0 %vm279_vm2, %v1494_v7  ;;  %1453 = vmatmul.mubr.msk.bf16.vlgmr.msra.gmra.mrb[0].mxu1 %vm279_vm2, %v1495_v8  ;;  %v1516_v29 = vld [vmem:[%s2150_s0 + $0x60] sm:$0xff]   ;;  %v1518_v31 = vld [vmem:[%s2150_s0 + $0x68] sm:$0xff]   ;;  %v1520_v33 = vld [vmem:[%s2150_s0 + $0x70] sm:$0xff]  }
  0x30   :  { %1424 = vmatprep.mubr.msk.bf16.mxu0 %vm279_vm2, %v1496_v9  ;;  %1456 = vmatprep.mubr.msk.bf16.mxu1 %vm279_vm2, %v1497_v10  ;;  %v1517_v30 = vld [vmem:[%s2150_s0 + $0xe0] sm:$0xff]   ;;  %v1519_v32 = vld [vmem:[%s2150_s0 + $0xe8] sm:$0xff]   ;;  %v1521_v34 = vld [vmem:[%s2150_s0 + $0xf0] sm:$0xff]  }
  0x31   :  { %v1522_v35 = vld [vmem:[%s2150_s0 + $0x78] sm:$0xff]   ;;  %v1749_v37 = vld [vmem:[#allocation4] ss:$0 sm:$0xff] }
  0x32   :  { %v1523_v36 = vld [vmem:[%s2150_s0 + $0xf8] sm:$0xff]  }
  0x37   :  { %1425 = vmatmul.mubr.msk.bf16.gmra.mrb[4].mxu0 %vm279_vm2, %v1498_v11  ;;  %1457 = vmatmul.mubr.msk.bf16.gmra.mrb[4].mxu1 %vm279_vm2, %v1499_v12 }
  0x38   :  { %1428 = vmatprep.mubr.msk.bf16.mxu0 %vm279_vm2, %v1500_v13  ;;  %1460 = vmatprep.mubr.msk.bf16.mxu1 %vm279_vm2, %v1501_v14 }
  0x3f   :  { %1429 = vmatmul.mubr.msk.bf16.gmra.mrb[8].mxu0 %vm279_vm2, %v1502_v15  ;;  %1461 = vmatmul.mubr.msk.bf16.gmra.mrb[8].mxu1 %vm279_vm2, %v1503_v16 }
  0x40   :  { %1432 = vmatprep.mubr.msk.bf16.mxu0 %vm279_vm2, %v1504_v17  ;;  %1464 = vmatprep.mubr.msk.bf16.mxu1 %vm279_vm2, %v1505_v18 }
  0x47   :  { %1433 = vmatmul.mubr.msk.bf16.gmra.mrb[12].mxu0 %vm279_vm2, %v1506_v19  ;;  %1465 = vmatmul.mubr.msk.bf16.gmra.mrb[12].mxu1 %vm279_vm2, %v1507_v20 }
  0x48   :  { %1436 = vmatprep.mubr.msk.bf16.mxu0 %vm279_vm2, %v1508_v21  ;;  %1468 = vmatprep.mubr.msk.bf16.mxu1 %vm279_vm2, %v1509_v22 }
  0x4f   :  { %1437 = vmatmul.mubr.msk.bf16.gmra.mrb[16].mxu0 %vm279_vm2, %v1510_v23  ;;  %1469 = vmatmul.mubr.msk.bf16.gmra.mrb[16].mxu1 %vm279_vm2, %v1511_v24 }
  0x50   :  { %1440 = vmatprep.mubr.msk.bf16.mxu0 %vm279_vm2, %v1512_v25  ;;  %1472 = vmatprep.mubr.msk.bf16.mxu1 %vm279_vm2, %v1513_v26 }
  0x57   :  { %1441 = vmatmul.mubr.msk.bf16.gmra.mrb[20].mxu0 %vm279_vm2, %v1514_v27  ;;  %1473 = vmatmul.mubr.msk.bf16.gmra.mrb[20].mxu1 %vm279_vm2, %v1515_v28 }
  0x58   :  { %1444 = vmatprep.mubr.msk.bf16.mxu0 %vm279_vm2, %v1516_v29  ;;  %1476 = vmatprep.mubr.msk.bf16.mxu1 %vm279_vm2, %v1517_v30 }
  0x5f   :  { %1445 = vmatmul.mubr.msk.bf16.gmra.mrb[24].mxu0 %vm279_vm2, %v1518_v31  ;;  %1477 = vmatmul.mubr.msk.bf16.gmra.mrb[24].mxu1 %vm279_vm2, %v1519_v32 }
  0x60   :  { %1448 = vmatprep.mubr.msk.bf16.mxu0 %vm279_vm2, %v1520_v33  ;;  %1480 = vmatprep.mubr.msk.bf16.mxu1 %vm279_vm2, %v1521_v34 }
  0x67   :  { %1449 = vmatmul.mubr.msk.bf16.gmra.mrb[28].mxu0 %vm279_vm2, %v1522_v35  ;;  %1481 = vmatmul.mubr.msk.bf16.gmra.mrb[28].mxu1 %vm279_vm2, %v1523_v36 }
 0x102   :  { %v1422_v38 = vpop.f32.mrb[0].mxu0  ;;  %v1454_v39 = vpop.f32.mrb[0].mxu1 }
 0x103   :  { %v426_v40 = vadd.f32 %v1422_v38, %v1749_v37  ;;  %v554_v41 = vadd.f32 %v1454_v39, %v1749_v37  ;;  %v417_v42 = vpop.f32.mrb[1].mxu0  ;;  %v545_v43 = vpop.f32.mrb[1].mxu1 }
 0x104   :  { %v418_v44 = vadd.f32 %v1749_v37, %v417_v42  ;;  %v546_v45 = vadd.f32 %v1749_v37, %v545_v43  ;;  %v1423_v46 = vpop.f32.mrb[2].mxu0  ;;  %v1455_v47 = vpop.f32.mrb[2].mxu1 }
 0x105   :  { %vm674_vm4 = vcmp.gt.f32.partialorder %v426_v40, 0.0  ;;  %v738_v48 = vmul.f32 0.1, %v426_v40  ;;  %vm706_vm5 = vcmp.gt.f32.partialorder %v554_v41, 0.0  ;;  %v770_v49 = vmul.f32 0.1, %v554_v41 }
 0x106   :  { %vm672_vm6 = vcmp.gt.f32.partialorder %v418_v44, 0.0  ;;  %v736_v50 = vmul.f32 0.1, %v418_v44  ;;  %vm704_vm7 = vcmp.gt.f32.partialorder %v546_v45, 0.0  ;;  %v768_v51 = vmul.f32 0.1, %v546_v45 }
 0x107   :  { %v802_v52 = vsel %vm674_vm4, %v426_v40, %v738_v48  ;;  %v834_v53 = vsel %vm706_vm5, %v554_v41, %v770_v49  ;;  %v429_v54 = vadd.f32 %v1423_v46, %v1749_v37  ;;  %v557_v55 = vadd.f32 %v1455_v47, %v1749_v37  ;;  %v420_v56 = vpop.f32.mrb[3].mxu0  ;;  %v548_v57 = vpop.f32.mrb[3].mxu1 }
 0x108   :  { %v1323_v58 = vpack.c.bf16 %v802_v52, %v802_v52  ;;  %v1355_v59 = vpack.c.bf16 %v834_v53, %v834_v53  ;;  %v800_v60 = vsel %vm672_vm6, %v418_v44, %v736_v50  ;;  %v832_v61 = vsel %vm704_vm7, %v546_v45, %v768_v51 }
 0x109   :  { %v1321_v62 = vpack.c.bf16 %v800_v60, %v800_v60  ;;  %v1353_v63 = vpack.c.bf16 %v832_v61, %v832_v61  ;;  %vm675_vm8 = vcmp.gt.f32.partialorder %v429_v54, 0.0  ;;  %v739_v0 = vmul.f32 0.1, %v429_v54 }
 0x10a   :  { %1123 = vst.msk [vmem:[%s2153_s3 + $0x8] sm:$0xf] %vm1120_vm3, %v1323_v58  ;;  %1155 = vst.msk [vmem:[%s2153_s3 + $0x88] sm:$0xf] %vm1120_vm3, %v1355_v59  ;;  %vm707_vm9 = vcmp.gt.f32.partialorder %v557_v55, 0.0  ;;  %v421_v2 = vadd.f32 %v1749_v37, %v420_v56  ;;  %v549_v3 = vadd.f32 %v1749_v37, %v548_v57  ;;  %v1426_v4 = vpop.f32.mrb[4].mxu0 }
 0x10b   :  { %v771_v1 = vmul.f32 0.1, %v557_v55  ;;  %v1458_v5 = vpop.f32.mrb[4].mxu1  ;;  %1121 = vst.msk [vmem:[%s2153_s3] sm:$0xf] %vm1120_vm3, %v1321_v62  ;;  %v803_v6 = vsel %vm675_vm8, %v429_v54, %v739_v0  ;;  %v442_v7 = vadd.f32 %v1426_v4, %v1749_v37  ;;  %v433_v9 = vpop.f32.mrb[5].mxu0 }
 0x10c   :  { %1153 = vst.msk [vmem:[%s2153_s3 + $0x80] sm:$0xf] %vm1120_vm3, %v1353_v63  ;;  %v570_v8 = vadd.f32 %v1458_v5, %v1749_v37  ;;  %v561_v10 = vpop.f32.mrb[5].mxu1  ;;  %v1324_v11 = vpack.c.bf16 %v803_v6, %v803_v6  ;;  %vm673_vm10 = vcmp.gt.f32.partialorder %v421_v2, 0.0  ;;  %v737_v13 = vmul.f32 0.1, %v421_v2 }
 0x10d   :  { %v835_v12 = vsel %vm707_vm9, %v557_v55, %v771_v1  ;;  %v1427_v14 = vpop.f32.mrb[6].mxu0  ;;  %v1459_v15 = vpop.f32.mrb[6].mxu1  ;;  %vm705_vm11 = vcmp.gt.f32.partialorder %v549_v3, 0.0  ;;  %v769_v17 = vmul.f32 0.1, %v549_v3  ;;  %vm678_vm12 = vcmp.gt.f32.partialorder %v442_v7, 0.0 }
 0x10e   :  { %v1356_v16 = vpack.c.bf16 %v835_v12, %v835_v12  ;;  %v436_v18 = vpop.f32.mrb[7].mxu0  ;;  %v564_v19 = vpop.f32.mrb[7].mxu1  ;;  %1124 = vst.msk [vmem:[%s2153_s3 + $0xc] sm:$0xf] %vm1120_vm3, %v1324_v11  ;;  %v801_v20 = vsel %vm673_vm10, %v421_v2, %v737_v13  ;;  %v742_v21 = vmul.f32 0.1, %v442_v7  ;;  %v434_v25 = vadd.f32 %v1749_v37, %v433_v9 }
 0x10f   :  { %vm710_vm13 = vcmp.gt.f32.partialorder %v570_v8, 0.0  ;;  %v774_v22 = vmul.f32 0.1, %v570_v8  ;;  %v1322_v23 = vpack.c.bf16 %v801_v20, %v801_v20  ;;  %v833_v24 = vsel %vm705_vm11, %v549_v3, %v769_v17 }
 0x110   :  { %1156 = vst.msk [vmem:[%s2153_s3 + $0x8c] sm:$0xf] %vm1120_vm3, %v1356_v16  ;;  %v562_v26 = vadd.f32 %v1749_v37, %v561_v10  ;;  %v1354_v27 = vpack.c.bf16 %v833_v24, %v833_v24  ;;  %v806_v28 = vsel %vm678_vm12, %v442_v7, %v742_v21  ;;  %v445_v30 = vadd.f32 %v1427_v14, %v1749_v37 }
 0x111   :  { %v838_v29 = vsel %vm710_vm13, %v570_v8, %v774_v22  ;;  %1122 = vst.msk [vmem:[%s2153_s3 + $0x4] sm:$0xf] %vm1120_vm3, %v1322_v23  ;;  %v1327_v31 = vpack.c.bf16 %v806_v28, %v806_v28  ;;  %vm676_vm14 = vcmp.gt.f32.partialorder %v434_v25, 0.0  ;;  %v740_v33 = vmul.f32 0.1, %v434_v25 }
 0x112   :  { %v1359_v32 = vpack.c.bf16 %v838_v29, %v838_v29  ;;  %1154 = vst.msk [vmem:[%s2153_s3 + $0x84] sm:$0xf] %vm1120_vm3, %v1354_v27  ;;  %vm708_vm15 = vcmp.gt.f32.partialorder %v562_v26, 0.0  ;;  %v772_v34 = vmul.f32 0.1, %v562_v26  ;;  %vm679_vm0 = vcmp.gt.f32.partialorder %v445_v30, 0.0 }
 0x113   :  { %v743_v35 = vmul.f32 0.1, %v445_v30  ;;  %1127 = vst.msk [vmem:[%s2153_s3 + $0x18] sm:$0xf] %vm1120_vm3, %v1327_v31  ;;  %v804_v36 = vsel %vm676_vm14, %v434_v25, %v740_v33  ;;  %v573_v38 = vadd.f32 %v1459_v15, %v1749_v37  ;;  %v437_v39 = vadd.f32 %v1749_v37, %v436_v18  ;;  %v1430_v41 = vpop.f32.mrb[8].mxu0  ;;  %v1462_v42 = vpop.f32.mrb[8].mxu1 }
 0x114   :  { %1159 = vst.msk [vmem:[%s2153_s3 + $0x98] sm:$0xf] %vm1120_vm3, %v1359_v32  ;;  %v565_v40 = vadd.f32 %v1749_v37, %v564_v19  ;;  %v1325_v43 = vpack.c.bf16 %v804_v36, %v804_v36  ;;  %v836_v44 = vsel %vm708_vm15, %v562_v26, %v772_v34  ;;  %v458_v46 = vadd.f32 %v1430_v41, %v1749_v37  ;;  %v449_v47 = vpop.f32.mrb[9].mxu0  ;;  %v577_v48 = vpop.f32.mrb[9].mxu1 }
 0x115   :  { %v807_v45 = vsel %vm679_vm0, %v445_v30, %v743_v35  ;;  %v1357_v49 = vpack.c.bf16 %v836_v44, %v836_v44  ;;  %vm711_vm1 = vcmp.gt.f32.partialorder %v573_v38, 0.0  ;;  %v775_v51 = vmul.f32 0.1, %v573_v38  ;;  %v1431_v52 = vpop.f32.mrb[10].mxu0  ;;  %v1463_v53 = vpop.f32.mrb[10].mxu1 }
 0x116   :  { %v1328_v50 = vpack.c.bf16 %v807_v45, %v807_v45  ;;  %1125 = vst.msk [vmem:[%s2153_s3 + $0x10] sm:$0xf] %vm1120_vm3, %v1325_v43  ;;  %vm677_vm2 = vcmp.gt.f32.partialorder %v437_v39, 0.0  ;;  %v741_v54 = vmul.f32 0.1, %v437_v39  ;;  %vm709_vm4 = vcmp.gt.f32.partialorder %v565_v40, 0.0 }
 0x117   :  { %v773_v55 = vmul.f32 0.1, %v565_v40  ;;  %1157 = vst.msk [vmem:[%s2153_s3 + $0x90] sm:$0xf] %vm1120_vm3, %v1357_v49  ;;  %v839_v56 = vsel %vm711_vm1, %v573_v38, %v775_v51  ;;  %vm682_vm5 = vcmp.gt.f32.partialorder %v458_v46, 0.0  ;;  %v586_v58 = vadd.f32 %v1462_v42, %v1749_v37  ;;  %v452_v59 = vpop.f32.mrb[11].mxu0 }
 0x118   :  { %1128 = vst.msk [vmem:[%s2153_s3 + $0x1c] sm:$0xf] %vm1120_vm3, %v1328_v50  ;;  %v746_v57 = vmul.f32 0.1, %v458_v46  ;;  %v580_v60 = vpop.f32.mrb[11].mxu1  ;;  %v1360_v61 = vpack.c.bf16 %v839_v56, %v839_v56  ;;  %v805_v62 = vsel %vm677_vm2, %v437_v39, %v741_v54  ;;  %v450_v0 = vadd.f32 %v1749_v37, %v449_v47 }
 0x119   :  { %v837_v63 = vsel %vm709_vm4, %v565_v40, %v773_v55  ;;  %v1326_v1 = vpack.c.bf16 %v805_v62, %v805_v62  ;;  %vm714_vm6 = vcmp.gt.f32.partialorder %v586_v58, 0.0  ;;  %v778_v5 = vmul.f32 0.1, %v586_v58 }
 0x11a   :  { %v1358_v2 = vpack.c.bf16 %v837_v63, %v837_v63  ;;  %v810_v3 = vsel %vm682_vm5, %v458_v46, %v746_v57  ;;  %1160 = vst.msk [vmem:[%s2153_s3 + $0x9c] sm:$0xf] %vm1120_vm3, %v1360_v61  ;;  %vm680_vm7 = vcmp.gt.f32.partialorder %v450_v0, 0.0  ;;  %v744_v6 = vmul.f32 0.1, %v450_v0  ;;  %v1434_v7 = vpop.f32.mrb[12].mxu0 }
 0x11b   :  { %v1331_v4 = vpack.c.bf16 %v810_v3, %v810_v3  ;;  %1126 = vst.msk [vmem:[%s2153_s3 + $0x14] sm:$0xf] %vm1120_vm3, %v1326_v1  ;;  %v578_v8 = vadd.f32 %v1749_v37, %v577_v48  ;;  %v461_v9 = vadd.f32 %v1431_v52, %v1749_v37  ;;  %v589_v10 = vadd.f32 %v1463_v53, %v1749_v37  ;;  %v1466_v12 = vpop.f32.mrb[12].mxu1  ;;  %v465_v13 = vpop.f32.mrb[13].mxu0 }
 0x11c   :  { %1158 = vst.msk [vmem:[%s2153_s3 + $0x94] sm:$0xf] %vm1120_vm3, %v1358_v2  ;;  %v453_v11 = vadd.f32 %v1749_v37, %v452_v59  ;;  %v842_v14 = vsel %vm714_vm6, %v586_v58, %v778_v5  ;;  %v808_v15 = vsel %vm680_vm7, %v450_v0, %v744_v6  ;;  %v581_v16 = vadd.f32 %v1749_v37, %v580_v60  ;;  %v593_v18 = vpop.f32.mrb[13].mxu1  ;;  %v1435_v19 = vpop.f32.mrb[14].mxu0 }
 0x11d   :  { %1131 = vst.msk [vmem:[%s2153_s3 + $0x28] sm:$0xf] %vm1120_vm3, %v1331_v4  ;;  %v474_v17 = vadd.f32 %v1434_v7, %v1749_v37  ;;  %v1363_v20 = vpack.c.bf16 %v842_v14, %v842_v14  ;;  %v1329_v21 = vpack.c.bf16 %v808_v15, %v808_v15  ;;  %vm712_vm8 = vcmp.gt.f32.partialorder %v578_v8, 0.0  ;;  %v1467_v23 = vpop.f32.mrb[14].mxu1  ;;  %v468_v24 = vpop.f32.mrb[15].mxu0 }
 0x11e   :  { %v776_v22 = vmul.f32 0.1, %v578_v8  ;;  %vm683_vm9 = vcmp.gt.f32.partialorder %v461_v9, 0.0  ;;  %v747_v25 = vmul.f32 0.1, %v461_v9  ;;  %vm715_vm10 = vcmp.gt.f32.partialorder %v589_v10, 0.0 }
 0x11f   :  { %v779_v26 = vmul.f32 0.1, %v589_v10  ;;  %1163 = vst.msk [vmem:[%s2153_s3 + $0xa8] sm:$0xf] %vm1120_vm3, %v1363_v20  ;;  %1129 = vst.msk [vmem:[%s2153_s3 + $0x20] sm:$0xf] %vm1120_vm3, %v1329_v21  ;;  %v602_v41 = vadd.f32 %v1466_v12, %v1749_v37  ;;  %v466_v45 = vadd.f32 %v1749_v37, %v465_v13  ;;  %v594_v46 = vadd.f32 %v1749_v37, %v593_v18 }
 0x120   :  { %v840_v27 = vsel %vm712_vm8, %v578_v8, %v776_v22  ;;  %vm681_vm11 = vcmp.gt.f32.partialorder %v453_v11, 0.0  ;;  %v745_v28 = vmul.f32 0.1, %v453_v11  ;;  %vm713_vm12 = vcmp.gt.f32.partialorder %v581_v16, 0.0  ;;  %v596_v29 = vpop.f32.mrb[15].mxu1 }
 0x121   :  { %v1361_v30 = vpack.c.bf16 %v840_v27, %v840_v27  ;;  %v811_v31 = vsel %vm683_vm9, %v461_v9, %v747_v25  ;;  %v843_v32 = vsel %vm715_vm10, %v589_v10, %v779_v26  ;;  %v777_v33 = vmul.f32 0.1, %v581_v16 }
 0x122   :  { %v1332_v34 = vpack.c.bf16 %v811_v31, %v811_v31  ;;  %v1364_v35 = vpack.c.bf16 %v843_v32, %v843_v32  ;;  %v809_v36 = vsel %vm681_vm11, %v453_v11, %v745_v28  ;;  %vm686_vm13 = vcmp.gt.f32.partialorder %v474_v17, 0.0  ;;  %v1438_v42 = vpop.f32.mrb[16].mxu0  ;;  %v1470_v43 = vpop.f32.mrb[16].mxu1 }
 0x123   :  { %1161 = vst.msk [vmem:[%s2153_s3 + $0xa0] sm:$0xf] %vm1120_vm3, %v1361_v30  ;;  %v1330_v38 = vpack.c.bf16 %v809_v36, %v809_v36  ;;  %v841_v39 = vsel %vm713_vm12, %v581_v16, %v777_v33  ;;  %v750_v40 = vmul.f32 0.1, %v474_v17  ;;  %v477_v47 = vadd.f32 %v1435_v19, %v1749_v37  ;;  %v481_v48 = vpop.f32.mrb[17].mxu0  ;;  %v609_v49 = vpop.f32.mrb[17].mxu1 }
 0x124   :  { %1132 = vst.msk [vmem:[%s2153_s3 + $0x2c] sm:$0xf] %vm1120_vm3, %v1332_v34  ;;  %1164 = vst.msk [vmem:[%s2153_s3 + $0xac] sm:$0xf] %vm1120_vm3, %v1364_v35  ;;  %v1362_v44 = vpack.c.bf16 %v841_v39, %v841_v39  ;;  %vm718_vm14 = vcmp.gt.f32.partialorder %v602_v41, 0.0  ;;  %v605_v52 = vadd.f32 %v1467_v23, %v1749_v37  ;;  %v1875_v53 = vpop.f32.mrb[18].mxu0  ;;  %v469_v4 = vadd.f32 %v1749_v37, %v468_v24 }
 0x125   :  { %1130 = vst.msk [vmem:[%s2153_s3 + $0x24] sm:$0xf] %vm1120_vm3, %v1330_v38  ;;  %v814_v50 = vsel %vm686_vm13, %v474_v17, %v750_v40  ;;  %v782_v51 = vmul.f32 0.1, %v602_v41  ;;  %v1877_v54 = vpop.f32.mrb[18].mxu1  ;;  %vm684_vm15 = vcmp.gt.f32.partialorder %v466_v45, 0.0  ;;  %v597_v8 = vadd.f32 %v1749_v37, %v596_v29 }
 0x126   :  { %1162 = vst.msk [vmem:[%s2153_s3 + $0xa4] sm:$0xf] %vm1120_vm3, %v1362_v44  ;;  %v1335_v55 = vpack.c.bf16 %v814_v50, %v814_v50  ;;  %v748_v56 = vmul.f32 0.1, %v466_v45  ;;  %vm716_vm0 = vcmp.gt.f32.partialorder %v594_v46, 0.0  ;;  %v1883_v57 = vpop.f32.mrb[19].mxu0  ;;  %v490_v11 = vadd.f32 %v1438_v42, %v1749_v37 }
 0x127   :  { %v1885_v58 = vpop.f32.mrb[19].mxu1  ;;  %v846_v59 = vsel %vm718_vm14, %v602_v41, %v782_v51  ;;  %v780_v60 = vmul.f32 0.1, %v594_v46  ;;  %vm687_vm1 = vcmp.gt.f32.partialorder %v477_v47, 0.0  ;;  %v751_v61 = vmul.f32 0.1, %v477_v47 }
 0x128   :  { %1135 = vst.msk [vmem:[%s2153_s3 + $0x38] sm:$0xf] %vm1120_vm3, %v1335_v55  ;;  %v1367_v62 = vpack.c.bf16 %v846_v59, %v846_v59  ;;  %v812_v63 = vsel %vm684_vm15, %v466_v45, %v748_v56  ;;  %vm719_vm2 = vcmp.gt.f32.partialorder %v605_v52, 0.0  ;;  %v783_v0 = vmul.f32 0.1, %v605_v52 }
 0x129   :  { %v1333_v1 = vpack.c.bf16 %v812_v63, %v812_v63  ;;  %v844_v2 = vsel %vm716_vm0, %v594_v46, %v780_v60  ;;  %v815_v3 = vsel %vm687_vm1, %v477_v47, %v751_v61  ;;  %vm685_vm4 = vcmp.gt.f32.partialorder %v469_v4, 0.0 }
 0x12a   :  { %1167 = vst.msk [vmem:[%s2153_s3 + $0xb8] sm:$0xf] %vm1120_vm3, %v1367_v62  ;;  %v1365_v5 = vpack.c.bf16 %v844_v2, %v844_v2  ;;  %v1336_v6 = vpack.c.bf16 %v815_v3, %v815_v3  ;;  %v847_v7 = vsel %vm719_vm2, %v605_v52, %v783_v0  ;;  %v749_v10 = vmul.f32 0.1, %v469_v4  ;;  %v1442_v12 = vpop.f32.mrb[20].mxu0  ;;  %v1474_v13 = vpop.f32.mrb[20].mxu1 }
 0x12b   :  { %1133 = vst.msk [vmem:[%s2153_s3 + $0x30] sm:$0xf] %vm1120_vm3, %v1333_v1  ;;  %v1368_v9 = vpack.c.bf16 %v847_v7, %v847_v7  ;;  %vm717_vm5 = vcmp.gt.f32.partialorder %v597_v8, 0.0  ;;  %v781_v14 = vmul.f32 0.1, %v597_v8  ;;  %v618_v15 = vadd.f32 %v1470_v43, %v1749_v37  ;;  %v497_v17 = vpop.f32.mrb[21].mxu0 }
 0x12c   :  { %1165 = vst.msk [vmem:[%s2153_s3 + $0xb0] sm:$0xf] %vm1120_vm3, %v1365_v5  ;;  %1136 = vst.msk [vmem:[%s2153_s3 + $0x3c] sm:$0xf] %vm1120_vm3, %v1336_v6  ;;  %v482_v16 = vadd.f32 %v1749_v37, %v481_v48  ;;  %v1912_v18 = vpop.f32.mrb[21].mxu1  ;;  %v813_v19 = vsel %vm685_vm4, %v469_v4, %v749_v10  ;;  %vm690_vm6 = vcmp.gt.f32.partialorder %v490_v11, 0.0  ;;  %v610_v21 = vadd.f32 %v1749_v37, %v609_v49 }
 0x12d   :  { %1168 = vst.msk [vmem:[%s2153_s3 + $0xbc] sm:$0xf] %vm1120_vm3, %v1368_v9  ;;  %v754_v20 = vmul.f32 0.1, %v490_v11  ;;  %v1919_v22 = vpop.f32.mrb[22].mxu0  ;;  %v1921_v23 = vpop.f32.mrb[22].mxu1  ;;  %v1334_v24 = vpack.c.bf16 %v813_v19, %v813_v19  ;;  %v845_v25 = vsel %vm717_vm5, %v597_v8, %v781_v14  ;;  %v493_v38 = vadd.f32 %v1875_v53, %v1749_v37 }
 0x12e   :  { %vm722_vm7 = vcmp.gt.f32.partialorder %v618_v15, 0.0  ;;  %v786_v26 = vmul.f32 0.1, %v618_v15  ;;  %v1923_v27 = vpop.f32.mrb[23].mxu0  ;;  %v1925_v28 = vpop.f32.mrb[23].mxu1  ;;  %v1366_v29 = vpack.c.bf16 %v845_v25, %v845_v25  ;;  %vm688_vm8 = vcmp.gt.f32.partialorder %v482_v16, 0.0 }
 0x12f   :  { %v818_v30 = vsel %vm690_vm6, %v490_v11, %v754_v20  ;;  %v752_v31 = vmul.f32 0.1, %v482_v16  ;;  %1134 = vst.msk [vmem:[%s2153_s3 + $0x34] sm:$0xf] %vm1120_vm3, %v1334_v24  ;;  %vm720_vm9 = vcmp.gt.f32.partialorder %v610_v21, 0.0  ;;  %v621_v39 = vadd.f32 %v1877_v54, %v1749_v37 }
 0x130   :  { %v1339_v32 = vpack.c.bf16 %v818_v30, %v818_v30  ;;  %v850_v33 = vsel %vm722_vm7, %v618_v15, %v786_v26  ;;  %v784_v34 = vmul.f32 0.1, %v610_v21  ;;  %1166 = vst.msk [vmem:[%s2153_s3 + $0xb4] sm:$0xf] %vm1120_vm3, %v1366_v29  ;;  %v485_v42 = vadd.f32 %v1749_v37, %v1883_v57 }
 0x131   :  { %v1371_v35 = vpack.c.bf16 %v850_v33, %v850_v33  ;;  %v816_v36 = vsel %vm688_vm8, %v482_v16, %v752_v31  ;;  %v613_v43 = vadd.f32 %v1749_v37, %v1885_v58  ;;  %vm691_vm10 = vcmp.gt.f32.partialorder %v493_v38, 0.0 }
 0x132   :  { %1139 = vst.msk [vmem:[%s2153_s3 + $0x48] sm:$0xf] %vm1120_vm3, %v1339_v32  ;;  %v1337_v40 = vpack.c.bf16 %v816_v36, %v816_v36  ;;  %v848_v41 = vsel %vm720_vm9, %v610_v21, %v784_v34  ;;  %v755_v45 = vmul.f32 0.1, %v493_v38  ;;  %vm723_vm11 = vcmp.gt.f32.partialorder %v621_v39, 0.0  ;;  %v1951_v46 = vpop.f32.mrb[24].mxu0 }
 0x133   :  { %1171 = vst.msk [vmem:[%s2153_s3 + $0xc8] sm:$0xf] %vm1120_vm3, %v1371_v35  ;;  %v1369_v44 = vpack.c.bf16 %v848_v41, %v848_v41  ;;  %v1953_v47 = vpop.f32.mrb[24].mxu1  ;;  %v787_v48 = vmul.f32 0.1, %v621_v39  ;;  %vm689_vm12 = vcmp.gt.f32.partialorder %v485_v42, 0.0  ;;  %v506_v52 = vadd.f32 %v1442_v12, %v1749_v37 }
 0x134   :  { %1137 = vst.msk [vmem:[%s2153_s3 + $0x40] sm:$0xf] %vm1120_vm3, %v1337_v40  ;;  %v753_v49 = vmul.f32 0.1, %v485_v42  ;;  %vm721_vm13 = vcmp.gt.f32.partialorder %v613_v43, 0.0  ;;  %v819_v50 = vsel %vm691_vm10, %v493_v38, %v755_v45  ;;  %v634_v53 = vadd.f32 %v1474_v13, %v1749_v37  ;;  %v1965_v54 = vpop.f32.mrb[25].mxu0 }
 0x135   :  { %1169 = vst.msk [vmem:[%s2153_s3 + $0xc0] sm:$0xf] %vm1120_vm3, %v1369_v44  ;;  %v785_v51 = vmul.f32 0.1, %v613_v43  ;;  %v1967_v55 = vpop.f32.mrb[25].mxu1  ;;  %v1340_v56 = vpack.c.bf16 %v819_v50, %v819_v50  ;;  %v851_v57 = vsel %vm723_vm11, %v621_v39, %v787_v48  ;;  %v498_v59 = vadd.f32 %v1749_v37, %v497_v17  ;;  %v1971_v60 = vpop.f32.mrb[26].mxu0 }
 0x136   :  { %v817_v58 = vsel %vm689_vm12, %v485_v42, %v753_v49  ;;  %v1973_v61 = vpop.f32.mrb[26].mxu1  ;;  %v1372_v62 = vpack.c.bf16 %v851_v57, %v851_v57  ;;  %vm694_vm14 = vcmp.gt.f32.partialorder %v506_v52, 0.0  ;;  %v1976_v1 = vpop.f32.mrb[27].mxu0  ;;  %v758_v4 = vmul.f32 0.1, %v506_v52 }
 0x137   :  { %v1338_v63 = vpack.c.bf16 %v817_v58, %v817_v58  ;;  %v849_v0 = vsel %vm721_vm13, %v613_v43, %v785_v51  ;;  %v1978_v2 = vpop.f32.mrb[27].mxu1  ;;  %1140 = vst.msk [vmem:[%s2153_s3 + $0x4c] sm:$0xf] %vm1120_vm3, %v1340_v56  ;;  %vm726_vm15 = vcmp.gt.f32.partialorder %v634_v53, 0.0  ;;  %v790_v5 = vmul.f32 0.1, %v634_v53 }
 0x138   :  { %v1370_v3 = vpack.c.bf16 %v849_v0, %v849_v0  ;;  %1172 = vst.msk [vmem:[%s2153_s3 + $0xcc] sm:$0xf] %vm1120_vm3, %v1372_v62  ;;  %vm692_vm0 = vcmp.gt.f32.partialorder %v498_v59, 0.0  ;;  %v756_v6 = vmul.f32 0.1, %v498_v59  ;;  %v626_v7 = vadd.f32 %v1749_v37, %v1912_v18 }
 0x139   :  { %1138 = vst.msk [vmem:[%s2153_s3 + $0x44] sm:$0xf] %vm1120_vm3, %v1338_v63  ;;  %v509_v8 = vadd.f32 %v1919_v22, %v1749_v37  ;;  %v822_v9 = vsel %vm694_vm14, %v506_v52, %v758_v4  ;;  %v854_v10 = vsel %vm726_vm15, %v634_v53, %v790_v5  ;;  %v637_v11 = vadd.f32 %v1921_v23, %v1749_v37 }
 0x13a   :  { %1170 = vst.msk [vmem:[%s2153_s3 + $0xc4] sm:$0xf] %vm1120_vm3, %v1370_v3  ;;  %v501_v12 = vadd.f32 %v1749_v37, %v1923_v27  ;;  %v1343_v13 = vpack.c.bf16 %v822_v9, %v822_v9  ;;  %v1375_v14 = vpack.c.bf16 %v854_v10, %v854_v10  ;;  %v820_v15 = vsel %vm692_vm0, %v498_v59, %v756_v6  ;;  %v2004_v16 = vpop.f32.mrb[28].mxu0  ;;  %v2006_v17 = vpop.f32.mrb[28].mxu1 }
 0x13b   :  { %vm724_vm1 = vcmp.gt.f32.partialorder %v626_v7, 0.0  ;;  %v1341_v18 = vpack.c.bf16 %v820_v15, %v820_v15  ;;  %v788_v19 = vmul.f32 0.1, %v626_v7  ;;  %vm695_vm2 = vcmp.gt.f32.partialorder %v509_v8, 0.0  ;;  %v2008_v21 = vpop.f32.mrb[29].mxu0  ;;  %v2026_v29 = vpop.f32.mrb[29].mxu1 }
 0x13c   :  { %v759_v20 = vmul.f32 0.1, %v509_v8  ;;  %1143 = vst.msk [vmem:[%s2153_s3 + $0x58] sm:$0xf] %vm1120_vm3, %v1343_v13  ;;  %1175 = vst.msk [vmem:[%s2153_s3 + $0xd8] sm:$0xf] %vm1120_vm3, %v1375_v14  ;;  %v629_v26 = vadd.f32 %v1749_v37, %v1925_v28  ;;  %v522_v27 = vadd.f32 %v1951_v46, %v1749_v37  ;;  %v650_v42 = vadd.f32 %v1953_v47, %v1749_v37 }
 0x13d   :  { %vm727_vm4 = vcmp.gt.f32.partialorder %v637_v11, 0.0  ;;  %v791_v22 = vmul.f32 0.1, %v637_v11  ;;  %vm693_vm5 = vcmp.gt.f32.partialorder %v501_v12, 0.0  ;;  %v757_v23 = vmul.f32 0.1, %v501_v12 }
 0x13e   :  { %1141 = vst.msk [vmem:[%s2153_s3 + $0x50] sm:$0xf] %vm1120_vm3, %v1341_v18  ;;  %v852_v24 = vsel %vm724_vm1, %v626_v7, %v788_v19  ;;  %v823_v25 = vsel %vm695_vm2, %v509_v8, %v759_v20  ;;  %v2028_v30 = vpop.f32.mrb[30].mxu0  ;;  %v2030_v35 = vpop.f32.mrb[30].mxu1  ;;  %vm725_vm6 = vcmp.gt.f32.partialorder %v629_v26, 0.0  ;;  %vm698_vm7 = vcmp.gt.f32.partialorder %v522_v27, 0.0 }
 0x13f   :  { %v1373_v31 = vpack.c.bf16 %v852_v24, %v852_v24  ;;  %v1344_v32 = vpack.c.bf16 %v823_v25, %v823_v25  ;;  %v855_v33 = vsel %vm727_vm4, %v637_v11, %v791_v22  ;;  %v821_v34 = vsel %vm693_vm5, %v501_v12, %v757_v23  ;;  %v2032_v36 = vpop.f32.mrb[31].mxu0  ;;  %v2034_v28 = vpop.f32.mrb[31].mxu1 }
 0x140   :  { %v1376_v38 = vpack.c.bf16 %v855_v33, %v855_v33  ;;  %v1342_v39 = vpack.c.bf16 %v821_v34, %v821_v34  ;;  %v789_v40 = vmul.f32 0.1, %v629_v26  ;;  %v762_v41 = vmul.f32 0.1, %v522_v27 }
 0x141   :  { %1173 = vst.msk [vmem:[%s2153_s3 + $0xd0] sm:$0xf] %vm1120_vm3, %v1373_v31  ;;  %1144 = vst.msk [vmem:[%s2153_s3 + $0x5c] sm:$0xf] %vm1120_vm3, %v1344_v32  ;;  %v514_v43 = vadd.f32 %v1749_v37, %v1965_v54  ;;  %v642_v45 = vadd.f32 %v1749_v37, %v1967_v55  ;;  %v525_v46 = vadd.f32 %v1971_v60, %v1749_v37  ;;  %vm730_vm8 = vcmp.gt.f32.partialorder %v650_v42, 0.0 }
 0x142   :  { %1176 = vst.msk [vmem:[%s2153_s3 + $0xdc] sm:$0xf] %vm1120_vm3, %v1376_v38  ;;  %1142 = vst.msk [vmem:[%s2153_s3 + $0x54] sm:$0xf] %vm1120_vm3, %v1342_v39  ;;  %v853_v44 = vsel %vm725_vm6, %v629_v26, %v789_v40  ;;  %v653_v47 = vadd.f32 %v1973_v61, %v1749_v37  ;;  %v826_v49 = vsel %vm698_vm7, %v522_v27, %v762_v41  ;;  %v794_v50 = vmul.f32 0.1, %v650_v42 }
 0x143   :  { %v1374_v48 = vpack.c.bf16 %v853_v44, %v853_v44  ;;  %v1347_v51 = vpack.c.bf16 %v826_v49, %v826_v49  ;;  %vm696_vm9 = vcmp.gt.f32.partialorder %v514_v43, 0.0  ;;  %v760_v52 = vmul.f32 0.1, %v514_v43 }
 0x144   :  { %vm728_vm10 = vcmp.gt.f32.partialorder %v642_v45, 0.0  ;;  %v858_v53 = vsel %vm730_vm8, %v650_v42, %v794_v50  ;;  %v792_v54 = vmul.f32 0.1, %v642_v45  ;;  %vm699_vm11 = vcmp.gt.f32.partialorder %v525_v46, 0.0 }
 0x145   :  { %1174 = vst.msk [vmem:[%s2153_s3 + $0xd4] sm:$0xf] %vm1120_vm3, %v1374_v48  ;;  %v763_v55 = vmul.f32 0.1, %v525_v46  ;;  %1147 = vst.msk [vmem:[%s2153_s3 + $0x68] sm:$0xf] %vm1120_vm3, %v1347_v51  ;;  %v1379_v56 = vpack.c.bf16 %v858_v53, %v858_v53  ;;  %v824_v57 = vsel %vm696_vm9, %v514_v43, %v760_v52  ;;  %v517_v62 = vadd.f32 %v1749_v37, %v1976_v1 }
 0x146   :  { %vm731_vm12 = vcmp.gt.f32.partialorder %v653_v47, 0.0  ;;  %v795_v58 = vmul.f32 0.1, %v653_v47  ;;  %v1345_v59 = vpack.c.bf16 %v824_v57, %v824_v57  ;;  %v856_v60 = vsel %vm728_vm10, %v642_v45, %v792_v54 }
 0x147   :  { %v827_v61 = vsel %vm699_vm11, %v525_v46, %v763_v55  ;;  %1179 = vst.msk [vmem:[%s2153_s3 + $0xe8] sm:$0xf] %vm1120_vm3, %v1379_v56  ;;  %v1377_v63 = vpack.c.bf16 %v856_v60, %v856_v60  ;;  %v645_v4 = vadd.f32 %v1749_v37, %v1978_v2  ;;  %vm697_vm13 = vcmp.gt.f32.partialorder %v517_v62, 0.0 }
 0x148   :  { %v1348_v0 = vpack.c.bf16 %v827_v61, %v827_v61  ;;  %v859_v3 = vsel %vm731_vm12, %v653_v47, %v795_v58  ;;  %1145 = vst.msk [vmem:[%s2153_s3 + $0x60] sm:$0xf] %vm1120_vm3, %v1345_v59  ;;  %v761_v6 = vmul.f32 0.1, %v517_v62  ;;  %v538_v1 = vadd.f32 %v2004_v16, %v1749_v37 }
 0x149   :  { %v1380_v5 = vpack.c.bf16 %v859_v3, %v859_v3  ;;  %1177 = vst.msk [vmem:[%s2153_s3 + $0xe0] sm:$0xf] %vm1120_vm3, %v1377_v63  ;;  %vm729_vm14 = vcmp.gt.f32.partialorder %v645_v4, 0.0  ;;  %v793_v2 = vmul.f32 0.1, %v645_v4  ;;  %v666_v7 = vadd.f32 %v2006_v17, %v1749_v37 }
 0x14a   :  { %1148 = vst.msk [vmem:[%s2153_s3 + $0x6c] sm:$0xf] %vm1120_vm3, %v1348_v0  ;;  %v530_v8 = vadd.f32 %v1749_v37, %v2008_v21  ;;  %v825_v9 = vsel %vm697_vm13, %v517_v62, %v761_v6  ;;  %vm702_vm15 = vcmp.gt.f32.partialorder %v538_v1, 0.0  ;;  %v766_v10 = vmul.f32 0.1, %v538_v1 }
 0x14b   :  { %1180 = vst.msk [vmem:[%s2153_s3 + $0xec] sm:$0xf] %vm1120_vm3, %v1380_v5  ;;  %v658_v11 = vadd.f32 %v1749_v37, %v2026_v29  ;;  %v1346_v12 = vpack.c.bf16 %v825_v9, %v825_v9  ;;  %v857_v13 = vsel %vm729_vm14, %v645_v4, %v793_v2  ;;  %vm734_vm0 = vcmp.gt.f32.partialorder %v666_v7, 0.0 }
 0x14c   :  { %v798_v14 = vmul.f32 0.1, %v666_v7  ;;  %v1378_v15 = vpack.c.bf16 %v857_v13, %v857_v13  ;;  %v830_v16 = vsel %vm702_vm15, %v538_v1, %v766_v10  ;;  %vm700_vm1 = vcmp.gt.f32.partialorder %v530_v8, 0.0 }
 0x14d   :  { %v764_v17 = vmul.f32 0.1, %v530_v8  ;;  %1146 = vst.msk [vmem:[%s2153_s3 + $0x64] sm:$0xf] %vm1120_vm3, %v1346_v12  ;;  %v1351_v18 = vpack.c.bf16 %v830_v16, %v830_v16  ;;  %vm732_vm2 = vcmp.gt.f32.partialorder %v658_v11, 0.0  ;;  %v541_v23 = vadd.f32 %v2028_v30, %v1749_v37 }
 0x14e   :  { %v862_v19 = vsel %vm734_vm0, %v666_v7, %v798_v14  ;;  %v796_v20 = vmul.f32 0.1, %v658_v11  ;;  %1178 = vst.msk [vmem:[%s2153_s3 + $0xe4] sm:$0xf] %vm1120_vm3, %v1378_v15  ;;  %v669_v24 = vadd.f32 %v2030_v35, %v1749_v37  ;;  %v533_v27 = vadd.f32 %v1749_v37, %v2032_v36 }
 0x14f   :  { %v1383_v21 = vpack.c.bf16 %v862_v19, %v862_v19  ;;  %v828_v22 = vsel %vm700_vm1, %v530_v8, %v764_v17  ;;  %1151 = vst.msk [vmem:[%s2153_s3 + $0x78] sm:$0xf] %vm1120_vm3, %v1351_v18  ;;  %v661_v29 = vadd.f32 %v1749_v37, %v2034_v28  ;;  %vm703_vm4 = vcmp.gt.f32.partialorder %v541_v23, 0.0 }
 0x150   :  { %v1349_v25 = vpack.c.bf16 %v828_v22, %v828_v22  ;;  %v860_v26 = vsel %vm732_vm2, %v658_v11, %v796_v20  ;;  %v767_v31 = vmul.f32 0.1, %v541_v23  ;;  %vm735_vm5 = vcmp.gt.f32.partialorder %v669_v24, 0.0 }
 0x151   :  { %1183 = vst.msk [vmem:[%s2153_s3 + $0xf8] sm:$0xf] %vm1120_vm3, %v1383_v21  ;;  %v1381_v30 = vpack.c.bf16 %v860_v26, %v860_v26  ;;  %v799_v32 = vmul.f32 0.1, %v669_v24  ;;  %vm701_vm6 = vcmp.gt.f32.partialorder %v533_v27, 0.0  ;;  %vm733_vm7 = vcmp.gt.f32.partialorder %v661_v29, 0.0 }
 0x152   :  { %1149 = vst.msk [vmem:[%s2153_s3 + $0x70] sm:$0xf] %vm1120_vm3, %v1349_v25  ;;  %v765_v33 = vmul.f32 0.1, %v533_v27  ;;  %v831_v37 = vsel %vm703_vm4, %v541_v23, %v767_v31  ;;  %v797_v34 = vmul.f32 0.1, %v661_v29 }
 0x153   :  { %1181 = vst.msk [vmem:[%s2153_s3 + $0xf0] sm:$0xf] %vm1120_vm3, %v1381_v30  ;;  %v1352_v35 = vpack.c.bf16 %v831_v37, %v831_v37  ;;  %v863_v36 = vsel %vm735_vm5, %v669_v24, %v799_v32 }
 0x154   :  { %v829_v38 = vsel %vm701_vm6, %v533_v27, %v765_v33  ;;  %v1384_v39 = vpack.c.bf16 %v863_v36, %v863_v36  ;;  %v861_v28 = vsel %vm733_vm7, %v661_v29, %v797_v34 }
 0x155   :  { %v1350_v40 = vpack.c.bf16 %v829_v38, %v829_v38  ;;  %1152 = vst.msk [vmem:[%s2153_s3 + $0x7c] sm:$0xf] %vm1120_vm3, %v1352_v35  ;;  %v1382_v41 = vpack.c.bf16 %v861_v28, %v861_v28 }
 0x156   :  { %1184 = vst.msk [vmem:[%s2153_s3 + $0xfc] sm:$0xf] %vm1120_vm3, %v1384_v39 }
 0x157   :  { %1150 = vst.msk [vmem:[%s2153_s3 + $0x74] sm:$0xf] %vm1120_vm3, %v1350_v40  ;;  %1182 = vst.msk [vmem:[%s2153_s3 + $0xf4] sm:$0xf] %vm1120_vm3, %v1382_v41 }
 0x158   :  { %1189 = vsyncpa [#allocation3], 1 }
 0x159   :  { %1190 = vsyncpa [#allocation5], 1 }

// kernel: discriminator_s_forward.8
= control target key start
LH: loop header
LB: loop body
LE: loop exit
PB: predicated region body
PF: predicated region fallthrough
CT: control target
= control target key end

     0   :  { %8 = vsyncpa [#allocation3], 0  ;;  %s1507_s12 = smov [#allocation2]   ;;  %s1958_s0 = inlined_call_operand.vmem [shape: bf16[1,128,656], index: 0, kind: input, shape index: {}]   ;;  %s1959_s1 = inlined_call_operand.vmem [shape: bf16[1,656,64], index: 1, kind: input, shape index: {}]   ;;  %s1960_s2 = inlined_call_operand.hbm [shape: f32[1,1,64], index: 2, kind: input, shape index: {}]   ;;  %s1961_s3 = inlined_call_operand.vmem [shape: bf16[128,64], index: 3, kind: output, shape index: {}]  }
   0x1   :  { %s19_s13 = sshll.u32 %s1507_s12, 4  ;;  %s1483_s16 = scalar_lea.hbm %s1960_s2, 16  ;;  %s20_s13 = int_to_ptr.vmem [resolvable:$true] %s19_s13 }
   0x2   :  { %p1484_p0 = scmp.ne.s32.totalorder %s1960_s2, %s1483_s16  ;;  %p1487_p1 = scmp.lt.u32.totalorder %s1483_s16, %s1960_s2 }
   0x4   :  { %p1489_p2 = pnand %p1487_p1, %p1484_p0 }
   0x6   :  { %1492 = shalt.err (!%p1489_p2)
}
   0x7   :  { %s1493_s21 = scalar_lea.vmem %s20_s13, 16  ;;  %s1497_s22 = scalar_lea.vmem %s20_s13, 32 }
   0x8   :  { %p1494_p3 = scmp.ne.s32.totalorder %s20_s13, %s1493_s21  ;;  %p1498_p4 = scmp.lt.s32.totalorder %s20_s13, %s20_s13 }
   0x9   :  { %p1499_p5 = scmp.lt.s32.totalorder %s1497_s22, %s1493_s21 }
   0xb   :  { %p1500_p6 = por %p1499_p5, %p1498_p4 }
   0xd   :  { %p1501_p7 = pnand %p1500_p6, %p1494_p3 }
   0xf   :  { %1504 = shalt.err (!%p1501_p7)
}
  0x10   :  { %22 = dma.hbm_to_vmem [thread:$0]  %s1960_s2, 16, %s20_s13, [#allocation3]  }
  0x11   :  { %1505 = dma.done.wait [#allocation3], 16  }
  0x12   :  { %1506 = vsyncadd [#allocation3], 4294967280  ;;  %v1370_v0 = vld [vmem:[%s1959_s1 + $0x40] sm:$0xff]   ;;  %v1374_v4 = vld [vmem:[%s1959_s1 + $0x48] sm:$0xff]   ;;  %v1508_v34 = vmov 0   ;;  %vm642_vm0 = vcmask 130048  }
  0x13   :  { %v1371_v1 = vld [vmem:[%s1959_s1 + $0xc0] sm:$0xff]   ;;  %1222 = vmatprep.subr.bf16.mxu0 %v1370_v0  ;;  %v1375_v5 = vld [vmem:[%s1959_s1 + $0xc8] sm:$0xff]   ;;  %v1378_v8 = vld [vmem:[%s1959_s1 + $0x50] sm:$0xff]   ;;  %vm1070_vm3 = vcmask 519168  }
  0x14   :  { %v1372_v2 = vld [vmem:[%s1959_s1] sm:$0xff]   ;;  %1286 = vmatprep.subr.bf16.mxu1 %v1371_v1  ;;  %v1376_v6 = vld [vmem:[%s1959_s1 + $0x8] sm:$0xff]   ;;  %v1379_v9 = vld [vmem:[%s1959_s1 + $0xd0] sm:$0xff]  }
  0x15   :  { %v1373_v3 = vld [vmem:[%s1959_s1 + $0x80] sm:$0xff]   ;;  %1223 = vmatpush3.bf16.msra.mxu0 %v1372_v2  ;;  %v1377_v7 = vld [vmem:[%s1959_s1 + $0x88] sm:$0xff]   ;;  %v1380_v10 = vld [vmem:[%s1959_s1 + $0x10] sm:$0xff]  }
  0x16   :  { %1287 = vmatpush3.bf16.msra.mxu1 %v1373_v3  ;;  %1224 = vmatprep.subr.bf16.mxu0 %v1374_v4  ;;  %v1381_v11 = vld [vmem:[%s1959_s1 + $0x90] sm:$0xff]   ;;  %v1382_v12 = vld [vmem:[%s1959_s1 + $0x58] sm:$0xff]   ;;  %v1386_v16 = vld [vmem:[%s1959_s1 + $0x60] sm:$0xff]  }
  0x17   :  { %1288 = vmatprep.subr.bf16.mxu1 %v1375_v5  ;;  %v1383_v13 = vld [vmem:[%s1959_s1 + $0xd8] sm:$0xff]   ;;  %v1387_v17 = vld [vmem:[%s1959_s1 + $0xe0] sm:$0xff]   ;;  %v1390_v20 = vld [vmem:[%s1959_s1 + $0x68] sm:$0xff]  }
  0x18   :  { %v1384_v14 = vld [vmem:[%s1959_s1 + $0x18] sm:$0xff]   ;;  %v1388_v18 = vld [vmem:[%s1959_s1 + $0x20] sm:$0xff]   ;;  %v1391_v21 = vld [vmem:[%s1959_s1 + $0xe8] sm:$0xff]  }
  0x19   :  { %1225 = vmatpush3.bf16.msra.mxu0 %v1376_v6  ;;  %v1385_v15 = vld [vmem:[%s1959_s1 + $0x98] sm:$0xff]   ;;  %v1389_v19 = vld [vmem:[%s1959_s1 + $0xa0] sm:$0xff]   ;;  %v1392_v22 = vld [vmem:[%s1959_s1 + $0x28] sm:$0xff]  }
  0x1a   :  { %1289 = vmatpush3.bf16.msra.mxu1 %v1377_v7  ;;  %1226 = vmatprep.subr.bf16.mxu0 %v1378_v8  ;;  %v1393_v23 = vld [vmem:[%s1959_s1 + $0xa8] sm:$0xff]   ;;  %v1394_v24 = vld [vmem:[%s1959_s1 + $0x70] sm:$0xff]   ;;  %v1398_v28 = vld [vmem:[%s1959_s1 + $0x78] sm:$0xff]  }
  0x1b   :  { %1290 = vmatprep.subr.bf16.mxu1 %v1379_v9  ;;  %v1395_v25 = vld [vmem:[%s1959_s1 + $0xf0] sm:$0xff]   ;;  %v1399_v29 = vld [vmem:[%s1959_s1 + $0xf8] sm:$0xff]   ;;  %v1405_v35 = vld [vmem:[%s1958_s0 + $0x8] ss:$24 sps:$4 sm:$0xff]  }
  0x1c   :  { %v1396_v26 = vld [vmem:[%s1959_s1 + $0x30] sm:$0xff]   ;;  %v1400_v30 = vld [vmem:[%s1959_s1 + $0x38] sm:$0xff]   ;;  %v1407_v36 = vld [vmem:[%s1958_s0 + $0xc] ss:$24 sps:$4 sm:$0xff]  }
  0x1d   :  { %1227 = vmatpush3.bf16.msra.mxu0 %v1380_v10  ;;  %v1397_v27 = vld [vmem:[%s1959_s1 + $0xb0] sm:$0xff]   ;;  %v1401_v31 = vld [vmem:[%s1959_s1 + $0xb8] sm:$0xff]   ;;  %v1408_v37 = vld [vmem:[%s1959_s1 + $0x100] sm:$0xff]   ;;  %796 = vmatprep.mubr.bf16.mxu1 %v1407_v36 }
  0x1e   :  { %1291 = vmatpush3.bf16.msra.mxu1 %v1381_v11  ;;  %1228 = vmatprep.subr.bf16.mxu0 %v1382_v12  ;;  %v1402_v32 = vld [vmem:[%s1958_s0] ss:$24 sps:$4 sm:$0xff]   ;;  %v1404_v33 = vld [vmem:[%s1958_s0 + $0x4] ss:$24 sps:$4 sm:$0xff]   ;;  %v1409_v38 = vld [vmem:[%s1958_s0 + $0x34] ss:$24 sps:$4 sm:$0xff]  }
  0x1f   :  { %1292 = vmatprep.subr.bf16.mxu1 %v1383_v13  ;;  %699 = vmatprep.mubr.bf16.mxu0 %v1404_v33  ;;  %v1411_v39 = vld [vmem:[%s1958_s0 + $0x3c] ss:$24 sps:$4 sm:$0xff]   ;;  %v1415_v40 = vld [vmem:[%s1959_s1 + $0x108] sm:$0xff]   ;;  %v1414_v42 = vld [vmem:[%s1958_s0 + $0x38] ss:$24 sps:$4 sm:$0xff]  }
  0x20   :  { %v1413_v41 = vld [vmem:[%s1958_s0 + $0x30] ss:$24 sps:$4 sm:$0xff]   ;;  %v1416_v43 = vld [vmem:[%s1958_s0 + $0x64] ss:$24 sps:$4 sm:$0xff]   ;;  %v1420_v47 = vld [vmem:[%s1958_s0 + $0x60] ss:$24 sps:$4 sm:$0xff]  }
  0x21   :  { %1229 = vmatpush3.bf16.msra.mxu0 %v1384_v14  ;;  %v1418_v44 = vld [vmem:[%s1958_s0 + $0x6c] ss:$24 sps:$4 sm:$0xff]   ;;  %v1422_v45 = vld [vmem:[%s1959_s1 + $0x110] sm:$0xff]   ;;  %v1427_v46 = vld [vmem:[%s1959_s1 + $0x118] sm:$0xff]  }
  0x22   :  { %1293 = vmatpush3.bf16.msra.mxu1 %v1385_v15  ;;  %1230 = vmatprep.subr.bf16.mxu0 %v1386_v16  ;;  %v1421_v48 = vld [vmem:[%s1958_s0 + $0x68] ss:$24 sps:$4 sm:$0xff]   ;;  %v1423_v49 = vld [vmem:[%s1958_s0 + $0x94] ss:$24 sps:$4 sm:$0xff]   ;;  %v1429_v54 = vld [vmem:[%s1958_s0 + $0x98] ss:$24 sps:$4 sm:$0xff]  }
  0x23   :  { %1294 = vmatprep.subr.bf16.mxu1 %v1387_v17  ;;  %v1425_v50 = vld [vmem:[%s1958_s0 + $0x9c] ss:$24 sps:$4 sm:$0xff]   ;;  %v1430_v51 = vld [vmem:[%s1959_s1 + $0x120] sm:$0xff]   ;;  %v1437_v52 = vld [vmem:[%s1959_s1 + $0x128] sm:$0xff]  }
  0x24   :  { %v1428_v53 = vld [vmem:[%s1958_s0 + $0x90] ss:$24 sps:$4 sm:$0xff]   ;;  %v1431_v55 = vld [vmem:[%s1958_s0 + $0xc4] ss:$24 sps:$4 sm:$0xff]   ;;  %v1435_v59 = vld [vmem:[%s1958_s0 + $0xc0] ss:$24 sps:$4 sm:$0xff]  }
  0x25   :  { %1231 = vmatpush3.bf16.msra.mxu0 %v1388_v18  ;;  %v1433_v56 = vld [vmem:[%s1958_s0 + $0xcc] ss:$24 sps:$4 sm:$0xff]   ;;  %v1444_v57 = vld [vmem:[%s1959_s1 + $0x130] sm:$0xff]   ;;  %v1451_v58 = vld [vmem:[%s1959_s1 + $0x138] sm:$0xff]  }
  0x26   :  { %1295 = vmatpush3.bf16.msra.mxu1 %v1389_v19  ;;  %1232 = vmatprep.subr.bf16.mxu0 %v1390_v20  ;;  %v1436_v60 = vld [vmem:[%s1958_s0 + $0xc8] ss:$24 sps:$4 sm:$0xff]   ;;  %v1438_v61 = vld [vmem:[%s1958_s0 + $0xf4] ss:$24 sps:$4 sm:$0xff]   ;;  %v1443_v1 = vld [vmem:[%s1958_s0 + $0xf8] ss:$24 sps:$4 sm:$0xff]  }
  0x27   :  { %1296 = vmatprep.subr.bf16.mxu1 %v1391_v21  ;;  %v1440_v62 = vld [vmem:[%s1958_s0 + $0xfc] ss:$24 sps:$4 sm:$0xff]   ;;  %v1458_v63 = vld [vmem:[%s1959_s1 + $0x140] sm:$0xff]   ;;  %v1442_v0 = vld [vmem:[%s1958_s0 + $0xf0] ss:$24 sps:$4 sm:$0xff]  }
  0x28   :  { %v1445_v2 = vld [vmem:[%s1958_s0 + $0x124] ss:$24 sps:$4 sm:$0xff]   ;;  %v1449_v4 = vld [vmem:[%s1958_s0 + $0x120] ss:$24 sps:$4 sm:$0xff]   ;;  %v1452_v6 = vld [vmem:[%s1958_s0 + $0x154] ss:$24 sps:$4 sm:$0xff]  }
  0x29   :  { %1233 = vmatpush3.bf16.msra.mxu0 %v1392_v22  ;;  %v1447_v3 = vld [vmem:[%s1958_s0 + $0x12c] ss:$24 sps:$4 sm:$0xff]   ;;  %v1450_v5 = vld [vmem:[%s1958_s0 + $0x128] ss:$24 sps:$4 sm:$0xff]   ;;  %v1454_v7 = vld [vmem:[%s1958_s0 + $0x15c] ss:$24 sps:$4 sm:$0xff]  }
  0x2a   :  { %1297 = vmatpush3.bf16.msra.mxu1 %v1393_v23  ;;  %1234 = vmatprep.subr.bf16.mxu0 %v1394_v24  ;;  %v1456_v8 = vld [vmem:[%s1958_s0 + $0x150] ss:$24 sps:$4 sm:$0xff]   ;;  %v1461_v10 = vld [vmem:[%s1958_s0 + $0x14] ss:$24 sps:$4 sm:$0xff]   ;;  %v1465_v14 = vld [vmem:[%s1958_s0 + $0x44] ss:$24 sps:$4 sm:$0xff]  }
  0x2b   :  { %1298 = vmatprep.subr.bf16.mxu1 %v1395_v25  ;;  %v1457_v9 = vld [vmem:[%s1958_s0 + $0x158] ss:$24 sps:$4 sm:$0xff]   ;;  %v1464_v11 = vld [vmem:[%s1958_s0 + $0xd4] ss:$24 sps:$4 sm:$0xff]   ;;  %v1467_v15 = vld [vmem:[%s1958_s0 + $0x104] ss:$24 sps:$4 sm:$0xff]  }
  0x2c   :  { %v1459_v12 = vld [vmem:[%s1958_s0 + $0x10] ss:$24 sps:$4 sm:$0xff]   ;;  %v1469_v16 = vld [vmem:[%s1958_s0 + $0x40] ss:$24 sps:$4 sm:$0xff]   ;;  %v1471_v18 = vld [vmem:[%s1958_s0 + $0x74] ss:$24 sps:$4 sm:$0xff]  }
  0x2d   :  { %1235 = vmatpush3.bf16.msra.mxu0 %v1396_v26  ;;  %v1462_v13 = vld [vmem:[%s1958_s0 + $0xd0] ss:$24 sps:$4 sm:$0xff]   ;;  %v1470_v17 = vld [vmem:[%s1958_s0 + $0x100] ss:$24 sps:$4 sm:$0xff]   ;;  %v1473_v19 = vld [vmem:[%s1958_s0 + $0x134] ss:$24 sps:$4 sm:$0xff]  }
  0x2e   :  { %1299 = vmatpush3.bf16.msra.mxu1 %v1397_v27  ;;  %1236 = vmatprep.subr.bf16.mxu0 %v1398_v28  ;;  %v1475_v20 = vld [vmem:[%s1958_s0 + $0x70] ss:$24 sps:$4 sm:$0xff]   ;;  %v1477_v22 = vld [vmem:[%s1958_s0 + $0xa4] ss:$24 sps:$4 sm:$0xff]   ;;  %v1481_v24 = vld [vmem:[%s1958_s0 + $0xa0] ss:$24 sps:$4 sm:$0xff]  }
  0x2f   :  { %1300 = vmatprep.subr.bf16.mxu1 %v1399_v29  ;;  %v1476_v21 = vld [vmem:[%s1958_s0 + $0x130] ss:$24 sps:$4 sm:$0xff]   ;;  %v1479_v23 = vld [vmem:[%s1958_s0 + $0x164] ss:$24 sps:$4 sm:$0xff]   ;;  %v1482_v25 = vld [vmem:[%s1958_s0 + $0x160] ss:$24 sps:$4 sm:$0xff]  }
  0x30   :  { %v1834_v28 = vld [vmem:[#allocation2] ss:$0 sm:$0xff] }
  0x31   :  { %1237 = vmatpush3.bf16.msra.mxu0 %v1400_v30 }
  0x32   :  { %1301 = vmatpush3.bf16.msra.mxu1 %v1401_v31  ;;  %861 = vmatprep.subr.bf16.mxu0 %v1508_v34 }
  0x33   :  { %1350 = vmatprep.subr.bf16.mxu1 %v1508_v34 }
  0x34   :  { %700 = vmatmul.mubr.bf16.vlgmr.msra.gmra.mrb[0].mxu0 %v1402_v32 }
  0x35   :  { %797 = vmatmul.mubr.bf16.vlgmr.msra.gmra.mrb[0].mxu1 %v1405_v35  ;;  %862 = vmatpush1.bf16.msra.mxu0 %v1408_v37 }
  0x36   :  { %1359 = vmatpush1.bf16.msra.mxu1 %v1408_v37  ;;  %707 = vmatprep.mubr.bf16.mxu0 %v1409_v38 }
  0x37   :  { %804 = vmatprep.mubr.bf16.mxu1 %v1411_v39  ;;  %863 = vmatprep.subr.bf16.mxu0 %v1508_v34 }
  0x38   :  { %1351 = vmatprep.subr.bf16.mxu1 %v1508_v34 }
  0x39   :  { %864 = vmatpush1.bf16.msra.mxu0 %v1415_v40 }
  0x3a   :  { %1360 = vmatpush1.bf16.msra.mxu1 %v1415_v40  ;;  %865 = vmatprep.subr.bf16.mxu0 %v1508_v34 }
  0x3b   :  { %1352 = vmatprep.subr.bf16.mxu1 %v1508_v34 }
  0x3c   :  { %708 = vmatmul.mubr.bf16.gmra.mrb[4].mxu0 %v1413_v41 }
  0x3d   :  { %805 = vmatmul.mubr.bf16.gmra.mrb[4].mxu1 %v1414_v42  ;;  %715 = vmatprep.mubr.bf16.mxu0 %v1416_v43 }
  0x3e   :  { %812 = vmatprep.mubr.bf16.mxu1 %v1418_v44  ;;  %866 = vmatpush1.bf16.msra.mxu0 %v1422_v45 }
  0x3f   :  { %1361 = vmatpush1.bf16.msra.mxu1 %v1422_v45  ;;  %867 = vmatprep.subr.bf16.mxu0 %v1508_v34 }
  0x40   :  { %1353 = vmatprep.subr.bf16.mxu1 %v1508_v34 }
  0x42   :  { %868 = vmatpush1.bf16.msra.mxu0 %v1427_v46 }
  0x43   :  { %1362 = vmatpush1.bf16.msra.mxu1 %v1427_v46  ;;  %869 = vmatprep.subr.bf16.mxu0 %v1508_v34 }
  0x44   :  { %716 = vmatmul.mubr.bf16.gmra.mrb[8].mxu0 %v1420_v47  ;;  %1354 = vmatprep.subr.bf16.mxu1 %v1508_v34 }
  0x45   :  { %813 = vmatmul.mubr.bf16.gmra.mrb[8].mxu1 %v1421_v48  ;;  %723 = vmatprep.mubr.bf16.mxu0 %v1423_v49 }
  0x46   :  { %820 = vmatprep.mubr.bf16.mxu1 %v1425_v50  ;;  %870 = vmatpush1.bf16.msra.mxu0 %v1430_v51 }
  0x47   :  { %1363 = vmatpush1.bf16.msra.mxu1 %v1430_v51  ;;  %871 = vmatprep.subr.bf16.mxu0 %v1508_v34 }
  0x48   :  { %1355 = vmatprep.subr.bf16.mxu1 %v1508_v34 }
  0x4a   :  { %872 = vmatpush1.bf16.msra.mxu0 %v1437_v52 }
  0x4b   :  { %1364 = vmatpush1.bf16.msra.mxu1 %v1437_v52  ;;  %873 = vmatprep.subr.bf16.mxu0 %v1508_v34 }
  0x4c   :  { %724 = vmatmul.mubr.bf16.gmra.mrb[12].mxu0 %v1428_v53  ;;  %1356 = vmatprep.subr.bf16.mxu1 %v1508_v34 }
  0x4d   :  { %821 = vmatmul.mubr.bf16.gmra.mrb[12].mxu1 %v1429_v54  ;;  %731 = vmatprep.mubr.bf16.mxu0 %v1431_v55 }
  0x4e   :  { %828 = vmatprep.mubr.bf16.mxu1 %v1433_v56  ;;  %874 = vmatpush1.bf16.msra.mxu0 %v1444_v57 }
  0x4f   :  { %1365 = vmatpush1.bf16.msra.mxu1 %v1444_v57  ;;  %875 = vmatprep.subr.bf16.mxu0 %v1508_v34 }
  0x50   :  { %1357 = vmatprep.subr.bf16.mxu1 %v1508_v34 }
  0x52   :  { %876 = vmatpush1.bf16.msra.mxu0 %v1451_v58 }
  0x53   :  { %1366 = vmatpush1.bf16.msra.mxu1 %v1451_v58  ;;  %877 = vmatprep.subr.bf16.mxu0 %v1508_v34 }
  0x54   :  { %732 = vmatmul.mubr.bf16.gmra.mrb[16].mxu0 %v1435_v59  ;;  %1358 = vmatprep.subr.bf16.mxu1 %v1508_v34 }
  0x55   :  { %829 = vmatmul.mubr.bf16.gmra.mrb[16].mxu1 %v1436_v60  ;;  %739 = vmatprep.mubr.bf16.mxu0 %v1438_v61 }
  0x56   :  { %836 = vmatprep.mubr.bf16.mxu1 %v1440_v62  ;;  %878 = vmatpush1.bf16.msra.mxu0 %v1458_v63 }
  0x57   :  { %1367 = vmatpush1.bf16.msra.mxu1 %v1458_v63 }
  0x5c   :  { %740 = vmatmul.mubr.bf16.gmra.mrb[20].mxu0 %v1442_v0 }
  0x5d   :  { %837 = vmatmul.mubr.bf16.gmra.mrb[20].mxu1 %v1443_v1  ;;  %747 = vmatprep.mubr.bf16.mxu0 %v1445_v2 }
  0x5e   :  { %844 = vmatprep.mubr.bf16.mxu1 %v1447_v3 }
  0x64   :  { %748 = vmatmul.mubr.bf16.gmra.mrb[24].mxu0 %v1449_v4 }
  0x65   :  { %845 = vmatmul.mubr.bf16.gmra.mrb[24].mxu1 %v1450_v5  ;;  %755 = vmatprep.mubr.bf16.mxu0 %v1452_v6 }
  0x66   :  { %852 = vmatprep.mubr.bf16.mxu1 %v1454_v7 }
  0x6c   :  { %756 = vmatmul.mubr.bf16.gmra.mrb[28].mxu0 %v1456_v8 }
  0x6d   :  { %853 = vmatmul.mubr.bf16.gmra.mrb[28].mxu1 %v1457_v9  ;;  %1182 = vmatprep.mubr.msk.bf16.mxu0 %vm642_vm0, %v1461_v10 }
  0x6e   :  { %1186 = vmatprep.mubr.msk.bf16.mxu1 %vm642_vm0, %v1464_v11 }
  0x74   :  { %894 = vmatmul.mubr.bf16.vlgmr.msra.gmra.mrb[32].mxu0 %v1459_v12 }
  0x75   :  { %926 = vmatmul.mubr.bf16.vlgmr.msra.gmra.mrb[32].mxu1 %v1462_v13  ;;  %1183 = vmatprep.mubr.msk.bf16.mxu0 %vm642_vm0, %v1465_v14 }
  0x76   :  { %1187 = vmatprep.mubr.msk.bf16.mxu1 %vm642_vm0, %v1467_v15 }
  0x7c   :  { %902 = vmatmul.mubr.bf16.gmra.mrb[36].mxu0 %v1469_v16 }
  0x7d   :  { %934 = vmatmul.mubr.bf16.gmra.mrb[36].mxu1 %v1470_v17  ;;  %1184 = vmatprep.mubr.msk.bf16.mxu0 %vm642_vm0, %v1471_v18 }
  0x7e   :  { %1188 = vmatprep.mubr.msk.bf16.mxu1 %vm642_vm0, %v1473_v19 }
  0x84   :  { %910 = vmatmul.mubr.bf16.gmra.mrb[40].mxu0 %v1475_v20 }
  0x85   :  { %942 = vmatmul.mubr.bf16.gmra.mrb[40].mxu1 %v1476_v21  ;;  %1185 = vmatprep.mubr.msk.bf16.mxu0 %vm642_vm0, %v1477_v22 }
  0x86   :  { %1189 = vmatprep.mubr.msk.bf16.mxu1 %vm642_vm0, %v1479_v23 }
  0x8c   :  { %918 = vmatmul.mubr.bf16.gmra.mrb[44].mxu0 %v1481_v24 }
  0x8d   :  { %950 = vmatmul.mubr.bf16.gmra.mrb[44].mxu1 %v1482_v25 }
 0x107   :  { %v1238_v26 = vpop.f32.mrb[0].mxu0 }
 0x108   :  { %v1302_v27 = vpop.f32.mrb[0].mxu1  ;;  %v1239_v29 = vpop.f32.mrb[1].mxu0 }
 0x109   :  { %v1240_v30 = vadd.f32 %v1239_v29, %v1238_v26  ;;  %v1303_v31 = vpop.f32.mrb[1].mxu1  ;;  %v1241_v32 = vpop.f32.mrb[2].mxu0 }
 0x10a   :  { %v1304_v33 = vadd.f32 %v1303_v31, %v1302_v27  ;;  %v1305_v34 = vpop.f32.mrb[2].mxu1  ;;  %v1242_v35 = vpop.f32.mrb[3].mxu0 }
 0x10b   :  { %v702_v36 = vadd.f32 %v1240_v30, %v1834_v28  ;;  %v1243_v37 = vadd.f32 %v1242_v35, %v1241_v32  ;;  %v1306_v38 = vpop.f32.mrb[3].mxu1 }
 0x10c   :  { %v1307_v39 = vadd.f32 %v1306_v38, %v1305_v34 }
 0x10d   :  { %v705_v40 = vadd.f32 %v1243_v37, %v1834_v28  ;;  %v1838_v41 = vadd.f32 %v1304_v33, %v702_v36 }
 0x10f   :  { %v1244_v42 = vpop.f32.mrb[4].mxu0  ;;  %v1840_v43 = vadd.f32 %v1307_v39, %v705_v40 }
 0x110   :  { %v1308_v44 = vpop.f32.mrb[4].mxu1  ;;  %v1245_v45 = vpop.f32.mrb[5].mxu0 }
 0x111   :  { %v1246_v46 = vadd.f32 %v1245_v45, %v1244_v42  ;;  %v1309_v47 = vpop.f32.mrb[5].mxu1  ;;  %v1247_v48 = vpop.f32.mrb[6].mxu0 }
 0x112   :  { %v1310_v49 = vadd.f32 %v1309_v47, %v1308_v44  ;;  %v1311_v50 = vpop.f32.mrb[6].mxu1  ;;  %v1248_v51 = vpop.f32.mrb[7].mxu0 }
 0x113   :  { %v710_v52 = vadd.f32 %v1246_v46, %v1834_v28  ;;  %v1249_v53 = vadd.f32 %v1248_v51, %v1247_v48  ;;  %v1312_v54 = vpop.f32.mrb[7].mxu1 }
 0x114   :  { %v1313_v55 = vadd.f32 %v1312_v54, %v1311_v50 }
 0x115   :  { %v713_v56 = vadd.f32 %v1249_v53, %v1834_v28  ;;  %v1844_v57 = vadd.f32 %v1310_v49, %v710_v52 }
 0x117   :  { %v1250_v58 = vpop.f32.mrb[8].mxu0  ;;  %v1846_v59 = vadd.f32 %v1313_v55, %v713_v56 }
 0x118   :  { %v1314_v60 = vpop.f32.mrb[8].mxu1  ;;  %v1251_v61 = vpop.f32.mrb[9].mxu0 }
 0x119   :  { %v1252_v62 = vadd.f32 %v1251_v61, %v1250_v58  ;;  %v1315_v63 = vpop.f32.mrb[9].mxu1  ;;  %v1253_v0 = vpop.f32.mrb[10].mxu0 }
 0x11a   :  { %v1316_v1 = vadd.f32 %v1315_v63, %v1314_v60  ;;  %v1317_v2 = vpop.f32.mrb[10].mxu1  ;;  %v1254_v3 = vpop.f32.mrb[11].mxu0 }
 0x11b   :  { %v718_v4 = vadd.f32 %v1252_v62, %v1834_v28  ;;  %v1255_v5 = vadd.f32 %v1254_v3, %v1253_v0  ;;  %v1318_v6 = vpop.f32.mrb[11].mxu1 }
 0x11c   :  { %v1319_v7 = vadd.f32 %v1318_v6, %v1317_v2 }
 0x11d   :  { %v721_v8 = vadd.f32 %v1255_v5, %v1834_v28  ;;  %v1850_v9 = vadd.f32 %v1316_v1, %v718_v4 }
 0x11f   :  { %v1256_v10 = vpop.f32.mrb[12].mxu0  ;;  %v1852_v11 = vadd.f32 %v1319_v7, %v721_v8 }
 0x120   :  { %v1320_v12 = vpop.f32.mrb[12].mxu1  ;;  %v1257_v13 = vpop.f32.mrb[13].mxu0 }
 0x121   :  { %v1258_v14 = vadd.f32 %v1257_v13, %v1256_v10  ;;  %v1321_v15 = vpop.f32.mrb[13].mxu1  ;;  %v1259_v16 = vpop.f32.mrb[14].mxu0 }
 0x122   :  { %v1322_v17 = vadd.f32 %v1321_v15, %v1320_v12  ;;  %v1323_v18 = vpop.f32.mrb[14].mxu1  ;;  %v1260_v19 = vpop.f32.mrb[15].mxu0 }
 0x123   :  { %v726_v20 = vadd.f32 %v1258_v14, %v1834_v28  ;;  %v1261_v21 = vadd.f32 %v1260_v19, %v1259_v16  ;;  %v1324_v22 = vpop.f32.mrb[15].mxu1 }
 0x124   :  { %v1325_v23 = vadd.f32 %v1324_v22, %v1323_v18 }
 0x125   :  { %v729_v24 = vadd.f32 %v1261_v21, %v1834_v28  ;;  %v1856_v25 = vadd.f32 %v1322_v17, %v726_v20 }
 0x127   :  { %v1262_v26 = vpop.f32.mrb[16].mxu0  ;;  %v1858_v27 = vadd.f32 %v1325_v23, %v729_v24 }
 0x128   :  { %v1326_v29 = vpop.f32.mrb[16].mxu1  ;;  %v1263_v30 = vpop.f32.mrb[17].mxu0 }
 0x129   :  { %v1264_v31 = vadd.f32 %v1263_v30, %v1262_v26  ;;  %v1327_v32 = vpop.f32.mrb[17].mxu1  ;;  %v1265_v33 = vpop.f32.mrb[18].mxu0 }
 0x12a   :  { %v1328_v34 = vadd.f32 %v1327_v32, %v1326_v29  ;;  %v1329_v35 = vpop.f32.mrb[18].mxu1  ;;  %v1266_v36 = vpop.f32.mrb[19].mxu0 }
 0x12b   :  { %v734_v37 = vadd.f32 %v1264_v31, %v1834_v28  ;;  %v1267_v38 = vadd.f32 %v1266_v36, %v1265_v33  ;;  %v1330_v39 = vpop.f32.mrb[19].mxu1 }
 0x12c   :  { %v1331_v40 = vadd.f32 %v1330_v39, %v1329_v35 }
 0x12d   :  { %v737_v42 = vadd.f32 %v1267_v38, %v1834_v28  ;;  %v831_v44 = vadd.f32 %v1328_v34, %v734_v37 }
 0x12f   :  { %v1268_v45 = vpop.f32.mrb[20].mxu0  ;;  %v834_v46 = vadd.f32 %v1331_v40, %v737_v42 }
 0x130   :  { %v1332_v47 = vpop.f32.mrb[20].mxu1  ;;  %v1269_v48 = vpop.f32.mrb[21].mxu0 }
 0x131   :  { %v1270_v49 = vadd.f32 %v1269_v48, %v1268_v45  ;;  %v1333_v50 = vpop.f32.mrb[21].mxu1  ;;  %v1271_v51 = vpop.f32.mrb[22].mxu0 }
 0x132   :  { %v1334_v52 = vadd.f32 %v1333_v50, %v1332_v47  ;;  %v1335_v53 = vpop.f32.mrb[22].mxu1  ;;  %v1272_v54 = vpop.f32.mrb[23].mxu0 }
 0x133   :  { %v742_v55 = vadd.f32 %v1270_v49, %v1834_v28  ;;  %v1273_v56 = vadd.f32 %v1272_v54, %v1271_v51  ;;  %v1336_v58 = vpop.f32.mrb[23].mxu1 }
 0x134   :  { %v1337_v60 = vadd.f32 %v1336_v58, %v1335_v53 }
 0x135   :  { %v745_v61 = vadd.f32 %v1273_v56, %v1834_v28  ;;  %v1864_v62 = vadd.f32 %v1334_v52, %v742_v55 }
 0x137   :  { %v1274_v63 = vpop.f32.mrb[24].mxu0  ;;  %v1866_v0 = vadd.f32 %v1337_v60, %v745_v61 }
 0x138   :  { %v1338_v1 = vpop.f32.mrb[24].mxu1  ;;  %v1275_v2 = vpop.f32.mrb[25].mxu0 }
 0x139   :  { %v1276_v3 = vadd.f32 %v1275_v2, %v1274_v63  ;;  %v1339_v4 = vpop.f32.mrb[25].mxu1  ;;  %v1277_v5 = vpop.f32.mrb[26].mxu0 }
 0x13a   :  { %v1340_v6 = vadd.f32 %v1339_v4, %v1338_v1  ;;  %v1341_v7 = vpop.f32.mrb[26].mxu1  ;;  %v1278_v8 = vpop.f32.mrb[27].mxu0 }
 0x13b   :  { %v750_v10 = vadd.f32 %v1276_v3, %v1834_v28  ;;  %v1279_v12 = vadd.f32 %v1278_v8, %v1277_v5  ;;  %v1342_v13 = vpop.f32.mrb[27].mxu1 }
 0x13c   :  { %v1343_v14 = vadd.f32 %v1342_v13, %v1341_v7 }
 0x13d   :  { %v753_v15 = vadd.f32 %v1279_v12, %v1834_v28  ;;  %v1870_v16 = vadd.f32 %v1340_v6, %v750_v10 }
 0x13f   :  { %v1280_v17 = vpop.f32.mrb[28].mxu0  ;;  %v1872_v18 = vadd.f32 %v1343_v14, %v753_v15 }
 0x140   :  { %v1344_v19 = vpop.f32.mrb[28].mxu1  ;;  %v1281_v20 = vpop.f32.mrb[29].mxu0 }
 0x141   :  { %v1282_v21 = vadd.f32 %v1281_v20, %v1280_v17  ;;  %v1345_v22 = vpop.f32.mrb[29].mxu1  ;;  %v1283_v23 = vpop.f32.mrb[30].mxu0 }
 0x142   :  { %v1346_v24 = vadd.f32 %v1345_v22, %v1344_v19  ;;  %v1347_v26 = vpop.f32.mrb[30].mxu1  ;;  %v1284_v29 = vpop.f32.mrb[31].mxu0 }
 0x143   :  { %v758_v30 = vadd.f32 %v1282_v21, %v1834_v28  ;;  %v1285_v31 = vadd.f32 %v1284_v29, %v1283_v23  ;;  %v1348_v32 = vpop.f32.mrb[31].mxu1 }
 0x144   :  { %v1349_v33 = vadd.f32 %v1348_v32, %v1347_v26 }
 0x145   :  { %v761_v34 = vadd.f32 %v1285_v31, %v1834_v28  ;;  %v1876_v35 = vadd.f32 %v1346_v24, %v758_v30 }
 0x147   :  { %v895_v36 = vpop.f32.mrb[32].mxu0  ;;  %v1878_v37 = vadd.f32 %v1349_v33, %v761_v34 }
 0x148   :  { %v896_v38 = vadd.f32 %v895_v36, %v1838_v41  ;;  %v927_v39 = vpop.f32.mrb[32].mxu1  ;;  %v897_v40 = vpop.f32.mrb[33].mxu0 }
 0x149   :  { %v928_v42 = vadd.f32 %v927_v39, %v831_v44  ;;  %v929_v45 = vpop.f32.mrb[33].mxu1  ;;  %v898_v47 = vpop.f32.mrb[34].mxu0 }
 0x14a   :  { %vm958_vm1 = vcmp.gt.f32.partialorder %v896_v38, 0.0  ;;  %v974_v48 = vmul.f32 0.1, %v896_v38  ;;  %v899_v49 = vadd.f32 %v898_v47, %v1840_v43  ;;  %v930_v50 = vpop.f32.mrb[34].mxu1  ;;  %v900_v51 = vpop.f32.mrb[35].mxu0 }
 0x14b   :  { %vm966_vm2 = vcmp.gt.f32.partialorder %v928_v42, 0.0  ;;  %v982_v28 = vmul.f32 0.1, %v928_v42  ;;  %v931_v52 = vadd.f32 %v930_v50, %v834_v46  ;;  %v932_v53 = vpop.f32.mrb[35].mxu1 }
 0x14c   :  { %v990_v54 = vsel %vm958_vm1, %v896_v38, %v974_v48  ;;  %vm959_vm4 = vcmp.gt.f32.partialorder %v899_v49, 0.0  ;;  %v975_v55 = vmul.f32 0.1, %v899_v49 }
 0x14d   :  { %v1206_v41 = vpack.c.bf16 %v990_v54, %v990_v54  ;;  %v998_v56 = vsel %vm966_vm2, %v928_v42, %v982_v28  ;;  %vm967_vm5 = vcmp.gt.f32.partialorder %v931_v52, 0.0  ;;  %v983_v44 = vmul.f32 0.1, %v931_v52 }
 0x14e   :  { %v1214_v58 = vpack.c.bf16 %v998_v56, %v998_v56  ;;  %v991_v60 = vsel %vm959_vm4, %v899_v49, %v975_v55 }
 0x14f   :  { %1071 = vst.msk [vmem:[%s1961_s3] sm:$0xf] %vm1070_vm3, %v1206_v41  ;;  %v1207_v43 = vpack.c.bf16 %v991_v60, %v991_v60  ;;  %v999_v61 = vsel %vm967_vm5, %v931_v52, %v983_v44  ;;  %v903_v63 = vpop.f32.mrb[36].mxu0 }
 0x150   :  { %1079 = vst.msk [vmem:[%s1961_s3 + $0x20] sm:$0xf] %vm1070_vm3, %v1214_v58  ;;  %v1215_v46 = vpack.c.bf16 %v999_v61, %v999_v61  ;;  %v904_v1 = vadd.f32 %v903_v63, %v1844_v57  ;;  %v935_v2 = vpop.f32.mrb[36].mxu1  ;;  %v905_v3 = vpop.f32.mrb[37].mxu0 }
 0x151   :  { %1072 = vst.msk [vmem:[%s1961_s3 + $0x4] sm:$0xf] %vm1070_vm3, %v1207_v43  ;;  %v936_v4 = vadd.f32 %v935_v2, %v1864_v62  ;;  %v937_v5 = vpop.f32.mrb[37].mxu1  ;;  %v906_v6 = vpop.f32.mrb[38].mxu0 }
 0x152   :  { %1080 = vst.msk [vmem:[%s1961_s3 + $0x24] sm:$0xf] %vm1070_vm3, %v1215_v46  ;;  %vm960_vm6 = vcmp.gt.f32.partialorder %v904_v1, 0.0  ;;  %v976_v7 = vmul.f32 0.1, %v904_v1  ;;  %v907_v57 = vadd.f32 %v906_v6, %v1846_v59  ;;  %v938_v8 = vpop.f32.mrb[38].mxu1 }
 0x153   :  { %v908_v10 = vpop.f32.mrb[39].mxu0  ;;  %vm968_vm7 = vcmp.gt.f32.partialorder %v936_v4, 0.0  ;;  %v984_v12 = vmul.f32 0.1, %v936_v4  ;;  %v939_v13 = vadd.f32 %v938_v8, %v1866_v0  ;;  %v940_v14 = vpop.f32.mrb[39].mxu1 }
 0x154   :  { %v992_v15 = vsel %vm960_vm6, %v904_v1, %v976_v7  ;;  %vm961_vm8 = vcmp.gt.f32.partialorder %v907_v57, 0.0  ;;  %v977_v62 = vmul.f32 0.1, %v907_v57 }
 0x155   :  { %v1208_v17 = vpack.c.bf16 %v992_v15, %v992_v15  ;;  %v1000_v19 = vsel %vm968_vm7, %v936_v4, %v984_v12  ;;  %vm969_vm9 = vcmp.gt.f32.partialorder %v939_v13, 0.0  ;;  %v985_v20 = vmul.f32 0.1, %v939_v13 }
 0x156   :  { %v1216_v21 = vpack.c.bf16 %v1000_v19, %v1000_v19  ;;  %v993_v22 = vsel %vm961_vm8, %v907_v57, %v977_v62 }
 0x157   :  { %1073 = vst.msk [vmem:[%s1961_s3 + $0x8] sm:$0xf] %vm1070_vm3, %v1208_v17  ;;  %v1209_v59 = vpack.c.bf16 %v993_v22, %v993_v22  ;;  %v1001_v23 = vsel %vm969_vm9, %v939_v13, %v985_v20  ;;  %v911_v24 = vpop.f32.mrb[40].mxu0 }
 0x158   :  { %1081 = vst.msk [vmem:[%s1961_s3 + $0x28] sm:$0xf] %vm1070_vm3, %v1216_v21  ;;  %v1217_v0 = vpack.c.bf16 %v1001_v23, %v1001_v23  ;;  %v912_v26 = vadd.f32 %v911_v24, %v1850_v9  ;;  %v943_v29 = vpop.f32.mrb[40].mxu1  ;;  %v913_v30 = vpop.f32.mrb[41].mxu0 }
 0x159   :  { %1074 = vst.msk [vmem:[%s1961_s3 + $0xc] sm:$0xf] %vm1070_vm3, %v1209_v59  ;;  %v944_v31 = vadd.f32 %v943_v29, %v1870_v16  ;;  %v945_v32 = vpop.f32.mrb[41].mxu1  ;;  %v914_v33 = vpop.f32.mrb[42].mxu0 }
 0x15a   :  { %1082 = vst.msk [vmem:[%s1961_s3 + $0x2c] sm:$0xf] %vm1070_vm3, %v1217_v0  ;;  %vm962_vm10 = vcmp.gt.f32.partialorder %v912_v26, 0.0  ;;  %v978_v34 = vmul.f32 0.1, %v912_v26  ;;  %v915_v9 = vadd.f32 %v914_v33, %v1852_v11  ;;  %v946_v36 = vpop.f32.mrb[42].mxu1 }
 0x15b   :  { %v916_v38 = vpop.f32.mrb[43].mxu0  ;;  %vm970_vm11 = vcmp.gt.f32.partialorder %v944_v31, 0.0  ;;  %v986_v39 = vmul.f32 0.1, %v944_v31  ;;  %v947_v40 = vadd.f32 %v946_v36, %v1872_v18  ;;  %v948_v42 = vpop.f32.mrb[43].mxu1 }
 0x15c   :  { %v994_v45 = vsel %vm962_vm10, %v912_v26, %v978_v34  ;;  %vm963_vm12 = vcmp.gt.f32.partialorder %v915_v9, 0.0  ;;  %v979_v16 = vmul.f32 0.1, %v915_v9 }
 0x15d   :  { %v1210_v47 = vpack.c.bf16 %v994_v45, %v994_v45  ;;  %v1002_v48 = vsel %vm970_vm11, %v944_v31, %v986_v39  ;;  %vm971_vm13 = vcmp.gt.f32.partialorder %v947_v40, 0.0  ;;  %v987_v49 = vmul.f32 0.1, %v947_v40 }
 0x15e   :  { %v1218_v50 = vpack.c.bf16 %v1002_v48, %v1002_v48  ;;  %v995_v51 = vsel %vm963_vm12, %v915_v9, %v979_v16 }
 0x15f   :  { %1075 = vst.msk [vmem:[%s1961_s3 + $0x10] sm:$0xf] %vm1070_vm3, %v1210_v47  ;;  %v1211_v11 = vpack.c.bf16 %v995_v51, %v995_v51  ;;  %v1003_v28 = vsel %vm971_vm13, %v947_v40, %v987_v49  ;;  %v919_v52 = vpop.f32.mrb[44].mxu0 }
 0x160   :  { %1083 = vst.msk [vmem:[%s1961_s3 + $0x30] sm:$0xf] %vm1070_vm3, %v1218_v50  ;;  %v1219_v18 = vpack.c.bf16 %v1003_v28, %v1003_v28  ;;  %v920_v53 = vadd.f32 %v919_v52, %v1856_v25  ;;  %v951_v54 = vpop.f32.mrb[44].mxu1  ;;  %v921_v55 = vpop.f32.mrb[45].mxu0 }
 0x161   :  { %1076 = vst.msk [vmem:[%s1961_s3 + $0x14] sm:$0xf] %vm1070_vm3, %v1211_v11  ;;  %v952_v41 = vadd.f32 %v951_v54, %v1876_v35  ;;  %v953_v56 = vpop.f32.mrb[45].mxu1  ;;  %v922_v44 = vpop.f32.mrb[46].mxu0 }
 0x162   :  { %1084 = vst.msk [vmem:[%s1961_s3 + $0x34] sm:$0xf] %vm1070_vm3, %v1219_v18  ;;  %vm964_vm14 = vcmp.gt.f32.partialorder %v920_v53, 0.0  ;;  %v980_v58 = vmul.f32 0.1, %v920_v53  ;;  %v923_v25 = vadd.f32 %v922_v44, %v1858_v27  ;;  %v954_v60 = vpop.f32.mrb[46].mxu1 }
 0x163   :  { %v924_v43 = vpop.f32.mrb[47].mxu0  ;;  %vm972_vm15 = vcmp.gt.f32.partialorder %v952_v41, 0.0  ;;  %v988_v61 = vmul.f32 0.1, %v952_v41  ;;  %v955_v63 = vadd.f32 %v954_v60, %v1878_v37  ;;  %v956_v46 = vpop.f32.mrb[47].mxu1 }
 0x164   :  { %v996_v1 = vsel %vm964_vm14, %v920_v53, %v980_v58  ;;  %vm965_vm0 = vcmp.gt.f32.partialorder %v923_v25, 0.0  ;;  %v981_v35 = vmul.f32 0.1, %v923_v25 }
 0x165   :  { %v1212_v2 = vpack.c.bf16 %v996_v1, %v996_v1  ;;  %v1004_v3 = vsel %vm972_vm15, %v952_v41, %v988_v61  ;;  %vm973_vm1 = vcmp.gt.f32.partialorder %v955_v63, 0.0  ;;  %v989_v4 = vmul.f32 0.1, %v955_v63 }
 0x166   :  { %v1220_v5 = vpack.c.bf16 %v1004_v3, %v1004_v3  ;;  %v997_v6 = vsel %vm965_vm0, %v923_v25, %v981_v35 }
 0x167   :  { %1077 = vst.msk [vmem:[%s1961_s3 + $0x18] sm:$0xf] %vm1070_vm3, %v1212_v2  ;;  %v1213_v27 = vpack.c.bf16 %v997_v6, %v997_v6  ;;  %v1005_v7 = vsel %vm973_vm1, %v955_v63, %v989_v4 }
 0x168   :  { %1085 = vst.msk [vmem:[%s1961_s3 + $0x38] sm:$0xf] %vm1070_vm3, %v1220_v5  ;;  %v1221_v37 = vpack.c.bf16 %v1005_v7, %v1005_v7 }
 0x169   :  { %1078 = vst.msk [vmem:[%s1961_s3 + $0x1c] sm:$0xf] %vm1070_vm3, %v1213_v27 }
 0x16a   :  { %1086 = vst.msk [vmem:[%s1961_s3 + $0x3c] sm:$0xf] %vm1070_vm3, %v1221_v37 }
 0x16b   :  { %1091 = vsyncpa [#allocation3], 1 }

// kernel: discriminator_s_forward.9
= control target key start
LH: loop header
LB: loop body
LE: loop exit
PB: predicated region body
PF: predicated region fallthrough
CT: control target
= control target key end

     0   :  { %s1935_s12 = smov 0   ;;  %s1937_s13 = smov 0   ;;  %s2105_s0 = inlined_call_operand.vmem [shape: bf16[2,32,1312], index: 0, kind: input, shape index: {}]   ;;  %s2106_s1 = inlined_call_operand.vmem [shape: bf16[2,1312,128], index: 1, kind: input, shape index: {}]   ;;  %s2107_s2 = inlined_call_operand.vmem [shape: f32[2,1,128], index: 2, kind: input, shape index: {}]   ;;  %s2108_s3 = inlined_call_operand.vmem [shape: bf16[32,256], index: 3, kind: output, shape index: {}]  }
   0x1   :  { %s1939_s14 = smov 0  }
   0x2 LB: > { %s1948_s15 = sadd.s32 4294967295, %s1913_s14   ;;  %s1950_s16 = sadd.s32 1, %s1913_s14   ;;  %s1913_s14 = sphi %s1939_s14, %s2112_s14   ;;  %s1909_s13 = sphi %s1937_s13, %s2111_s13   ;;  %s1905_s12 = sphi %s1935_s12, %s2110_s12  }
   0x3   : > { %s95_s17 = ssub.s32 %s1913_s14, %s1950_s16  ;;  %s98_s18 = sadd.s32 1, %s1909_s13 }
   0x4   : > { %p96_p0 = scmp.eq.s32.totalorder %s95_s17, 0  ;;  %p108_p1 = scmp.ne.s32.totalorder %s1909_s13, %s1905_s12 }
   0x5   : > { %p109_p2 = scmp.eq.s32.totalorder %s1948_s15, 1  ;;  %p1465_p3 = scmp.ge.s32.totalorder %s1913_s14, 1 }
   0x6   : > { %s1958_s19 = scalar_select %p96_p0, %s1909_s13, %s98_s18  }
   0x7   : > { %p1960_p4 = por %p109_p2, %p108_p1  ;;  %p155_p5 = scmp.lt.s32.totalorder %s1913_s14, 3 }
   0x9   : > { %p156_p6 = pnand %p1465_p3, %p155_p5 }
   0xa   : > { %p186_p7 = scmp.lt.s32.totalorder (!%p156_p6), %s1948_s15, 1  ;;  %vm997_vm0 = vcmask (!%p156_p6), 261120   ;;  %s183_s6 = sand.u32 (!%p156_p6), 1, %s1905_s12  }
   0xb   : > { %159 = sbr.rel (%p156_p6) target bundleno = 363 (0x16b), region = 32  ;;  %s1466_s7 = sshll.u32 (!%p156_p6), %s183_s6, 4 }
   0xc   : > { %s185_s8 = scalar_lea.vmem (!%p156_p6), [#allocation2], %s1466_s7 }
  0x12   : > { %s1966_s21 = scalar_select %p186_p7, %s1948_s15, 1 }
  0x13   : > { %s1581_s9 = sshll.u32 (%p1960_p4), %s1948_s15, 2 }
  0x14   : > { %s1752_s22 = smul.u32 656, %s1966_s21  ;;  %s198_s5 = scalar_lea.vmem %s2107_s2, %s1966_s21 }
  0x15   : > { %s1751_s26 = smul.u32 176, %s1966_s21  ;;  %s1338_s12 = scalar_lea.vmem (%p1960_p4), %s2108_s3, %s1581_s9 }
  0x16   : > { %s1972_s25 = scalar_lea.vmem %s2106_s1, %s1752_s22 }
  0x17   : > { %v1777_v0 = vld [vmem:[%s1972_s25 + $0x40] sm:$0xff]   ;;  %v1781_v4 = vld [vmem:[%s1972_s25 + $0x48] sm:$0xff]   ;;  %v1785_v8 = vld [vmem:[%s1972_s25 + $0x50] sm:$0xff]   ;;  %s2007_s29 = scalar_lea.vmem %s2105_s0, %s1751_s26 }
  0x18   : > { %v1778_v1 = vld [vmem:[%s1972_s25] sm:$0xff]   ;;  %1599 = vmatprep.subr.bf16.mxu0 %v1777_v0  ;;  %v1782_v5 = vld [vmem:[%s1972_s25 + $0x8] sm:$0xff]   ;;  %v1786_v9 = vld [vmem:[%s1972_s25 + $0x10] sm:$0xff]  }
  0x19   : > { %v1779_v2 = vld [vmem:[%s1972_s25 + $0xc0] sm:$0xff]   ;;  %1600 = vmatpush3.bf16.msra.mxu0 %v1778_v1  ;;  %v1783_v6 = vld [vmem:[%s1972_s25 + $0xc8] sm:$0xff]   ;;  %v1787_v10 = vld [vmem:[%s1972_s25 + $0xd0] sm:$0xff]  }
  0x1a   : > { %v1780_v3 = vld [vmem:[%s1972_s25 + $0x80] sm:$0xff]   ;;  %1627 = vmatprep.subr.bf16.mxu1 %v1779_v2  ;;  %1601 = vmatprep.subr.bf16.mxu0 %v1781_v4  ;;  %v1784_v7 = vld [vmem:[%s1972_s25 + $0x88] sm:$0xff]   ;;  %v1788_v11 = vld [vmem:[%s1972_s25 + $0x90] sm:$0xff]  }
  0x1b   : > { %1628 = vmatpush3.bf16.msra.mxu1 %v1780_v3  ;;  %v1789_v12 = vld [vmem:[%s1972_s25 + $0x58] sm:$0xff]   ;;  %v1793_v16 = vld [vmem:[%s1972_s25 + $0x60] sm:$0xff]   ;;  %v1797_v20 = vld [vmem:[%s1972_s25 + $0x68] sm:$0xff]  }
  0x1c   : > { %1629 = vmatprep.subr.bf16.mxu1 %v1783_v6  ;;  %v1790_v13 = vld [vmem:[%s1972_s25 + $0x18] sm:$0xff]   ;;  %v1794_v17 = vld [vmem:[%s1972_s25 + $0x20] sm:$0xff]   ;;  %v1798_v21 = vld [vmem:[%s1972_s25 + $0x28] sm:$0xff]  }
  0x1d   : > { %1602 = vmatpush3.bf16.msra.mxu0 %v1782_v5  ;;  %v1791_v14 = vld [vmem:[%s1972_s25 + $0xd8] sm:$0xff]   ;;  %v1795_v18 = vld [vmem:[%s1972_s25 + $0xe0] sm:$0xff]   ;;  %v1799_v22 = vld [vmem:[%s1972_s25 + $0xe8] sm:$0xff]  }
  0x1e   : > { %1603 = vmatprep.subr.bf16.mxu0 %v1785_v8  ;;  %v1792_v15 = vld [vmem:[%s1972_s25 + $0x98] sm:$0xff]   ;;  %v1796_v19 = vld [vmem:[%s1972_s25 + $0xa0] sm:$0xff]   ;;  %v1800_v23 = vld [vmem:[%s1972_s25 + $0xa8] sm:$0xff]  }
  0x1f   : > { %1630 = vmatpush3.bf16.msra.mxu1 %v1784_v7  ;;  %v1801_v24 = vld [vmem:[%s1972_s25 + $0x70] sm:$0xff]   ;;  %v1805_v28 = vld [vmem:[%s1972_s25 + $0x78] sm:$0xff]   ;;  %v1808_v31 = vld [vmem:[%s2007_s29] ss:$44 sps:$4 sm:$0xff]  }
  0x20   : > { %1631 = vmatprep.subr.bf16.mxu1 %v1787_v10  ;;  %v1802_v25 = vld [vmem:[%s1972_s25 + $0x30] sm:$0xff]   ;;  %v1806_v29 = vld [vmem:[%s1972_s25 + $0x38] sm:$0xff]   ;;  %v1812_v34 = vld [vmem:[%s1972_s25 + $0x140] sm:$0xff]  }
  0x21   : > { %1604 = vmatpush3.bf16.msra.mxu0 %v1786_v9  ;;  %v1803_v26 = vld [vmem:[%s1972_s25 + $0xf0] sm:$0xff]   ;;  %v1807_v30 = vld [vmem:[%s1972_s25 + $0xf8] sm:$0xff]   ;;  %v1816_v37 = vld [vmem:[%s1972_s25 + $0x100] sm:$0xff]  }
  0x22   : > { %1605 = vmatprep.subr.bf16.mxu0 %v1789_v12  ;;  %v1804_v27 = vld [vmem:[%s1972_s25 + $0xb0] sm:$0xff]   ;;  %v1811_v33 = vld [vmem:[%s1972_s25 + $0xb8] sm:$0xff]   ;;  %v1817_v38 = vld [vmem:[%s1972_s25 + $0x1c0] sm:$0xff]  }
  0x23   : > { %1632 = vmatpush3.bf16.msra.mxu1 %v1788_v11  ;;  %v1810_v32 = vld [vmem:[%s2007_s29 + $0x4] ss:$44 sps:$4 sm:$0xff]   ;;  %v1813_v35 = vld [vmem:[%s2007_s29 + $0x8] ss:$44 sps:$4 sm:$0xff]   ;;  %v1815_v36 = vld [vmem:[%s2007_s29 + $0xc] ss:$44 sps:$4 sm:$0xff]  }
  0x24   : > { %1633 = vmatprep.subr.bf16.mxu1 %v1791_v14  ;;  %1036 = vmatprep.mubr.bf16.mxu0 %v1810_v32  ;;  %v1818_v39 = vld [vmem:[%s1972_s25 + $0x180] sm:$0xff]   ;;  %v1819_v40 = vld [vmem:[%s1972_s25 + $0x148] sm:$0xff]   ;;  %v1823_v44 = vld [vmem:[%s1972_s25 + $0x150] sm:$0xff]  }
  0x25   : > { %1606 = vmatpush3.bf16.msra.mxu0 %v1790_v13  ;;  %1085 = vmatprep.mubr.bf16.mxu1 %v1815_v36  ;;  %v1820_v41 = vld [vmem:[%s1972_s25 + $0x108] sm:$0xff]   ;;  %v1824_v45 = vld [vmem:[%s1972_s25 + $0x110] sm:$0xff]   ;;  %v1827_v48 = vld [vmem:[%s1972_s25 + $0x158] sm:$0xff]  }
  0x26   : > { %1607 = vmatprep.subr.bf16.mxu0 %v1793_v16  ;;  %v1821_v42 = vld [vmem:[%s1972_s25 + $0x1c8] sm:$0xff]   ;;  %v1825_v46 = vld [vmem:[%s1972_s25 + $0x1d0] sm:$0xff]   ;;  %v1828_v49 = vld [vmem:[%s1972_s25 + $0x118] sm:$0xff]  }
  0x27   : > { %1634 = vmatpush3.bf16.msra.mxu1 %v1792_v15  ;;  %v1822_v43 = vld [vmem:[%s1972_s25 + $0x188] sm:$0xff]   ;;  %v1826_v47 = vld [vmem:[%s1972_s25 + $0x190] sm:$0xff]   ;;  %v1829_v50 = vld [vmem:[%s1972_s25 + $0x1d8] sm:$0xff]  }
  0x28   : > { %1635 = vmatprep.subr.bf16.mxu1 %v1795_v18  ;;  %v1830_v51 = vld [vmem:[%s1972_s25 + $0x198] sm:$0xff]   ;;  %v1831_v52 = vld [vmem:[%s1972_s25 + $0x160] sm:$0xff]   ;;  %v1835_v56 = vld [vmem:[%s1972_s25 + $0x168] sm:$0xff]  }
  0x29   : > { %1608 = vmatpush3.bf16.msra.mxu0 %v1794_v17  ;;  %v1832_v53 = vld [vmem:[%s1972_s25 + $0x120] sm:$0xff]   ;;  %v1836_v57 = vld [vmem:[%s2007_s29 + $0x5c] ss:$44 sps:$4 sm:$0xff]   ;;  %v1845_v0 = vld [vmem:[%s1972_s25 + $0x170] sm:$0xff]  }
  0x2a   : > { %1609 = vmatprep.subr.bf16.mxu0 %v1797_v20  ;;  %v1833_v54 = vld [vmem:[%s1972_s25 + $0x1e0] sm:$0xff]   ;;  %v1838_v58 = vld [vmem:[%s1972_s25 + $0x128] sm:$0xff]   ;;  %v1846_v1 = vld [vmem:[%s1972_s25 + $0x130] sm:$0xff]  }
  0x2b   : > { %1636 = vmatpush3.bf16.msra.mxu1 %v1796_v19  ;;  %v1834_v55 = vld [vmem:[%s1972_s25 + $0x1a0] sm:$0xff]   ;;  %v1840_v60 = vld [vmem:[%s1972_s25 + $0x1e8] sm:$0xff]   ;;  %v1847_v2 = vld [vmem:[%s1972_s25 + $0x1f0] sm:$0xff]  }
  0x2c   : > { %1637 = vmatprep.subr.bf16.mxu1 %v1799_v22  ;;  %v1839_v59 = vld [vmem:[%s2007_s29 + $0x58] ss:$44 sps:$4 sm:$0xff]   ;;  %v1843_v62 = vld [vmem:[%s1972_s25 + $0x1a8] sm:$0xff]   ;;  %v1848_v3 = vld [vmem:[%s1972_s25 + $0x1b0] sm:$0xff]  }
  0x2d   : > { %1610 = vmatpush3.bf16.msra.mxu0 %v1798_v21  ;;  %v1841_v61 = vld [vmem:[%s2007_s29 + $0x64] ss:$44 sps:$4 sm:$0xff]   ;;  %v1844_v63 = vld [vmem:[%s2007_s29 + $0x60] ss:$44 sps:$4 sm:$0xff]   ;;  %v1849_v4 = vld [vmem:[%s1972_s25 + $0x178] sm:$0xff]  }
  0x2e   : > { %1611 = vmatprep.subr.bf16.mxu0 %v1801_v24  ;;  %v1850_v5 = vld [vmem:[%s1972_s25 + $0x138] sm:$0xff]   ;;  %v1854_v8 = vld [vmem:[%s2007_s29 + $0x14] ss:$44 sps:$4 sm:$0xff]   ;;  %v1861_v14 = vld [vmem:[%s1972_s25 + $0x248] sm:$0xff]  }
  0x2f   : > { %1638 = vmatpush3.bf16.msra.mxu1 %v1800_v23  ;;  %v1851_v6 = vld [vmem:[%s1972_s25 + $0x1f8] sm:$0xff]   ;;  %v1856_v10 = vld [vmem:[%s1972_s25 + $0x240] sm:$0xff]   ;;  %v1862_v15 = vld [vmem:[%s1972_s25 + $0x208] sm:$0xff]  }
  0x30   : > { %1639 = vmatprep.subr.bf16.mxu1 %v1803_v26  ;;  %v1852_v7 = vld [vmem:[%s2007_s29 + $0x10] ss:$44 sps:$4 sm:$0xff]   ;;  %v1857_v11 = vld [vmem:[%s2007_s29 + $0x18] ss:$44 sps:$4 sm:$0xff]   ;;  %v1865_v17 = vld [vmem:[%s2007_s29 + $0x68] ss:$44 sps:$4 sm:$0xff]  }
  0x31   : > { %1612 = vmatpush3.bf16.msra.mxu0 %v1802_v25  ;;  %v1855_v9 = vld [vmem:[%s1972_s25 + $0x1b8] sm:$0xff]   ;;  %v1860_v13 = vld [vmem:[%s1972_s25 + $0x200] sm:$0xff]   ;;  %v1866_v18 = vld [vmem:[%s1972_s25 + $0x250] sm:$0xff]  }
  0x32   : > { %1613 = vmatprep.subr.bf16.mxu0 %v1805_v28  ;;  %v1859_v12 = vld [vmem:[%s2007_s29 + $0x1c] ss:$44 sps:$4 sm:$0xff]   ;;  %v1863_v16 = vld [vmem:[%s2007_s29 + $0x6c] ss:$44 sps:$4 sm:$0xff]   ;;  %v1867_v19 = vld [vmem:[%s2007_s29 + $0x74] ss:$44 sps:$4 sm:$0xff]  }
  0x33   : > { %1640 = vmatpush3.bf16.msra.mxu1 %v1804_v27  ;;  %v1869_v20 = vld [vmem:[%s1972_s25 + $0x210] sm:$0xff]   ;;  %v1871_v22 = vld [vmem:[%s1972_s25 + $0x258] sm:$0xff]   ;;  %v1873_v24 = vld [vmem:[%s1972_s25 + $0x260] sm:$0xff]  }
  0x34   : > { %1641 = vmatprep.subr.bf16.mxu1 %v1807_v30  ;;  %v1870_v21 = vld [vmem:[%s2007_s29 + $0x70] ss:$44 sps:$4 sm:$0xff]   ;;  %v1874_v25 = vld [vmem:[%s1972_s25 + $0x220] sm:$0xff]   ;;  %v1875_v26 = vld [vmem:[%s1972_s25 + $0x268] sm:$0xff]  }
  0x35   : > { %1614 = vmatpush3.bf16.msra.mxu0 %v1806_v29  ;;  %v1872_v23 = vld [vmem:[%s1972_s25 + $0x218] sm:$0xff]   ;;  %v1879_v27 = vld [vmem:[%s1972_s25 + $0x280] sm:$0xff]   ;;  %v1876_v28 = vld [vmem:[%s1972_s25 + $0x228] sm:$0xff]  }
  0x36   : > { %1655 = vmatprep.subr.bf16.mxu0 %v1812_v34  ;;  %v1877_v29 = vld [vmem:[%s1972_s25 + $0x270] sm:$0xff]   ;;  %v1885_v32 = vld [vmem:[%s1972_s25 + $0x288] sm:$0xff]   ;;  %v1881_v36 = vld [vmem:[%s1972_s25 + $0x238] sm:$0xff]  }
  0x37   : > { %1642 = vmatpush3.bf16.msra.mxu1 %v1811_v33  ;;  %v1884_v30 = vld [vmem:[%s2007_s29 + $0x24] ss:$44 sps:$4 sm:$0xff]   ;;  %v1886_v33 = vld [vmem:[%s2007_s29 + $0x28] ss:$44 sps:$4 sm:$0xff]   ;;  %v1887_v34 = vld [vmem:[%s2007_s29 + $0x80] ss:$44 sps:$4 sm:$0xff]  }
  0x38   : > { %1037 = vmatmul.mubr.bf16.vlgmr.msra.gmra.mrb[0].mxu0 %v1808_v31  ;;  %1683 = vmatprep.subr.bf16.mxu1 %v1817_v38  ;;  %v1878_v31 = vld [vmem:[%s1972_s25 + $0x230] sm:$0xff]   ;;  %v1888_v38 = vld [vmem:[%s2007_s29 + $0x7c] ss:$44 sps:$4 sm:$0xff]  }
  0x39   : > { %1656 = vmatpush3.bf16.msra.mxu0 %v1816_v37  ;;  %1044 = vmatprep.mubr.bf16.mxu0 %v1836_v57  ;;  %v1882_v37 = vld [vmem:[%s2007_s29 + $0x20] ss:$44 sps:$4 sm:$0xff]  }
  0x3a   : > { %1086 = vmatmul.mubr.bf16.vlgmr.msra.gmra.mrb[0].mxu1 %v1813_v35  ;;  %1657 = vmatprep.subr.bf16.mxu0 %v1819_v40  ;;  %v1880_v35 = vld [vmem:[%s1972_s25 + $0x278] sm:$0xff]  }
  0x3b   : > { %1684 = vmatpush3.bf16.msra.mxu1 %v1818_v39  ;;  %1093 = vmatprep.mubr.bf16.mxu1 %v1841_v61  ;;  %v1890_v39 = vld [vmem:[%s2007_s29 + $0x78] ss:$44 sps:$4 sm:$0xff]  }
  0x3c   : > { %1685 = vmatprep.subr.bf16.mxu1 %v1821_v42 }
  0x3d   : > { %1658 = vmatpush3.bf16.msra.mxu0 %v1820_v41  ;;  %v1469_v41 = vld [vmem:[%s198_s5] ss:$0 sm:$0xff] }
  0x3e   : > { %1659 = vmatprep.subr.bf16.mxu0 %v1823_v44 }
  0x3f   : > { %1686 = vmatpush3.bf16.msra.mxu1 %v1822_v43 }
  0x40   : > { %1687 = vmatprep.subr.bf16.mxu1 %v1825_v46  ;;  %1045 = vmatmul.mubr.bf16.gmra.mrb[4].mxu0 %v1839_v59 }
  0x41   : > { %1660 = vmatpush3.bf16.msra.mxu0 %v1824_v45  ;;  %1134 = vmatprep.mubr.bf16.mxu0 %v1854_v8 }
  0x42   : > { %1661 = vmatprep.subr.bf16.mxu0 %v1827_v48  ;;  %1094 = vmatmul.mubr.bf16.gmra.mrb[4].mxu1 %v1844_v63 }
  0x43   : > { %1688 = vmatpush3.bf16.msra.mxu1 %v1826_v47  ;;  %1183 = vmatprep.mubr.bf16.mxu1 %v1859_v12 }
  0x44   : > { %1689 = vmatprep.subr.bf16.mxu1 %v1829_v50 }
  0x45   : > { %1662 = vmatpush3.bf16.msra.mxu0 %v1828_v49 }
  0x46   : > { %1663 = vmatprep.subr.bf16.mxu0 %v1831_v52 }
  0x47   : > { %1690 = vmatpush3.bf16.msra.mxu1 %v1830_v51 }
  0x48   : > { %1691 = vmatprep.subr.bf16.mxu1 %v1833_v54 }
  0x49   : > { %1664 = vmatpush3.bf16.msra.mxu0 %v1832_v53 }
  0x4a   : > { %1665 = vmatprep.subr.bf16.mxu0 %v1835_v56 }
  0x4b   : > { %1692 = vmatpush3.bf16.msra.mxu1 %v1834_v55 }
  0x4c   : > { %1693 = vmatprep.subr.bf16.mxu1 %v1840_v60 }
  0x4d   : > { %1666 = vmatpush3.bf16.msra.mxu0 %v1838_v58 }
  0x4e   : > { %1667 = vmatprep.subr.bf16.mxu0 %v1845_v0 }
  0x4f   : > { %1694 = vmatpush3.bf16.msra.mxu1 %v1843_v62 }
  0x50   : > { %1695 = vmatprep.subr.bf16.mxu1 %v1847_v2 }
  0x51   : > { %1668 = vmatpush3.bf16.msra.mxu0 %v1846_v1 }
  0x52   : > { %1669 = vmatprep.subr.bf16.mxu0 %v1849_v4 }
  0x53   : > { %1696 = vmatpush3.bf16.msra.mxu1 %v1848_v3 }
  0x54   : > { %1697 = vmatprep.subr.bf16.mxu1 %v1851_v6 }
  0x55   : > { %1670 = vmatpush3.bf16.msra.mxu0 %v1850_v5 }
  0x56   : > { %1711 = vmatprep.subr.bf16.mxu0 %v1856_v10 }
  0x57   : > { %1698 = vmatpush3.bf16.msra.mxu1 %v1855_v9 }
  0x58   : > { %1135 = vmatmul.mubr.bf16.vlgmr.msra.gmra.mrb[8].mxu0 %v1852_v7  ;;  %1743 = vmatprep.subr.bf16.mxu1 %v1879_v27 }
  0x59   : > { %1712 = vmatpush3.bf16.msra.mxu0 %v1860_v13  ;;  %1142 = vmatprep.mubr.bf16.mxu0 %v1863_v16 }
  0x5a   : > { %1184 = vmatmul.mubr.bf16.vlgmr.msra.gmra.mrb[8].mxu1 %v1857_v11  ;;  %1713 = vmatprep.subr.bf16.mxu0 %v1861_v14 }
  0x5b   : > { %1191 = vmatprep.mubr.bf16.mxu1 %v1867_v19  ;;  %1744 = vmatpush3.bf16.msra.mxu1 %v1879_v27 }
  0x5c   : > { %1745 = vmatprep.subr.bf16.mxu1 %v1885_v32 }
  0x5d   : > { %1714 = vmatpush3.bf16.msra.mxu0 %v1862_v15 }
  0x5e   : > { %1715 = vmatprep.subr.bf16.mxu0 %v1866_v18 }
  0x5f   : > { %1746 = vmatpush3.bf16.msra.mxu1 %v1885_v32 }
  0x60   : > { %1143 = vmatmul.mubr.bf16.gmra.mrb[12].mxu0 %v1865_v17 }
  0x61   : > { %1716 = vmatpush3.bf16.msra.mxu0 %v1869_v20  ;;  %1232 = vmatprep.mubr.bf16.mxu0 %v1884_v30 }
  0x62   : > { %1192 = vmatmul.mubr.bf16.gmra.mrb[12].mxu1 %v1870_v21  ;;  %1717 = vmatprep.subr.bf16.mxu0 %v1871_v22 }
  0x63   : > { %1747 = vmatprep.mubr.msk.bf16.mxu1 %vm997_vm0, %v1886_v33 }
  0x65   : > { %1718 = vmatpush3.bf16.msra.mxu0 %v1872_v23 }
  0x66   : > { %1719 = vmatprep.subr.bf16.mxu0 %v1873_v24 }
  0x69   : > { %1720 = vmatpush3.bf16.msra.mxu0 %v1874_v25 }
  0x6a   : > { %1721 = vmatprep.subr.bf16.mxu0 %v1875_v26  ;;  %1748 = vmatmul.mubr.msk.bf16.vlgmr.msra.gmra.mrb[16].mxu1 %vm997_vm0, %v1887_v34 }
  0x6d   : > { %1722 = vmatpush3.bf16.msra.mxu0 %v1876_v28 }
  0x6e   : > { %1723 = vmatprep.subr.bf16.mxu0 %v1877_v29 }
  0x71   : > { %1724 = vmatpush3.bf16.msra.mxu0 %v1878_v31 }
  0x72   : > { %1725 = vmatprep.subr.bf16.mxu0 %v1880_v35 }
  0x75   : > { %1726 = vmatpush3.bf16.msra.mxu0 %v1881_v36 }
  0x78   : > { %1233 = vmatmul.mubr.bf16.vlgmr.msra.gmra.mrb[16].mxu0 %v1882_v37 }
  0x79   : > { %1240 = vmatprep.mubr.bf16.mxu0 %v1888_v38 }
  0x80   : > { %1241 = vmatmul.mubr.bf16.gmra.mrb[20].mxu0 %v1890_v39 }
 0x10b   : > { %v1615_v40 = vpop.f32.mrb[0].mxu0 }
 0x10c   : > { %v1616_v42 = vpop.f32.mrb[1].mxu0 }
 0x10d   : > { %v1617_v43 = vadd.f32 %v1616_v42, %v1615_v40  ;;  %v1618_v44 = vpop.f32.mrb[2].mxu0  ;;  %v1643_v45 = vpop.f32.mrb[0].mxu1 }
 0x10e   : > { %v1619_v46 = vpop.f32.mrb[3].mxu0  ;;  %v1644_v49 = vpop.f32.mrb[1].mxu1 }
 0x10f   : > { %v1039_v47 = vadd.f32 %v1617_v43, %v1469_v41  ;;  %v1620_v48 = vadd.f32 %v1619_v46, %v1618_v44  ;;  %v1645_v50 = vadd.f32 %v1644_v49, %v1643_v45  ;;  %v1646_v51 = vpop.f32.mrb[2].mxu1 }
 0x110   : > { %v1647_v53 = vpop.f32.mrb[3].mxu1 }
 0x111   : > { %v1042_v52 = vadd.f32 %v1620_v48, %v1469_v41  ;;  %v1088_v54 = vadd.f32 %v1645_v50, %v1039_v47  ;;  %v1648_v55 = vadd.f32 %v1647_v53, %v1646_v51 }
 0x113   : > { %v1091_v56 = vadd.f32 %v1648_v55, %v1042_v52  ;;  %v1621_v57 = vpop.f32.mrb[4].mxu0 }
 0x114   : > { %v1622_v58 = vpop.f32.mrb[5].mxu0 }
 0x115   : > { %v1623_v59 = vadd.f32 %v1622_v58, %v1621_v57  ;;  %v1624_v60 = vpop.f32.mrb[6].mxu0  ;;  %v1649_v61 = vpop.f32.mrb[4].mxu1 }
 0x116   : > { %v1625_v62 = vpop.f32.mrb[7].mxu0  ;;  %v1650_v1 = vpop.f32.mrb[5].mxu1 }
 0x117   : > { %v1047_v63 = vadd.f32 %v1623_v59, %v1469_v41  ;;  %v1626_v0 = vadd.f32 %v1625_v62, %v1624_v60  ;;  %v1651_v2 = vadd.f32 %v1650_v1, %v1649_v61  ;;  %v1652_v3 = vpop.f32.mrb[6].mxu1 }
 0x118   : > { %v1653_v5 = vpop.f32.mrb[7].mxu1 }
 0x119   : > { %v1050_v4 = vadd.f32 %v1626_v0, %v1469_v41  ;;  %v1096_v6 = vadd.f32 %v1651_v2, %v1047_v63  ;;  %v1654_v7 = vadd.f32 %v1653_v5, %v1652_v3 }
 0x11b   : > { %v1099_v8 = vadd.f32 %v1654_v7, %v1050_v4 }
 0x12b   : > { %v1671_v9 = vpop.f32.mrb[8].mxu0 }
 0x12c   : > { %v1672_v10 = vpop.f32.mrb[9].mxu0 }
 0x12d   : > { %v1673_v11 = vadd.f32 %v1672_v10, %v1671_v9  ;;  %v1674_v12 = vpop.f32.mrb[10].mxu0  ;;  %v1699_v13 = vpop.f32.mrb[8].mxu1 }
 0x12e   : > { %v1675_v14 = vpop.f32.mrb[11].mxu0  ;;  %v1700_v17 = vpop.f32.mrb[9].mxu1 }
 0x12f   : > { %v1137_v15 = vadd.f32 %v1673_v11, %v1088_v54  ;;  %v1676_v16 = vadd.f32 %v1675_v14, %v1674_v12  ;;  %v1701_v18 = vadd.f32 %v1700_v17, %v1699_v13  ;;  %v1702_v19 = vpop.f32.mrb[10].mxu1 }
 0x130   : > { %v1703_v21 = vpop.f32.mrb[11].mxu1 }
 0x131   : > { %v1140_v20 = vadd.f32 %v1676_v16, %v1091_v56  ;;  %v1186_v22 = vadd.f32 %v1701_v18, %v1137_v15  ;;  %v1704_v23 = vadd.f32 %v1703_v21, %v1702_v19 }
 0x133   : > { %v1677_v24 = vpop.f32.mrb[12].mxu0  ;;  %v1189_v25 = vadd.f32 %v1704_v23, %v1140_v20 }
 0x134   : > { %v1678_v26 = vpop.f32.mrb[13].mxu0 }
 0x135   : > { %v1679_v27 = vadd.f32 %v1678_v26, %v1677_v24  ;;  %v1680_v28 = vpop.f32.mrb[14].mxu0  ;;  %v1705_v29 = vpop.f32.mrb[12].mxu1 }
 0x136   : > { %v1681_v30 = vpop.f32.mrb[15].mxu0  ;;  %v1706_v33 = vpop.f32.mrb[13].mxu1 }
 0x137   : > { %v1145_v31 = vadd.f32 %v1679_v27, %v1096_v6  ;;  %v1682_v32 = vadd.f32 %v1681_v30, %v1680_v28  ;;  %v1707_v34 = vadd.f32 %v1706_v33, %v1705_v29  ;;  %v1708_v35 = vpop.f32.mrb[14].mxu1 }
 0x138   : > { %v1709_v37 = vpop.f32.mrb[15].mxu1 }
 0x139   : > { %v1148_v36 = vadd.f32 %v1682_v32, %v1099_v8  ;;  %v1194_v38 = vadd.f32 %v1707_v34, %v1145_v31  ;;  %v1710_v39 = vadd.f32 %v1709_v37, %v1708_v35 }
 0x13b   : > { %v1197_v40 = vadd.f32 %v1710_v39, %v1148_v36 }
 0x13d   : > { %v1749_v41 = vpop.f32.mrb[16].mxu1 }
 0x13e   : > { %v1283_v42 = vpop.f32.mrb[17].mxu1 }
 0x13f   : > { %v1750_v43 = vpop.f32.mrb[18].mxu1 }
 0x140   : > { %v1286_v44 = vpop.f32.mrb[19].mxu1 }
 0x14b   : > { %v1727_v45 = vpop.f32.mrb[16].mxu0 }
 0x14c   : > { %v1728_v46 = vpop.f32.mrb[17].mxu0 }
 0x14d   : > { %v1729_v47 = vadd.f32 %v1728_v46, %v1727_v45  ;;  %v1730_v48 = vpop.f32.mrb[18].mxu0 }
 0x14e   : > { %v1731_v49 = vpop.f32.mrb[19].mxu0 }
 0x14f   : > { %v1732_v50 = vadd.f32 %v1731_v49, %v1730_v48  ;;  %v1235_v51 = vadd.f32 %v1729_v47, %v1186_v22 }
 0x151   : > { %v1284_v52 = vadd.f32 %v1283_v42, %v1235_v51  ;;  %v1238_v53 = vadd.f32 %v1732_v50, %v1189_v25 }
 0x153   : > { %v1302_v54 = vmul.f32 0.1, %v1284_v52  ;;  %v1287_v55 = vadd.f32 %v1286_v44, %v1238_v53  ;;  %v1733_v56 = vpop.f32.mrb[20].mxu0  ;;  %vm1298_vm1 = vcmp.gt.f32.partialorder %v1284_v52, 0.0 }
 0x154   : > { %v1734_v57 = vpop.f32.mrb[21].mxu0 }
 0x155   : > { %vm1299_vm2 = vcmp.gt.f32.partialorder %v1287_v55, 0.0  ;;  %v1303_v58 = vmul.f32 0.1, %v1287_v55  ;;  %v1735_v59 = vadd.f32 %v1734_v57, %v1733_v56  ;;  %v1736_v60 = vpop.f32.mrb[22].mxu0  ;;  %v1306_v62 = vsel %vm1298_vm1, %v1284_v52, %v1302_v54 }
 0x156   : > { %v1737_v61 = vpop.f32.mrb[23].mxu0 }
 0x157   : > { %v1307_v63 = vsel %vm1299_vm2, %v1287_v55, %v1303_v58  ;;  %v1243_v0 = vadd.f32 %v1735_v59, %v1194_v38  ;;  %v1738_v1 = vadd.f32 %v1737_v61, %v1736_v60 }
 0x158   : > { %v1591_v2 = vpack.c.bf16 %v1307_v63, %v1306_v62 }
 0x159   : > { %v1292_v3 = vadd.f32 %v1749_v41, %v1243_v0  ;;  %v1246_v4 = vadd.f32 %v1738_v1, %v1197_v40 }
 0x15a   : > { %1592 = vst [vmem:[%s185_s8] sm:$0xff] %v1591_v2  }
 0x15b   : > { %v1304_v5 = vmul.f32 0.1, %v1292_v3  ;;  %v1295_v6 = vadd.f32 %v1750_v43, %v1246_v4  ;;  %vm1300_vm3 = vcmp.gt.f32.partialorder %v1292_v3, 0.0 }
 0x15c   : > { %1336 = sbr.rel (!%p1960_p4) target bundleno = 363 (0x16b), region = 36 }
 0x15d   : > { %vm1301_vm4 = vcmp.gt.f32.partialorder %v1295_v6, 0.0  ;;  %v1305_v7 = vmul.f32 0.1, %v1295_v6  ;;  %v1308_v8 = vsel %vm1300_vm3, %v1292_v3, %v1304_v5 }
 0x15f   : > { %v1309_v9 = vsel %vm1301_vm4, %v1295_v6, %v1305_v7 }
 0x160   : > { %v1596_v10 = vpack.c.bf16 %v1309_v9, %v1308_v8 }
 0x161   : > { %v1354_v11 = vld [vmem:[%s185_s8] sm:$0xf] (%p1960_p4)  ;;  %v1356_v12 = vld [vmem:[%s185_s8 + $0x4] sm:$0xf] (%p1960_p4) }
 0x162   : > { %1598 = vst [vmem:[%s185_s8 + $0x8] sm:$0xff] %v1596_v10   ;;  %1355 = vst [vmem:[%s1338_s12] sm:$0xf] (%p1960_p4), %v1354_v11 }
 0x163   : > { %1357 = vst [vmem:[%s1338_s12 + $0x8] sm:$0xf] %v1356_v12 }
 0x169   : > { %v1358_v13 = vld [vmem:[%s185_s8 + $0x8] sm:$0xf]  ;;  %v1360_v14 = vld [vmem:[%s185_s8 + $0xc] sm:$0xf] }
 0x16a   : > { %1359 = vst [vmem:[%s1338_s12 + $0x10] sm:$0xf] %v1358_v13  ;;  %1361 = vst [vmem:[%s1338_s12 + $0x18] sm:$0xf] %v1360_v14 }
 0x16b PF: > { %p10_p8 = scmp.ge.s32.totalorder %s1950_s16, 4   ;;  %s2110_s12 = smov %s1909_s13 }
 0x16c   : > { %s2111_s13 = smov %s1958_s19  ;;  %s2112_s14 = smov %s1950_s16 }
 0x16d   :  { %12 = sbr.rel (!%p10_p8) target bundleno = 2 (0x2), region = 109 }

// kernel: discriminator_s_forward.10
= control target key start
LH: loop header
LB: loop body
LE: loop exit
PB: predicated region body
PF: predicated region fallthrough
CT: control target
= control target key end

     0   :  { %s1595_s12 = smov 0   ;;  %s1716_s0 = inlined_call_operand.vmem [shape: bf16[8,8,1312], index: 0, kind: input, shape index: {}]   ;;  %s1717_s1 = inlined_call_operand.vmem [shape: bf16[8,1312,128], index: 1, kind: input, shape index: {}]   ;;  %s1718_s2 = inlined_call_operand.vmem [shape: f32[8,1,128], index: 2, kind: input, shape index: {}]   ;;  %s1719_s3 = inlined_call_operand.vmem [shape: bf16[8,1024], index: 3, kind: output, shape index: {}]  }
   0x1 LB: > { %s1234_s13 = sadd.s32 4294967295, %s1571_s12   ;;  %p1238_p0 = scmp.ge.s32.totalorder %s1571_s12, 1  ;;  %s1571_s12 = sphi %s1595_s12, %s13_s12  }
   0x2   : > { %p155_p1 = scmp.lt.s32.totalorder %s1571_s12, 9 }
   0x4   : > { %p156_p2 = pnand %p1238_p0, %p155_p1 }
   0x5   : > { %p186_p3 = scmp.lt.s32.totalorder (!%p156_p2), %s1234_s13, 7  ;;  %vm1574_vm0 = vmmov (!%p156_p2), 0   ;;  %vm911_vm1 = vcmask (!%p156_p2), 261120  }
   0x6   : > { %159 = sbr.rel (%p156_p2) target bundleno = 339 (0x153), region = 32 }
   0xd   : > { %s1721_s13 = smov (!%p186_p3, %s1234_s13), 7 }
   0xe   : > { %s1461_s14 = smul.u32 656, %s1721_s13  ;;  %s198_s24 = scalar_lea.vmem %s1718_s2, %s1721_s13 }
   0xf   : > { %s1460_s18 = smul.u32 44, %s1721_s13  ;;  %s1241_s25 = sshll.u32 %s1721_s13, 2 }
  0x10   : > { %s1609_s17 = scalar_lea.vmem %s1717_s1, %s1461_s14  ;;  %s202_s28 = scalar_lea.vmem %s1719_s3, %s1241_s25 }
  0x11   : > { %v1472_v0 = vld [vmem:[%s1609_s17 + $0x40] sm:$0xff]   ;;  %v1476_v4 = vld [vmem:[%s1609_s17 + $0x48] sm:$0xff]   ;;  %v1480_v8 = vld [vmem:[%s1609_s17 + $0x50] sm:$0xff]   ;;  %s1644_s21 = scalar_lea.vmem %s1716_s0, %s1460_s18 }
  0x12   : > { %v1473_v1 = vld [vmem:[%s1609_s17] sm:$0xff]   ;;  %1339 = vmatprep.subr.bf16.mxu0 %v1472_v0  ;;  %v1477_v5 = vld [vmem:[%s1609_s17 + $0x8] sm:$0xff]   ;;  %v1481_v9 = vld [vmem:[%s1609_s17 + $0x10] sm:$0xff]  }
  0x13   : > { %v1474_v2 = vld [vmem:[%s1609_s17 + $0xc0] sm:$0xff]   ;;  %1340 = vmatpush3.bf16.msra.mxu0 %v1473_v1  ;;  %v1478_v6 = vld [vmem:[%s1609_s17 + $0xc8] sm:$0xff]   ;;  %v1482_v10 = vld [vmem:[%s1609_s17 + $0xd0] sm:$0xff]  }
  0x14   : > { %v1475_v3 = vld [vmem:[%s1609_s17 + $0x80] sm:$0xff]   ;;  %1361 = vmatprep.subr.bf16.mxu1 %v1474_v2  ;;  %1341 = vmatprep.subr.bf16.mxu0 %v1476_v4  ;;  %v1479_v7 = vld [vmem:[%s1609_s17 + $0x88] sm:$0xff]   ;;  %v1483_v11 = vld [vmem:[%s1609_s17 + $0x90] sm:$0xff]  }
  0x15   : > { %1362 = vmatpush3.bf16.msra.mxu1 %v1475_v3  ;;  %v1484_v12 = vld [vmem:[%s1609_s17 + $0x58] sm:$0xff]   ;;  %v1488_v16 = vld [vmem:[%s1609_s17 + $0x60] sm:$0xff]   ;;  %v1492_v20 = vld [vmem:[%s1609_s17 + $0x68] sm:$0xff]  }
  0x16   : > { %1363 = vmatprep.subr.bf16.mxu1 %v1478_v6  ;;  %v1485_v13 = vld [vmem:[%s1609_s17 + $0x18] sm:$0xff]   ;;  %v1489_v17 = vld [vmem:[%s1609_s17 + $0x20] sm:$0xff]   ;;  %v1493_v21 = vld [vmem:[%s1609_s17 + $0x28] sm:$0xff]  }
  0x17   : > { %1342 = vmatpush3.bf16.msra.mxu0 %v1477_v5  ;;  %v1486_v14 = vld [vmem:[%s1609_s17 + $0xd8] sm:$0xff]   ;;  %v1490_v18 = vld [vmem:[%s1609_s17 + $0xe0] sm:$0xff]   ;;  %v1494_v22 = vld [vmem:[%s1609_s17 + $0xe8] sm:$0xff]  }
  0x18   : > { %1343 = vmatprep.subr.bf16.mxu0 %v1480_v8  ;;  %v1487_v15 = vld [vmem:[%s1609_s17 + $0x98] sm:$0xff]   ;;  %v1491_v19 = vld [vmem:[%s1609_s17 + $0xa0] sm:$0xff]   ;;  %v1495_v23 = vld [vmem:[%s1609_s17 + $0xa8] sm:$0xff]  }
  0x19   : > { %1364 = vmatpush3.bf16.msra.mxu1 %v1479_v7  ;;  %v1496_v24 = vld [vmem:[%s1609_s17 + $0x70] sm:$0xff]   ;;  %v1500_v28 = vld [vmem:[%s1609_s17 + $0x78] sm:$0xff]   ;;  %v204_v31 = vld [vmem:[%s1644_s21] sm:$0xff] }
  0x1a   : > { %1365 = vmatprep.subr.bf16.mxu1 %v1482_v10  ;;  %v1497_v25 = vld [vmem:[%s1609_s17 + $0x30] sm:$0xff]   ;;  %v1501_v29 = vld [vmem:[%s1609_s17 + $0x38] sm:$0xff]   ;;  %v1243_v32 = vcombine.low %v204_v31, %v204_v31  ;;  %v1244_v33 = vcombine.high %v204_v31, %v204_v31  ;;  %v1506_v35 = vld [vmem:[%s1609_s17 + $0x140] sm:$0xff]  }
  0x1b   : > { %1344 = vmatpush3.bf16.msra.mxu0 %v1481_v9  ;;  %v1498_v26 = vld [vmem:[%s1609_s17 + $0xf0] sm:$0xff]   ;;  %v1502_v30 = vld [vmem:[%s1609_s17 + $0xf8] sm:$0xff]   ;;  %v205_v36 = vld [vmem:[%s1644_s21 + $0x8] sm:$0xff] }
  0x1c   : > { %1345 = vmatprep.subr.bf16.mxu0 %v1484_v12  ;;  %v1499_v27 = vld [vmem:[%s1609_s17 + $0xb0] sm:$0xff]   ;;  %v1505_v34 = vld [vmem:[%s1609_s17 + $0xb8] sm:$0xff]   ;;  %947 = vmatprep.mubr.bf16.mxu0 %v1244_v33  ;;  %v1245_v37 = vcombine.low %v205_v36, %v205_v36  ;;  %v1246_v38 = vcombine.high %v205_v36, %v205_v36  ;;  %v1509_v39 = vld [vmem:[%s1609_s17 + $0x100] sm:$0xff]  }
  0x1d   : > { %1366 = vmatpush3.bf16.msra.mxu1 %v1483_v11  ;;  %v1510_v40 = vld [vmem:[%s1609_s17 + $0x1c0] sm:$0xff]   ;;  %v1512_v42 = vld [vmem:[%s1609_s17 + $0x148] sm:$0xff]   ;;  %v1516_v46 = vld [vmem:[%s1609_s17 + $0x150] sm:$0xff]  }
  0x1e   : > { %1367 = vmatprep.subr.bf16.mxu1 %v1486_v14  ;;  %987 = vmatprep.mubr.bf16.mxu1 %v1246_v38  ;;  %v1511_v41 = vld [vmem:[%s1609_s17 + $0x180] sm:$0xff]   ;;  %v1513_v43 = vld [vmem:[%s1609_s17 + $0x108] sm:$0xff]   ;;  %v1517_v47 = vld [vmem:[%s1609_s17 + $0x110] sm:$0xff]  }
  0x1f   : > { %1346 = vmatpush3.bf16.msra.mxu0 %v1485_v13  ;;  %v1514_v44 = vld [vmem:[%s1609_s17 + $0x1c8] sm:$0xff]   ;;  %v1518_v48 = vld [vmem:[%s1609_s17 + $0x1d0] sm:$0xff]   ;;  %v1520_v50 = vld [vmem:[%s1609_s17 + $0x158] sm:$0xff]  }
  0x20   : > { %1347 = vmatprep.subr.bf16.mxu0 %v1488_v16  ;;  %v1515_v45 = vld [vmem:[%s1609_s17 + $0x188] sm:$0xff]   ;;  %v1519_v49 = vld [vmem:[%s1609_s17 + $0x190] sm:$0xff]   ;;  %v1521_v51 = vld [vmem:[%s1609_s17 + $0x118] sm:$0xff]  }
  0x21   : > { %1368 = vmatpush3.bf16.msra.mxu1 %v1487_v15  ;;  %v1522_v52 = vld [vmem:[%s1609_s17 + $0x1d8] sm:$0xff]   ;;  %v1524_v54 = vld [vmem:[%s1609_s17 + $0x160] sm:$0xff]   ;;  %v1528_v58 = vld [vmem:[%s1609_s17 + $0x168] sm:$0xff]   ;;  %v1573_v15 = vmov 0.0  }
  0x22   : > { %1369 = vmatprep.subr.bf16.mxu1 %v1490_v18  ;;  %v1523_v53 = vld [vmem:[%s1609_s17 + $0x198] sm:$0xff]   ;;  %v1525_v55 = vld [vmem:[%s1609_s17 + $0x120] sm:$0xff]   ;;  %v1529_v59 = vld [vmem:[%s1609_s17 + $0x128] sm:$0xff]  }
  0x23   : > { %1348 = vmatpush3.bf16.msra.mxu0 %v1489_v17  ;;  %v1526_v56 = vld [vmem:[%s1609_s17 + $0x1e0] sm:$0xff]   ;;  %v1530_v60 = vld [vmem:[%s1609_s17 + $0x1e8] sm:$0xff]   ;;  %v1532_v62 = vld [vmem:[%s1609_s17 + $0x170] sm:$0xff]  }
  0x24   : > { %1349 = vmatprep.subr.bf16.mxu0 %v1492_v20  ;;  %v1527_v57 = vld [vmem:[%s1609_s17 + $0x1a0] sm:$0xff]   ;;  %v1531_v61 = vld [vmem:[%s1609_s17 + $0x1a8] sm:$0xff]   ;;  %v1533_v63 = vld [vmem:[%s1609_s17 + $0x130] sm:$0xff]  }
  0x25   : > { %1370 = vmatpush3.bf16.msra.mxu1 %v1491_v19  ;;  %v1534_v0 = vld [vmem:[%s1609_s17 + $0x1f0] sm:$0xff]   ;;  %v1536_v2 = vld [vmem:[%s1609_s17 + $0x178] sm:$0xff]   ;;  %v1542_v9 = vld [vmem:[%s1609_s17 + $0x240] sm:$0xff]  }
  0x26   : > { %1371 = vmatprep.subr.bf16.mxu1 %v1494_v22  ;;  %v1535_v1 = vld [vmem:[%s1609_s17 + $0x1b0] sm:$0xff]   ;;  %v1537_v3 = vld [vmem:[%s1609_s17 + $0x138] sm:$0xff]   ;;  %v1545_v13 = vld [vmem:[%s1609_s17 + $0x200] sm:$0xff]  }
  0x27   : > { %1350 = vmatpush3.bf16.msra.mxu0 %v1493_v21  ;;  %v1538_v4 = vld [vmem:[%s1609_s17 + $0x1f8] sm:$0xff]   ;;  %v206_v5 = vld [vmem:[%s1644_s21 + $0x10] sm:$0xff]  ;;  %v1546_v14 = vld [vmem:[%s1609_s17 + $0x248] sm:$0xff]  }
  0x28   : > { %1351 = vmatprep.subr.bf16.mxu0 %v1496_v24  ;;  %v1247_v6 = vcombine.low %v206_v5, %v206_v5  ;;  %v1248_v7 = vcombine.high %v206_v5, %v206_v5  ;;  %v1541_v8 = vld [vmem:[%s1609_s17 + $0x1b8] sm:$0xff]   ;;  %v1547_v16 = vld [vmem:[%s1609_s17 + $0x208] sm:$0xff]   ;;  %v1548_v17 = vld [vmem:[%s1609_s17 + $0x250] sm:$0xff]  }
  0x29   : > { %1372 = vmatpush3.bf16.msra.mxu1 %v1495_v23  ;;  %v207_v10 = vld [vmem:[%s1644_s21 + $0x18] sm:$0xff]  ;;  %v1549_v18 = vld [vmem:[%s1609_s17 + $0x210] sm:$0xff]   ;;  %v1552_v21 = vld [vmem:[%s1609_s17 + $0x260] sm:$0xff]  }
  0x2a   : > { %1373 = vmatprep.subr.bf16.mxu1 %v1498_v26  ;;  %v1249_v11 = vcombine.low %v207_v10, %v207_v10  ;;  %v1250_v12 = vcombine.high %v207_v10, %v207_v10  ;;  %v1550_v19 = vld [vmem:[%s1609_s17 + $0x258] sm:$0xff]   ;;  %v1558_v22 = vld [vmem:[%s1609_s17 + $0x280] sm:$0xff]   ;;  %v1554_v24 = vld [vmem:[%s1609_s17 + $0x268] sm:$0xff]  }
  0x2b   : > { %1352 = vmatpush3.bf16.msra.mxu0 %v1497_v25  ;;  %v1551_v20 = vld [vmem:[%s1609_s17 + $0x218] sm:$0xff]   ;;  %v1553_v23 = vld [vmem:[%s1609_s17 + $0x220] sm:$0xff]   ;;  %v1557_v31 = vld [vmem:[%s1609_s17 + $0x230] sm:$0xff]  }
  0x2c   : > { %1353 = vmatprep.subr.bf16.mxu0 %v1500_v28  ;;  %v208_v25 = vld [vmem:[%s1644_s21 + $0x20] sm:$0xff]  ;;  %v1555_v28 = vld [vmem:[%s1609_s17 + $0x228] sm:$0xff]   ;;  %v1560_v33 = vld [vmem:[%s1609_s17 + $0x238] sm:$0xff]  }
  0x2d   : > { %1374 = vmatpush3.bf16.msra.mxu1 %v1499_v27  ;;  %v1252_v26 = vcombine.high %v208_v25, %v208_v25  ;;  %v1563_v27 = vld [vmem:[%s1609_s17 + $0x288] sm:$0xff]   ;;  %v1242_v36 = vld [vmem:[%s198_s24] ss:$0 sm:$0xff] }
  0x2e   : > { %1375 = vmatprep.subr.bf16.mxu1 %v1502_v30  ;;  %v1556_v30 = vld [vmem:[%s1609_s17 + $0x270] sm:$0xff]  }
  0x2f   : > { %1354 = vmatpush3.bf16.msra.mxu0 %v1501_v29  ;;  %v1564_v29 = vld [vmem:[%s1644_s21 + $0x28] ss:$0 sps:$4 sm:$0xff]  }
  0x30   : > { %1383 = vmatprep.subr.bf16.mxu0 %v1506_v35 }
  0x31   : > { %1376 = vmatpush3.bf16.msra.mxu1 %v1505_v34  ;;  %v1251_v34 = vcombine.low %v208_v25, %v208_v25 }
  0x32   : > { %948 = vmatmul.mubr.bf16.vlgmr.msra.gmra.mrb[0].mxu0 %v1243_v32  ;;  %1405 = vmatprep.subr.bf16.mxu1 %v1510_v40  ;;  %v1559_v32 = vld [vmem:[%s1609_s17 + $0x278] sm:$0xff]  }
  0x33   : > { %1384 = vmatpush3.bf16.msra.mxu0 %v1509_v39  ;;  %1027 = vmatprep.mubr.bf16.mxu0 %v1248_v7 }
  0x34   : > { %988 = vmatmul.mubr.bf16.vlgmr.msra.gmra.mrb[0].mxu1 %v1245_v37  ;;  %1385 = vmatprep.subr.bf16.mxu0 %v1512_v42 }
  0x35   : > { %1406 = vmatpush3.bf16.msra.mxu1 %v1511_v41  ;;  %1067 = vmatprep.mubr.bf16.mxu1 %v1250_v12 }
  0x36   : > { %1407 = vmatprep.subr.bf16.mxu1 %v1514_v44 }
  0x37   : > { %1386 = vmatpush3.bf16.msra.mxu0 %v1513_v43 }
  0x38   : > { %1387 = vmatprep.subr.bf16.mxu0 %v1516_v46 }
  0x39   : > { %1408 = vmatpush3.bf16.msra.mxu1 %v1515_v45 }
  0x3a   : > { %1409 = vmatprep.subr.bf16.mxu1 %v1518_v48 }
  0x3b   : > { %1388 = vmatpush3.bf16.msra.mxu0 %v1517_v47 }
  0x3c   : > { %1389 = vmatprep.subr.bf16.mxu0 %v1520_v50 }
  0x3d   : > { %1410 = vmatpush3.bf16.msra.mxu1 %v1519_v49 }
  0x3e   : > { %1411 = vmatprep.subr.bf16.mxu1 %v1522_v52 }
  0x3f   : > { %1390 = vmatpush3.bf16.msra.mxu0 %v1521_v51 }
  0x40   : > { %1391 = vmatprep.subr.bf16.mxu0 %v1524_v54 }
  0x41   : > { %1412 = vmatpush3.bf16.msra.mxu1 %v1523_v53 }
  0x42   : > { %1413 = vmatprep.subr.bf16.mxu1 %v1526_v56 }
  0x43   : > { %1392 = vmatpush3.bf16.msra.mxu0 %v1525_v55 }
  0x44   : > { %1393 = vmatprep.subr.bf16.mxu0 %v1528_v58 }
  0x45   : > { %1414 = vmatpush3.bf16.msra.mxu1 %v1527_v57 }
  0x46   : > { %1415 = vmatprep.subr.bf16.mxu1 %v1530_v60 }
  0x47   : > { %1394 = vmatpush3.bf16.msra.mxu0 %v1529_v59 }
  0x48   : > { %1395 = vmatprep.subr.bf16.mxu0 %v1532_v62 }
  0x49   : > { %1416 = vmatpush3.bf16.msra.mxu1 %v1531_v61 }
  0x4a   : > { %1417 = vmatprep.subr.bf16.mxu1 %v1534_v0 }
  0x4b   : > { %1396 = vmatpush3.bf16.msra.mxu0 %v1533_v63 }
  0x4c   : > { %1397 = vmatprep.subr.bf16.mxu0 %v1536_v2 }
  0x4d   : > { %1418 = vmatpush3.bf16.msra.mxu1 %v1535_v1 }
  0x4e   : > { %1419 = vmatprep.subr.bf16.mxu1 %v1538_v4 }
  0x4f   : > { %1398 = vmatpush3.bf16.msra.mxu0 %v1537_v3 }
  0x50   : > { %1427 = vmatprep.subr.bf16.mxu0 %v1542_v9 }
  0x51   : > { %1420 = vmatpush3.bf16.msra.mxu1 %v1541_v8 }
  0x52   : > { %1028 = vmatmul.mubr.bf16.vlgmr.msra.gmra.mrb[4].mxu0 %v1247_v6  ;;  %1452 = vmatprep.subr.bf16.mxu1 %v1573_v15 }
  0x53   : > { %1428 = vmatpush3.bf16.msra.mxu0 %v1545_v13  ;;  %1107 = vmatprep.mubr.bf16.mxu0 %v1252_v26 }
  0x54   : > { %1068 = vmatmul.mubr.bf16.vlgmr.msra.gmra.mrb[4].mxu1 %v1249_v11  ;;  %1429 = vmatprep.subr.bf16.mxu0 %v1546_v14 }
  0x55   : > { %1456 = vmatprep.mubr.msk.bf16.mxu1 %vm1574_vm0, %v1573_v15  ;;  %1453 = vmatpush3.bf16.msra.mxu1 %v1558_v22 }
  0x56   : > { %1454 = vmatprep.subr.bf16.mxu1 %v1573_v15 }
  0x57   : > { %1430 = vmatpush3.bf16.msra.mxu0 %v1547_v16 }
  0x58   : > { %1431 = vmatprep.subr.bf16.mxu0 %v1548_v17 }
  0x59   : > { %1455 = vmatpush3.bf16.msra.mxu1 %v1563_v27 }
  0x5b   : > { %1432 = vmatpush3.bf16.msra.mxu0 %v1549_v18 }
  0x5c   : > { %1433 = vmatprep.subr.bf16.mxu0 %v1550_v19  ;;  %1457 = vmatmul.mubr.msk.bf16.vlgmr.msra.gmra.mrb[8].mxu1 %vm911_vm1, %v1564_v29 }
  0x5f   : > { %1434 = vmatpush3.bf16.msra.mxu0 %v1551_v20 }
  0x60   : > { %1435 = vmatprep.subr.bf16.mxu0 %v1552_v21 }
  0x63   : > { %1436 = vmatpush3.bf16.msra.mxu0 %v1553_v23 }
  0x64   : > { %1437 = vmatprep.subr.bf16.mxu0 %v1554_v24 }
  0x67   : > { %1438 = vmatpush3.bf16.msra.mxu0 %v1555_v28 }
  0x68   : > { %1439 = vmatprep.subr.bf16.mxu0 %v1556_v30 }
  0x6b   : > { %1440 = vmatpush3.bf16.msra.mxu0 %v1557_v31 }
  0x6c   : > { %1441 = vmatprep.subr.bf16.mxu0 %v1559_v32 }
  0x6f   : > { %1442 = vmatpush3.bf16.msra.mxu0 %v1560_v33 }
  0x72   : > { %1108 = vmatmul.mubr.bf16.vlgmr.msra.gmra.mrb[8].mxu0 %v1251_v34 }
 0x105   : > { %v1355_v35 = vpop.f32.mrb[0].mxu0 }
 0x106   : > { %v1356_v37 = vpop.f32.mrb[1].mxu0 }
 0x107   : > { %v1357_v38 = vadd.f32 %v1356_v37, %v1355_v35  ;;  %v1358_v39 = vpop.f32.mrb[2].mxu0  ;;  %v1377_v40 = vpop.f32.mrb[0].mxu1 }
 0x108   : > { %v1359_v41 = vpop.f32.mrb[3].mxu0  ;;  %v1378_v42 = vpop.f32.mrb[1].mxu1 }
 0x109   : > { %v950_v43 = vadd.f32 %v1357_v38, %v1242_v36  ;;  %v1379_v44 = vadd.f32 %v1378_v42, %v1377_v40  ;;  %v1380_v45 = vpop.f32.mrb[2].mxu1 }
 0x10a   : > { %v1381_v46 = vpop.f32.mrb[3].mxu1 }
 0x10b   : > { %v990_v47 = vadd.f32 %v1379_v44, %v950_v43 }
 0x125   : > { %v1399_v48 = vpop.f32.mrb[4].mxu0 }
 0x126   : > { %v1400_v49 = vpop.f32.mrb[5].mxu0 }
 0x127   : > { %v1401_v50 = vadd.f32 %v1400_v49, %v1399_v48  ;;  %v1402_v51 = vpop.f32.mrb[6].mxu0  ;;  %v1421_v52 = vpop.f32.mrb[4].mxu1 }
 0x128   : > { %v1403_v53 = vpop.f32.mrb[7].mxu0  ;;  %v1422_v55 = vpop.f32.mrb[5].mxu1 }
 0x129   : > { %v1030_v54 = vadd.f32 %v1401_v50, %v990_v47  ;;  %v1423_v56 = vadd.f32 %v1422_v55, %v1421_v52  ;;  %v1424_v57 = vpop.f32.mrb[6].mxu1 }
 0x12a   : > { %v1425_v58 = vpop.f32.mrb[7].mxu1 }
 0x12b   : > { %v1070_v59 = vadd.f32 %v1423_v56, %v1030_v54 }
 0x12f   : > { %v1149_v60 = vpop.f32.mrb[8].mxu1 }
 0x130   : > { %v1458_v61 = vpop.f32.mrb[9].mxu1 }
 0x131   : > { %v1152_v62 = vpop.f32.mrb[10].mxu1 }
 0x132   : > { %v1459_v63 = vpop.f32.mrb[11].mxu1 }
 0x145   : > { %v1443_v0 = vpop.f32.mrb[8].mxu0 }
 0x146   : > { %v1444_v1 = vpop.f32.mrb[9].mxu0 }
 0x147   : > { %v1445_v2 = vadd.f32 %v1444_v1, %v1443_v0  ;;  %v1446_v3 = vpop.f32.mrb[10].mxu0 }
 0x148   : > { %v1447_v4 = vpop.f32.mrb[11].mxu0 }
 0x149   : > { %v1110_v5 = vadd.f32 %v1445_v2, %v1070_v59 }
 0x14b   : > { %v1150_v6 = vadd.f32 %v1149_v60, %v1110_v5 }
 0x14d   : > { %vm1155_vm2 = vcmp.gt.f32.partialorder %v1150_v6, 0.0  ;;  %v1156_v7 = vmul.f32 0.1, %v1150_v6 }
 0x14f   : > { %v1157_v8 = vsel %vm1155_vm2, %v1150_v6, %v1156_v7 }
 0x150   : > { %v1158_v9 = vpack.c.bf16 %v1157_v8, %v1157_v8 }
 0x152   : > { %1159 = vst [vmem:[%s202_s28] sm:$0xf] %v1158_v9 }
 0x153 PF: > { %s13_s12 = sadd.s32 1, %s1571_s12  }
 0x154   : > { %p10_p4 = scmp.ge.s32.totalorder %s13_s12, 10  }
 0x156   :  { %12 = sbr.rel (!%p10_p4) target bundleno = 1 (0x1), region = 68 }

// kernel: discriminator_s_forward.13
= control target key start
LH: loop header
LB: loop body
LE: loop exit
PB: predicated region body
PF: predicated region fallthrough
CT: control target
= control target key end

     0   :  { %v40_v1 = vlaneseq  ;;  %v593_v11 = vmov 1983009808   ;;  %vm526_vm0 = vcmask 1041408   ;;  %vm585_vm1 = vcmask 0   ;;  %s744_s2 = inlined_call_operand.<no memory space> [shape: f32[1,1,1], index: 2, kind: input, shape index: {}]   ;;  %s745_s1 = inlined_call_operand.vmem [shape: bf16[1,1,3072], index: 1, kind: input, shape index: {}]   ;;  %s746_s0 = inlined_call_operand.vmem [shape: bf16[1,2,3072], index: 0, kind: input, shape index: {}]   ;;  %s747_s3 = inlined_call_operand.vmem [shape: bf16[2,1], index: 3, kind: output, shape index: {}]  }
   0x1   :  { %v8_v0 = vstv %s744_s2  ;;  %v25_v2 = vld [vmem:[%s745_s1] sm:$0xff]  ;;  %v26_v10 = vld [vmem:[%s745_s1 + $0x8] sm:$0xff]  ;;  %v283_v12 = vunpack.c.l.s4 %v593_v11  ;;  %v27_v51 = vld [vmem:[%s745_s1 + $0x10] sm:$0xff] }
   0x2   :  { %9 = vst [vmem:[#allocation2] sm:$0x1] %v8_v0  ;;  %v41_v3 = vshrl.u32 %v40_v1, 7  ;;  %v28_v4 = vunpack.c.l.bf16 %v25_v2  ;;  %v29_v9 = vunpack.c.h.bf16 %v25_v2  ;;  %v30_v21 = vunpack.c.l.bf16 %v26_v10  ;;  %v16_v27 = vld [vmem:[%s746_s0] sm:$0xff] }
   0x3   :  { %v284_v22 = vunpack.c.0.s8 %v283_v12  ;;  %v19_v37 = vunpack.c.l.bf16 %v16_v27  ;;  %v31_v38 = vunpack.c.h.bf16 %v26_v10  ;;  %v20_v57 = vunpack.c.h.bf16 %v16_v27 }
   0x4   :  { %v620_v5 = vsub.s32 0, %v41_v3  ;;  %v622_v6 = vsub.s32 2, %v41_v3  ;;  %v624_v7 = vsub.s32 4, %v41_v3  ;;  %v626_v8 = vsub.s32 6, %v41_v3 }
   0x5   :  { %v654_v36 = vsub.s32 %v284_v22, %v41_v3  ;;  %v32_v61 = vunpack.c.l.bf16 %v27_v51 }
   0x6   :  { %v43_v13 = vrot.slane %v28_v4, %v620_v5  ;;  %v47_v14 = vrot.slane %v28_v4, %v622_v6  ;;  %v51_v15 = vrot.slane %v28_v4, %v624_v7  ;;  %v55_v16 = vrot.slane %v28_v4, %v626_v8 }
   0x7   :  { %v59_v17 = vrot.slane %v29_v9, %v620_v5  ;;  %v63_v18 = vrot.slane %v29_v9, %v622_v6  ;;  %v67_v19 = vrot.slane %v29_v9, %v624_v7  ;;  %v71_v20 = vrot.slane %v29_v9, %v626_v8  ;;  %v17_v9 = vld [vmem:[%s746_s0 + $0x8] sm:$0xff] }
   0x8   :  { %v163_v23 = vrot.slane %v43_v13, %v620_v5  ;;  %v167_v24 = vrot.slane %v47_v14, %v620_v5  ;;  %v171_v25 = vrot.slane %v51_v15, %v620_v5  ;;  %v175_v26 = vrot.slane %v55_v16, %v620_v5 }
   0x9   :  { %v179_v28 = vrot.slane %v59_v17, %v620_v5  ;;  %v183_v29 = vrot.slane %v63_v18, %v620_v5  ;;  %v187_v30 = vrot.slane %v67_v19, %v620_v5  ;;  %v191_v31 = vrot.slane %v71_v20, %v620_v5 }
   0xa   :  { %v75_v32 = vrot.slane %v30_v21, %v620_v5  ;;  %v79_v33 = vrot.slane %v30_v21, %v622_v6  ;;  %v83_v34 = vrot.slane %v30_v21, %v624_v7  ;;  %v87_v35 = vrot.slane %v30_v21, %v626_v8 }
   0xb   :  { %v280_v39 = vcombine.low %v163_v23, %v167_v24  ;;  %v281_v40 = vcombine.low %v171_v25, %v175_v26  ;;  %v297_v41 = vcombine.low %v179_v28, %v183_v29  ;;  %v298_v42 = vcombine.low %v187_v30, %v191_v31 }
   0xc   :  { %v195_v43 = vrot.slane %v75_v32, %v620_v5  ;;  %v199_v44 = vrot.slane %v79_v33, %v620_v5  ;;  %v203_v45 = vrot.slane %v83_v34, %v620_v5  ;;  %v207_v46 = vrot.slane %v87_v35, %v620_v5 }
   0xd   :  { %v288_v47 = vrot.slane %v280_v39, %v654_v36  ;;  %v295_v48 = vrot.slane %v281_v40, %v654_v36  ;;  %v305_v49 = vrot.slane %v297_v41, %v654_v36  ;;  %v312_v50 = vrot.slane %v298_v42, %v654_v36 }
   0xe   :  { %v91_v52 = vrot.slane %v31_v38, %v620_v5  ;;  %v95_v53 = vrot.slane %v31_v38, %v622_v6  ;;  %v99_v54 = vrot.slane %v31_v38, %v624_v7  ;;  %v103_v55 = vrot.slane %v31_v38, %v626_v8 }
   0xf   :  { %v296_v56 = vcombine.low %v288_v47, %v295_v48  ;;  %v313_v58 = vcombine.low %v305_v49, %v312_v50  ;;  %v314_v59 = vcombine.low %v195_v43, %v199_v44  ;;  %v315_v60 = vcombine.low %v203_v45, %v207_v46 }
  0x10   :  { %v211_v63 = vrot.slane %v91_v52, %v620_v5  ;;  %v215_v0 = vrot.slane %v95_v53, %v620_v5  ;;  %v219_v1 = vrot.slane %v99_v54, %v620_v5  ;;  %v223_v2 = vrot.slane %v103_v55, %v620_v5 }
  0x11   :  { %v388_v62 = vmul.f32 %v296_v56, %v19_v37  ;;  %v322_v10 = vrot.slane %v314_v59, %v654_v36  ;;  %v329_v11 = vrot.slane %v315_v60, %v654_v36  ;;  %v389_v12 = vmul.f32 %v313_v58, %v20_v57  ;;  %v18_v59 = vld [vmem:[%s746_s0 + $0x10] sm:$0xff] }
  0x12   :  { %v107_v13 = vrot.slane %v32_v61, %v620_v5  ;;  %v111_v15 = vrot.slane %v32_v61, %v622_v6  ;;  %v115_v16 = vrot.slane %v32_v61, %v624_v7  ;;  %v119_v17 = vrot.slane %v32_v61, %v626_v8 }
  0x13   :  { %v400_v3 = vcombine.high %v388_v62, %v388_v62  ;;  %v407_v4 = vrot.slane %v388_v62, %v654_v36  ;;  %v21_v19 = vunpack.c.l.bf16 %v17_v9  ;;  %v331_v20 = vcombine.low %v211_v63, %v215_v0 }
  0x14   :  { %v332_v21 = vcombine.low %v219_v1, %v223_v2  ;;  %v330_v22 = vcombine.low %v322_v10, %v329_v11  ;;  %v417_v24 = vcombine.high %v389_v12, %v389_v12  ;;  %v424_v25 = vrot.slane %v389_v12, %v654_v36 }
  0x15   :  { %v414_v14 = vrot.slane %v400_v3, %v654_v36  ;;  %v415_v18 = vcombine.high %v407_v4, %v407_v4  ;;  %v33_v26 = vunpack.c.h.bf16 %v27_v51  ;;  %v227_v27 = vrot.slane %v107_v13, %v620_v5 }
  0x16   :  { %v527_v28 = vsel %vm526_vm0, %v407_v4, 0.0  ;;  %v231_v29 = vrot.slane %v111_v15, %v620_v5  ;;  %v235_v30 = vrot.slane %v115_v16, %v620_v5  ;;  %v239_v31 = vrot.slane %v119_v17, %v620_v5 }
  0x17   :  { %v416_v23 = vcombine.high %v414_v14, %v414_v14  ;;  %v528_v32 = vsel %vm526_vm0, %v415_v18, 0.0  ;;  %v339_v33 = vrot.slane %v331_v20, %v654_v36  ;;  %v346_v34 = vrot.slane %v332_v21, %v654_v36 }
  0x18   :  { %v529_v35 = vadd.f32 %v528_v32, %v527_v28  ;;  %v530_v37 = vsel %vm526_vm0, %v414_v14, 0.0  ;;  %v390_v38 = vmul.f32 %v330_v22, %v21_v19  ;;  %v431_v39 = vrot.slane %v417_v24, %v654_v36 }
  0x19   :  { %v432_v40 = vcombine.high %v424_v25, %v424_v25  ;;  %v532_v41 = vsel %vm526_vm0, %v416_v23, 0.0  ;;  %v22_v42 = vunpack.c.h.bf16 %v17_v9  ;;  %v123_v43 = vrot.slane %v33_v26, %v620_v5 }
  0x1a   :  { %v531_v44 = vadd.f32 %v530_v37, %v529_v35  ;;  %v127_v45 = vrot.slane %v33_v26, %v622_v6  ;;  %v131_v46 = vrot.slane %v33_v26, %v624_v7  ;;  %v135_v47 = vrot.slane %v33_v26, %v626_v8 }
  0x1b   :  { %v534_v48 = vsel %vm526_vm0, %v424_v25, 0.0  ;;  %v347_v49 = vcombine.low %v339_v33, %v346_v34  ;;  %v348_v50 = vcombine.low %v227_v27, %v231_v29  ;;  %v349_v51 = vcombine.low %v235_v30, %v239_v31 }
  0x1c   :  { %v533_v52 = vadd.f32 %v532_v41, %v531_v44  ;;  %v433_v53 = vcombine.high %v431_v39, %v431_v39  ;;  %v434_v54 = vcombine.high %v390_v38, %v390_v38  ;;  %v441_v55 = vrot.slane %v390_v38, %v654_v36 }
  0x1d   :  { %v536_v56 = vsel %vm526_vm0, %v432_v40, 0.0  ;;  %v243_v58 = vrot.slane %v123_v43, %v620_v5  ;;  %v247_v6 = vrot.slane %v127_v45, %v620_v5  ;;  %v251_v7 = vrot.slane %v131_v46, %v620_v5 }
  0x1e   :  { %v535_v57 = vadd.f32 %v534_v48, %v533_v52  ;;  %v538_v8 = vsel %vm526_vm0, %v431_v39, 0.0  ;;  %v255_v60 = vrot.slane %v135_v47, %v620_v5  ;;  %v356_v61 = vrot.slane %v348_v50, %v654_v36 }
  0x1f   :  { %v363_v62 = vrot.slane %v349_v51, %v654_v36  ;;  %v391_v0 = vmul.f32 %v347_v49, %v22_v42  ;;  %v448_v1 = vrot.slane %v434_v54, %v654_v36  ;;  %v449_v2 = vcombine.high %v441_v55, %v441_v55 }
  0x20   :  { %v537_v63 = vadd.f32 %v536_v56, %v535_v57  ;;  %v540_v3 = vsel %vm526_vm0, %v433_v53, 0.0  ;;  %v23_v9 = vunpack.c.l.bf16 %v18_v59  ;;  %v542_v10 = vsel %vm526_vm0, %v441_v55, 0.0 }
  0x21   :  { %v364_v11 = vcombine.low %v356_v61, %v363_v62  ;;  %v365_v12 = vcombine.low %v243_v58, %v247_v6  ;;  %v366_v13 = vcombine.low %v251_v7, %v255_v60  ;;  %v450_v5 = vcombine.high %v448_v1, %v448_v1 }
  0x22   :  { %v539_v4 = vadd.f32 %v538_v8, %v537_v63  ;;  %v451_v15 = vcombine.high %v391_v0, %v391_v0  ;;  %v458_v16 = vrot.slane %v391_v0, %v654_v36  ;;  %v544_v17 = vsel %vm526_vm0, %v449_v2, 0.0 }
  0x23   :  { %v546_v19 = vsel %vm526_vm0, %v448_v1, 0.0  ;;  %v373_v20 = vrot.slane %v365_v12, %v654_v36  ;;  %v380_v21 = vrot.slane %v366_v13, %v654_v36  ;;  %v392_v23 = vmul.f32 %v364_v11, %v23_v9 }
  0x24   :  { %v541_v14 = vadd.f32 %v540_v3, %v539_v4  ;;  %v465_v24 = vrot.slane %v451_v15, %v654_v36  ;;  %v466_v25 = vcombine.high %v458_v16, %v458_v16  ;;  %v548_v26 = vsel %vm526_vm0, %v450_v5, 0.0 }
  0x25   :  { %v550_v28 = vsel %vm526_vm0, %v458_v16, 0.0  ;;  %v24_v29 = vunpack.c.h.bf16 %v18_v59  ;;  %v381_v30 = vcombine.low %v373_v20, %v380_v21  ;;  %v468_v33 = vcombine.high %v392_v23, %v392_v23 }
  0x26   :  { %v543_v18 = vadd.f32 %v542_v10, %v541_v14  ;;  %v467_v32 = vcombine.high %v465_v24, %v465_v24  ;;  %v475_v34 = vrot.slane %v392_v23, %v654_v36  ;;  %v552_v35 = vsel %vm526_vm0, %v466_v25, 0.0 }
  0x27   :  { %v554_v38 = vsel %vm526_vm0, %v465_v24, 0.0  ;;  %v393_v40 = vmul.f32 %v381_v30, %v24_v29  ;;  %v482_v41 = vrot.slane %v468_v33, %v654_v36 }
  0x28   :  { %v545_v22 = vadd.f32 %v544_v17, %v543_v18  ;;  %v483_v42 = vcombine.high %v475_v34, %v475_v34  ;;  %v556_v43 = vsel %vm526_vm0, %v467_v32, 0.0  ;;  %v558_v45 = vsel %vm526_vm0, %v475_v34, 0.0 }
  0x29   :  { %v484_v47 = vcombine.high %v482_v41, %v482_v41  ;;  %v485_v48 = vcombine.high %v393_v40, %v393_v40  ;;  %v492_v49 = vrot.slane %v393_v40, %v654_v36  ;;  %v562_v52 = vsel %vm526_vm0, %v482_v41, 0.0 }
  0x2a   :  { %v547_v27 = vadd.f32 %v546_v19, %v545_v22  ;;  %v560_v50 = vsel %vm526_vm0, %v483_v42, 0.0 }
  0x2b   :  { %v499_v54 = vrot.slane %v485_v48, %v654_v36  ;;  %v500_v55 = vcombine.high %v492_v49, %v492_v49  ;;  %v564_v56 = vsel %vm526_vm0, %v484_v47, 0.0  ;;  %v566_v58 = vsel %vm526_vm0, %v492_v49, 0.0  ;;  %v591_v36 = vld [vmem:[#allocation2] ss:$0 sm:$0xff] }
  0x2c   :  { %v549_v31 = vadd.f32 %v548_v26, %v547_v27 }
  0x2d   :  { %v501_v7 = vcombine.high %v499_v54, %v499_v54  ;;  %v568_v8 = vsel %vm526_vm0, %v500_v55, 0.0  ;;  %v570_v60 = vsel %vm526_vm0, %v499_v54, 0.0 }
  0x2e   :  { %v551_v37 = vadd.f32 %v550_v28, %v549_v31 }
  0x2f   :  { %v572_v62 = vsel %vm526_vm0, %v501_v7, 0.0 }
  0x30   :  { %v553_v39 = vadd.f32 %v552_v35, %v551_v37 }
  0x32   :  { %v555_v44 = vadd.f32 %v554_v38, %v553_v39 }
  0x34   :  { %v557_v46 = vadd.f32 %v556_v43, %v555_v44 }
  0x36   :  { %v559_v51 = vadd.f32 %v558_v45, %v557_v46 }
  0x38   :  { %v561_v53 = vadd.f32 %v560_v50, %v559_v51 }
  0x3a   :  { %v563_v57 = vadd.f32 %v562_v52, %v561_v53 }
  0x3c   :  { %v565_v6 = vadd.f32 %v564_v56, %v563_v57 }
  0x3e   :  { %v567_v59 = vadd.f32 %v566_v58, %v565_v6 }
  0x40   :  { %v569_v61 = vadd.f32 %v568_v8, %v567_v59 }
  0x42   :  { %v571_v63 = vadd.f32 %v570_v60, %v569_v61 }
  0x44   :  { %v573_v0 = vadd.f32 %v572_v62, %v571_v63 }
  0x46   :  { %574 = vadd.xlane.f32.xlu0 %v573_v0 }
  0xd3   :  { %v575_v1 = vpop.xlane.xlu0 %574 }
  0xd4   :  { %v583_v2 = vadd.f32 %v591_v36, %v575_v1 }
  0xd6   :  { %v584_v3 = vpack.c.bf16 %v583_v2, %v583_v2 }
  0xd8   :  { %586 = vst.msk [vmem:[%s747_s3] sm:$0x1] %vm585_vm1, %v584_v3 }

// kernel: discriminator_s_forward.11
= control target key start
LH: loop header
LB: loop body
LE: loop exit
PB: predicated region body
PF: predicated region fallthrough
CT: control target
= control target key end

     0   :  { %s5239_s12 = smov 0   ;;  %s5670_s0 = inlined_call_operand.vmem [shape: bf16[8,2,5248], index: 0, kind: input, shape index: {}]   ;;  %s5671_s1 = inlined_call_operand.vmem [shape: bf16[8,5248,128], index: 1, kind: input, shape index: {}]   ;;  %s5672_s2 = inlined_call_operand.vmem [shape: f32[8,1,128], index: 2, kind: input, shape index: {}]   ;;  %s5673_s3 = inlined_call_operand.vmem [shape: bf16[2,1024], index: 3, kind: output, shape index: {}]  }
   0x1 LB: > { %s4055_s13 = sadd.s32 4294967295, %s5214_s12   ;;  %p4059_p0 = scmp.ge.s32.totalorder %s5214_s12, 1  ;;  %s5214_s12 = sphi %s5239_s12, %s13_s12  }
   0x2   : > { %p154_p1 = scmp.lt.s32.totalorder %s5214_s12, 9 }
   0x4   : > { %p155_p2 = pnand %p4059_p0, %p154_p1 }
   0x5   : > { %p183_p3 = scmp.lt.s32.totalorder (!%p155_p2), %s4055_s13, 7  ;;  %v878_v20 = vlaneseq (!%p155_p2)  ;;  %v5216_v22 = vmov (!%p155_p2), 1966171168   ;;  %vm5218_vm0 = vmmov (!%p155_p2), 0  }
   0x6   : > { %158 = sbr.rel (%p155_p2) target bundleno = 590 (0x24e), region = 32  ;;  %v876_v23 = vunpack.c.l.s4 (!%p155_p2), %v5216_v22 }
   0x7   : > { %v879_v27 = vshrl.u32 (!%p155_p2), %v878_v20, 7 }
   0x8   : > { %v877_v29 = vunpack.c.0.s8 (!%p155_p2), %v876_v23 }
   0xa   : > { %v5290_v34 = vsub.s32 (!%p155_p2), %v877_v29, %v879_v27 }
   0xd   : > { %s5675_s13 = smov (!%p183_p3, %s4055_s13), 7 }
   0xe   : > { %s4863_s14 = smul.u32 2624, %s5675_s13  ;;  %s194_s24 = scalar_lea.vmem %s5672_s2, %s5675_s13 }
   0xf   : > { %s4862_s18 = smul.u32 41, %s5675_s13  ;;  %s197_s27 = scalar_lea.vmem %s5673_s3, %s5675_s13 }
  0x10   : > { %s5253_s17 = scalar_lea.vmem %s5671_s1, %s4863_s14 }
  0x11   : > { %v4875_v0 = vld [vmem:[%s5253_s17 + $0x40] sm:$0xff]   ;;  %v4879_v4 = vld [vmem:[%s5253_s17 + $0x48] sm:$0xff]   ;;  %v4883_v8 = vld [vmem:[%s5253_s17 + $0x50] sm:$0xff]   ;;  %s5288_s21 = scalar_lea.vmem %s5670_s0, %s4862_s18 }
  0x12   : > { %v4876_v1 = vld [vmem:[%s5253_s17] sm:$0xff]   ;;  %4393 = vmatprep.subr.bf16.mxu0 %v4875_v0  ;;  %v4880_v5 = vld [vmem:[%s5253_s17 + $0x8] sm:$0xff]   ;;  %v4884_v9 = vld [vmem:[%s5253_s17 + $0x10] sm:$0xff]  }
  0x13   : > { %v4877_v2 = vld [vmem:[%s5253_s17 + $0xc0] sm:$0xff]   ;;  %4394 = vmatpush3.bf16.msra.mxu0 %v4876_v1  ;;  %v4881_v6 = vld [vmem:[%s5253_s17 + $0xc8] sm:$0xff]   ;;  %v4885_v10 = vld [vmem:[%s5253_s17 + $0xd0] sm:$0xff]  }
  0x14   : > { %v4878_v3 = vld [vmem:[%s5253_s17 + $0x80] sm:$0xff]   ;;  %4415 = vmatprep.subr.bf16.mxu1 %v4877_v2  ;;  %4395 = vmatprep.subr.bf16.mxu0 %v4879_v4  ;;  %v4882_v7 = vld [vmem:[%s5253_s17 + $0x88] sm:$0xff]   ;;  %v4886_v11 = vld [vmem:[%s5253_s17 + $0x90] sm:$0xff]  }
  0x15   : > { %4416 = vmatpush3.bf16.msra.mxu1 %v4878_v3  ;;  %v4887_v12 = vld [vmem:[%s5253_s17 + $0x58] sm:$0xff]   ;;  %v4891_v16 = vld [vmem:[%s5253_s17 + $0x60] sm:$0xff]   ;;  %v4895_v21 = vld [vmem:[%s5253_s17 + $0x68] sm:$0xff]  }
  0x16   : > { %4417 = vmatprep.subr.bf16.mxu1 %v4881_v6  ;;  %v4888_v13 = vld [vmem:[%s5253_s17 + $0x18] sm:$0xff]   ;;  %v4892_v17 = vld [vmem:[%s5253_s17 + $0x20] sm:$0xff]   ;;  %v4896_v24 = vld [vmem:[%s5253_s17 + $0x28] sm:$0xff]  }
  0x17   : > { %4396 = vmatpush3.bf16.msra.mxu0 %v4880_v5  ;;  %v4889_v14 = vld [vmem:[%s5253_s17 + $0xd8] sm:$0xff]   ;;  %v4893_v18 = vld [vmem:[%s5253_s17 + $0xe0] sm:$0xff]   ;;  %v4897_v25 = vld [vmem:[%s5253_s17 + $0xe8] sm:$0xff]  }
  0x18   : > { %4397 = vmatprep.subr.bf16.mxu0 %v4883_v8  ;;  %v4890_v15 = vld [vmem:[%s5253_s17 + $0x98] sm:$0xff]   ;;  %v4894_v19 = vld [vmem:[%s5253_s17 + $0xa0] sm:$0xff]   ;;  %v4898_v26 = vld [vmem:[%s5253_s17 + $0xa8] sm:$0xff]  }
  0x19   : > { %4418 = vmatpush3.bf16.msra.mxu1 %v4882_v7  ;;  %v4899_v28 = vld [vmem:[%s5253_s17 + $0x70] sm:$0xff]   ;;  %v4903_v33 = vld [vmem:[%s5253_s17 + $0x78] sm:$0xff]   ;;  %v199_v37 = vld [vmem:[%s5288_s21] sm:$0xff] }
  0x1a   : > { %4419 = vmatprep.subr.bf16.mxu1 %v4885_v10  ;;  %v4900_v30 = vld [vmem:[%s5253_s17 + $0x30] sm:$0xff]   ;;  %v4904_v35 = vld [vmem:[%s5253_s17 + $0x38] sm:$0xff]   ;;  %v874_v38 = vcombine.high %v199_v37, %v199_v37  ;;  %v881_v39 = vrot.slane %v199_v37, %v5290_v34  ;;  %v4908_v41 = vld [vmem:[%s5253_s17 + $0x140] sm:$0xff]  }
  0x1b   : > { %4398 = vmatpush3.bf16.msra.mxu0 %v4884_v9  ;;  %v4901_v31 = vld [vmem:[%s5253_s17 + $0xf0] sm:$0xff]   ;;  %v4905_v36 = vld [vmem:[%s5253_s17 + $0xf8] sm:$0xff]   ;;  %v4909_v44 = vld [vmem:[%s5253_s17 + $0x100] sm:$0xff]  }
  0x1c   : > { %4399 = vmatprep.subr.bf16.mxu0 %v4887_v12  ;;  %v4902_v32 = vld [vmem:[%s5253_s17 + $0xb0] sm:$0xff]   ;;  %v4907_v40 = vld [vmem:[%s5253_s17 + $0xb8] sm:$0xff]   ;;  %v889_v42 = vcombine.high %v881_v39, %v881_v39  ;;  %v897_v43 = vrot.slane %v881_v39, %v5290_v34  ;;  %v5301_v45 = vrot.slane %v874_v38, %v5290_v34  ;;  %v4910_v46 = vld [vmem:[%s5253_s17 + $0x1c0] sm:$0xff]  }
  0x1d   : > { %4420 = vmatpush3.bf16.msra.mxu1 %v4886_v11  ;;  %v4911_v48 = vld [vmem:[%s5253_s17 + $0x180] sm:$0xff]   ;;  %v4912_v51 = vld [vmem:[%s5253_s17 + $0x148] sm:$0xff]   ;;  %v4916_v58 = vld [vmem:[%s5253_s17 + $0x150] sm:$0xff]  }
  0x1e   : > { %4421 = vmatprep.subr.bf16.mxu1 %v4889_v14  ;;  %v911_v47 = vrot.slane %v889_v42, %v5290_v34  ;;  %v890_v49 = vcombine.high %v5301_v45, %v5301_v45  ;;  %v919_v50 = vcombine.high %v897_v43, %v897_v43  ;;  %v4913_v53 = vld [vmem:[%s5253_s17 + $0x108] sm:$0xff]   ;;  %v4917_v59 = vld [vmem:[%s5253_s17 + $0x110] sm:$0xff]   ;;  %v4920_v62 = vld [vmem:[%s5253_s17 + $0x158] sm:$0xff]  }
  0x1f   : > { %4400 = vmatpush3.bf16.msra.mxu0 %v4888_v13  ;;  %v4914_v55 = vld [vmem:[%s5253_s17 + $0x1c8] sm:$0xff]   ;;  %v4918_v60 = vld [vmem:[%s5253_s17 + $0x1d0] sm:$0xff]   ;;  %v4921_v63 = vld [vmem:[%s5253_s17 + $0x118] sm:$0xff]  }
  0x20   : > { %4401 = vmatprep.subr.bf16.mxu0 %v4891_v16  ;;  %3174 = vmatprep.mubr.bf16.mxu0 %v911_v47  ;;  %v921_v52 = vcombine.high %v911_v47, %v911_v47  ;;  %v918_v54 = vrot.slane %v890_v49, %v5290_v34  ;;  %v4915_v56 = vld [vmem:[%s5253_s17 + $0x188] sm:$0xff]   ;;  %v4919_v61 = vld [vmem:[%s5253_s17 + $0x190] sm:$0xff]   ;;  %v4922_v0 = vld [vmem:[%s5253_s17 + $0x1d8] sm:$0xff]  }
  0x21   : > { %4422 = vmatpush3.bf16.msra.mxu1 %v4890_v15  ;;  %v4923_v1 = vld [vmem:[%s5253_s17 + $0x198] sm:$0xff]   ;;  %v4924_v2 = vld [vmem:[%s5253_s17 + $0x160] sm:$0xff]   ;;  %v4928_v6 = vld [vmem:[%s5253_s17 + $0x168] sm:$0xff]  }
  0x22   : > { %4423 = vmatprep.subr.bf16.mxu1 %v4893_v18  ;;  %3214 = vmatprep.mubr.bf16.mxu1 %v921_v52  ;;  %v922_v57 = vcombine.high %v918_v54, %v918_v54  ;;  %v4925_v3 = vld [vmem:[%s5253_s17 + $0x120] sm:$0xff]   ;;  %v4929_v7 = vld [vmem:[%s5253_s17 + $0x128] sm:$0xff]   ;;  %v4932_v10 = vld [vmem:[%s5253_s17 + $0x170] sm:$0xff]   ;;  %v904_v18 = vrot.slane %v5301_v45, %v5290_v34 }
  0x23   : > { %4402 = vmatpush3.bf16.msra.mxu0 %v4892_v17  ;;  %v4926_v4 = vld [vmem:[%s5253_s17 + $0x1e0] sm:$0xff]   ;;  %v4930_v8 = vld [vmem:[%s5253_s17 + $0x1e8] sm:$0xff]   ;;  %v4933_v11 = vld [vmem:[%s5253_s17 + $0x130] sm:$0xff]  }
  0x24   : > { %4403 = vmatprep.subr.bf16.mxu0 %v4895_v21  ;;  %v4927_v5 = vld [vmem:[%s5253_s17 + $0x1a0] sm:$0xff]   ;;  %v4931_v9 = vld [vmem:[%s5253_s17 + $0x1a8] sm:$0xff]   ;;  %v4934_v12 = vld [vmem:[%s5253_s17 + $0x1f0] sm:$0xff]   ;;  %v920_v23 = vcombine.high %v904_v18, %v904_v18 }
  0x25   : > { %4424 = vmatpush3.bf16.msra.mxu1 %v4894_v19  ;;  %v4935_v13 = vld [vmem:[%s5253_s17 + $0x1b0] sm:$0xff]   ;;  %v4936_v14 = vld [vmem:[%s5253_s17 + $0x178] sm:$0xff]   ;;  %v4940_v19 = vld [vmem:[%s5253_s17 + $0x240] sm:$0xff]  }
  0x26   : > { %4425 = vmatprep.subr.bf16.mxu1 %v4897_v25  ;;  %v4937_v15 = vld [vmem:[%s5253_s17 + $0x138] sm:$0xff]   ;;  %v4941_v20 = vld [vmem:[%s5253_s17 + $0x200] sm:$0xff]   ;;  %v4945_v25 = vld [vmem:[%s5253_s17 + $0x208] sm:$0xff]  }
  0x27   : > { %4404 = vmatpush3.bf16.msra.mxu0 %v4896_v24  ;;  %v4938_v16 = vld [vmem:[%s5253_s17 + $0x1f8] sm:$0xff]   ;;  %v4942_v21 = vld [vmem:[%s5253_s17 + $0x2c0] sm:$0xff]   ;;  %v4944_v24 = vld [vmem:[%s5253_s17 + $0x248] sm:$0xff]  }
  0x28   : > { %4405 = vmatprep.subr.bf16.mxu0 %v4899_v28  ;;  %v4939_v17 = vld [vmem:[%s5253_s17 + $0x1b8] sm:$0xff]   ;;  %v4943_v22 = vld [vmem:[%s5253_s17 + $0x280] sm:$0xff]   ;;  %v4947_v27 = vld [vmem:[%s5253_s17 + $0x288] sm:$0xff]  }
  0x29   : > { %4426 = vmatpush3.bf16.msra.mxu1 %v4898_v26  ;;  %v4946_v26 = vld [vmem:[%s5253_s17 + $0x2c8] sm:$0xff]   ;;  %v4948_v28 = vld [vmem:[%s5253_s17 + $0x250] sm:$0xff]   ;;  %v4956_v37 = vld [vmem:[%s5253_s17 + $0x260] sm:$0xff]  }
  0x2a   : > { %4427 = vmatprep.subr.bf16.mxu1 %v4901_v31  ;;  %v4949_v29 = vld [vmem:[%s5253_s17 + $0x210] sm:$0xff]   ;;  %v4957_v38 = vld [vmem:[%s5253_s17 + $0x220] sm:$0xff]   ;;  %v4961_v42 = vld [vmem:[%s5253_s17 + $0x228] sm:$0xff]  }
  0x2b   : > { %4406 = vmatpush3.bf16.msra.mxu0 %v4900_v30  ;;  %v4950_v30 = vld [vmem:[%s5253_s17 + $0x2d0] sm:$0xff]   ;;  %v4958_v39 = vld [vmem:[%s5253_s17 + $0x2e0] sm:$0xff]   ;;  %v4968_v49 = vld [vmem:[%s5253_s17 + $0x278] sm:$0xff]  }
  0x2c   : > { %4407 = vmatprep.subr.bf16.mxu0 %v4903_v33  ;;  %v4951_v31 = vld [vmem:[%s5253_s17 + $0x290] sm:$0xff]   ;;  %v4953_v33 = vld [vmem:[%s5253_s17 + $0x218] sm:$0xff]   ;;  %v200_v52 = vld [vmem:[%s5288_s21 + $0x8] sm:$0xff] }
  0x2d   : > { %4428 = vmatpush3.bf16.msra.mxu1 %v4902_v32  ;;  %v4952_v32 = vld [vmem:[%s5253_s17 + $0x258] sm:$0xff]   ;;  %v4964_v45 = vld [vmem:[%s5253_s17 + $0x270] sm:$0xff]  }
  0x2e   : > { %4429 = vmatprep.subr.bf16.mxu1 %v4905_v36  ;;  %v4955_v36 = vld [vmem:[%s5253_s17 + $0x298] sm:$0xff]   ;;  %v4966_v47 = vld [vmem:[%s5253_s17 + $0x2f0] sm:$0xff]  }
  0x2f   : > { %4408 = vmatpush3.bf16.msra.mxu0 %v4904_v35  ;;  %v4954_v35 = vld [vmem:[%s5253_s17 + $0x2d8] sm:$0xff]  }
  0x30   : > { %4437 = vmatprep.subr.bf16.mxu0 %v4908_v41  ;;  %v4960_v41 = vld [vmem:[%s5253_s17 + $0x268] sm:$0xff]  }
  0x31   : > { %4430 = vmatpush3.bf16.msra.mxu1 %v4907_v40  ;;  %v4959_v40 = vld [vmem:[%s5253_s17 + $0x2a0] sm:$0xff]  }
  0x32   : > { %4459 = vmatprep.subr.bf16.mxu1 %v4910_v46  ;;  %3175 = vmatmul.mubr.bf16.vlgmr.msra.gmra.mrb[0].mxu0 %v897_v43  ;;  %v4962_v43 = vld [vmem:[%s5253_s17 + $0x2e8] sm:$0xff]   ;;  %v4965_v46 = vld [vmem:[%s5253_s17 + $0x230] sm:$0xff]  }
  0x33   : > { %4438 = vmatpush3.bf16.msra.mxu0 %v4909_v44  ;;  %3254 = vmatprep.mubr.bf16.mxu0 %v918_v54  ;;  %v4963_v44 = vld [vmem:[%s5253_s17 + $0x2a8] sm:$0xff]   ;;  %v4971_v54 = vld [vmem:[%s5253_s17 + $0x2b8] sm:$0xff]  }
  0x34   : > { %3215 = vmatmul.mubr.bf16.vlgmr.msra.gmra.mrb[0].mxu1 %v919_v50  ;;  %4439 = vmatprep.subr.bf16.mxu0 %v4912_v51  ;;  %v4969_v50 = vld [vmem:[%s5253_s17 + $0x238] sm:$0xff]  }
  0x35   : > { %4460 = vmatpush3.bf16.msra.mxu1 %v4911_v48  ;;  %3294 = vmatprep.mubr.bf16.mxu1 %v922_v57  ;;  %v4967_v48 = vld [vmem:[%s5253_s17 + $0x2b0] sm:$0xff]   ;;  %v4970_v51 = vld [vmem:[%s5253_s17 + $0x2f8] sm:$0xff]  }
  0x36   : > { %4461 = vmatprep.subr.bf16.mxu1 %v4914_v55  ;;  %v923_v55 = vcombine.high %v200_v52, %v200_v52 }
  0x37   : > { %4440 = vmatpush3.bf16.msra.mxu0 %v4913_v53  ;;  %v930_v53 = vrot.slane %v200_v52, %v5290_v34  ;;  %v5021_v52 = vld [vmem:[%s5253_s17 + $0x460] sm:$0xff]  }
  0x38   : > { %4441 = vmatprep.subr.bf16.mxu0 %v4916_v58 }
  0x39   : > { %4462 = vmatpush3.bf16.msra.mxu1 %v4915_v56  ;;  %v4972_v56 = vld [vmem:[%s5253_s17 + $0x340] sm:$0xff]   ;;  %v938_v57 = vcombine.high %v930_v53, %v930_v53  ;;  %v946_v58 = vrot.slane %v930_v53, %v5290_v34 }
  0x3a   : > { %4463 = vmatprep.subr.bf16.mxu1 %v4918_v60  ;;  %v5377_v60 = vrot.slane %v923_v55, %v5290_v34  ;;  %v5022_v53 = vld [vmem:[%s5253_s17 + $0x420] sm:$0xff]  }
  0x3b   : > { %4442 = vmatpush3.bf16.msra.mxu0 %v4917_v59  ;;  %v4973_v59 = vld [vmem:[%s5253_s17 + $0x300] sm:$0xff]  }
  0x3c   : > { %4443 = vmatprep.subr.bf16.mxu0 %v4920_v62  ;;  %v960_v62 = vrot.slane %v938_v57, %v5290_v34  ;;  %v5024_v55 = vld [vmem:[%s5253_s17 + $0x4a0] sm:$0xff]   ;;  %v5026_v57 = vld [vmem:[%s5253_s17 + $0x428] sm:$0xff]  }
  0x3d   : > { %4464 = vmatpush3.bf16.msra.mxu1 %v4919_v61  ;;  %v4974_v61 = vld [vmem:[%s5253_s17 + $0x3c0] sm:$0xff]  }
  0x3e   : > { %4465 = vmatprep.subr.bf16.mxu1 %v4922_v0  ;;  %v939_v0 = vcombine.high %v5377_v60, %v5377_v60 }
  0x3f   : > { %4444 = vmatpush3.bf16.msra.mxu0 %v4921_v63  ;;  %v4975_v63 = vld [vmem:[%s5253_s17 + $0x380] sm:$0xff]  }
  0x40   : > { %4445 = vmatprep.subr.bf16.mxu0 %v4924_v2  ;;  %v4976_v2 = vld [vmem:[%s5253_s17 + $0x348] sm:$0xff]  }
  0x41   : > { %4466 = vmatpush3.bf16.msra.mxu1 %v4923_v1  ;;  %v968_v1 = vcombine.high %v946_v58, %v946_v58 }
  0x42   : > { %4467 = vmatprep.subr.bf16.mxu1 %v4926_v4  ;;  %v4977_v4 = vld [vmem:[%s5253_s17 + $0x308] sm:$0xff]  }
  0x43   : > { %4446 = vmatpush3.bf16.msra.mxu0 %v4925_v3  ;;  %v970_v3 = vcombine.high %v960_v62, %v960_v62 }
  0x44   : > { %4447 = vmatprep.subr.bf16.mxu0 %v4928_v6  ;;  %v4978_v6 = vld [vmem:[%s5253_s17 + $0x3c8] sm:$0xff]  }
  0x45   : > { %4468 = vmatpush3.bf16.msra.mxu1 %v4927_v5  ;;  %v967_v5 = vrot.slane %v939_v0, %v5290_v34  ;;  %v5033_v0 = vld [vmem:[%s5253_s17 + $0x478] sm:$0xff]  }
  0x46   : > { %4469 = vmatprep.subr.bf16.mxu1 %v4930_v8 }
  0x47   : > { %4448 = vmatpush3.bf16.msra.mxu0 %v4929_v7  ;;  %v4979_v7 = vld [vmem:[%s5253_s17 + $0x388] sm:$0xff]   ;;  %v971_v8 = vcombine.high %v967_v5, %v967_v5 }
  0x48   : > { %4449 = vmatprep.subr.bf16.mxu0 %v4932_v10  ;;  %v4981_v10 = vld [vmem:[%s5253_s17 + $0x310] sm:$0xff]  }
  0x49   : > { %4470 = vmatpush3.bf16.msra.mxu1 %v4931_v9  ;;  %v4980_v9 = vld [vmem:[%s5253_s17 + $0x350] sm:$0xff]  }
  0x4a   : > { %4471 = vmatprep.subr.bf16.mxu1 %v4934_v12  ;;  %v4983_v12 = vld [vmem:[%s5253_s17 + $0x390] sm:$0xff]  }
  0x4b   : > { %4450 = vmatpush3.bf16.msra.mxu0 %v4933_v11  ;;  %v4982_v11 = vld [vmem:[%s5253_s17 + $0x3d0] sm:$0xff]  }
  0x4c   : > { %4451 = vmatprep.subr.bf16.mxu0 %v4936_v14  ;;  %v4985_v14 = vld [vmem:[%s5253_s17 + $0x318] sm:$0xff]  }
  0x4d   : > { %4472 = vmatpush3.bf16.msra.mxu1 %v4935_v13  ;;  %v4984_v13 = vld [vmem:[%s5253_s17 + $0x358] sm:$0xff]  }
  0x4e   : > { %4473 = vmatprep.subr.bf16.mxu1 %v4938_v16  ;;  %v4987_v16 = vld [vmem:[%s5253_s17 + $0x398] sm:$0xff]  }
  0x4f   : > { %4452 = vmatpush3.bf16.msra.mxu0 %v4937_v15  ;;  %v4986_v15 = vld [vmem:[%s5253_s17 + $0x3d8] sm:$0xff]  }
  0x50   : > { %4481 = vmatprep.subr.bf16.mxu0 %v4940_v19  ;;  %v4990_v19 = vld [vmem:[%s5253_s17 + $0x3e0] sm:$0xff]  }
  0x51   : > { %4474 = vmatpush3.bf16.msra.mxu1 %v4939_v17  ;;  %v4988_v17 = vld [vmem:[%s5253_s17 + $0x360] sm:$0xff]  }
  0x52   : > { %3255 = vmatmul.mubr.bf16.vlgmr.msra.gmra.mrb[4].mxu0 %v904_v18  ;;  %4503 = vmatprep.subr.bf16.mxu1 %v4942_v21  ;;  %v4989_v18 = vld [vmem:[%s5253_s17 + $0x320] sm:$0xff]   ;;  %v4992_v21 = vld [vmem:[%s5253_s17 + $0x368] sm:$0xff]  }
  0x53   : > { %4482 = vmatpush3.bf16.msra.mxu0 %v4941_v20  ;;  %3334 = vmatprep.mubr.bf16.mxu0 %v960_v62  ;;  %v4991_v20 = vld [vmem:[%s5253_s17 + $0x3a0] sm:$0xff]   ;;  %v5031_v62 = vld [vmem:[%s5253_s17 + $0x4f0] sm:$0xff]  }
  0x54   : > { %3295 = vmatmul.mubr.bf16.vlgmr.msra.gmra.mrb[4].mxu1 %v920_v23  ;;  %4483 = vmatprep.subr.bf16.mxu0 %v4944_v24  ;;  %v4994_v23 = vld [vmem:[%s5253_s17 + $0x3e8] sm:$0xff]  }
  0x55   : > { %4504 = vmatpush3.bf16.msra.mxu1 %v4943_v22  ;;  %3374 = vmatprep.mubr.bf16.mxu1 %v970_v3  ;;  %v4993_v22 = vld [vmem:[%s5253_s17 + $0x328] sm:$0xff]   ;;  %v201_v3 = vld [vmem:[%s5288_s21 + $0x10] sm:$0xff] }
  0x56   : > { %4505 = vmatprep.subr.bf16.mxu1 %v4946_v26  ;;  %v4995_v24 = vld [vmem:[%s5253_s17 + $0x3a8] sm:$0xff]   ;;  %v4997_v26 = vld [vmem:[%s5253_s17 + $0x330] sm:$0xff]  }
  0x57   : > { %4484 = vmatpush3.bf16.msra.mxu0 %v4945_v25  ;;  %v4996_v25 = vld [vmem:[%s5253_s17 + $0x370] sm:$0xff]  }
  0x58   : > { %4485 = vmatprep.subr.bf16.mxu0 %v4948_v28  ;;  %v4999_v28 = vld [vmem:[%s5253_s17 + $0x3b0] sm:$0xff]  }
  0x59   : > { %4506 = vmatpush3.bf16.msra.mxu1 %v4947_v27  ;;  %v4998_v27 = vld [vmem:[%s5253_s17 + $0x3f0] sm:$0xff]  }
  0x5a   : > { %4507 = vmatprep.subr.bf16.mxu1 %v4950_v30  ;;  %v5001_v30 = vld [vmem:[%s5253_s17 + $0x338] sm:$0xff]  }
  0x5b   : > { %4486 = vmatpush3.bf16.msra.mxu0 %v4949_v29  ;;  %v5000_v29 = vld [vmem:[%s5253_s17 + $0x378] sm:$0xff]  }
  0x5c   : > { %4487 = vmatprep.subr.bf16.mxu0 %v4952_v32  ;;  %v5004_v32 = vld [vmem:[%s5253_s17 + $0x3b8] sm:$0xff]  }
  0x5d   : > { %4508 = vmatpush3.bf16.msra.mxu1 %v4951_v31  ;;  %v5002_v31 = vld [vmem:[%s5253_s17 + $0x3f8] sm:$0xff]  }
  0x5e   : > { %4509 = vmatprep.subr.bf16.mxu1 %v4954_v35  ;;  %v5005_v35 = vld [vmem:[%s5253_s17 + $0x440] sm:$0xff]  }
  0x5f   : > { %4488 = vmatpush3.bf16.msra.mxu0 %v4953_v33  ;;  %v953_v33 = vrot.slane %v5377_v60, %v5290_v34  ;;  %v5029_v60 = vld [vmem:[%s5253_s17 + $0x470] sm:$0xff]  }
  0x60   : > { %4489 = vmatprep.subr.bf16.mxu0 %v4956_v37  ;;  %v5007_v37 = vld [vmem:[%s5253_s17 + $0x4c0] sm:$0xff]  }
  0x61   : > { %4510 = vmatpush3.bf16.msra.mxu1 %v4955_v36  ;;  %v5006_v36 = vld [vmem:[%s5253_s17 + $0x400] sm:$0xff]  }
  0x62   : > { %4511 = vmatprep.subr.bf16.mxu1 %v4958_v39  ;;  %v969_v39 = vcombine.high %v953_v33, %v953_v33 }
  0x63   : > { %4490 = vmatpush3.bf16.msra.mxu0 %v4957_v38  ;;  %v5008_v38 = vld [vmem:[%s5253_s17 + $0x480] sm:$0xff]  }
  0x64   : > { %4491 = vmatprep.subr.bf16.mxu0 %v4960_v41  ;;  %v5010_v41 = vld [vmem:[%s5253_s17 + $0x408] sm:$0xff]  }
  0x65   : > { %4512 = vmatpush3.bf16.msra.mxu1 %v4959_v40  ;;  %v5009_v40 = vld [vmem:[%s5253_s17 + $0x448] sm:$0xff]  }
  0x66   : > { %4513 = vmatprep.subr.bf16.mxu1 %v4962_v43  ;;  %v5012_v43 = vld [vmem:[%s5253_s17 + $0x488] sm:$0xff]  }
  0x67   : > { %4492 = vmatpush3.bf16.msra.mxu0 %v4961_v42  ;;  %v5011_v42 = vld [vmem:[%s5253_s17 + $0x4c8] sm:$0xff]  }
  0x68   : > { %4493 = vmatprep.subr.bf16.mxu0 %v4964_v45  ;;  %v5014_v45 = vld [vmem:[%s5253_s17 + $0x410] sm:$0xff]  }
  0x69   : > { %4514 = vmatpush3.bf16.msra.mxu1 %v4963_v44  ;;  %v5013_v44 = vld [vmem:[%s5253_s17 + $0x450] sm:$0xff]  }
  0x6a   : > { %4515 = vmatprep.subr.bf16.mxu1 %v4966_v47  ;;  %v5016_v47 = vld [vmem:[%s5253_s17 + $0x490] sm:$0xff]  }
  0x6b   : > { %4494 = vmatpush3.bf16.msra.mxu0 %v4965_v46  ;;  %v5015_v46 = vld [vmem:[%s5253_s17 + $0x4d0] sm:$0xff]  }
  0x6c   : > { %4495 = vmatprep.subr.bf16.mxu0 %v4968_v49  ;;  %v5018_v49 = vld [vmem:[%s5253_s17 + $0x418] sm:$0xff]  }
  0x6d   : > { %4516 = vmatpush3.bf16.msra.mxu1 %v4967_v48  ;;  %v5017_v48 = vld [vmem:[%s5253_s17 + $0x458] sm:$0xff]  }
  0x6e   : > { %4517 = vmatprep.subr.bf16.mxu1 %v4970_v51  ;;  %v5020_v51 = vld [vmem:[%s5253_s17 + $0x498] sm:$0xff]  }
  0x6f   : > { %4496 = vmatpush3.bf16.msra.mxu0 %v4969_v50  ;;  %v5019_v50 = vld [vmem:[%s5253_s17 + $0x4d8] sm:$0xff]  }
  0x70   : > { %4525 = vmatprep.subr.bf16.mxu0 %v4972_v56  ;;  %v5025_v56 = vld [vmem:[%s5253_s17 + $0x468] sm:$0xff]  }
  0x71   : > { %4518 = vmatpush3.bf16.msra.mxu1 %v4971_v54  ;;  %v5023_v54 = vld [vmem:[%s5253_s17 + $0x4e0] sm:$0xff]  }
  0x72   : > { %3335 = vmatmul.mubr.bf16.vlgmr.msra.gmra.mrb[8].mxu0 %v946_v58  ;;  %4547 = vmatprep.subr.bf16.mxu1 %v4974_v61  ;;  %v5027_v58 = vld [vmem:[%s5253_s17 + $0x4e8] sm:$0xff]   ;;  %v5030_v61 = vld [vmem:[%s5253_s17 + $0x430] sm:$0xff]  }
  0x73   : > { %4526 = vmatpush3.bf16.msra.mxu0 %v4973_v59  ;;  %3414 = vmatprep.mubr.bf16.mxu0 %v967_v5  ;;  %v5028_v59 = vld [vmem:[%s5253_s17 + $0x4a8] sm:$0xff]   ;;  %v5036_v5 = vld [vmem:[%s5253_s17 + $0x4b8] sm:$0xff]  }
  0x74   : > { %3375 = vmatmul.mubr.bf16.vlgmr.msra.gmra.mrb[8].mxu1 %v968_v1  ;;  %4527 = vmatprep.subr.bf16.mxu0 %v4976_v2  ;;  %v5034_v1 = vld [vmem:[%s5253_s17 + $0x438] sm:$0xff]  }
  0x75   : > { %4548 = vmatpush3.bf16.msra.mxu1 %v4975_v63  ;;  %3454 = vmatprep.mubr.bf16.mxu1 %v971_v8  ;;  %v5032_v63 = vld [vmem:[%s5253_s17 + $0x4b0] sm:$0xff]   ;;  %v5035_v2 = vld [vmem:[%s5253_s17 + $0x4f8] sm:$0xff]  }
  0x76   : > { %4549 = vmatprep.subr.bf16.mxu1 %v4978_v6  ;;  %v972_v6 = vcombine.high %v201_v3, %v201_v3 }
  0x77   : > { %4528 = vmatpush3.bf16.msra.mxu0 %v4977_v4  ;;  %v979_v4 = vrot.slane %v201_v3, %v5290_v34  ;;  %v5086_v3 = vld [vmem:[%s5253_s17 + $0x660] sm:$0xff]  }
  0x78   : > { %4529 = vmatprep.subr.bf16.mxu0 %v4980_v9 }
  0x79   : > { %4550 = vmatpush3.bf16.msra.mxu1 %v4979_v7  ;;  %v5037_v7 = vld [vmem:[%s5253_s17 + $0x540] sm:$0xff]   ;;  %v987_v8 = vcombine.high %v979_v4, %v979_v4  ;;  %v995_v9 = vrot.slane %v979_v4, %v5290_v34 }
  0x7a   : > { %4551 = vmatprep.subr.bf16.mxu1 %v4982_v11  ;;  %v5453_v11 = vrot.slane %v972_v6, %v5290_v34  ;;  %v5087_v4 = vld [vmem:[%s5253_s17 + $0x620] sm:$0xff]  }
  0x7b   : > { %4530 = vmatpush3.bf16.msra.mxu0 %v4981_v10  ;;  %v5038_v10 = vld [vmem:[%s5253_s17 + $0x500] sm:$0xff]  }
  0x7c   : > { %4531 = vmatprep.subr.bf16.mxu0 %v4984_v13  ;;  %v1009_v13 = vrot.slane %v987_v8, %v5290_v34  ;;  %v5089_v6 = vld [vmem:[%s5253_s17 + $0x6a0] sm:$0xff]   ;;  %v5091_v8 = vld [vmem:[%s5253_s17 + $0x628] sm:$0xff]  }
  0x7d   : > { %4552 = vmatpush3.bf16.msra.mxu1 %v4983_v12  ;;  %v5039_v12 = vld [vmem:[%s5253_s17 + $0x5c0] sm:$0xff]  }
  0x7e   : > { %4553 = vmatprep.subr.bf16.mxu1 %v4986_v15  ;;  %v988_v15 = vcombine.high %v5453_v11, %v5453_v11 }
  0x7f   : > { %4532 = vmatpush3.bf16.msra.mxu0 %v4985_v14  ;;  %v5040_v14 = vld [vmem:[%s5253_s17 + $0x580] sm:$0xff]  }
  0x80   : > { %4533 = vmatprep.subr.bf16.mxu0 %v4988_v17  ;;  %v5041_v17 = vld [vmem:[%s5253_s17 + $0x548] sm:$0xff]  }
  0x81   : > { %4554 = vmatpush3.bf16.msra.mxu1 %v4987_v16  ;;  %v1017_v16 = vcombine.high %v995_v9, %v995_v9 }
  0x82   : > { %4555 = vmatprep.subr.bf16.mxu1 %v4990_v19  ;;  %v5042_v19 = vld [vmem:[%s5253_s17 + $0x508] sm:$0xff]  }
  0x83   : > { %4534 = vmatpush3.bf16.msra.mxu0 %v4989_v18  ;;  %v1019_v18 = vcombine.high %v1009_v13, %v1009_v13 }
  0x84   : > { %4535 = vmatprep.subr.bf16.mxu0 %v4992_v21  ;;  %v5043_v21 = vld [vmem:[%s5253_s17 + $0x5c8] sm:$0xff]  }
  0x85   : > { %4556 = vmatpush3.bf16.msra.mxu1 %v4991_v20  ;;  %v1016_v20 = vrot.slane %v988_v15, %v5290_v34  ;;  %v5098_v15 = vld [vmem:[%s5253_s17 + $0x678] sm:$0xff]  }
  0x86   : > { %4557 = vmatprep.subr.bf16.mxu1 %v4994_v23 }
  0x87   : > { %4536 = vmatpush3.bf16.msra.mxu0 %v4993_v22  ;;  %v5044_v22 = vld [vmem:[%s5253_s17 + $0x588] sm:$0xff]   ;;  %v1020_v23 = vcombine.high %v1016_v20, %v1016_v20 }
  0x88   : > { %4537 = vmatprep.subr.bf16.mxu0 %v4996_v25  ;;  %v5046_v25 = vld [vmem:[%s5253_s17 + $0x510] sm:$0xff]  }
  0x89   : > { %4558 = vmatpush3.bf16.msra.mxu1 %v4995_v24  ;;  %v5045_v24 = vld [vmem:[%s5253_s17 + $0x550] sm:$0xff]  }
  0x8a   : > { %4559 = vmatprep.subr.bf16.mxu1 %v4998_v27  ;;  %v5048_v27 = vld [vmem:[%s5253_s17 + $0x590] sm:$0xff]  }
  0x8b   : > { %4538 = vmatpush3.bf16.msra.mxu0 %v4997_v26  ;;  %v5047_v26 = vld [vmem:[%s5253_s17 + $0x5d0] sm:$0xff]  }
  0x8c   : > { %4539 = vmatprep.subr.bf16.mxu0 %v5000_v29  ;;  %v5050_v29 = vld [vmem:[%s5253_s17 + $0x518] sm:$0xff]  }
  0x8d   : > { %4560 = vmatpush3.bf16.msra.mxu1 %v4999_v28  ;;  %v5049_v28 = vld [vmem:[%s5253_s17 + $0x558] sm:$0xff]  }
  0x8e   : > { %4561 = vmatprep.subr.bf16.mxu1 %v5002_v31  ;;  %v5052_v31 = vld [vmem:[%s5253_s17 + $0x598] sm:$0xff]  }
  0x8f   : > { %4540 = vmatpush3.bf16.msra.mxu0 %v5001_v30  ;;  %v5051_v30 = vld [vmem:[%s5253_s17 + $0x5d8] sm:$0xff]  }
  0x90   : > { %4569 = vmatprep.subr.bf16.mxu0 %v5005_v35  ;;  %v5055_v35 = vld [vmem:[%s5253_s17 + $0x5e0] sm:$0xff]  }
  0x91   : > { %4562 = vmatpush3.bf16.msra.mxu1 %v5004_v32  ;;  %v5053_v32 = vld [vmem:[%s5253_s17 + $0x560] sm:$0xff]  }
  0x92   : > { %3415 = vmatmul.mubr.bf16.vlgmr.msra.gmra.mrb[12].mxu0 %v953_v33  ;;  %4591 = vmatprep.subr.bf16.mxu1 %v5007_v37  ;;  %v5054_v33 = vld [vmem:[%s5253_s17 + $0x520] sm:$0xff]   ;;  %v5057_v37 = vld [vmem:[%s5253_s17 + $0x568] sm:$0xff]  }
  0x93   : > { %4570 = vmatpush3.bf16.msra.mxu0 %v5006_v36  ;;  %3494 = vmatprep.mubr.bf16.mxu0 %v1009_v13  ;;  %v5056_v36 = vld [vmem:[%s5253_s17 + $0x5a0] sm:$0xff]   ;;  %v5096_v13 = vld [vmem:[%s5253_s17 + $0x6f0] sm:$0xff]  }
  0x94   : > { %3455 = vmatmul.mubr.bf16.vlgmr.msra.gmra.mrb[12].mxu1 %v969_v39  ;;  %4571 = vmatprep.subr.bf16.mxu0 %v5009_v40  ;;  %v5059_v39 = vld [vmem:[%s5253_s17 + $0x5e8] sm:$0xff]  }
  0x95   : > { %4592 = vmatpush3.bf16.msra.mxu1 %v5008_v38  ;;  %3534 = vmatprep.mubr.bf16.mxu1 %v1019_v18  ;;  %v5058_v38 = vld [vmem:[%s5253_s17 + $0x528] sm:$0xff]   ;;  %v202_v18 = vld [vmem:[%s5288_s21 + $0x18] sm:$0xff] }
  0x96   : > { %4593 = vmatprep.subr.bf16.mxu1 %v5011_v42  ;;  %v5060_v40 = vld [vmem:[%s5253_s17 + $0x5a8] sm:$0xff]   ;;  %v5062_v42 = vld [vmem:[%s5253_s17 + $0x530] sm:$0xff]  }
  0x97   : > { %4572 = vmatpush3.bf16.msra.mxu0 %v5010_v41  ;;  %v5061_v41 = vld [vmem:[%s5253_s17 + $0x570] sm:$0xff]  }
  0x98   : > { %4573 = vmatprep.subr.bf16.mxu0 %v5013_v44  ;;  %v5064_v44 = vld [vmem:[%s5253_s17 + $0x5b0] sm:$0xff]  }
  0x99   : > { %4594 = vmatpush3.bf16.msra.mxu1 %v5012_v43  ;;  %v5063_v43 = vld [vmem:[%s5253_s17 + $0x5f0] sm:$0xff]  }
  0x9a   : > { %4595 = vmatprep.subr.bf16.mxu1 %v5015_v46  ;;  %v5066_v46 = vld [vmem:[%s5253_s17 + $0x538] sm:$0xff]  }
  0x9b   : > { %4574 = vmatpush3.bf16.msra.mxu0 %v5014_v45  ;;  %v5065_v45 = vld [vmem:[%s5253_s17 + $0x578] sm:$0xff]  }
  0x9c   : > { %4575 = vmatprep.subr.bf16.mxu0 %v5017_v48  ;;  %v5069_v48 = vld [vmem:[%s5253_s17 + $0x5b8] sm:$0xff]  }
  0x9d   : > { %4596 = vmatpush3.bf16.msra.mxu1 %v5016_v47  ;;  %v5067_v47 = vld [vmem:[%s5253_s17 + $0x5f8] sm:$0xff]  }
  0x9e   : > { %4597 = vmatprep.subr.bf16.mxu1 %v5019_v50  ;;  %v5070_v50 = vld [vmem:[%s5253_s17 + $0x640] sm:$0xff]  }
  0x9f   : > { %4576 = vmatpush3.bf16.msra.mxu0 %v5018_v49  ;;  %v1002_v49 = vrot.slane %v5453_v11, %v5290_v34  ;;  %v5094_v11 = vld [vmem:[%s5253_s17 + $0x670] sm:$0xff]  }
  0xa0   : > { %4577 = vmatprep.subr.bf16.mxu0 %v5021_v52  ;;  %v5072_v52 = vld [vmem:[%s5253_s17 + $0x6c0] sm:$0xff]  }
  0xa1   : > { %4598 = vmatpush3.bf16.msra.mxu1 %v5020_v51  ;;  %v5071_v51 = vld [vmem:[%s5253_s17 + $0x600] sm:$0xff]  }
  0xa2   : > { %4599 = vmatprep.subr.bf16.mxu1 %v5023_v54  ;;  %v1018_v54 = vcombine.high %v1002_v49, %v1002_v49 }
  0xa3   : > { %4578 = vmatpush3.bf16.msra.mxu0 %v5022_v53  ;;  %v5073_v53 = vld [vmem:[%s5253_s17 + $0x680] sm:$0xff]  }
  0xa4   : > { %4579 = vmatprep.subr.bf16.mxu0 %v5025_v56  ;;  %v5075_v56 = vld [vmem:[%s5253_s17 + $0x608] sm:$0xff]  }
  0xa5   : > { %4600 = vmatpush3.bf16.msra.mxu1 %v5024_v55  ;;  %v5074_v55 = vld [vmem:[%s5253_s17 + $0x648] sm:$0xff]  }
  0xa6   : > { %4601 = vmatprep.subr.bf16.mxu1 %v5027_v58  ;;  %v5077_v58 = vld [vmem:[%s5253_s17 + $0x688] sm:$0xff]  }
  0xa7   : > { %4580 = vmatpush3.bf16.msra.mxu0 %v5026_v57  ;;  %v5076_v57 = vld [vmem:[%s5253_s17 + $0x6c8] sm:$0xff]  }
  0xa8   : > { %4581 = vmatprep.subr.bf16.mxu0 %v5029_v60  ;;  %v5079_v60 = vld [vmem:[%s5253_s17 + $0x610] sm:$0xff]  }
  0xa9   : > { %4602 = vmatpush3.bf16.msra.mxu1 %v5028_v59  ;;  %v5078_v59 = vld [vmem:[%s5253_s17 + $0x650] sm:$0xff]  }
  0xaa   : > { %4603 = vmatprep.subr.bf16.mxu1 %v5031_v62  ;;  %v5081_v62 = vld [vmem:[%s5253_s17 + $0x690] sm:$0xff]  }
  0xab   : > { %4582 = vmatpush3.bf16.msra.mxu0 %v5030_v61  ;;  %v5080_v61 = vld [vmem:[%s5253_s17 + $0x6d0] sm:$0xff]  }
  0xac   : > { %4583 = vmatprep.subr.bf16.mxu0 %v5033_v0  ;;  %v5083_v0 = vld [vmem:[%s5253_s17 + $0x618] sm:$0xff]  }
  0xad   : > { %4604 = vmatpush3.bf16.msra.mxu1 %v5032_v63  ;;  %v5082_v63 = vld [vmem:[%s5253_s17 + $0x658] sm:$0xff]  }
  0xae   : > { %4605 = vmatprep.subr.bf16.mxu1 %v5035_v2  ;;  %v5085_v2 = vld [vmem:[%s5253_s17 + $0x698] sm:$0xff]  }
  0xaf   : > { %4584 = vmatpush3.bf16.msra.mxu0 %v5034_v1  ;;  %v5084_v1 = vld [vmem:[%s5253_s17 + $0x6d8] sm:$0xff]  }
  0xb0   : > { %4613 = vmatprep.subr.bf16.mxu0 %v5037_v7  ;;  %v5090_v7 = vld [vmem:[%s5253_s17 + $0x668] sm:$0xff]  }
  0xb1   : > { %4606 = vmatpush3.bf16.msra.mxu1 %v5036_v5  ;;  %v5088_v5 = vld [vmem:[%s5253_s17 + $0x6e0] sm:$0xff]  }
  0xb2   : > { %3495 = vmatmul.mubr.bf16.vlgmr.msra.gmra.mrb[16].mxu0 %v995_v9  ;;  %4635 = vmatprep.subr.bf16.mxu1 %v5039_v12  ;;  %v5092_v9 = vld [vmem:[%s5253_s17 + $0x6e8] sm:$0xff]   ;;  %v5095_v12 = vld [vmem:[%s5253_s17 + $0x630] sm:$0xff]  }
  0xb3   : > { %4614 = vmatpush3.bf16.msra.mxu0 %v5038_v10  ;;  %3574 = vmatprep.mubr.bf16.mxu0 %v1016_v20  ;;  %v5093_v10 = vld [vmem:[%s5253_s17 + $0x6a8] sm:$0xff]   ;;  %v5101_v20 = vld [vmem:[%s5253_s17 + $0x6b8] sm:$0xff]  }
  0xb4   : > { %3535 = vmatmul.mubr.bf16.vlgmr.msra.gmra.mrb[16].mxu1 %v1017_v16  ;;  %4615 = vmatprep.subr.bf16.mxu0 %v5041_v17  ;;  %v5099_v16 = vld [vmem:[%s5253_s17 + $0x638] sm:$0xff]  }
  0xb5   : > { %4636 = vmatpush3.bf16.msra.mxu1 %v5040_v14  ;;  %3614 = vmatprep.mubr.bf16.mxu1 %v1020_v23  ;;  %v5097_v14 = vld [vmem:[%s5253_s17 + $0x6b0] sm:$0xff]   ;;  %v5100_v17 = vld [vmem:[%s5253_s17 + $0x6f8] sm:$0xff]  }
  0xb6   : > { %4637 = vmatprep.subr.bf16.mxu1 %v5043_v21  ;;  %v1021_v21 = vcombine.high %v202_v18, %v202_v18 }
  0xb7   : > { %4616 = vmatpush3.bf16.msra.mxu0 %v5042_v19  ;;  %v1028_v19 = vrot.slane %v202_v18, %v5290_v34 }
  0xb8   : > { %4617 = vmatprep.subr.bf16.mxu0 %v5045_v24 }
  0xb9   : > { %4638 = vmatpush3.bf16.msra.mxu1 %v5044_v22  ;;  %v5102_v22 = vld [vmem:[%s5253_s17 + $0x740] sm:$0xff]   ;;  %v1036_v23 = vcombine.high %v1028_v19, %v1028_v19  ;;  %v1044_v24 = vrot.slane %v1028_v19, %v5290_v34  ;;  %v5139_v19 = vld [vmem:[%s5253_s17 + $0x848] sm:$0xff]  }
  0xba   : > { %4639 = vmatprep.subr.bf16.mxu1 %v5047_v26  ;;  %v5104_v26 = vld [vmem:[%s5253_s17 + $0x7c0] sm:$0xff]  }
  0xbb   : > { %4618 = vmatpush3.bf16.msra.mxu0 %v5046_v25  ;;  %v5528_v25 = vrot.slane %v1021_v21, %v5290_v34  ;;  %v5141_v21 = vld [vmem:[%s5253_s17 + $0x8c8] sm:$0xff]  }
  0xbc   : > { %4619 = vmatprep.subr.bf16.mxu0 %v5049_v28  ;;  %v5103_v28 = vld [vmem:[%s5253_s17 + $0x700] sm:$0xff]  }
  0xbd   : > { %4640 = vmatpush3.bf16.msra.mxu1 %v5048_v27  ;;  %v1058_v27 = vrot.slane %v1036_v23, %v5290_v34  ;;  %v5143_v23 = vld [vmem:[%s5253_s17 + $0x850] sm:$0xff]  }
  0xbe   : > { %4641 = vmatprep.subr.bf16.mxu1 %v5051_v30  ;;  %v1066_v30 = vcombine.high %v1044_v24, %v1044_v24 }
  0xbf   : > { %4620 = vmatpush3.bf16.msra.mxu0 %v5050_v29  ;;  %v1037_v29 = vcombine.high %v5528_v25, %v5528_v25 }
  0xc0   : > { %4621 = vmatprep.subr.bf16.mxu0 %v5053_v32  ;;  %v1068_v32 = vcombine.high %v1058_v27, %v1058_v27 }
  0xc1   : > { %4642 = vmatpush3.bf16.msra.mxu1 %v5052_v31  ;;  %v5106_v31 = vld [vmem:[%s5253_s17 + $0x748] sm:$0xff]  }
  0xc2   : > { %4643 = vmatprep.subr.bf16.mxu1 %v5055_v35  ;;  %v1065_v35 = vrot.slane %v1037_v29, %v5290_v34  ;;  %v5149_v29 = vld [vmem:[%s5253_s17 + $0x8d8] sm:$0xff]  }
  0xc3   : > { %4622 = vmatpush3.bf16.msra.mxu0 %v5054_v33  ;;  %v5105_v33 = vld [vmem:[%s5253_s17 + $0x780] sm:$0xff]  }
  0xc4   : > { %4623 = vmatprep.subr.bf16.mxu0 %v5057_v37  ;;  %v5107_v37 = vld [vmem:[%s5253_s17 + $0x708] sm:$0xff]  }
  0xc5   : > { %4644 = vmatpush3.bf16.msra.mxu1 %v5056_v36  ;;  %v5108_v36 = vld [vmem:[%s5253_s17 + $0x7c8] sm:$0xff]  }
  0xc6   : > { %4645 = vmatprep.subr.bf16.mxu1 %v5059_v39  ;;  %v5110_v39 = vld [vmem:[%s5253_s17 + $0x750] sm:$0xff]  }
  0xc7   : > { %4624 = vmatpush3.bf16.msra.mxu0 %v5058_v38  ;;  %v1069_v38 = vcombine.high %v1065_v35, %v1065_v35 }
  0xc8   : > { %4625 = vmatprep.subr.bf16.mxu0 %v5061_v41  ;;  %v5112_v41 = vld [vmem:[%s5253_s17 + $0x7d0] sm:$0xff]  }
  0xc9   : > { %4646 = vmatpush3.bf16.msra.mxu1 %v5060_v40  ;;  %v5109_v40 = vld [vmem:[%s5253_s17 + $0x788] sm:$0xff]  }
  0xca   : > { %4647 = vmatprep.subr.bf16.mxu1 %v5063_v43  ;;  %v5114_v43 = vld [vmem:[%s5253_s17 + $0x758] sm:$0xff]  }
  0xcb   : > { %4626 = vmatpush3.bf16.msra.mxu0 %v5062_v42  ;;  %v5111_v42 = vld [vmem:[%s5253_s17 + $0x710] sm:$0xff]  }
  0xcc   : > { %4627 = vmatprep.subr.bf16.mxu0 %v5065_v45  ;;  %v5116_v45 = vld [vmem:[%s5253_s17 + $0x7d8] sm:$0xff]  }
  0xcd   : > { %4648 = vmatpush3.bf16.msra.mxu1 %v5064_v44  ;;  %v5113_v44 = vld [vmem:[%s5253_s17 + $0x790] sm:$0xff]  }
  0xce   : > { %4649 = vmatprep.subr.bf16.mxu1 %v5067_v47  ;;  %v5118_v47 = vld [vmem:[%s5253_s17 + $0x760] sm:$0xff]  }
  0xcf   : > { %4628 = vmatpush3.bf16.msra.mxu0 %v5066_v46  ;;  %v5115_v46 = vld [vmem:[%s5253_s17 + $0x718] sm:$0xff]  }
  0xd0   : > { %4657 = vmatprep.subr.bf16.mxu0 %v5070_v50  ;;  %v5119_v50 = vld [vmem:[%s5253_s17 + $0x720] sm:$0xff]  }
  0xd1   : > { %4650 = vmatpush3.bf16.msra.mxu1 %v5069_v48  ;;  %v5117_v48 = vld [vmem:[%s5253_s17 + $0x798] sm:$0xff]  }
  0xd2   : > { %3575 = vmatmul.mubr.bf16.vlgmr.msra.gmra.mrb[20].mxu0 %v1002_v49  ;;  %4679 = vmatprep.subr.bf16.mxu1 %v5072_v52  ;;  %v5120_v49 = vld [vmem:[%s5253_s17 + $0x7e0] sm:$0xff]  }
  0xd3   : > { %4658 = vmatpush3.bf16.msra.mxu0 %v5071_v51  ;;  %3654 = vmatprep.mubr.bf16.mxu0 %v1058_v27  ;;  %v5122_v51 = vld [vmem:[%s5253_s17 + $0x768] sm:$0xff]   ;;  %v5121_v52 = vld [vmem:[%s5253_s17 + $0x7a0] sm:$0xff]   ;;  %v5147_v27 = vld [vmem:[%s5253_s17 + $0x858] sm:$0xff]  }
  0xd4   : > { %3615 = vmatmul.mubr.bf16.vlgmr.msra.gmra.mrb[20].mxu1 %v1018_v54  ;;  %4659 = vmatprep.subr.bf16.mxu0 %v5074_v55  ;;  %v4061_v54 = vld [vmem:[%s194_s24] ss:$0 sm:$0xff]  ;;  %v5123_v55 = vld [vmem:[%s5253_s17 + $0x728] sm:$0xff]  }
  0xd5   : > { %4680 = vmatpush3.bf16.msra.mxu1 %v5073_v53  ;;  %3694 = vmatprep.mubr.bf16.mxu1 %v1068_v32  ;;  %v5124_v53 = vld [vmem:[%s5253_s17 + $0x7e8] sm:$0xff]   ;;  %v5152_v32 = vld [vmem:[%s5253_s17 + $0x820] sm:$0xff]  }
  0xd6   : > { %4681 = vmatprep.subr.bf16.mxu1 %v5076_v57  ;;  %v5126_v57 = vld [vmem:[%s5253_s17 + $0x770] sm:$0xff]  }
  0xd7   : > { %4660 = vmatpush3.bf16.msra.mxu0 %v5075_v56 }
  0xd8   : > { %4661 = vmatprep.subr.bf16.mxu0 %v5078_v59  ;;  %v5125_v59 = vld [vmem:[%s5253_s17 + $0x7a8] sm:$0xff]  }
  0xd9   : > { %4682 = vmatpush3.bf16.msra.mxu1 %v5077_v58 }
  0xda   : > { %4683 = vmatprep.subr.bf16.mxu1 %v5080_v61 }
  0xdb   : > { %4662 = vmatpush3.bf16.msra.mxu0 %v5079_v60 }
  0xdc   : > { %4663 = vmatprep.subr.bf16.mxu0 %v5082_v63  ;;  %v5127_v63 = vld [vmem:[%s5253_s17 + $0x730] sm:$0xff]  }
  0xdd   : > { %4684 = vmatpush3.bf16.msra.mxu1 %v5081_v62 }
  0xde   : > { %4685 = vmatprep.subr.bf16.mxu1 %v5084_v1 }
  0xdf   : > { %4664 = vmatpush3.bf16.msra.mxu0 %v5083_v0  ;;  %v5128_v0 = vld [vmem:[%s5253_s17 + $0x7f0] sm:$0xff]  }
  0xe0   : > { %4665 = vmatprep.subr.bf16.mxu0 %v5086_v3  ;;  %v5129_v3 = vld [vmem:[%s5253_s17 + $0x7b0] sm:$0xff]  }
  0xe1   : > { %4686 = vmatpush3.bf16.msra.mxu1 %v5085_v2 }
  0xe2   : > { %4687 = vmatprep.subr.bf16.mxu1 %v5088_v5 }
  0xe3   : > { %4666 = vmatpush3.bf16.msra.mxu0 %v5087_v4 }
  0xe4   : > { %4667 = vmatprep.subr.bf16.mxu0 %v5090_v7 }
  0xe5   : > { %4688 = vmatpush3.bf16.msra.mxu1 %v5089_v6  ;;  %v5130_v6 = vld [vmem:[%s5253_s17 + $0x778] sm:$0xff]  }
  0xe6   : > { %4689 = vmatprep.subr.bf16.mxu1 %v5092_v9 }
  0xe7   : > { %4668 = vmatpush3.bf16.msra.mxu0 %v5091_v8  ;;  %v5131_v8 = vld [vmem:[%s5253_s17 + $0x738] sm:$0xff]  }
  0xe8   : > { %4669 = vmatprep.subr.bf16.mxu0 %v5094_v11  ;;  %v5132_v11 = vld [vmem:[%s5253_s17 + $0x7f8] sm:$0xff]  }
  0xe9   : > { %4690 = vmatpush3.bf16.msra.mxu1 %v5093_v10 }
  0xea   : > { %4691 = vmatprep.subr.bf16.mxu1 %v5096_v13  ;;  %v1051_v13 = vrot.slane %v5528_v25, %v5290_v34  ;;  %v5145_v25 = vld [vmem:[%s5253_s17 + $0x8d0] sm:$0xff]  }
  0xeb   : > { %4670 = vmatpush3.bf16.msra.mxu0 %v5095_v12  ;;  %v5134_v12 = vld [vmem:[%s5253_s17 + $0x7b8] sm:$0xff]  }
  0xec   : > { %4671 = vmatprep.subr.bf16.mxu0 %v5098_v15  ;;  %v5136_v15 = vld [vmem:[%s5253_s17 + $0x800] sm:$0xff]   ;;  %v1067_v18 = vcombine.high %v1051_v13, %v1051_v13 }
  0xed   : > { %4692 = vmatpush3.bf16.msra.mxu1 %v5097_v14  ;;  %v5135_v14 = vld [vmem:[%s5253_s17 + $0x840] sm:$0xff]  }
  0xee   : > { %4693 = vmatprep.subr.bf16.mxu1 %v5100_v17  ;;  %v5138_v17 = vld [vmem:[%s5253_s17 + $0x880] sm:$0xff]  }
  0xef   : > { %4672 = vmatpush3.bf16.msra.mxu0 %v5099_v16  ;;  %v5137_v16 = vld [vmem:[%s5253_s17 + $0x8c0] sm:$0xff]  }
  0xf0   : > { %4701 = vmatprep.subr.bf16.mxu0 %v5102_v22  ;;  %v5142_v22 = vld [vmem:[%s5253_s17 + $0x888] sm:$0xff]  }
  0xf1   : > { %4694 = vmatpush3.bf16.msra.mxu1 %v5101_v20  ;;  %v5140_v20 = vld [vmem:[%s5253_s17 + $0x808] sm:$0xff]  }
  0xf2   : > { %4723 = vmatprep.subr.bf16.mxu1 %v5104_v26  ;;  %3655 = vmatmul.mubr.bf16.vlgmr.msra.gmra.mrb[24].mxu0 %v1044_v24  ;;  %v5144_v24 = vld [vmem:[%s5253_s17 + $0x810] sm:$0xff]  }
  0xf3   : > { %4702 = vmatpush3.bf16.msra.mxu0 %v5103_v28  ;;  %3734 = vmatprep.mubr.bf16.mxu0 %v1065_v35  ;;  %v5146_v26 = vld [vmem:[%s5253_s17 + $0x890] sm:$0xff]   ;;  %v5148_v28 = vld [vmem:[%s5253_s17 + $0x818] sm:$0xff]   ;;  %v5154_v35 = vld [vmem:[%s5253_s17 + $0x8a0] sm:$0xff]  }
  0xf4   : > { %3695 = vmatmul.mubr.bf16.vlgmr.msra.gmra.mrb[24].mxu1 %v1066_v30  ;;  %4703 = vmatprep.subr.bf16.mxu0 %v5106_v31  ;;  %v5150_v30 = vld [vmem:[%s5253_s17 + $0x898] sm:$0xff]   ;;  %v5151_v31 = vld [vmem:[%s5253_s17 + $0x860] sm:$0xff]  }
  0xf5   : > { %4724 = vmatpush3.bf16.msra.mxu1 %v5105_v33  ;;  %3774 = vmatprep.mubr.bf16.mxu1 %v1069_v38  ;;  %v5153_v33 = vld [vmem:[%s5253_s17 + $0x8e0] sm:$0xff]   ;;  %v5157_v38 = vld [vmem:[%s5253_s17 + $0x8e8] sm:$0xff]  }
  0xf6   : > { %4725 = vmatprep.subr.bf16.mxu1 %v5108_v36  ;;  %v5155_v36 = vld [vmem:[%s5253_s17 + $0x868] sm:$0xff]  }
  0xf7   : > { %4704 = vmatpush3.bf16.msra.mxu0 %v5107_v37  ;;  %v5156_v37 = vld [vmem:[%s5253_s17 + $0x828] sm:$0xff]  }
  0xf8   : > { %4705 = vmatprep.subr.bf16.mxu0 %v5110_v39  ;;  %v5158_v39 = vld [vmem:[%s5253_s17 + $0x8a8] sm:$0xff]  }
  0xf9   : > { %4726 = vmatpush3.bf16.msra.mxu1 %v5109_v40 }
  0xfa   : > { %4727 = vmatprep.subr.bf16.mxu1 %v5112_v41  ;;  %v5159_v41 = vld [vmem:[%s5253_s17 + $0x870] sm:$0xff]  }
  0xfb   : > { %4706 = vmatpush3.bf16.msra.mxu0 %v5111_v42 }
  0xfc   : > { %4707 = vmatprep.subr.bf16.mxu0 %v5114_v43  ;;  %v5160_v43 = vld [vmem:[%s5253_s17 + $0x830] sm:$0xff]  }
  0xfd   : > { %4728 = vmatpush3.bf16.msra.mxu1 %v5113_v44 }
  0xfe   : > { %4729 = vmatprep.subr.bf16.mxu1 %v5116_v45 }
  0xff   : > { %4708 = vmatpush3.bf16.msra.mxu0 %v5115_v46 }
 0x100   : > { %4709 = vmatprep.subr.bf16.mxu0 %v5118_v47 }
 0x101   : > { %4730 = vmatpush3.bf16.msra.mxu1 %v5117_v48 }
 0x102   : > { %4731 = vmatprep.subr.bf16.mxu1 %v5120_v49  ;;  %v5161_v49 = vld [vmem:[%s5253_s17 + $0x8f0] sm:$0xff]  }
 0x103   : > { %4710 = vmatpush3.bf16.msra.mxu0 %v5119_v50  ;;  %v5162_v50 = vld [vmem:[%s5253_s17 + $0x8b0] sm:$0xff]  }
 0x104   : > { %4711 = vmatprep.subr.bf16.mxu0 %v5122_v51 }
 0x105   : > { %v4409_v56 = vpop.f32.mrb[0].mxu0  ;;  %4732 = vmatpush3.bf16.msra.mxu1 %v5121_v52 }
 0x106   : > { %v4410_v58 = vpop.f32.mrb[1].mxu0  ;;  %4733 = vmatprep.subr.bf16.mxu1 %v5124_v53  ;;  %v5163_v53 = vld [vmem:[%s5253_s17 + $0x878] sm:$0xff]  }
 0x107   : > { %v4411_v60 = vadd.f32 %v4410_v58, %v4409_v56  ;;  %v4412_v61 = vpop.f32.mrb[2].mxu0  ;;  %v4431_v62 = vpop.f32.mrb[0].mxu1  ;;  %4712 = vmatpush3.bf16.msra.mxu0 %v5123_v55  ;;  %v5164_v56 = vld [vmem:[%s5253_s17 + $0x838] sm:$0xff]  }
 0x108   : > { %v4413_v1 = vpop.f32.mrb[3].mxu0  ;;  %v4432_v2 = vpop.f32.mrb[1].mxu1  ;;  %4713 = vmatprep.subr.bf16.mxu0 %v5126_v57  ;;  %v5165_v58 = vld [vmem:[%s5253_s17 + $0x8f8] sm:$0xff]  }
 0x109   : > { %v3177_v4 = vadd.f32 %v4411_v60, %v4061_v54  ;;  %v4433_v5 = vadd.f32 %v4432_v2, %v4431_v62  ;;  %v4434_v7 = vpop.f32.mrb[2].mxu1  ;;  %4734 = vmatpush3.bf16.msra.mxu1 %v5125_v59  ;;  %v203_v59 = vld [vmem:[%s5288_s21 + $0x20] sm:$0xff]  ;;  %v5166_v61 = vld [vmem:[%s5253_s17 + $0x8b8] sm:$0xff]  }
 0x10a   : > { %v4435_v9 = vpop.f32.mrb[3].mxu1  ;;  %4735 = vmatprep.subr.bf16.mxu1 %v5128_v0  ;;  %v1077_v60 = vrot.slane %v203_v59, %v5290_v34  ;;  %v1070_v62 = vcombine.high %v203_v59, %v203_v59  ;;  %v5203_v59 = vld [vmem:[%s5253_s17 + $0xa18] sm:$0xff]  }
 0x10b   : > { %v5567_v10 = vadd.f32 %v4433_v5, %v3177_v4  ;;  %4714 = vmatpush3.bf16.msra.mxu0 %v5127_v63  ;;  %v5167_v63 = vld [vmem:[%s5253_s17 + $0x940] sm:$0xff]  }
 0x10c   : > { %4715 = vmatprep.subr.bf16.mxu0 %v5130_v6  ;;  %v1085_v0 = vcombine.high %v1077_v60, %v1077_v60  ;;  %v1093_v1 = vrot.slane %v1077_v60, %v5290_v34  ;;  %v5613_v2 = vrot.slane %v1070_v62, %v5290_v34  ;;  %v5168_v5 = vld [vmem:[%s5253_s17 + $0x900] sm:$0xff]   ;;  %v5205_v62 = vld [vmem:[%s5253_s17 + $0xa28] sm:$0xff]  }
 0x10d   : > { %4736 = vmatpush3.bf16.msra.mxu1 %v5129_v3  ;;  %v5169_v3 = vld [vmem:[%s5253_s17 + $0x9c0] sm:$0xff]  }
 0x10e   : > { %4737 = vmatprep.subr.bf16.mxu1 %v5132_v11  ;;  %v1107_v4 = vrot.slane %v1085_v0, %v5290_v34  ;;  %v1086_v6 = vcombine.high %v5613_v2, %v5613_v2  ;;  %v1115_v7 = vcombine.high %v1093_v1, %v1093_v1  ;;  %v5204_v60 = vld [vmem:[%s5253_s17 + $0xa20] sm:$0xff]  }
 0x10f   : > { %4716 = vmatpush3.bf16.msra.mxu0 %v5131_v8  ;;  %v5171_v8 = vld [vmem:[%s5253_s17 + $0x948] sm:$0xff]  }
 0x110   : > { %4745 = vmatprep.subr.bf16.mxu0 %v5135_v14  ;;  %v1117_v9 = vcombine.high %v1107_v4, %v1107_v4  ;;  %v1114_v11 = vrot.slane %v1086_v6, %v5290_v34 }
 0x111   : > { %4738 = vmatpush3.bf16.msra.mxu1 %v5134_v12  ;;  %v5173_v12 = vld [vmem:[%s5253_s17 + $0x9c8] sm:$0xff]  }
 0x112   : > { %3735 = vmatmul.mubr.bf16.vlgmr.msra.gmra.mrb[28].mxu0 %v1051_v13  ;;  %4767 = vmatprep.subr.bf16.mxu1 %v5137_v16  ;;  %v5172_v13 = vld [vmem:[%s5253_s17 + $0x908] sm:$0xff]   ;;  %v1118_v14 = vcombine.high %v1114_v11, %v1114_v11 }
 0x113   : > { %4746 = vmatpush3.bf16.msra.mxu0 %v5136_v15  ;;  %3814 = vmatprep.mubr.bf16.mxu0 %v1107_v4  ;;  %v5175_v15 = vld [vmem:[%s5253_s17 + $0x950] sm:$0xff]   ;;  %v5174_v16 = vld [vmem:[%s5253_s17 + $0x988] sm:$0xff]  }
 0x114   : > { %3775 = vmatmul.mubr.bf16.vlgmr.msra.gmra.mrb[28].mxu1 %v1067_v18  ;;  %4747 = vmatprep.subr.bf16.mxu0 %v5139_v19  ;;  %v5176_v18 = vld [vmem:[%s5253_s17 + $0x910] sm:$0xff]   ;;  %v5179_v19 = vld [vmem:[%s5253_s17 + $0x958] sm:$0xff]  }
 0x115   : > { %4768 = vmatpush3.bf16.msra.mxu1 %v5138_v17  ;;  %3854 = vmatprep.mubr.bf16.mxu1 %v1117_v9  ;;  %v5177_v17 = vld [vmem:[%s5253_s17 + $0x9d0] sm:$0xff]  }
 0x116   : > { %4769 = vmatprep.subr.bf16.mxu1 %v5141_v21  ;;  %v5181_v21 = vld [vmem:[%s5253_s17 + $0x9d8] sm:$0xff]  }
 0x117   : > { %4748 = vmatpush3.bf16.msra.mxu0 %v5140_v20  ;;  %v5178_v20 = vld [vmem:[%s5253_s17 + $0x990] sm:$0xff]  }
 0x118   : > { %4749 = vmatprep.subr.bf16.mxu0 %v5143_v23  ;;  %v5183_v23 = vld [vmem:[%s5253_s17 + $0x960] sm:$0xff]  }
 0x119   : > { %4770 = vmatpush3.bf16.msra.mxu1 %v5142_v22  ;;  %v5180_v22 = vld [vmem:[%s5253_s17 + $0x918] sm:$0xff]  }
 0x11a   : > { %4771 = vmatprep.subr.bf16.mxu1 %v5145_v25  ;;  %v5185_v25 = vld [vmem:[%s5253_s17 + $0x9e0] sm:$0xff]  }
 0x11b   : > { %4750 = vmatpush3.bf16.msra.mxu0 %v5144_v24  ;;  %v5182_v24 = vld [vmem:[%s5253_s17 + $0x998] sm:$0xff]  }
 0x11c   : > { %4751 = vmatprep.subr.bf16.mxu0 %v5147_v27  ;;  %v5187_v27 = vld [vmem:[%s5253_s17 + $0x968] sm:$0xff]  }
 0x11d   : > { %4772 = vmatpush3.bf16.msra.mxu1 %v5146_v26  ;;  %v5184_v26 = vld [vmem:[%s5253_s17 + $0x920] sm:$0xff]  }
 0x11e   : > { %4773 = vmatprep.subr.bf16.mxu1 %v5149_v29  ;;  %v5189_v29 = vld [vmem:[%s5253_s17 + $0x9e8] sm:$0xff]  }
 0x11f   : > { %4752 = vmatpush3.bf16.msra.mxu0 %v5148_v28  ;;  %v5186_v28 = vld [vmem:[%s5253_s17 + $0x9a0] sm:$0xff]  }
 0x120   : > { %4753 = vmatprep.subr.bf16.mxu0 %v5151_v31  ;;  %v5188_v31 = vld [vmem:[%s5253_s17 + $0x928] sm:$0xff]  }
 0x121   : > { %4774 = vmatpush3.bf16.msra.mxu1 %v5150_v30 }
 0x122   : > { %4775 = vmatprep.subr.bf16.mxu1 %v5153_v33  ;;  %v5191_v33 = vld [vmem:[%s5253_s17 + $0x970] sm:$0xff]  }
 0x123   : > { %4754 = vmatpush3.bf16.msra.mxu0 %v5152_v32 }
 0x124   : > { %4755 = vmatprep.subr.bf16.mxu0 %v5155_v36 }
 0x125   : > { %v4453_v40 = vpop.f32.mrb[4].mxu0  ;;  %4776 = vmatpush3.bf16.msra.mxu1 %v5154_v35 }
 0x126   : > { %v4454_v42 = vpop.f32.mrb[5].mxu0  ;;  %4777 = vmatprep.subr.bf16.mxu1 %v5157_v38  ;;  %v5190_v38 = vld [vmem:[%s5253_s17 + $0x9a8] sm:$0xff]  }
 0x127   : > { %v4455_v44 = vadd.f32 %v4454_v42, %v4453_v40  ;;  %v4456_v45 = vpop.f32.mrb[6].mxu0  ;;  %v4475_v46 = vpop.f32.mrb[4].mxu1  ;;  %4756 = vmatpush3.bf16.msra.mxu0 %v5156_v37 }
 0x128   : > { %v4457_v47 = vpop.f32.mrb[7].mxu0  ;;  %v4476_v48 = vpop.f32.mrb[5].mxu1  ;;  %4757 = vmatprep.subr.bf16.mxu0 %v5159_v41 }
 0x129   : > { %v3257_v51 = vadd.f32 %v4455_v44, %v5567_v10  ;;  %v4477_v52 = vadd.f32 %v4476_v48, %v4475_v46  ;;  %4778 = vmatpush3.bf16.msra.mxu1 %v5158_v39  ;;  %v4478_v54 = vpop.f32.mrb[6].mxu1  ;;  %v5170_v10 = vld [vmem:[%s5253_s17 + $0x980] sm:$0xff]   ;;  %v5193_v39 = vld [vmem:[%s5253_s17 + $0x9f0] sm:$0xff]   ;;  %v5195_v46 = vld [vmem:[%s5253_s17 + $0x978] sm:$0xff]  }
 0x12a   : > { %4779 = vmatprep.subr.bf16.mxu1 %v5161_v49  ;;  %v4479_v57 = vpop.f32.mrb[7].mxu1  ;;  %v5192_v44 = vld [vmem:[%s5253_s17 + $0x930] sm:$0xff]   ;;  %v5200_v54 = vld [vmem:[%s5253_s17 + $0xa00] sm:$0xff]  }
 0x12b   : > { %v5603_v55 = vadd.f32 %v4477_v52, %v3257_v51  ;;  %4758 = vmatpush3.bf16.msra.mxu0 %v5160_v43  ;;  %v5194_v49 = vld [vmem:[%s5253_s17 + $0x9b0] sm:$0xff]   ;;  %v5196_v51 = vld [vmem:[%s5253_s17 + $0x938] sm:$0xff]   ;;  %v1100_v52 = vrot.slane %v5613_v2, %v5290_v34  ;;  %v5201_v57 = vld [vmem:[%s5253_s17 + $0xa08] sm:$0xff]  }
 0x12c   : > { %4759 = vmatprep.subr.bf16.mxu0 %v5163_v53  ;;  %v5199_v53 = vld [vmem:[%s5253_s17 + $0x9b8] sm:$0xff]  }
 0x12d   : > { %4780 = vmatpush3.bf16.msra.mxu1 %v5162_v50  ;;  %v5197_v50 = vld [vmem:[%s5253_s17 + $0x9f8] sm:$0xff]  }
 0x12e   : > { %4781 = vmatprep.subr.bf16.mxu1 %v5165_v58  ;;  %v5202_v58 = vld [vmem:[%s5253_s17 + $0xa10] sm:$0xff]  }
 0x12f   : > { %4760 = vmatpush3.bf16.msra.mxu0 %v5164_v56  ;;  %v1116_v56 = vcombine.high %v1100_v52, %v1100_v52 }
 0x130   : > { %4789 = vmatprep.subr.bf16.mxu0 %v5167_v63 }
 0x131   : > { %4782 = vmatpush3.bf16.msra.mxu1 %v5166_v61 }
 0x132   : > { %4811 = vmatprep.subr.bf16.mxu1 %v5169_v3  ;;  %3815 = vmatmul.mubr.bf16.vlgmr.msra.gmra.mrb[32].mxu0 %v1093_v1 }
 0x133   : > { %4790 = vmatpush3.bf16.msra.mxu0 %v5168_v5  ;;  %3894 = vmatprep.mubr.bf16.mxu0 %v1114_v11  ;;  %v5207_v11 = vld [vmem:[%s5253_s17 + $0xa38] sm:$0xff]  }
 0x134   : > { %3855 = vmatmul.mubr.bf16.vlgmr.msra.gmra.mrb[32].mxu1 %v1115_v7  ;;  %4791 = vmatprep.subr.bf16.mxu0 %v5171_v8  ;;  %v5206_v7 = vld [vmem:[%s5253_s17 + $0xa30] sm:$0xff]  }
 0x135   : > { %4812 = vmatpush3.bf16.msra.mxu1 %v5170_v10  ;;  %3934 = vmatprep.mubr.bf16.mxu1 %v1118_v14 }
 0x136   : > { %4813 = vmatprep.subr.bf16.mxu1 %v5173_v12  ;;  %v4062_v12 = vld.sshfl [vmem:[%s5288_s21 + $0x28] sm:$0x1 pattern:$0x75316420] }
 0x137   : > { %4792 = vmatpush3.bf16.msra.mxu0 %v5172_v13  ;;  %v1132_v13 = vrot.slane %v4062_v12, %v5290_v34 }
 0x138   : > { %4793 = vmatprep.subr.bf16.mxu0 %v5175_v15 }
 0x139   : > { %4814 = vmatpush3.bf16.msra.mxu1 %v5174_v16 }
 0x13a   : > { %4815 = vmatprep.subr.bf16.mxu1 %v5177_v17 }
 0x13b   : > { %4794 = vmatpush3.bf16.msra.mxu0 %v5176_v18 }
 0x13c   : > { %4795 = vmatprep.subr.bf16.mxu0 %v5179_v19 }
 0x13d   : > { %4816 = vmatpush3.bf16.msra.mxu1 %v5178_v20 }
 0x13e   : > { %4817 = vmatprep.subr.bf16.mxu1 %v5181_v21 }
 0x13f   : > { %4796 = vmatpush3.bf16.msra.mxu0 %v5180_v22 }
 0x140   : > { %4797 = vmatprep.subr.bf16.mxu0 %v5183_v23 }
 0x141   : > { %4818 = vmatpush3.bf16.msra.mxu1 %v5182_v24 }
 0x142   : > { %4819 = vmatprep.subr.bf16.mxu1 %v5185_v25 }
 0x143   : > { %4798 = vmatpush3.bf16.msra.mxu0 %v5184_v26 }
 0x144   : > { %4799 = vmatprep.subr.bf16.mxu0 %v5187_v27 }
 0x145   : > { %v4497_v30 = vpop.f32.mrb[8].mxu0  ;;  %4820 = vmatpush3.bf16.msra.mxu1 %v5186_v28 }
 0x146   : > { %v4498_v32 = vpop.f32.mrb[9].mxu0  ;;  %4821 = vmatprep.subr.bf16.mxu1 %v5189_v29 }
 0x147   : > { %v4499_v35 = vadd.f32 %v4498_v32, %v4497_v30  ;;  %v4500_v36 = vpop.f32.mrb[10].mxu0  ;;  %v4519_v37 = vpop.f32.mrb[8].mxu1  ;;  %4800 = vmatpush3.bf16.msra.mxu0 %v5188_v31 }
 0x148   : > { %v4501_v40 = vpop.f32.mrb[11].mxu0  ;;  %v4520_v41 = vpop.f32.mrb[9].mxu1  ;;  %4801 = vmatprep.subr.bf16.mxu0 %v5191_v33 }
 0x149   : > { %v3337_v42 = vadd.f32 %v4499_v35, %v5603_v55  ;;  %v4521_v43 = vadd.f32 %v4520_v41, %v4519_v37  ;;  %v4522_v45 = vpop.f32.mrb[10].mxu1  ;;  %4822 = vmatpush3.bf16.msra.mxu1 %v5190_v38  ;;  %v5217_v55 = vmov 0.0  }
 0x14a   : > { %v4523_v47 = vpop.f32.mrb[11].mxu1  ;;  %4823 = vmatprep.subr.bf16.mxu1 %v5193_v39 }
 0x14b   : > { %v3377_v48 = vadd.f32 %v4521_v43, %v3337_v42  ;;  %4802 = vmatpush3.bf16.msra.mxu0 %v5192_v44 }
 0x14c   : > { %4803 = vmatprep.subr.bf16.mxu0 %v5195_v46 }
 0x14d   : > { %4824 = vmatpush3.bf16.msra.mxu1 %v5194_v49 }
 0x14e   : > { %4825 = vmatprep.subr.bf16.mxu1 %v5197_v50 }
 0x14f   : > { %4804 = vmatpush3.bf16.msra.mxu0 %v5196_v51 }
 0x150   : > { %4842 = vmatprep.subr.bf16.mxu0 %v5217_v55 }
 0x151   : > { %4826 = vmatpush3.bf16.msra.mxu1 %v5199_v53 }
 0x152   : > { %3895 = vmatmul.mubr.bf16.vlgmr.msra.gmra.mrb[36].mxu0 %v1100_v52 }
 0x153   : > { %4843 = vmatpush3.bf16.msra.mxu0 %v5200_v54  ;;  %4858 = vmatprep.mubr.msk.bf16.mxu0 %vm5218_vm0, %v5217_v55 }
 0x154   : > { %3935 = vmatmul.mubr.bf16.vlgmr.msra.gmra.mrb[36].mxu1 %v1116_v56  ;;  %4844 = vmatprep.subr.bf16.mxu0 %v5217_v55 }
 0x157   : > { %4845 = vmatpush3.bf16.msra.mxu0 %v5201_v57 }
 0x158   : > { %4846 = vmatprep.subr.bf16.mxu0 %v5217_v55 }
 0x15b   : > { %4847 = vmatpush3.bf16.msra.mxu0 %v5202_v58 }
 0x15c   : > { %4848 = vmatprep.subr.bf16.mxu0 %v5217_v55 }
 0x15f   : > { %4849 = vmatpush3.bf16.msra.mxu0 %v5203_v59 }
 0x160   : > { %4850 = vmatprep.subr.bf16.mxu0 %v5217_v55 }
 0x163   : > { %4851 = vmatpush3.bf16.msra.mxu0 %v5204_v60 }
 0x164   : > { %4852 = vmatprep.subr.bf16.mxu0 %v5217_v55 }
 0x165   : > { %v4541_v61 = vpop.f32.mrb[12].mxu0 }
 0x166   : > { %v4542_v63 = vpop.f32.mrb[13].mxu0 }
 0x167   : > { %v4543_v0 = vadd.f32 %v4542_v63, %v4541_v61  ;;  %v4544_v1 = vpop.f32.mrb[14].mxu0  ;;  %v4563_v2 = vpop.f32.mrb[12].mxu1  ;;  %4853 = vmatpush3.bf16.msra.mxu0 %v5205_v62 }
 0x168   : > { %v4545_v3 = vpop.f32.mrb[15].mxu0  ;;  %v4564_v4 = vpop.f32.mrb[13].mxu1  ;;  %4854 = vmatprep.subr.bf16.mxu0 %v5217_v55 }
 0x169   : > { %v3417_v5 = vadd.f32 %v4543_v0, %v3377_v48  ;;  %v4565_v6 = vadd.f32 %v4564_v4, %v4563_v2  ;;  %v4566_v8 = vpop.f32.mrb[14].mxu1 }
 0x16a   : > { %v4567_v9 = vpop.f32.mrb[15].mxu1 }
 0x16b   : > { %v3457_v10 = vadd.f32 %v4565_v6, %v3417_v5  ;;  %4855 = vmatpush3.bf16.msra.mxu0 %v5206_v7 }
 0x16c   : > { %4856 = vmatprep.subr.bf16.mxu0 %v5217_v55 }
 0x16f   : > { %4857 = vmatpush3.bf16.msra.mxu0 %v5207_v11 }
 0x172   : > { %4859 = vmatmul.mubr.bf16.vlgmr.msra.gmra.mrb[40].mxu0 %v1132_v13 }
 0x185   : > { %v4585_v14 = vpop.f32.mrb[16].mxu0 }
 0x186   : > { %v4586_v15 = vpop.f32.mrb[17].mxu0 }
 0x187   : > { %v4587_v16 = vadd.f32 %v4586_v15, %v4585_v14  ;;  %v4588_v17 = vpop.f32.mrb[18].mxu0  ;;  %v4607_v18 = vpop.f32.mrb[16].mxu1 }
 0x188   : > { %v4589_v19 = vpop.f32.mrb[19].mxu0  ;;  %v4608_v20 = vpop.f32.mrb[17].mxu1 }
 0x189   : > { %v3497_v21 = vadd.f32 %v4587_v16, %v3457_v10  ;;  %v4609_v22 = vadd.f32 %v4608_v20, %v4607_v18  ;;  %v4610_v23 = vpop.f32.mrb[18].mxu1 }
 0x18a   : > { %v4611_v24 = vpop.f32.mrb[19].mxu1 }
 0x18b   : > { %v3537_v25 = vadd.f32 %v4609_v22, %v3497_v21 }
 0x1a5   : > { %v4629_v26 = vpop.f32.mrb[20].mxu0 }
 0x1a6   : > { %v4630_v27 = vpop.f32.mrb[21].mxu0 }
 0x1a7   : > { %v4631_v28 = vadd.f32 %v4630_v27, %v4629_v26  ;;  %v4632_v29 = vpop.f32.mrb[22].mxu0  ;;  %v4651_v30 = vpop.f32.mrb[20].mxu1 }
 0x1a8   : > { %v4633_v34 = vpop.f32.mrb[23].mxu0  ;;  %v4652_v31 = vpop.f32.mrb[21].mxu1 }
 0x1a9   : > { %v3577_v32 = vadd.f32 %v4631_v28, %v3537_v25  ;;  %v4653_v33 = vadd.f32 %v4652_v31, %v4651_v30  ;;  %v4654_v35 = vpop.f32.mrb[22].mxu1 }
 0x1aa   : > { %v4655_v36 = vpop.f32.mrb[23].mxu1 }
 0x1ab   : > { %v3617_v37 = vadd.f32 %v4653_v33, %v3577_v32 }
 0x1c5   : > { %v4673_v38 = vpop.f32.mrb[24].mxu0 }
 0x1c6   : > { %v4674_v39 = vpop.f32.mrb[25].mxu0 }
 0x1c7   : > { %v4675_v40 = vadd.f32 %v4674_v39, %v4673_v38  ;;  %v4676_v41 = vpop.f32.mrb[26].mxu0  ;;  %v4695_v42 = vpop.f32.mrb[24].mxu1 }
 0x1c8   : > { %v4677_v43 = vpop.f32.mrb[27].mxu0  ;;  %v4696_v44 = vpop.f32.mrb[25].mxu1 }
 0x1c9   : > { %v3657_v45 = vadd.f32 %v4675_v40, %v3617_v37  ;;  %v4697_v46 = vadd.f32 %v4696_v44, %v4695_v42  ;;  %v4698_v47 = vpop.f32.mrb[26].mxu1 }
 0x1ca   : > { %v4699_v48 = vpop.f32.mrb[27].mxu1 }
 0x1cb   : > { %v3697_v49 = vadd.f32 %v4697_v46, %v3657_v45 }
 0x1e5   : > { %v4717_v50 = vpop.f32.mrb[28].mxu0 }
 0x1e6   : > { %v4718_v51 = vpop.f32.mrb[29].mxu0 }
 0x1e7   : > { %v4719_v52 = vadd.f32 %v4718_v51, %v4717_v50  ;;  %v4720_v53 = vpop.f32.mrb[30].mxu0  ;;  %v4739_v54 = vpop.f32.mrb[28].mxu1 }
 0x1e8   : > { %v4721_v55 = vpop.f32.mrb[31].mxu0  ;;  %v4740_v56 = vpop.f32.mrb[29].mxu1 }
 0x1e9   : > { %v3737_v57 = vadd.f32 %v4719_v52, %v3697_v49  ;;  %v4741_v58 = vadd.f32 %v4740_v56, %v4739_v54  ;;  %v4742_v59 = vpop.f32.mrb[30].mxu1 }
 0x1ea   : > { %v4743_v60 = vpop.f32.mrb[31].mxu1 }
 0x1eb   : > { %v3777_v61 = vadd.f32 %v4741_v58, %v3737_v57 }
 0x205   : > { %v4761_v62 = vpop.f32.mrb[32].mxu0 }
 0x206   : > { %v4762_v63 = vpop.f32.mrb[33].mxu0 }
 0x207   : > { %v4763_v0 = vadd.f32 %v4762_v63, %v4761_v62  ;;  %v4764_v1 = vpop.f32.mrb[34].mxu0  ;;  %v4783_v2 = vpop.f32.mrb[32].mxu1 }
 0x208   : > { %v4765_v3 = vpop.f32.mrb[35].mxu0  ;;  %v4784_v4 = vpop.f32.mrb[33].mxu1 }
 0x209   : > { %v3817_v5 = vadd.f32 %v4763_v0, %v3777_v61  ;;  %v4785_v6 = vadd.f32 %v4784_v4, %v4783_v2  ;;  %v4786_v7 = vpop.f32.mrb[34].mxu1 }
 0x20a   : > { %v4787_v8 = vpop.f32.mrb[35].mxu1 }
 0x20b   : > { %v3857_v9 = vadd.f32 %v4785_v6, %v3817_v5 }
 0x225   : > { %v4805_v10 = vpop.f32.mrb[36].mxu0 }
 0x226   : > { %v4806_v11 = vpop.f32.mrb[37].mxu0 }
 0x227   : > { %v4807_v12 = vadd.f32 %v4806_v11, %v4805_v10  ;;  %v4808_v13 = vpop.f32.mrb[38].mxu0  ;;  %v4827_v14 = vpop.f32.mrb[36].mxu1 }
 0x228   : > { %v4809_v15 = vpop.f32.mrb[39].mxu0  ;;  %v4828_v16 = vpop.f32.mrb[37].mxu1 }
 0x229   : > { %v3897_v17 = vadd.f32 %v4807_v12, %v3857_v9  ;;  %v4829_v18 = vadd.f32 %v4828_v16, %v4827_v14  ;;  %v4830_v19 = vpop.f32.mrb[38].mxu1 }
 0x22a   : > { %v4831_v20 = vpop.f32.mrb[39].mxu1 }
 0x22b   : > { %v3937_v21 = vadd.f32 %v4829_v18, %v3897_v17 }
 0x245   : > { %v3976_v22 = vpop.f32.mrb[40].mxu0 }
 0x246   : > { %v3977_v23 = vadd.f32 %v3976_v22, %v3937_v21  ;;  %v4860_v24 = vpop.f32.mrb[41].mxu0 }
 0x247   : > { %v3979_v25 = vpop.f32.mrb[42].mxu0 }
 0x248   : > { %vm3982_vm1 = vcmp.gt.f32.partialorder %v3977_v23, 0.0  ;;  %v3983_v26 = vmul.f32 0.1, %v3977_v23  ;;  %v4861_v27 = vpop.f32.mrb[43].mxu0 }
 0x24a   : > { %v3984_v28 = vsel %vm3982_vm1, %v3977_v23, %v3983_v26 }
 0x24b   : > { %v3985_v29 = vpack.c.bf16 %v3984_v28, %v3984_v28 }
 0x24d   : > { %3986 = vst [vmem:[%s197_s27] sm:$0x1] %v3985_v29 }
 0x24e PF: > { %s13_s12 = sadd.s32 1, %s5214_s12  }
 0x24f   : > { %p10_p4 = scmp.ge.s32.totalorder %s13_s12, 10  }
 0x251   :  { %12 = sbr.rel (!%p10_p4) target bundleno = 1 (0x1), region = 68 }

// kernel: discriminator_s_forward.12
= control target key start
LH: loop header
LB: loop body
LE: loop exit
PB: predicated region body
PF: predicated region fallthrough
CT: control target
= control target key end

     0   :  { %s6979_s12 = smov 0   ;;  %s7872_s0 = inlined_call_operand.vmem [shape: bf16[1,2,5120], index: 0, kind: input, shape index: {}]   ;;  %s7873_s1 = inlined_call_operand.vmem [shape: bf16[4,5120,256], index: 1, kind: input, shape index: {}]   ;;  %s7874_s2 = inlined_call_operand.vmem [shape: f32[4,1,256], index: 2, kind: input, shape index: {}]   ;;  %s7875_s3 = inlined_call_operand.vmem [shape: bf16[2,1024], index: 3, kind: output, shape index: {}]  }
   0x1 LB: > { %s6985_s13 = sadd.s32 4294967295, %s6956_s12   ;;  %p5247_p0 = scmp.ge.s32.totalorder %s6956_s12, 1  ;;  %s6956_s12 = sphi %s6979_s12, %s13_s12  }
   0x2   : > { %p146_p1 = scmp.lt.s32.totalorder %s6956_s12, 5 }
   0x4   : > { %p147_p2 = pnand %p5247_p0, %p146_p1 }
   0x5   : > { %p173_p3 = scmp.lt.s32.totalorder (!%p147_p2), %s6985_s13, 3  ;;  %v834_v0 = vlaneseq (!%p147_p2)  ;;  %v189_v1 = vld [vmem:[%s7872_s0 + $0x10] sm:$0xff] (!%p147_p2)  ;;  %v6958_v2 = vmov (!%p147_p2), 1966171168   ;;  %v7002_v7 = vld [vmem:[%s7872_s0] sm:$0xff] (!%p147_p2)  ;;  %s5250_s10 = sshll.u32 (!%p147_p2), %s6985_s13, 1 }
   0x6   : > { %150 = sbr.rel (%p147_p2) target bundleno = 884 (0x374), region = 32  ;;  %v851_v3 = vunpack.c.l.s4 (!%p147_p2), %v6958_v2  ;;  %v947_v6 = vcombine.high (!%p147_p2), %v189_v1, %v189_v1  ;;  %p183_p4 = scmp.lt.s32.totalorder (!%p147_p2), %s5250_s10, 7 }
   0x7   : > { %v6996_v4 = vshrl.u32 (!%p147_p2), %v834_v0, 7 }
   0x8   : > { %v852_v5 = vunpack.c.0.s8 (!%p147_p2), %v851_v3 }
   0xa   : > { %v7005_v8 = vsub.s32 (!%p147_p2), %v852_v5, %v6996_v4 }
   0xc   : > { %v7015_v10 = vrot.slane (!%p147_p2), %v7002_v7, %v7005_v8  ;;  %v7018_v11 = vrot.slane (!%p147_p2), %v947_v6, %v7005_v8 }
   0xd   : > { %s6994_s16 = scalar_select %p173_p3, %s6985_s13, 3 }
   0xe   : > { %v864_v15 = vcombine.high %v7015_v10, %v7015_v10  ;;  %v963_v16 = vcombine.high %v7018_v11, %v7018_v11  ;;  %s7877_s10 = smov (!%p183_p4, %s5250_s10), 7 }
   0xf   : > { %s5971_s17 = smul.u32 5120, %s6994_s16  ;;  %s5249_s6 = sshll.u32 %s6994_s16, 1 }
  0x10   : > { %v7031_v20 = vrot.slane %v864_v15, %v7005_v8  ;;  %v7034_v21 = vrot.slane %v963_v16, %v7005_v8  ;;  %s181_s9 = scalar_lea.vmem %s7874_s2, %s5249_s6  ;;  %s185_s14 = scalar_lea.vmem %s7875_s3, %s7877_s10 }
  0x11   : > { %s7010_s22 = scalar_lea.vmem %s7873_s1, %s5971_s17 }
  0x12   : > { %v5981_v9 = vld [vmem:[%s7010_s22 + $0x4] ss:$8 sps:$4 sm:$0xff]   ;;  %v5985_v13 = vld [vmem:[%s7010_s22] ss:$8 sps:$4 sm:$0xff]   ;;  %v5987_v17 = vld [vmem:[%s7010_s22 + $0x14] ss:$8 sps:$4 sm:$0xff]   ;;  %4366 = vmatprep.mubr.bf16.mxu1 %v7031_v20  ;;  %4776 = vmatprep.mubr.bf16.mxu0 %v7034_v21 }
  0x13   : > { %v5983_v12 = vld [vmem:[%s7010_s22 + $0xa04] ss:$8 sps:$4 sm:$0xff]   ;;  %4334 = vmatprep.subr.bf16.mxu1 %v5981_v9  ;;  %v5986_v14 = vld [vmem:[%s7010_s22 + $0xa00] ss:$8 sps:$4 sm:$0xff]   ;;  %v5989_v18 = vld [vmem:[%s7010_s22 + $0xa14] ss:$8 sps:$4 sm:$0xff]  }
  0x14   : > { %4744 = vmatprep.subr.bf16.mxu0 %v5983_v12  ;;  %4335 = vmatpush1.bf16.msra.mxu1 %v5985_v13  ;;  %v5991_v19 = vld [vmem:[%s7010_s22 + $0x10] ss:$8 sps:$4 sm:$0xff]   ;;  %v5993_v23 = vld [vmem:[%s7010_s22 + $0x24] ss:$8 sps:$4 sm:$0xff]   ;;  %v5997_v25 = vld [vmem:[%s7010_s22 + $0x20] ss:$8 sps:$4 sm:$0xff]  }
  0x15   : > { %4745 = vmatpush1.bf16.msra.mxu0 %v5986_v14  ;;  %4336 = vmatprep.subr.bf16.mxu1 %v5987_v17  ;;  %v5992_v22 = vld [vmem:[%s7010_s22 + $0xa10] ss:$8 sps:$4 sm:$0xff]   ;;  %v5995_v24 = vld [vmem:[%s7010_s22 + $0xa24] ss:$8 sps:$4 sm:$0xff]   ;;  %v5998_v26 = vld [vmem:[%s7010_s22 + $0xa20] ss:$8 sps:$4 sm:$0xff]  }
  0x16   : > { %4746 = vmatprep.subr.bf16.mxu0 %v5989_v18  ;;  %v5999_v27 = vld [vmem:[%s7010_s22 + $0x34] ss:$8 sps:$4 sm:$0xff]   ;;  %v6003_v29 = vld [vmem:[%s7010_s22 + $0x30] ss:$8 sps:$4 sm:$0xff]   ;;  %v6005_v31 = vld [vmem:[%s7010_s22 + $0x44] ss:$8 sps:$4 sm:$0xff]  }
  0x17   : > { %v6001_v28 = vld [vmem:[%s7010_s22 + $0xa34] ss:$8 sps:$4 sm:$0xff]   ;;  %v6004_v30 = vld [vmem:[%s7010_s22 + $0xa30] ss:$8 sps:$4 sm:$0xff]   ;;  %v6007_v32 = vld [vmem:[%s7010_s22 + $0xa44] ss:$8 sps:$4 sm:$0xff]  }
  0x18   : > { %4337 = vmatpush1.bf16.msra.mxu1 %v5991_v19  ;;  %v6009_v33 = vld [vmem:[%s7010_s22 + $0x40] ss:$8 sps:$4 sm:$0xff]   ;;  %v6011_v35 = vld [vmem:[%s7010_s22 + $0x54] ss:$8 sps:$4 sm:$0xff]   ;;  %v6015_v37 = vld [vmem:[%s7010_s22 + $0x50] ss:$8 sps:$4 sm:$0xff]  }
  0x19   : > { %4747 = vmatpush1.bf16.msra.mxu0 %v5992_v22  ;;  %4338 = vmatprep.subr.bf16.mxu1 %v5993_v23  ;;  %v6010_v34 = vld [vmem:[%s7010_s22 + $0xa40] ss:$8 sps:$4 sm:$0xff]   ;;  %v6013_v36 = vld [vmem:[%s7010_s22 + $0xa54] ss:$8 sps:$4 sm:$0xff]   ;;  %v6016_v38 = vld [vmem:[%s7010_s22 + $0xa50] ss:$8 sps:$4 sm:$0xff]  }
  0x1a   : > { %4748 = vmatprep.subr.bf16.mxu0 %v5995_v24  ;;  %v6017_v39 = vld [vmem:[%s7010_s22 + $0x64] ss:$8 sps:$4 sm:$0xff]   ;;  %v6021_v41 = vld [vmem:[%s7010_s22 + $0x60] ss:$8 sps:$4 sm:$0xff]   ;;  %v6023_v43 = vld [vmem:[%s7010_s22 + $0x74] ss:$8 sps:$4 sm:$0xff]  }
  0x1b   : > { %v6019_v40 = vld [vmem:[%s7010_s22 + $0xa64] ss:$8 sps:$4 sm:$0xff]   ;;  %v6022_v42 = vld [vmem:[%s7010_s22 + $0xa60] ss:$8 sps:$4 sm:$0xff]   ;;  %v6025_v44 = vld [vmem:[%s7010_s22 + $0xa74] ss:$8 sps:$4 sm:$0xff]  }
  0x1c   : > { %4339 = vmatpush1.bf16.msra.mxu1 %v5997_v25  ;;  %v6027_v45 = vld [vmem:[%s7010_s22 + $0x70] ss:$8 sps:$4 sm:$0xff]   ;;  %v6029_v47 = vld [vmem:[%s7010_s22 + $0x84] ss:$8 sps:$4 sm:$0xff]   ;;  %v6033_v49 = vld [vmem:[%s7010_s22 + $0x80] ss:$8 sps:$4 sm:$0xff]  }
  0x1d   : > { %4749 = vmatpush1.bf16.msra.mxu0 %v5998_v26  ;;  %4340 = vmatprep.subr.bf16.mxu1 %v5999_v27  ;;  %v6028_v46 = vld [vmem:[%s7010_s22 + $0xa70] ss:$8 sps:$4 sm:$0xff]   ;;  %v6031_v48 = vld [vmem:[%s7010_s22 + $0xa84] ss:$8 sps:$4 sm:$0xff]   ;;  %v6034_v50 = vld [vmem:[%s7010_s22 + $0xa80] ss:$8 sps:$4 sm:$0xff]   ;;  %v7101_v26 = vrot.slane %v7015_v10, %v7005_v8  ;;  %v7105_v27 = vrot.slane %v7018_v11, %v7005_v8  ;;  %v995_v10 = vcombine.high %v7034_v21, %v7034_v21 }
  0x1e   : > { %4750 = vmatprep.subr.bf16.mxu0 %v6001_v28  ;;  %v6035_v51 = vld [vmem:[%s7010_s22 + $0x94] ss:$8 sps:$4 sm:$0xff]   ;;  %v6039_v53 = vld [vmem:[%s7010_s22 + $0x90] ss:$8 sps:$4 sm:$0xff]   ;;  %v6041_v55 = vld [vmem:[%s7010_s22 + $0xa4] ss:$8 sps:$4 sm:$0xff]  }
  0x1f   : > { %v6037_v52 = vld [vmem:[%s7010_s22 + $0xa94] ss:$8 sps:$4 sm:$0xff]   ;;  %v6040_v54 = vld [vmem:[%s7010_s22 + $0xa90] ss:$8 sps:$4 sm:$0xff]   ;;  %v6043_v56 = vld [vmem:[%s7010_s22 + $0xaa4] ss:$8 sps:$4 sm:$0xff]  }
  0x20   : > { %4341 = vmatpush1.bf16.msra.mxu1 %v6003_v29  ;;  %v6045_v57 = vld [vmem:[%s7010_s22 + $0xa0] ss:$8 sps:$4 sm:$0xff]   ;;  %v6047_v59 = vld [vmem:[%s7010_s22 + $0xb4] ss:$8 sps:$4 sm:$0xff]   ;;  %v6051_v61 = vld [vmem:[%s7010_s22 + $0xb0] ss:$8 sps:$4 sm:$0xff]  }
  0x21   : > { %4751 = vmatpush1.bf16.msra.mxu0 %v6004_v30  ;;  %4342 = vmatprep.subr.bf16.mxu1 %v6005_v31  ;;  %v6046_v58 = vld [vmem:[%s7010_s22 + $0xaa0] ss:$8 sps:$4 sm:$0xff]   ;;  %v6049_v60 = vld [vmem:[%s7010_s22 + $0xab4] ss:$8 sps:$4 sm:$0xff]   ;;  %v6052_v62 = vld [vmem:[%s7010_s22 + $0xab0] ss:$8 sps:$4 sm:$0xff]   ;;  %v896_v30 = vcombine.high %v7031_v20, %v7031_v20 }
  0x22   : > { %4752 = vmatprep.subr.bf16.mxu0 %v6007_v32  ;;  %v6053_v63 = vld [vmem:[%s7010_s22 + $0xc4] ss:$8 sps:$4 sm:$0xff]   ;;  %v6057_v1 = vld [vmem:[%s7010_s22 + $0xc0] ss:$8 sps:$4 sm:$0xff]   ;;  %v6059_v3 = vld [vmem:[%s7010_s22 + $0xd4] ss:$8 sps:$4 sm:$0xff]  }
  0x23   : > { %v6055_v0 = vld [vmem:[%s7010_s22 + $0xac4] ss:$8 sps:$4 sm:$0xff]   ;;  %v6058_v2 = vld [vmem:[%s7010_s22 + $0xac0] ss:$8 sps:$4 sm:$0xff]   ;;  %v6061_v5 = vld [vmem:[%s7010_s22 + $0xad4] ss:$8 sps:$4 sm:$0xff]  }
  0x24   : > { %4343 = vmatpush1.bf16.msra.mxu1 %v6009_v33  ;;  %v6063_v6 = vld [vmem:[%s7010_s22 + $0xd0] ss:$8 sps:$4 sm:$0xff]   ;;  %v6065_v12 = vld [vmem:[%s7010_s22 + $0xe4] ss:$8 sps:$4 sm:$0xff]   ;;  %v6069_v14 = vld [vmem:[%s7010_s22 + $0xe0] ss:$8 sps:$4 sm:$0xff]  }
  0x25   : > { %4753 = vmatpush1.bf16.msra.mxu0 %v6010_v34  ;;  %4344 = vmatprep.subr.bf16.mxu1 %v6011_v35  ;;  %v6064_v9 = vld [vmem:[%s7010_s22 + $0xad0] ss:$8 sps:$4 sm:$0xff]   ;;  %v6067_v13 = vld [vmem:[%s7010_s22 + $0xae4] ss:$8 sps:$4 sm:$0xff]   ;;  %v6070_v15 = vld [vmem:[%s7010_s22 + $0xae0] ss:$8 sps:$4 sm:$0xff]  }
  0x26   : > { %4754 = vmatprep.subr.bf16.mxu0 %v6013_v36  ;;  %v6071_v16 = vld [vmem:[%s7010_s22 + $0xf4] ss:$8 sps:$4 sm:$0xff]   ;;  %v6075_v18 = vld [vmem:[%s7010_s22 + $0xf0] ss:$8 sps:$4 sm:$0xff]   ;;  %v6080_v22 = vld [vmem:[%s7010_s22 + $0x104] ss:$8 sps:$4 sm:$0xff]  }
  0x27   : > { %v6073_v17 = vld [vmem:[%s7010_s22 + $0xaf4] ss:$8 sps:$4 sm:$0xff]   ;;  %v6076_v19 = vld [vmem:[%s7010_s22 + $0xaf0] ss:$8 sps:$4 sm:$0xff]   ;;  %v6084_v23 = vld [vmem:[%s7010_s22 + $0xb04] ss:$8 sps:$4 sm:$0xff]  }
  0x28   : > { %4345 = vmatpush1.bf16.msra.mxu1 %v6015_v37  ;;  %v6078_v24 = vld [vmem:[%s7010_s22 + $0x100] ss:$8 sps:$4 sm:$0xff]   ;;  %v6087_v28 = vld [vmem:[%s7010_s22 + $0x114] ss:$8 sps:$4 sm:$0xff]   ;;  %v6085_v11 = vld [vmem:[%s7010_s22 + $0x110] ss:$8 sps:$4 sm:$0xff]  }
  0x29   : > { %4755 = vmatpush1.bf16.msra.mxu0 %v6016_v38  ;;  %4346 = vmatprep.subr.bf16.mxu1 %v6017_v39  ;;  %v6082_v25 = vld [vmem:[%s7010_s22 + $0xb00] ss:$8 sps:$4 sm:$0xff]   ;;  %v6090_v29 = vld [vmem:[%s7010_s22 + $0xb14] ss:$8 sps:$4 sm:$0xff]   ;;  %v6088_v31 = vld [vmem:[%s7010_s22 + $0xb10] ss:$8 sps:$4 sm:$0xff]  }
  0x2a   : > { %4756 = vmatprep.subr.bf16.mxu0 %v6019_v40  ;;  %v6093_v32 = vld [vmem:[%s7010_s22 + $0x124] ss:$8 sps:$4 sm:$0xff]   ;;  %v6091_v21 = vld [vmem:[%s7010_s22 + $0x120] ss:$8 sps:$4 sm:$0xff]   ;;  %v6099_v34 = vld [vmem:[%s7010_s22 + $0x134] ss:$8 sps:$4 sm:$0xff]  }
  0x2b   : > { %v6096_v20 = vld [vmem:[%s7010_s22 + $0xb24] ss:$8 sps:$4 sm:$0xff]   ;;  %v6094_v33 = vld [vmem:[%s7010_s22 + $0xb20] ss:$8 sps:$4 sm:$0xff]   ;;  %v6102_v35 = vld [vmem:[%s7010_s22 + $0xb34] ss:$8 sps:$4 sm:$0xff]  }
  0x2c   : > { %4347 = vmatpush1.bf16.msra.mxu1 %v6021_v41  ;;  %v6097_v36 = vld [vmem:[%s7010_s22 + $0x130] ss:$8 sps:$4 sm:$0xff]   ;;  %v6105_v38 = vld [vmem:[%s7010_s22 + $0x144] ss:$8 sps:$4 sm:$0xff]   ;;  %v6103_v40 = vld [vmem:[%s7010_s22 + $0x140] ss:$8 sps:$4 sm:$0xff]  }
  0x2d   : > { %4757 = vmatpush1.bf16.msra.mxu0 %v6022_v42  ;;  %4348 = vmatprep.subr.bf16.mxu1 %v6023_v43  ;;  %v6100_v37 = vld [vmem:[%s7010_s22 + $0xb30] ss:$8 sps:$4 sm:$0xff]   ;;  %v6108_v39 = vld [vmem:[%s7010_s22 + $0xb44] ss:$8 sps:$4 sm:$0xff]   ;;  %v6106_v41 = vld [vmem:[%s7010_s22 + $0xb40] ss:$8 sps:$4 sm:$0xff]  }
  0x2e   : > { %4758 = vmatprep.subr.bf16.mxu0 %v6025_v44  ;;  %v6111_v42 = vld [vmem:[%s7010_s22 + $0x154] ss:$8 sps:$4 sm:$0xff]   ;;  %v6109_v44 = vld [vmem:[%s7010_s22 + $0x150] ss:$8 sps:$4 sm:$0xff]  }
  0x2f   : > { %v6114_v43 = vld [vmem:[%s7010_s22 + $0xb54] ss:$8 sps:$4 sm:$0xff]  }
  0x30   : > { %4349 = vmatpush1.bf16.msra.mxu1 %v6027_v45  ;;  %v6112_v45 = vld [vmem:[%s7010_s22 + $0xb50] ss:$8 sps:$4 sm:$0xff]  }
  0x31   : > { %4759 = vmatpush1.bf16.msra.mxu0 %v6028_v46  ;;  %4350 = vmatprep.subr.bf16.mxu1 %v6029_v47  ;;  %v6117_v46 = vld [vmem:[%s7010_s22 + $0x164] ss:$8 sps:$4 sm:$0xff]  }
  0x32   : > { %4760 = vmatprep.subr.bf16.mxu0 %v6031_v48  ;;  %v6120_v47 = vld [vmem:[%s7010_s22 + $0xb64] ss:$8 sps:$4 sm:$0xff]   ;;  %v6115_v48 = vld [vmem:[%s7010_s22 + $0x160] ss:$8 sps:$4 sm:$0xff]  }
  0x34   : > { %4351 = vmatpush1.bf16.msra.mxu1 %v6033_v49  ;;  %v6118_v49 = vld [vmem:[%s7010_s22 + $0xb60] ss:$8 sps:$4 sm:$0xff]  }
  0x35   : > { %4761 = vmatpush1.bf16.msra.mxu0 %v6034_v50  ;;  %4352 = vmatprep.subr.bf16.mxu1 %v6035_v51  ;;  %v6123_v50 = vld [vmem:[%s7010_s22 + $0x174] ss:$8 sps:$4 sm:$0xff]  }
  0x36   : > { %4762 = vmatprep.subr.bf16.mxu0 %v6037_v52  ;;  %v6126_v51 = vld [vmem:[%s7010_s22 + $0xb74] ss:$8 sps:$4 sm:$0xff]   ;;  %v6121_v52 = vld [vmem:[%s7010_s22 + $0x170] ss:$8 sps:$4 sm:$0xff]  }
  0x38   : > { %4353 = vmatpush1.bf16.msra.mxu1 %v6039_v53  ;;  %v6124_v53 = vld [vmem:[%s7010_s22 + $0xb70] ss:$8 sps:$4 sm:$0xff]  }
  0x39   : > { %4763 = vmatpush1.bf16.msra.mxu0 %v6040_v54  ;;  %4354 = vmatprep.subr.bf16.mxu1 %v6041_v55  ;;  %v6129_v54 = vld [vmem:[%s7010_s22 + $0x184] ss:$8 sps:$4 sm:$0xff]  }
  0x3a   : > { %4764 = vmatprep.subr.bf16.mxu0 %v6043_v56  ;;  %v6132_v55 = vld [vmem:[%s7010_s22 + $0xb84] ss:$8 sps:$4 sm:$0xff]   ;;  %v6127_v56 = vld [vmem:[%s7010_s22 + $0x180] ss:$8 sps:$4 sm:$0xff]  }
  0x3c   : > { %4355 = vmatpush1.bf16.msra.mxu1 %v6045_v57  ;;  %v6130_v57 = vld [vmem:[%s7010_s22 + $0xb80] ss:$8 sps:$4 sm:$0xff]  }
  0x3d   : > { %4765 = vmatpush1.bf16.msra.mxu0 %v6046_v58  ;;  %4356 = vmatprep.subr.bf16.mxu1 %v6047_v59  ;;  %v6135_v58 = vld [vmem:[%s7010_s22 + $0x194] ss:$8 sps:$4 sm:$0xff]  }
  0x3e   : > { %4766 = vmatprep.subr.bf16.mxu0 %v6049_v60  ;;  %v6138_v59 = vld [vmem:[%s7010_s22 + $0xb94] ss:$8 sps:$4 sm:$0xff]   ;;  %v6133_v60 = vld [vmem:[%s7010_s22 + $0x190] ss:$8 sps:$4 sm:$0xff]  }
  0x40   : > { %4357 = vmatpush1.bf16.msra.mxu1 %v6051_v61  ;;  %v6136_v61 = vld [vmem:[%s7010_s22 + $0xb90] ss:$8 sps:$4 sm:$0xff]  }
  0x41   : > { %4767 = vmatpush1.bf16.msra.mxu0 %v6052_v62  ;;  %4358 = vmatprep.subr.bf16.mxu1 %v6053_v63  ;;  %v6141_v62 = vld [vmem:[%s7010_s22 + $0x1a4] ss:$8 sps:$4 sm:$0xff]  }
  0x42   : > { %4768 = vmatprep.subr.bf16.mxu0 %v6055_v0  ;;  %v6144_v63 = vld [vmem:[%s7010_s22 + $0xba4] ss:$8 sps:$4 sm:$0xff]   ;;  %v6139_v0 = vld [vmem:[%s7010_s22 + $0x1a0] ss:$8 sps:$4 sm:$0xff]  }
  0x44   : > { %4359 = vmatpush1.bf16.msra.mxu1 %v6057_v1  ;;  %v6142_v1 = vld [vmem:[%s7010_s22 + $0xba0] ss:$8 sps:$4 sm:$0xff]  }
  0x45   : > { %4769 = vmatpush1.bf16.msra.mxu0 %v6058_v2  ;;  %4360 = vmatprep.subr.bf16.mxu1 %v6059_v3  ;;  %v6147_v2 = vld [vmem:[%s7010_s22 + $0x1b4] ss:$8 sps:$4 sm:$0xff]  }
  0x46   : > { %4770 = vmatprep.subr.bf16.mxu0 %v6061_v5  ;;  %v6150_v3 = vld [vmem:[%s7010_s22 + $0xbb4] ss:$8 sps:$4 sm:$0xff]   ;;  %v6145_v5 = vld [vmem:[%s7010_s22 + $0x1b0] ss:$8 sps:$4 sm:$0xff]  }
  0x48   : > { %4361 = vmatpush1.bf16.msra.mxu1 %v6063_v6  ;;  %v6148_v6 = vld [vmem:[%s7010_s22 + $0xbb0] ss:$8 sps:$4 sm:$0xff]  }
  0x49   : > { %4771 = vmatpush1.bf16.msra.mxu0 %v6064_v9  ;;  %4362 = vmatprep.subr.bf16.mxu1 %v6065_v12  ;;  %v6153_v9 = vld [vmem:[%s7010_s22 + $0x1c4] ss:$8 sps:$4 sm:$0xff]  }
  0x4a   : > { %4772 = vmatprep.subr.bf16.mxu0 %v6067_v13  ;;  %v6156_v12 = vld [vmem:[%s7010_s22 + $0xbc4] ss:$8 sps:$4 sm:$0xff]   ;;  %v6151_v13 = vld [vmem:[%s7010_s22 + $0x1c0] ss:$8 sps:$4 sm:$0xff]  }
  0x4c   : > { %4363 = vmatpush1.bf16.msra.mxu1 %v6069_v14  ;;  %v6154_v14 = vld [vmem:[%s7010_s22 + $0xbc0] ss:$8 sps:$4 sm:$0xff]  }
  0x4d   : > { %4773 = vmatpush1.bf16.msra.mxu0 %v6070_v15  ;;  %4364 = vmatprep.subr.bf16.mxu1 %v6071_v16  ;;  %v6159_v15 = vld [vmem:[%s7010_s22 + $0x1d4] ss:$8 sps:$4 sm:$0xff]  }
  0x4e   : > { %4774 = vmatprep.subr.bf16.mxu0 %v6073_v17  ;;  %v6162_v16 = vld [vmem:[%s7010_s22 + $0xbd4] ss:$8 sps:$4 sm:$0xff]   ;;  %v6157_v17 = vld [vmem:[%s7010_s22 + $0x1d0] ss:$8 sps:$4 sm:$0xff]  }
  0x50   : > { %4365 = vmatpush1.bf16.msra.mxu1 %v6075_v18  ;;  %v6160_v18 = vld [vmem:[%s7010_s22 + $0xbd0] ss:$8 sps:$4 sm:$0xff]  }
  0x51   : > { %4775 = vmatpush1.bf16.msra.mxu0 %v6076_v19  ;;  %4375 = vmatprep.subr.bf16.mxu1 %v6080_v22  ;;  %v6165_v19 = vld [vmem:[%s7010_s22 + $0x1e4] ss:$8 sps:$4 sm:$0xff]  }
  0x52   : > { %4785 = vmatprep.subr.bf16.mxu0 %v6084_v23  ;;  %v6168_v22 = vld [vmem:[%s7010_s22 + $0xbe4] ss:$8 sps:$4 sm:$0xff]   ;;  %v849_v23 = vcombine.high %v7002_v7, %v7002_v7 }
  0x53   : > { %4367 = vmatmul.mubr.bf16.vlgmr.msra.gmra.mrb[0].mxu1 %v7101_v26  ;;  %v6177_v7 = vld [vmem:[%s7010_s22 + $0x204] ss:$8 sps:$4 sm:$0xff]  }
  0x54   : > { %4777 = vmatmul.mubr.bf16.vlgmr.msra.gmra.mrb[0].mxu0 %v7105_v27  ;;  %4376 = vmatpush1.bf16.msra.mxu1 %v6078_v24  ;;  %v6163_v24 = vld [vmem:[%s7010_s22 + $0x1e0] ss:$8 sps:$4 sm:$0xff]  }
  0x55   : > { %4786 = vmatpush1.bf16.msra.mxu0 %v6082_v25  ;;  %4377 = vmatprep.subr.bf16.mxu1 %v6087_v28  ;;  %v6166_v25 = vld [vmem:[%s7010_s22 + $0xbe0] ss:$8 sps:$4 sm:$0xff]   ;;  %v6171_v28 = vld [vmem:[%s7010_s22 + $0x1f4] ss:$8 sps:$4 sm:$0xff]  }
  0x56   : > { %4787 = vmatprep.subr.bf16.mxu0 %v6090_v29  ;;  %4407 = vmatprep.mubr.bf16.mxu1 %v896_v30  ;;  %v6174_v29 = vld [vmem:[%s7010_s22 + $0xbf4] ss:$8 sps:$4 sm:$0xff]   ;;  %v7174_v30 = vrot.slane %v849_v23, %v7005_v8  ;;  %v6241_v23 = vld [vmem:[%s7010_s22 + $0x2b0] ss:$8 sps:$4 sm:$0xff]  }
  0x57   : > { %4817 = vmatprep.mubr.bf16.mxu0 %v995_v10  ;;  %v6169_v10 = vld [vmem:[%s7010_s22 + $0x1f0] ss:$8 sps:$4 sm:$0xff]  }
  0x58   : > { %4378 = vmatpush1.bf16.msra.mxu1 %v6085_v11  ;;  %v6172_v11 = vld [vmem:[%s7010_s22 + $0xbf0] ss:$8 sps:$4 sm:$0xff]  }
  0x59   : > { %4788 = vmatpush1.bf16.msra.mxu0 %v6088_v31  ;;  %4379 = vmatprep.subr.bf16.mxu1 %v6093_v32  ;;  %v6180_v31 = vld [vmem:[%s7010_s22 + $0xc04] ss:$8 sps:$4 sm:$0xff]   ;;  %v865_v32 = vcombine.high %v7174_v30, %v7174_v30 }
  0x5a   : > { %4789 = vmatprep.subr.bf16.mxu0 %v6096_v20  ;;  %v894_v20 = vcombine.high %v7101_v26, %v7101_v26 }
  0x5b   : > { %v7196_v26 = vrot.slane %v865_v32, %v7005_v8  ;;  %v6256_v32 = vld [vmem:[%s7010_s22 + $0xcd0] ss:$8 sps:$4 sm:$0xff]  }
  0x5c   : > { %4380 = vmatpush1.bf16.msra.mxu1 %v6091_v21  ;;  %v993_v21 = vcombine.high %v7105_v27, %v7105_v27 }
  0x5d   : > { %4790 = vmatpush1.bf16.msra.mxu0 %v6094_v33  ;;  %4381 = vmatprep.subr.bf16.mxu1 %v6099_v34  ;;  %v6175_v33 = vld [vmem:[%s7010_s22 + $0x200] ss:$8 sps:$4 sm:$0xff]  }
  0x5e   : > { %4791 = vmatprep.subr.bf16.mxu0 %v6102_v35  ;;  %v6178_v34 = vld [vmem:[%s7010_s22 + $0xc00] ss:$8 sps:$4 sm:$0xff]   ;;  %v6183_v35 = vld [vmem:[%s7010_s22 + $0x214] ss:$8 sps:$4 sm:$0xff]  }
  0x60   : > { %4382 = vmatpush1.bf16.msra.mxu1 %v6097_v36  ;;  %v6186_v36 = vld [vmem:[%s7010_s22 + $0xc14] ss:$8 sps:$4 sm:$0xff]  }
  0x61   : > { %4792 = vmatpush1.bf16.msra.mxu0 %v6100_v37  ;;  %4383 = vmatprep.subr.bf16.mxu1 %v6105_v38  ;;  %v7193_v37 = vld [vmem:[%s7872_s0 + $0x18] sm:$0xff] }
  0x62   : > { %4793 = vmatprep.subr.bf16.mxu0 %v6108_v39  ;;  %v7200_v27 = vrot.slane %v7193_v37, %v7005_v8  ;;  %v6181_v38 = vld [vmem:[%s7010_s22 + $0x210] ss:$8 sps:$4 sm:$0xff]  }
  0x63   : > { %v6184_v39 = vld [vmem:[%s7010_s22 + $0xc10] ss:$8 sps:$4 sm:$0xff]  }
  0x64   : > { %4384 = vmatpush1.bf16.msra.mxu1 %v6103_v40  ;;  %v1011_v40 = vcombine.high %v7200_v27, %v7200_v27 }
  0x65   : > { %4794 = vmatpush1.bf16.msra.mxu0 %v6106_v41  ;;  %4385 = vmatprep.subr.bf16.mxu1 %v6111_v42  ;;  %v6189_v41 = vld [vmem:[%s7010_s22 + $0x224] ss:$8 sps:$4 sm:$0xff]  }
  0x66   : > { %4795 = vmatprep.subr.bf16.mxu0 %v6114_v43  ;;  %v6192_v42 = vld [vmem:[%s7010_s22 + $0xc24] ss:$8 sps:$4 sm:$0xff]   ;;  %v7210_v43 = vrot.slane %v1011_v40, %v7005_v8 }
  0x67   : > { %v6273_v40 = vld [vmem:[%s7010_s22 + $0x304] ss:$8 sps:$4 sm:$0xff]  }
  0x68   : > { %4386 = vmatpush1.bf16.msra.mxu1 %v6109_v44  ;;  %v6187_v44 = vld [vmem:[%s7010_s22 + $0x220] ss:$8 sps:$4 sm:$0xff]  }
  0x69   : > { %4796 = vmatpush1.bf16.msra.mxu0 %v6112_v45  ;;  %4387 = vmatprep.subr.bf16.mxu1 %v6117_v46  ;;  %v6190_v45 = vld [vmem:[%s7010_s22 + $0xc20] ss:$8 sps:$4 sm:$0xff]   ;;  %v6195_v46 = vld [vmem:[%s7010_s22 + $0x234] ss:$8 sps:$4 sm:$0xff]  }
  0x6a   : > { %4797 = vmatprep.subr.bf16.mxu0 %v6120_v47  ;;  %v6198_v47 = vld [vmem:[%s7010_s22 + $0xc34] ss:$8 sps:$4 sm:$0xff]  }
  0x6c   : > { %4388 = vmatpush1.bf16.msra.mxu1 %v6115_v48  ;;  %v6193_v48 = vld [vmem:[%s7010_s22 + $0x230] ss:$8 sps:$4 sm:$0xff]  }
  0x6d   : > { %4798 = vmatpush1.bf16.msra.mxu0 %v6118_v49  ;;  %4389 = vmatprep.subr.bf16.mxu1 %v6123_v50  ;;  %v6196_v49 = vld [vmem:[%s7010_s22 + $0xc30] ss:$8 sps:$4 sm:$0xff]   ;;  %v6201_v50 = vld [vmem:[%s7010_s22 + $0x244] ss:$8 sps:$4 sm:$0xff]  }
  0x6e   : > { %4799 = vmatprep.subr.bf16.mxu0 %v6126_v51  ;;  %v6204_v51 = vld [vmem:[%s7010_s22 + $0xc44] ss:$8 sps:$4 sm:$0xff]  }
  0x70   : > { %4390 = vmatpush1.bf16.msra.mxu1 %v6121_v52  ;;  %v6199_v52 = vld [vmem:[%s7010_s22 + $0x240] ss:$8 sps:$4 sm:$0xff]  }
  0x71   : > { %4800 = vmatpush1.bf16.msra.mxu0 %v6124_v53  ;;  %4391 = vmatprep.subr.bf16.mxu1 %v6129_v54  ;;  %v6202_v53 = vld [vmem:[%s7010_s22 + $0xc40] ss:$8 sps:$4 sm:$0xff]   ;;  %v6207_v54 = vld [vmem:[%s7010_s22 + $0x254] ss:$8 sps:$4 sm:$0xff]  }
  0x72   : > { %4801 = vmatprep.subr.bf16.mxu0 %v6132_v55  ;;  %v6210_v55 = vld [vmem:[%s7010_s22 + $0xc54] ss:$8 sps:$4 sm:$0xff]  }
  0x74   : > { %4392 = vmatpush1.bf16.msra.mxu1 %v6127_v56  ;;  %v6205_v56 = vld [vmem:[%s7010_s22 + $0x250] ss:$8 sps:$4 sm:$0xff]  }
  0x75   : > { %4802 = vmatpush1.bf16.msra.mxu0 %v6130_v57  ;;  %4393 = vmatprep.subr.bf16.mxu1 %v6135_v58  ;;  %v6208_v57 = vld [vmem:[%s7010_s22 + $0xc50] ss:$8 sps:$4 sm:$0xff]   ;;  %v6213_v58 = vld [vmem:[%s7010_s22 + $0x264] ss:$8 sps:$4 sm:$0xff]  }
  0x76   : > { %4803 = vmatprep.subr.bf16.mxu0 %v6138_v59  ;;  %v6216_v59 = vld [vmem:[%s7010_s22 + $0xc64] ss:$8 sps:$4 sm:$0xff]  }
  0x78   : > { %4394 = vmatpush1.bf16.msra.mxu1 %v6133_v60  ;;  %v6211_v60 = vld [vmem:[%s7010_s22 + $0x260] ss:$8 sps:$4 sm:$0xff]  }
  0x79   : > { %4804 = vmatpush1.bf16.msra.mxu0 %v6136_v61  ;;  %4395 = vmatprep.subr.bf16.mxu1 %v6141_v62  ;;  %v6214_v61 = vld [vmem:[%s7010_s22 + $0xc60] ss:$8 sps:$4 sm:$0xff]   ;;  %v6219_v62 = vld [vmem:[%s7010_s22 + $0x274] ss:$8 sps:$4 sm:$0xff]  }
  0x7a   : > { %4805 = vmatprep.subr.bf16.mxu0 %v6144_v63  ;;  %v6222_v63 = vld [vmem:[%s7010_s22 + $0xc74] ss:$8 sps:$4 sm:$0xff]  }
  0x7c   : > { %4396 = vmatpush1.bf16.msra.mxu1 %v6139_v0  ;;  %v6217_v0 = vld [vmem:[%s7010_s22 + $0x270] ss:$8 sps:$4 sm:$0xff]  }
  0x7d   : > { %4806 = vmatpush1.bf16.msra.mxu0 %v6142_v1  ;;  %4397 = vmatprep.subr.bf16.mxu1 %v6147_v2  ;;  %v6220_v1 = vld [vmem:[%s7010_s22 + $0xc70] ss:$8 sps:$4 sm:$0xff]   ;;  %v6225_v2 = vld [vmem:[%s7010_s22 + $0x284] ss:$8 sps:$4 sm:$0xff]  }
  0x7e   : > { %4807 = vmatprep.subr.bf16.mxu0 %v6150_v3  ;;  %v6228_v3 = vld [vmem:[%s7010_s22 + $0xc84] ss:$8 sps:$4 sm:$0xff]  }
  0x80   : > { %4398 = vmatpush1.bf16.msra.mxu1 %v6145_v5  ;;  %v6223_v5 = vld [vmem:[%s7010_s22 + $0x280] ss:$8 sps:$4 sm:$0xff]  }
  0x81   : > { %4808 = vmatpush1.bf16.msra.mxu0 %v6148_v6  ;;  %4399 = vmatprep.subr.bf16.mxu1 %v6153_v9  ;;  %v6226_v6 = vld [vmem:[%s7010_s22 + $0xc80] ss:$8 sps:$4 sm:$0xff]   ;;  %v6231_v9 = vld [vmem:[%s7010_s22 + $0x294] ss:$8 sps:$4 sm:$0xff]  }
  0x82   : > { %4809 = vmatprep.subr.bf16.mxu0 %v6156_v12  ;;  %v6234_v12 = vld [vmem:[%s7010_s22 + $0xc94] ss:$8 sps:$4 sm:$0xff]  }
  0x84   : > { %4400 = vmatpush1.bf16.msra.mxu1 %v6151_v13  ;;  %v6229_v13 = vld [vmem:[%s7010_s22 + $0x290] ss:$8 sps:$4 sm:$0xff]  }
  0x85   : > { %4810 = vmatpush1.bf16.msra.mxu0 %v6154_v14  ;;  %4401 = vmatprep.subr.bf16.mxu1 %v6159_v15  ;;  %v6232_v14 = vld [vmem:[%s7010_s22 + $0xc90] ss:$8 sps:$4 sm:$0xff]   ;;  %v6237_v15 = vld [vmem:[%s7010_s22 + $0x2a4] ss:$8 sps:$4 sm:$0xff]  }
  0x86   : > { %4811 = vmatprep.subr.bf16.mxu0 %v6162_v16  ;;  %v6240_v16 = vld [vmem:[%s7010_s22 + $0xca4] ss:$8 sps:$4 sm:$0xff]  }
  0x88   : > { %4402 = vmatpush1.bf16.msra.mxu1 %v6157_v17  ;;  %v6235_v17 = vld [vmem:[%s7010_s22 + $0x2a0] ss:$8 sps:$4 sm:$0xff]  }
  0x89   : > { %4812 = vmatpush1.bf16.msra.mxu0 %v6160_v18  ;;  %4403 = vmatprep.subr.bf16.mxu1 %v6165_v19  ;;  %v6238_v18 = vld [vmem:[%s7010_s22 + $0xca0] ss:$8 sps:$4 sm:$0xff]   ;;  %v6243_v19 = vld [vmem:[%s7010_s22 + $0x2b4] ss:$8 sps:$4 sm:$0xff]  }
  0x8a   : > { %4813 = vmatprep.subr.bf16.mxu0 %v6168_v22  ;;  %v6246_v22 = vld [vmem:[%s7010_s22 + $0xcb4] ss:$8 sps:$4 sm:$0xff]  }
  0x8c   : > { %4404 = vmatpush1.bf16.msra.mxu1 %v6163_v24  ;;  %v6244_v24 = vld [vmem:[%s7010_s22 + $0xcb0] ss:$8 sps:$4 sm:$0xff]  }
  0x8d   : > { %4814 = vmatpush1.bf16.msra.mxu0 %v6166_v25  ;;  %4405 = vmatprep.subr.bf16.mxu1 %v6171_v28  ;;  %v6249_v25 = vld [vmem:[%s7010_s22 + $0x2c4] ss:$8 sps:$4 sm:$0xff]  }
  0x8e   : > { %4815 = vmatprep.subr.bf16.mxu0 %v6174_v29  ;;  %v6252_v28 = vld [vmem:[%s7010_s22 + $0xcc4] ss:$8 sps:$4 sm:$0xff]   ;;  %v6247_v29 = vld [vmem:[%s7010_s22 + $0x2c0] ss:$8 sps:$4 sm:$0xff]  }
  0x90   : > { %4406 = vmatpush1.bf16.msra.mxu1 %v6169_v10  ;;  %v6250_v10 = vld [vmem:[%s7010_s22 + $0xcc0] ss:$8 sps:$4 sm:$0xff]  }
  0x91   : > { %4816 = vmatpush1.bf16.msra.mxu0 %v6172_v11  ;;  %4416 = vmatprep.subr.bf16.mxu1 %v6177_v7  ;;  %v6255_v11 = vld [vmem:[%s7010_s22 + $0x2d4] ss:$8 sps:$4 sm:$0xff]  }
  0x92   : > { %4826 = vmatprep.subr.bf16.mxu0 %v6180_v31  ;;  %v6258_v7 = vld [vmem:[%s7010_s22 + $0xcd4] ss:$8 sps:$4 sm:$0xff]   ;;  %v6253_v31 = vld [vmem:[%s7010_s22 + $0x2d0] ss:$8 sps:$4 sm:$0xff]  }
  0x93   : > { %4408 = vmatmul.mubr.bf16.vlgmr.msra.gmra.mrb[0].mxu1 %v894_v20  ;;  %v6261_v20 = vld [vmem:[%s7010_s22 + $0x2e4] ss:$8 sps:$4 sm:$0xff]  }
  0x94   : > { %4818 = vmatmul.mubr.bf16.vlgmr.msra.gmra.mrb[0].mxu0 %v993_v21  ;;  %4417 = vmatpush1.bf16.msra.mxu1 %v6175_v33  ;;  %v6264_v21 = vld [vmem:[%s7010_s22 + $0xce4] ss:$8 sps:$4 sm:$0xff]   ;;  %v6259_v33 = vld [vmem:[%s7010_s22 + $0x2e0] ss:$8 sps:$4 sm:$0xff]  }
  0x95   : > { %4827 = vmatpush1.bf16.msra.mxu0 %v6178_v34  ;;  %4418 = vmatprep.subr.bf16.mxu1 %v6183_v35  ;;  %v6262_v34 = vld [vmem:[%s7010_s22 + $0xce0] ss:$8 sps:$4 sm:$0xff]   ;;  %v6267_v35 = vld [vmem:[%s7010_s22 + $0x2f4] ss:$8 sps:$4 sm:$0xff]  }
  0x96   : > { %4828 = vmatprep.subr.bf16.mxu0 %v6186_v36  ;;  %4448 = vmatprep.mubr.bf16.mxu1 %v7196_v26  ;;  %v6270_v36 = vld [vmem:[%s7010_s22 + $0xcf4] ss:$8 sps:$4 sm:$0xff]  }
  0x97   : > { %4858 = vmatprep.mubr.bf16.mxu0 %v7210_v43 }
  0x98   : > { %4419 = vmatpush1.bf16.msra.mxu1 %v6181_v38  ;;  %v6265_v38 = vld [vmem:[%s7010_s22 + $0x2f0] ss:$8 sps:$4 sm:$0xff]  }
  0x99   : > { %4829 = vmatpush1.bf16.msra.mxu0 %v6184_v39  ;;  %4420 = vmatprep.subr.bf16.mxu1 %v6189_v41  ;;  %v6268_v39 = vld [vmem:[%s7010_s22 + $0xcf0] ss:$8 sps:$4 sm:$0xff]   ;;  %v6276_v41 = vld [vmem:[%s7010_s22 + $0xd04] ss:$8 sps:$4 sm:$0xff]  }
  0x9a   : > { %4830 = vmatprep.subr.bf16.mxu0 %v6192_v42  ;;  %v6271_v42 = vld [vmem:[%s7010_s22 + $0x300] ss:$8 sps:$4 sm:$0xff]  }
  0x9c   : > { %4421 = vmatpush1.bf16.msra.mxu1 %v6187_v44  ;;  %v7272_v44 = vrot.slane %v7174_v30, %v7005_v8  ;;  %v1043_v30 = vcombine.high %v7210_v43, %v7210_v43  ;;  %v6283_v43 = vld [vmem:[%s7010_s22 + $0x320] ss:$8 sps:$4 sm:$0xff]  }
  0x9d   : > { %4831 = vmatpush1.bf16.msra.mxu0 %v6190_v45  ;;  %4422 = vmatprep.subr.bf16.mxu1 %v6195_v46  ;;  %v7276_v45 = vrot.slane %v7200_v27, %v7005_v8  ;;  %v6274_v46 = vld [vmem:[%s7010_s22 + $0xd00] ss:$8 sps:$4 sm:$0xff]   ;;  %v6277_v27 = vld [vmem:[%s7010_s22 + $0x310] ss:$8 sps:$4 sm:$0xff]  }
  0x9e   : > { %4832 = vmatprep.subr.bf16.mxu0 %v6198_v47  ;;  %v6279_v47 = vld [vmem:[%s7010_s22 + $0x314] ss:$8 sps:$4 sm:$0xff]  }
  0xa0   : > { %4423 = vmatpush1.bf16.msra.mxu1 %v6193_v48  ;;  %v6282_v48 = vld [vmem:[%s7010_s22 + $0xd14] ss:$8 sps:$4 sm:$0xff]  }
  0xa1   : > { %4833 = vmatpush1.bf16.msra.mxu0 %v6196_v49  ;;  %4424 = vmatprep.subr.bf16.mxu1 %v6201_v50  ;;  %v897_v49 = vcombine.high %v7196_v26, %v7196_v26  ;;  %v6280_v50 = vld [vmem:[%s7010_s22 + $0xd10] ss:$8 sps:$4 sm:$0xff]   ;;  %v6288_v26 = vld [vmem:[%s7010_s22 + $0xd24] ss:$8 sps:$4 sm:$0xff]  }
  0xa2   : > { %4834 = vmatprep.subr.bf16.mxu0 %v6204_v51  ;;  %v6285_v51 = vld [vmem:[%s7010_s22 + $0x324] ss:$8 sps:$4 sm:$0xff]  }
  0xa4   : > { %4425 = vmatpush1.bf16.msra.mxu1 %v6199_v52  ;;  %v6286_v52 = vld [vmem:[%s7010_s22 + $0xd20] ss:$8 sps:$4 sm:$0xff]  }
  0xa5   : > { %4835 = vmatpush1.bf16.msra.mxu0 %v6202_v53  ;;  %4426 = vmatprep.subr.bf16.mxu1 %v6207_v54  ;;  %v6291_v53 = vld [vmem:[%s7010_s22 + $0x334] ss:$8 sps:$4 sm:$0xff]  }
  0xa6   : > { %4836 = vmatprep.subr.bf16.mxu0 %v6210_v55  ;;  %v6294_v54 = vld [vmem:[%s7010_s22 + $0xd34] ss:$8 sps:$4 sm:$0xff]   ;;  %v6289_v55 = vld [vmem:[%s7010_s22 + $0x330] ss:$8 sps:$4 sm:$0xff]  }
  0xa8   : > { %4427 = vmatpush1.bf16.msra.mxu1 %v6205_v56  ;;  %v6292_v56 = vld [vmem:[%s7010_s22 + $0xd30] ss:$8 sps:$4 sm:$0xff]  }
  0xa9   : > { %4837 = vmatpush1.bf16.msra.mxu0 %v6208_v57  ;;  %4428 = vmatprep.subr.bf16.mxu1 %v6213_v58  ;;  %v6297_v57 = vld [vmem:[%s7010_s22 + $0x344] ss:$8 sps:$4 sm:$0xff]  }
  0xaa   : > { %4838 = vmatprep.subr.bf16.mxu0 %v6216_v59  ;;  %v6300_v58 = vld [vmem:[%s7010_s22 + $0xd44] ss:$8 sps:$4 sm:$0xff]   ;;  %v6295_v59 = vld [vmem:[%s7010_s22 + $0x340] ss:$8 sps:$4 sm:$0xff]  }
  0xac   : > { %4429 = vmatpush1.bf16.msra.mxu1 %v6211_v60  ;;  %v6298_v60 = vld [vmem:[%s7010_s22 + $0xd40] ss:$8 sps:$4 sm:$0xff]  }
  0xad   : > { %4839 = vmatpush1.bf16.msra.mxu0 %v6214_v61  ;;  %4430 = vmatprep.subr.bf16.mxu1 %v6219_v62  ;;  %v6303_v61 = vld [vmem:[%s7010_s22 + $0x354] ss:$8 sps:$4 sm:$0xff]  }
  0xae   : > { %4840 = vmatprep.subr.bf16.mxu0 %v6222_v63  ;;  %v6306_v62 = vld [vmem:[%s7010_s22 + $0xd54] ss:$8 sps:$4 sm:$0xff]   ;;  %v6301_v63 = vld [vmem:[%s7010_s22 + $0x350] ss:$8 sps:$4 sm:$0xff]  }
  0xb0   : > { %4431 = vmatpush1.bf16.msra.mxu1 %v6217_v0  ;;  %v6304_v0 = vld [vmem:[%s7010_s22 + $0xd50] ss:$8 sps:$4 sm:$0xff]  }
  0xb1   : > { %4841 = vmatpush1.bf16.msra.mxu0 %v6220_v1  ;;  %4432 = vmatprep.subr.bf16.mxu1 %v6225_v2  ;;  %v6309_v1 = vld [vmem:[%s7010_s22 + $0x364] ss:$8 sps:$4 sm:$0xff]  }
  0xb2   : > { %4842 = vmatprep.subr.bf16.mxu0 %v6228_v3  ;;  %v6312_v2 = vld [vmem:[%s7010_s22 + $0xd64] ss:$8 sps:$4 sm:$0xff]   ;;  %v6307_v3 = vld [vmem:[%s7010_s22 + $0x360] ss:$8 sps:$4 sm:$0xff]  }
  0xb4   : > { %4433 = vmatpush1.bf16.msra.mxu1 %v6223_v5  ;;  %v6310_v5 = vld [vmem:[%s7010_s22 + $0xd60] ss:$8 sps:$4 sm:$0xff]  }
  0xb5   : > { %4843 = vmatpush1.bf16.msra.mxu0 %v6226_v6  ;;  %4434 = vmatprep.subr.bf16.mxu1 %v6231_v9  ;;  %v6315_v6 = vld [vmem:[%s7010_s22 + $0x374] ss:$8 sps:$4 sm:$0xff]  }
  0xb6   : > { %4844 = vmatprep.subr.bf16.mxu0 %v6234_v12  ;;  %v6318_v9 = vld [vmem:[%s7010_s22 + $0xd74] ss:$8 sps:$4 sm:$0xff]   ;;  %v6313_v12 = vld [vmem:[%s7010_s22 + $0x370] ss:$8 sps:$4 sm:$0xff]  }
  0xb8   : > { %4435 = vmatpush1.bf16.msra.mxu1 %v6229_v13  ;;  %v6316_v13 = vld [vmem:[%s7010_s22 + $0xd70] ss:$8 sps:$4 sm:$0xff]  }
  0xb9   : > { %4845 = vmatpush1.bf16.msra.mxu0 %v6232_v14  ;;  %4436 = vmatprep.subr.bf16.mxu1 %v6237_v15  ;;  %v6321_v14 = vld [vmem:[%s7010_s22 + $0x384] ss:$8 sps:$4 sm:$0xff]  }
  0xba   : > { %4846 = vmatprep.subr.bf16.mxu0 %v6240_v16  ;;  %v6324_v15 = vld [vmem:[%s7010_s22 + $0xd84] ss:$8 sps:$4 sm:$0xff]   ;;  %v6319_v16 = vld [vmem:[%s7010_s22 + $0x380] ss:$8 sps:$4 sm:$0xff]  }
  0xbc   : > { %4437 = vmatpush1.bf16.msra.mxu1 %v6235_v17  ;;  %v6322_v17 = vld [vmem:[%s7010_s22 + $0xd80] ss:$8 sps:$4 sm:$0xff]  }
  0xbd   : > { %4847 = vmatpush1.bf16.msra.mxu0 %v6238_v18  ;;  %4438 = vmatprep.subr.bf16.mxu1 %v6243_v19  ;;  %v6327_v18 = vld [vmem:[%s7010_s22 + $0x394] ss:$8 sps:$4 sm:$0xff]  }
  0xbe   : > { %4848 = vmatprep.subr.bf16.mxu0 %v6246_v22  ;;  %v6330_v19 = vld [vmem:[%s7010_s22 + $0xd94] ss:$8 sps:$4 sm:$0xff]   ;;  %v6325_v22 = vld [vmem:[%s7010_s22 + $0x390] ss:$8 sps:$4 sm:$0xff]  }
  0xc0   : > { %4439 = vmatpush1.bf16.msra.mxu1 %v6241_v23  ;;  %v6328_v23 = vld [vmem:[%s7010_s22 + $0xd90] ss:$8 sps:$4 sm:$0xff]  }
  0xc1   : > { %4849 = vmatpush1.bf16.msra.mxu0 %v6244_v24  ;;  %4440 = vmatprep.subr.bf16.mxu1 %v6249_v25  ;;  %v6333_v24 = vld [vmem:[%s7010_s22 + $0x3a4] ss:$8 sps:$4 sm:$0xff]  }
  0xc2   : > { %4850 = vmatprep.subr.bf16.mxu0 %v6252_v28  ;;  %v6336_v25 = vld [vmem:[%s7010_s22 + $0xda4] ss:$8 sps:$4 sm:$0xff]   ;;  %v6331_v28 = vld [vmem:[%s7010_s22 + $0x3a0] ss:$8 sps:$4 sm:$0xff]  }
  0xc4   : > { %4441 = vmatpush1.bf16.msra.mxu1 %v6247_v29  ;;  %v6334_v29 = vld [vmem:[%s7010_s22 + $0xda0] ss:$8 sps:$4 sm:$0xff]  }
  0xc5   : > { %4851 = vmatpush1.bf16.msra.mxu0 %v6250_v10  ;;  %4442 = vmatprep.subr.bf16.mxu1 %v6255_v11  ;;  %v6339_v10 = vld [vmem:[%s7010_s22 + $0x3b4] ss:$8 sps:$4 sm:$0xff]  }
  0xc6   : > { %4852 = vmatprep.subr.bf16.mxu0 %v6258_v7  ;;  %v6342_v11 = vld [vmem:[%s7010_s22 + $0xdb4] ss:$8 sps:$4 sm:$0xff]   ;;  %v6337_v7 = vld [vmem:[%s7010_s22 + $0x3b0] ss:$8 sps:$4 sm:$0xff]  }
  0xc8   : > { %4443 = vmatpush1.bf16.msra.mxu1 %v6253_v31  ;;  %v6340_v31 = vld [vmem:[%s7010_s22 + $0xdb0] ss:$8 sps:$4 sm:$0xff]  }
  0xc9   : > { %4853 = vmatpush1.bf16.msra.mxu0 %v6256_v32  ;;  %4444 = vmatprep.subr.bf16.mxu1 %v6261_v20  ;;  %v6345_v32 = vld [vmem:[%s7010_s22 + $0x3c4] ss:$8 sps:$4 sm:$0xff]  }
  0xca   : > { %4854 = vmatprep.subr.bf16.mxu0 %v6264_v21  ;;  %v6348_v20 = vld [vmem:[%s7010_s22 + $0xdc4] ss:$8 sps:$4 sm:$0xff]   ;;  %v6343_v21 = vld [vmem:[%s7010_s22 + $0x3c0] ss:$8 sps:$4 sm:$0xff]  }
  0xcc   : > { %4445 = vmatpush1.bf16.msra.mxu1 %v6259_v33  ;;  %v6346_v33 = vld [vmem:[%s7010_s22 + $0xdc0] ss:$8 sps:$4 sm:$0xff]  }
  0xcd   : > { %4855 = vmatpush1.bf16.msra.mxu0 %v6262_v34  ;;  %4446 = vmatprep.subr.bf16.mxu1 %v6267_v35  ;;  %v6351_v34 = vld [vmem:[%s7010_s22 + $0x3d4] ss:$8 sps:$4 sm:$0xff]  }
  0xce   : > { %4856 = vmatprep.subr.bf16.mxu0 %v6270_v36  ;;  %v6354_v35 = vld [vmem:[%s7010_s22 + $0xdd4] ss:$8 sps:$4 sm:$0xff]   ;;  %v6349_v36 = vld [vmem:[%s7010_s22 + $0x3d0] ss:$8 sps:$4 sm:$0xff]  }
  0xd0   : > { %4447 = vmatpush1.bf16.msra.mxu1 %v6265_v38  ;;  %v6352_v38 = vld [vmem:[%s7010_s22 + $0xdd0] ss:$8 sps:$4 sm:$0xff]  }
  0xd1   : > { %4857 = vmatpush1.bf16.msra.mxu0 %v6268_v39  ;;  %4457 = vmatprep.subr.bf16.mxu1 %v6273_v40  ;;  %v6357_v39 = vld [vmem:[%s7010_s22 + $0x3e4] ss:$8 sps:$4 sm:$0xff]  }
  0xd2   : > { %4867 = vmatprep.subr.bf16.mxu0 %v6276_v41  ;;  %v6360_v40 = vld [vmem:[%s7010_s22 + $0xde4] ss:$8 sps:$4 sm:$0xff]   ;;  %v996_v41 = vcombine.high %v7193_v37, %v7193_v37  ;;  %v6361_v37 = vld [vmem:[%s7010_s22 + $0x3f0] ss:$8 sps:$4 sm:$0xff]  }
  0xd3   : > { %4449 = vmatmul.mubr.bf16.vlgmr.msra.gmra.mrb[0].mxu1 %v7272_v44 }
  0xd4   : > { %4859 = vmatmul.mubr.bf16.vlgmr.msra.gmra.mrb[0].mxu0 %v7276_v45  ;;  %4458 = vmatpush1.bf16.msra.mxu1 %v6271_v42  ;;  %v7344_v42 = vld.sshfl [vmem:[%s7872_s0 + $0x8] sm:$0xff pattern:$0x75316420] }
  0xd5   : > { %4868 = vmatpush1.bf16.msra.mxu0 %v6274_v46  ;;  %4459 = vmatprep.subr.bf16.mxu1 %v6279_v47  ;;  %v6355_v46 = vld [vmem:[%s7010_s22 + $0x3e0] ss:$8 sps:$4 sm:$0xff]  }
  0xd6   : > { %4869 = vmatprep.subr.bf16.mxu0 %v6282_v48  ;;  %4489 = vmatprep.mubr.bf16.mxu1 %v897_v49  ;;  %v6358_v47 = vld [vmem:[%s7010_s22 + $0xde0] ss:$8 sps:$4 sm:$0xff]   ;;  %v6363_v48 = vld [vmem:[%s7010_s22 + $0x3f4] ss:$8 sps:$4 sm:$0xff]  }
  0xd7   : > { %4899 = vmatprep.mubr.bf16.mxu0 %v1043_v30  ;;  %v6366_v49 = vld [vmem:[%s7010_s22 + $0xdf4] ss:$8 sps:$4 sm:$0xff]   ;;  %v7351_v30 = vrot.slane %v996_v41, %v7005_v8  ;;  %v6436_v41 = vld [vmem:[%s7010_s22 + $0xeb0] ss:$8 sps:$4 sm:$0xff]  }
  0xd8   : > { %4460 = vmatpush1.bf16.msra.mxu1 %v6277_v27  ;;  %v6364_v27 = vld [vmem:[%s7010_s22 + $0xdf0] ss:$8 sps:$4 sm:$0xff]  }
  0xd9   : > { %4870 = vmatpush1.bf16.msra.mxu0 %v6280_v50  ;;  %4461 = vmatprep.subr.bf16.mxu1 %v6285_v51  ;;  %v6369_v50 = vld [vmem:[%s7010_s22 + $0x404] ss:$8 sps:$4 sm:$0xff]  }
  0xda   : > { %4871 = vmatprep.subr.bf16.mxu0 %v6288_v26  ;;  %v6372_v51 = vld [vmem:[%s7010_s22 + $0xe04] ss:$8 sps:$4 sm:$0xff]   ;;  %v913_v26 = vcombine.high %v7344_v42, %v7344_v42 }
  0xdc   : > { %4462 = vmatpush1.bf16.msra.mxu1 %v6283_v43  ;;  %v1012_v43 = vcombine.high %v7351_v30, %v7351_v30 }
  0xdd   : > { %4872 = vmatpush1.bf16.msra.mxu0 %v6286_v52  ;;  %4463 = vmatprep.subr.bf16.mxu1 %v6291_v53  ;;  %v895_v52 = vcombine.high %v7272_v44, %v7272_v44  ;;  %v1041_v53 = vcombine.high %v7276_v45, %v7276_v45  ;;  %v6373_v45 = vld [vmem:[%s7010_s22 + $0x410] ss:$8 sps:$4 sm:$0xff]  }
  0xde   : > { %4873 = vmatprep.subr.bf16.mxu0 %v6294_v54  ;;  %v6367_v54 = vld [vmem:[%s7010_s22 + $0x400] ss:$8 sps:$4 sm:$0xff]   ;;  %v7373_v44 = vrot.slane %v1012_v43, %v7005_v8  ;;  %v6456_v43 = vld [vmem:[%s7010_s22 + $0xee4] ss:$8 sps:$4 sm:$0xff]  }
  0xe0   : > { %4464 = vmatpush1.bf16.msra.mxu1 %v6289_v55  ;;  %v6370_v55 = vld [vmem:[%s7010_s22 + $0xe00] ss:$8 sps:$4 sm:$0xff]  }
  0xe1   : > { %4874 = vmatpush1.bf16.msra.mxu0 %v6292_v56  ;;  %4465 = vmatprep.subr.bf16.mxu1 %v6297_v57  ;;  %v6375_v56 = vld [vmem:[%s7010_s22 + $0x414] ss:$8 sps:$4 sm:$0xff]  }
  0xe2   : > { %4875 = vmatprep.subr.bf16.mxu0 %v6300_v58  ;;  %v6378_v57 = vld [vmem:[%s7010_s22 + $0xe14] ss:$8 sps:$4 sm:$0xff]   ;;  %v7370_v58 = vrot.slane %v913_v26, %v7005_v8  ;;  %v6453_v26 = vld [vmem:[%s7010_s22 + $0x4e4] ss:$8 sps:$4 sm:$0xff]  }
  0xe4   : > { %4466 = vmatpush1.bf16.msra.mxu1 %v6295_v59  ;;  %v6376_v59 = vld [vmem:[%s7010_s22 + $0xe10] ss:$8 sps:$4 sm:$0xff]  }
  0xe5   : > { %4876 = vmatpush1.bf16.msra.mxu0 %v6298_v60  ;;  %4467 = vmatprep.subr.bf16.mxu1 %v6303_v61  ;;  %v6381_v60 = vld [vmem:[%s7010_s22 + $0x424] ss:$8 sps:$4 sm:$0xff]  }
  0xe6   : > { %4877 = vmatprep.subr.bf16.mxu0 %v6306_v62  ;;  %v6384_v61 = vld [vmem:[%s7010_s22 + $0xe24] ss:$8 sps:$4 sm:$0xff]   ;;  %v6379_v62 = vld [vmem:[%s7010_s22 + $0x420] ss:$8 sps:$4 sm:$0xff]  }
  0xe8   : > { %4468 = vmatpush1.bf16.msra.mxu1 %v6301_v63  ;;  %v6382_v63 = vld [vmem:[%s7010_s22 + $0xe20] ss:$8 sps:$4 sm:$0xff]  }
  0xe9   : > { %4878 = vmatpush1.bf16.msra.mxu0 %v6304_v0  ;;  %4469 = vmatprep.subr.bf16.mxu1 %v6309_v1  ;;  %v6387_v0 = vld [vmem:[%s7010_s22 + $0x434] ss:$8 sps:$4 sm:$0xff]  }
  0xea   : > { %4879 = vmatprep.subr.bf16.mxu0 %v6312_v2  ;;  %v6390_v1 = vld [vmem:[%s7010_s22 + $0xe34] ss:$8 sps:$4 sm:$0xff]   ;;  %v6385_v2 = vld [vmem:[%s7010_s22 + $0x430] ss:$8 sps:$4 sm:$0xff]  }
  0xec   : > { %4470 = vmatpush1.bf16.msra.mxu1 %v6307_v3  ;;  %v6388_v3 = vld [vmem:[%s7010_s22 + $0xe30] ss:$8 sps:$4 sm:$0xff]  }
  0xed   : > { %4880 = vmatpush1.bf16.msra.mxu0 %v6310_v5  ;;  %4471 = vmatprep.subr.bf16.mxu1 %v6315_v6  ;;  %v6393_v5 = vld [vmem:[%s7010_s22 + $0x444] ss:$8 sps:$4 sm:$0xff]  }
  0xee   : > { %4881 = vmatprep.subr.bf16.mxu0 %v6318_v9  ;;  %v6396_v6 = vld [vmem:[%s7010_s22 + $0xe44] ss:$8 sps:$4 sm:$0xff]   ;;  %v6391_v9 = vld [vmem:[%s7010_s22 + $0x440] ss:$8 sps:$4 sm:$0xff]  }
  0xf0   : > { %4472 = vmatpush1.bf16.msra.mxu1 %v6313_v12  ;;  %v6394_v12 = vld [vmem:[%s7010_s22 + $0xe40] ss:$8 sps:$4 sm:$0xff]  }
  0xf1   : > { %4882 = vmatpush1.bf16.msra.mxu0 %v6316_v13  ;;  %4473 = vmatprep.subr.bf16.mxu1 %v6321_v14  ;;  %v6399_v13 = vld [vmem:[%s7010_s22 + $0x454] ss:$8 sps:$4 sm:$0xff]  }
  0xf2   : > { %4883 = vmatprep.subr.bf16.mxu0 %v6324_v15  ;;  %v6402_v14 = vld [vmem:[%s7010_s22 + $0xe54] ss:$8 sps:$4 sm:$0xff]   ;;  %v6397_v15 = vld [vmem:[%s7010_s22 + $0x450] ss:$8 sps:$4 sm:$0xff]  }
  0xf4   : > { %4474 = vmatpush1.bf16.msra.mxu1 %v6319_v16  ;;  %v6400_v16 = vld [vmem:[%s7010_s22 + $0xe50] ss:$8 sps:$4 sm:$0xff]  }
  0xf5   : > { %4884 = vmatpush1.bf16.msra.mxu0 %v6322_v17  ;;  %4475 = vmatprep.subr.bf16.mxu1 %v6327_v18  ;;  %v6405_v17 = vld [vmem:[%s7010_s22 + $0x464] ss:$8 sps:$4 sm:$0xff]  }
  0xf6   : > { %4885 = vmatprep.subr.bf16.mxu0 %v6330_v19  ;;  %v6408_v18 = vld [vmem:[%s7010_s22 + $0xe64] ss:$8 sps:$4 sm:$0xff]   ;;  %v6403_v19 = vld [vmem:[%s7010_s22 + $0x460] ss:$8 sps:$4 sm:$0xff]  }
  0xf8   : > { %4476 = vmatpush1.bf16.msra.mxu1 %v6325_v22  ;;  %v6406_v22 = vld [vmem:[%s7010_s22 + $0xe60] ss:$8 sps:$4 sm:$0xff]  }
  0xf9   : > { %4886 = vmatpush1.bf16.msra.mxu0 %v6328_v23  ;;  %4477 = vmatprep.subr.bf16.mxu1 %v6333_v24  ;;  %v6411_v23 = vld [vmem:[%s7010_s22 + $0x474] ss:$8 sps:$4 sm:$0xff]  }
  0xfa   : > { %4887 = vmatprep.subr.bf16.mxu0 %v6336_v25  ;;  %v6414_v24 = vld [vmem:[%s7010_s22 + $0xe74] ss:$8 sps:$4 sm:$0xff]   ;;  %v6409_v25 = vld [vmem:[%s7010_s22 + $0x470] ss:$8 sps:$4 sm:$0xff]  }
  0xfc   : > { %4478 = vmatpush1.bf16.msra.mxu1 %v6331_v28  ;;  %v6412_v28 = vld [vmem:[%s7010_s22 + $0xe70] ss:$8 sps:$4 sm:$0xff]  }
  0xfd   : > { %4888 = vmatpush1.bf16.msra.mxu0 %v6334_v29  ;;  %4479 = vmatprep.subr.bf16.mxu1 %v6339_v10  ;;  %v6417_v29 = vld [vmem:[%s7010_s22 + $0x484] ss:$8 sps:$4 sm:$0xff]  }
  0xfe   : > { %4889 = vmatprep.subr.bf16.mxu0 %v6342_v11  ;;  %v6420_v10 = vld [vmem:[%s7010_s22 + $0xe84] ss:$8 sps:$4 sm:$0xff]   ;;  %v6415_v11 = vld [vmem:[%s7010_s22 + $0x480] ss:$8 sps:$4 sm:$0xff]  }
 0x100   : > { %4480 = vmatpush1.bf16.msra.mxu1 %v6337_v7  ;;  %v6418_v7 = vld [vmem:[%s7010_s22 + $0xe80] ss:$8 sps:$4 sm:$0xff]  }
 0x101   : > { %4890 = vmatpush1.bf16.msra.mxu0 %v6340_v31  ;;  %4481 = vmatprep.subr.bf16.mxu1 %v6345_v32  ;;  %v6423_v31 = vld [vmem:[%s7010_s22 + $0x494] ss:$8 sps:$4 sm:$0xff]  }
 0x102   : > { %4891 = vmatprep.subr.bf16.mxu0 %v6348_v20  ;;  %v6426_v32 = vld [vmem:[%s7010_s22 + $0xe94] ss:$8 sps:$4 sm:$0xff]   ;;  %v6421_v20 = vld [vmem:[%s7010_s22 + $0x490] ss:$8 sps:$4 sm:$0xff]  }
 0x104   : > { %4482 = vmatpush1.bf16.msra.mxu1 %v6343_v21  ;;  %v6424_v21 = vld [vmem:[%s7010_s22 + $0xe90] ss:$8 sps:$4 sm:$0xff]  }
 0x105   : > { %4892 = vmatpush1.bf16.msra.mxu0 %v6346_v33  ;;  %4483 = vmatprep.subr.bf16.mxu1 %v6351_v34  ;;  %v6429_v33 = vld [vmem:[%s7010_s22 + $0x4a4] ss:$8 sps:$4 sm:$0xff]  }
 0x106   : > { %4893 = vmatprep.subr.bf16.mxu0 %v6354_v35  ;;  %v6432_v34 = vld [vmem:[%s7010_s22 + $0xea4] ss:$8 sps:$4 sm:$0xff]   ;;  %v6427_v35 = vld [vmem:[%s7010_s22 + $0x4a0] ss:$8 sps:$4 sm:$0xff]  }
 0x108   : > { %4484 = vmatpush1.bf16.msra.mxu1 %v6349_v36  ;;  %v6430_v36 = vld [vmem:[%s7010_s22 + $0xea0] ss:$8 sps:$4 sm:$0xff]  }
 0x109   : > { %4894 = vmatpush1.bf16.msra.mxu0 %v6352_v38  ;;  %4485 = vmatprep.subr.bf16.mxu1 %v6357_v39  ;;  %v6435_v38 = vld [vmem:[%s7010_s22 + $0x4b4] ss:$8 sps:$4 sm:$0xff]  }
 0x10a   : > { %4895 = vmatprep.subr.bf16.mxu0 %v6360_v40  ;;  %v6438_v39 = vld [vmem:[%s7010_s22 + $0xeb4] ss:$8 sps:$4 sm:$0xff]   ;;  %v6433_v40 = vld [vmem:[%s7010_s22 + $0x4b0] ss:$8 sps:$4 sm:$0xff]  }
 0x10c   : > { %4486 = vmatpush1.bf16.msra.mxu1 %v6355_v46  ;;  %v6441_v46 = vld [vmem:[%s7010_s22 + $0x4c4] ss:$8 sps:$4 sm:$0xff]  }
 0x10d   : > { %4896 = vmatpush1.bf16.msra.mxu0 %v6358_v47  ;;  %4487 = vmatprep.subr.bf16.mxu1 %v6363_v48  ;;  %v6444_v47 = vld [vmem:[%s7010_s22 + $0xec4] ss:$8 sps:$4 sm:$0xff]   ;;  %v6439_v48 = vld [vmem:[%s7010_s22 + $0x4c0] ss:$8 sps:$4 sm:$0xff]  }
 0x10e   : > { %4897 = vmatprep.subr.bf16.mxu0 %v6366_v49  ;;  %v6442_v49 = vld [vmem:[%s7010_s22 + $0xec0] ss:$8 sps:$4 sm:$0xff]  }
 0x110   : > { %4488 = vmatpush1.bf16.msra.mxu1 %v6361_v37  ;;  %v6447_v37 = vld [vmem:[%s7010_s22 + $0x4d4] ss:$8 sps:$4 sm:$0xff]  }
 0x111   : > { %4898 = vmatpush1.bf16.msra.mxu0 %v6364_v27  ;;  %4498 = vmatprep.subr.bf16.mxu1 %v6369_v50  ;;  %v6450_v27 = vld [vmem:[%s7010_s22 + $0xed4] ss:$8 sps:$4 sm:$0xff]   ;;  %v6445_v50 = vld [vmem:[%s7010_s22 + $0x4d0] ss:$8 sps:$4 sm:$0xff]  }
 0x112   : > { %4908 = vmatprep.subr.bf16.mxu0 %v6372_v51  ;;  %v6448_v51 = vld [vmem:[%s7010_s22 + $0xed0] ss:$8 sps:$4 sm:$0xff]  }
 0x113   : > { %4490 = vmatmul.mubr.bf16.vlgmr.msra.gmra.mrb[0].mxu1 %v895_v52  ;;  %v6451_v52 = vld [vmem:[%s7010_s22 + $0x4e0] ss:$8 sps:$4 sm:$0xff]  }
 0x114   : > { %4900 = vmatmul.mubr.bf16.vlgmr.msra.gmra.mrb[0].mxu0 %v1041_v53  ;;  %4499 = vmatpush1.bf16.msra.mxu1 %v6367_v54  ;;  %v6454_v53 = vld [vmem:[%s7010_s22 + $0xee0] ss:$8 sps:$4 sm:$0xff]   ;;  %v6459_v54 = vld [vmem:[%s7010_s22 + $0x4f4] ss:$8 sps:$4 sm:$0xff]  }
 0x115   : > { %4909 = vmatpush1.bf16.msra.mxu0 %v6370_v55  ;;  %4500 = vmatprep.subr.bf16.mxu1 %v6375_v56  ;;  %v6462_v55 = vld [vmem:[%s7010_s22 + $0xef4] ss:$8 sps:$4 sm:$0xff]   ;;  %v6457_v56 = vld [vmem:[%s7010_s22 + $0x4f0] ss:$8 sps:$4 sm:$0xff]  }
 0x116   : > { %4910 = vmatprep.subr.bf16.mxu0 %v6378_v57  ;;  %4530 = vmatprep.mubr.bf16.mxu1 %v7370_v58  ;;  %v6460_v57 = vld [vmem:[%s7010_s22 + $0xef0] ss:$8 sps:$4 sm:$0xff]  }
 0x117   : > { %4940 = vmatprep.mubr.bf16.mxu0 %v7373_v44 }
 0x118   : > { %4501 = vmatpush1.bf16.msra.mxu1 %v6373_v45  ;;  %v6465_v45 = vld [vmem:[%s7010_s22 + $0x504] ss:$8 sps:$4 sm:$0xff]  }
 0x119   : > { %4911 = vmatpush1.bf16.msra.mxu0 %v6376_v59  ;;  %4502 = vmatprep.subr.bf16.mxu1 %v6381_v60  ;;  %v6469_v59 = vld [vmem:[%s7010_s22 + $0xf04] ss:$8 sps:$4 sm:$0xff]   ;;  %v7439_v60 = vrot.slane %v7344_v42, %v7005_v8  ;;  %v945_v42 = vcombine.high %v7370_v58, %v7370_v58 }
 0x11a   : > { %4912 = vmatprep.subr.bf16.mxu0 %v6384_v61  ;;  %v7443_v61 = vrot.slane %v7351_v30, %v7005_v8  ;;  %v6470_v30 = vld [vmem:[%s7010_s22 + $0x510] ss:$8 sps:$4 sm:$0xff]   ;;  %v6478_v58 = vld [vmem:[%s7010_s22 + $0x524] ss:$8 sps:$4 sm:$0xff]  }
 0x11c   : > { %4503 = vmatpush1.bf16.msra.mxu1 %v6379_v62  ;;  %v6463_v62 = vld [vmem:[%s7010_s22 + $0x500] ss:$8 sps:$4 sm:$0xff]  }
 0x11d   : > { %4913 = vmatpush1.bf16.msra.mxu0 %v6382_v63  ;;  %4504 = vmatprep.subr.bf16.mxu1 %v6387_v0  ;;  %v6467_v63 = vld [vmem:[%s7010_s22 + $0xf00] ss:$8 sps:$4 sm:$0xff]   ;;  %v6472_v0 = vld [vmem:[%s7010_s22 + $0x514] ss:$8 sps:$4 sm:$0xff]  }
 0x11e   : > { %4914 = vmatprep.subr.bf16.mxu0 %v6390_v1  ;;  %v6475_v1 = vld [vmem:[%s7010_s22 + $0xf14] ss:$8 sps:$4 sm:$0xff]  }
 0x120   : > { %4505 = vmatpush1.bf16.msra.mxu1 %v6385_v2  ;;  %v1044_v2 = vcombine.high %v7373_v44, %v7373_v44  ;;  %v6476_v44 = vld [vmem:[%s7010_s22 + $0x520] ss:$8 sps:$4 sm:$0xff]  }
 0x121   : > { %4915 = vmatpush1.bf16.msra.mxu0 %v6388_v3  ;;  %4506 = vmatprep.subr.bf16.mxu1 %v6393_v5  ;;  %v6473_v3 = vld [vmem:[%s7010_s22 + $0xf10] ss:$8 sps:$4 sm:$0xff]   ;;  %v6481_v5 = vld [vmem:[%s7010_s22 + $0xf24] ss:$8 sps:$4 sm:$0xff]  }
 0x122   : > { %4916 = vmatprep.subr.bf16.mxu0 %v6396_v6  ;;  %v6479_v6 = vld [vmem:[%s7010_s22 + $0xf20] ss:$8 sps:$4 sm:$0xff]  }
 0x124   : > { %4507 = vmatpush1.bf16.msra.mxu1 %v6391_v9  ;;  %v6484_v9 = vld [vmem:[%s7010_s22 + $0x534] ss:$8 sps:$4 sm:$0xff]  }
 0x125   : > { %4917 = vmatpush1.bf16.msra.mxu0 %v6394_v12  ;;  %4508 = vmatprep.subr.bf16.mxu1 %v6399_v13  ;;  %v6487_v12 = vld [vmem:[%s7010_s22 + $0xf34] ss:$8 sps:$4 sm:$0xff]   ;;  %v6482_v13 = vld [vmem:[%s7010_s22 + $0x530] ss:$8 sps:$4 sm:$0xff]  }
 0x126   : > { %4918 = vmatprep.subr.bf16.mxu0 %v6402_v14  ;;  %v6485_v14 = vld [vmem:[%s7010_s22 + $0xf30] ss:$8 sps:$4 sm:$0xff]  }
 0x128   : > { %4509 = vmatpush1.bf16.msra.mxu1 %v6397_v15  ;;  %v6490_v15 = vld [vmem:[%s7010_s22 + $0x544] ss:$8 sps:$4 sm:$0xff]  }
 0x129   : > { %4919 = vmatpush1.bf16.msra.mxu0 %v6400_v16  ;;  %4510 = vmatprep.subr.bf16.mxu1 %v6405_v17  ;;  %v6493_v16 = vld [vmem:[%s7010_s22 + $0xf44] ss:$8 sps:$4 sm:$0xff]   ;;  %v6488_v17 = vld [vmem:[%s7010_s22 + $0x540] ss:$8 sps:$4 sm:$0xff]  }
 0x12a   : > { %4920 = vmatprep.subr.bf16.mxu0 %v6408_v18  ;;  %v6491_v18 = vld [vmem:[%s7010_s22 + $0xf40] ss:$8 sps:$4 sm:$0xff]  }
 0x12c   : > { %4511 = vmatpush1.bf16.msra.mxu1 %v6403_v19  ;;  %v6496_v19 = vld [vmem:[%s7010_s22 + $0x554] ss:$8 sps:$4 sm:$0xff]  }
 0x12d   : > { %4921 = vmatpush1.bf16.msra.mxu0 %v6406_v22  ;;  %4512 = vmatprep.subr.bf16.mxu1 %v6411_v23  ;;  %v6499_v22 = vld [vmem:[%s7010_s22 + $0xf54] ss:$8 sps:$4 sm:$0xff]   ;;  %v6494_v23 = vld [vmem:[%s7010_s22 + $0x550] ss:$8 sps:$4 sm:$0xff]  }
 0x12e   : > { %4922 = vmatprep.subr.bf16.mxu0 %v6414_v24  ;;  %v6497_v24 = vld [vmem:[%s7010_s22 + $0xf50] ss:$8 sps:$4 sm:$0xff]  }
 0x130   : > { %4513 = vmatpush1.bf16.msra.mxu1 %v6409_v25  ;;  %v6502_v25 = vld [vmem:[%s7010_s22 + $0x564] ss:$8 sps:$4 sm:$0xff]  }
 0x131   : > { %4923 = vmatpush1.bf16.msra.mxu0 %v6412_v28  ;;  %4514 = vmatprep.subr.bf16.mxu1 %v6417_v29  ;;  %v6505_v28 = vld [vmem:[%s7010_s22 + $0xf64] ss:$8 sps:$4 sm:$0xff]   ;;  %v6500_v29 = vld [vmem:[%s7010_s22 + $0x560] ss:$8 sps:$4 sm:$0xff]  }
 0x132   : > { %4924 = vmatprep.subr.bf16.mxu0 %v6420_v10  ;;  %v6503_v10 = vld [vmem:[%s7010_s22 + $0xf60] ss:$8 sps:$4 sm:$0xff]  }
 0x134   : > { %4515 = vmatpush1.bf16.msra.mxu1 %v6415_v11  ;;  %v6508_v11 = vld [vmem:[%s7010_s22 + $0x574] ss:$8 sps:$4 sm:$0xff]  }
 0x135   : > { %4925 = vmatpush1.bf16.msra.mxu0 %v6418_v7  ;;  %4516 = vmatprep.subr.bf16.mxu1 %v6423_v31  ;;  %v6511_v7 = vld [vmem:[%s7010_s22 + $0xf74] ss:$8 sps:$4 sm:$0xff]   ;;  %v6506_v31 = vld [vmem:[%s7010_s22 + $0x570] ss:$8 sps:$4 sm:$0xff]  }
 0x136   : > { %4926 = vmatprep.subr.bf16.mxu0 %v6426_v32  ;;  %v6509_v32 = vld [vmem:[%s7010_s22 + $0xf70] ss:$8 sps:$4 sm:$0xff]  }
 0x138   : > { %4517 = vmatpush1.bf16.msra.mxu1 %v6421_v20  ;;  %v6514_v20 = vld [vmem:[%s7010_s22 + $0x584] ss:$8 sps:$4 sm:$0xff]  }
 0x139   : > { %4927 = vmatpush1.bf16.msra.mxu0 %v6424_v21  ;;  %4518 = vmatprep.subr.bf16.mxu1 %v6429_v33  ;;  %v6517_v21 = vld [vmem:[%s7010_s22 + $0xf84] ss:$8 sps:$4 sm:$0xff]   ;;  %v6512_v33 = vld [vmem:[%s7010_s22 + $0x580] ss:$8 sps:$4 sm:$0xff]  }
 0x13a   : > { %4928 = vmatprep.subr.bf16.mxu0 %v6432_v34  ;;  %v6515_v34 = vld [vmem:[%s7010_s22 + $0xf80] ss:$8 sps:$4 sm:$0xff]  }
 0x13c   : > { %4519 = vmatpush1.bf16.msra.mxu1 %v6427_v35  ;;  %v6520_v35 = vld [vmem:[%s7010_s22 + $0x594] ss:$8 sps:$4 sm:$0xff]  }
 0x13d   : > { %4929 = vmatpush1.bf16.msra.mxu0 %v6430_v36  ;;  %4520 = vmatprep.subr.bf16.mxu1 %v6435_v38  ;;  %v6523_v36 = vld [vmem:[%s7010_s22 + $0xf94] ss:$8 sps:$4 sm:$0xff]   ;;  %v6518_v38 = vld [vmem:[%s7010_s22 + $0x590] ss:$8 sps:$4 sm:$0xff]  }
 0x13e   : > { %4930 = vmatprep.subr.bf16.mxu0 %v6438_v39  ;;  %v6521_v39 = vld [vmem:[%s7010_s22 + $0xf90] ss:$8 sps:$4 sm:$0xff]  }
 0x140   : > { %4521 = vmatpush1.bf16.msra.mxu1 %v6433_v40  ;;  %v6526_v40 = vld [vmem:[%s7010_s22 + $0x5a4] ss:$8 sps:$4 sm:$0xff]  }
 0x141   : > { %4931 = vmatpush1.bf16.msra.mxu0 %v6436_v41  ;;  %4522 = vmatprep.subr.bf16.mxu1 %v6441_v46  ;;  %v6529_v41 = vld [vmem:[%s7010_s22 + $0xfa4] ss:$8 sps:$4 sm:$0xff]   ;;  %v6524_v46 = vld [vmem:[%s7010_s22 + $0x5a0] ss:$8 sps:$4 sm:$0xff]  }
 0x142   : > { %4932 = vmatprep.subr.bf16.mxu0 %v6444_v47  ;;  %v6527_v47 = vld [vmem:[%s7010_s22 + $0xfa0] ss:$8 sps:$4 sm:$0xff]  }
 0x144   : > { %4523 = vmatpush1.bf16.msra.mxu1 %v6439_v48  ;;  %v6532_v48 = vld [vmem:[%s7010_s22 + $0x5b4] ss:$8 sps:$4 sm:$0xff]  }
 0x145   : > { %4933 = vmatpush1.bf16.msra.mxu0 %v6442_v49  ;;  %4524 = vmatprep.subr.bf16.mxu1 %v6447_v37  ;;  %v6535_v49 = vld [vmem:[%s7010_s22 + $0xfb4] ss:$8 sps:$4 sm:$0xff]   ;;  %v6530_v37 = vld [vmem:[%s7010_s22 + $0x5b0] ss:$8 sps:$4 sm:$0xff]  }
 0x146   : > { %4934 = vmatprep.subr.bf16.mxu0 %v6450_v27  ;;  %v6533_v27 = vld [vmem:[%s7010_s22 + $0xfb0] ss:$8 sps:$4 sm:$0xff]  }
 0x148   : > { %4525 = vmatpush1.bf16.msra.mxu1 %v6445_v50  ;;  %v6538_v50 = vld [vmem:[%s7010_s22 + $0x5c4] ss:$8 sps:$4 sm:$0xff]  }
 0x149   : > { %4935 = vmatpush1.bf16.msra.mxu0 %v6448_v51  ;;  %4526 = vmatprep.subr.bf16.mxu1 %v6453_v26  ;;  %v6541_v51 = vld [vmem:[%s7010_s22 + $0xfc4] ss:$8 sps:$4 sm:$0xff]   ;;  %v6536_v26 = vld [vmem:[%s7010_s22 + $0x5c0] ss:$8 sps:$4 sm:$0xff]  }
 0x14a   : > { %4936 = vmatprep.subr.bf16.mxu0 %v6456_v43  ;;  %v6539_v43 = vld [vmem:[%s7010_s22 + $0xfc0] ss:$8 sps:$4 sm:$0xff]  }
 0x14c   : > { %4527 = vmatpush1.bf16.msra.mxu1 %v6451_v52  ;;  %v6544_v52 = vld [vmem:[%s7010_s22 + $0x5d4] ss:$8 sps:$4 sm:$0xff]  }
 0x14d   : > { %4937 = vmatpush1.bf16.msra.mxu0 %v6454_v53  ;;  %4528 = vmatprep.subr.bf16.mxu1 %v6459_v54  ;;  %v6547_v53 = vld [vmem:[%s7010_s22 + $0xfd4] ss:$8 sps:$4 sm:$0xff]   ;;  %v6542_v54 = vld [vmem:[%s7010_s22 + $0x5d0] ss:$8 sps:$4 sm:$0xff]  }
 0x14e   : > { %4938 = vmatprep.subr.bf16.mxu0 %v6462_v55  ;;  %v6545_v55 = vld [vmem:[%s7010_s22 + $0xfd0] ss:$8 sps:$4 sm:$0xff]  }
 0x150   : > { %4529 = vmatpush1.bf16.msra.mxu1 %v6457_v56  ;;  %v6550_v56 = vld [vmem:[%s7010_s22 + $0x5e4] ss:$8 sps:$4 sm:$0xff]  }
 0x151   : > { %4939 = vmatpush1.bf16.msra.mxu0 %v6460_v57  ;;  %4539 = vmatprep.subr.bf16.mxu1 %v6465_v45  ;;  %v6553_v57 = vld [vmem:[%s7010_s22 + $0xfe4] ss:$8 sps:$4 sm:$0xff]  }
 0x152   : > { %4949 = vmatprep.subr.bf16.mxu0 %v6469_v59  ;;  %v7510_v45 = vld [vmem:[%s7872_s0 + $0x20] sm:$0xff]  ;;  %v6946_v59 = vld [vmem:[%s7872_s0 + $0x8] sm:$0xff] }
 0x153   : > { %4531 = vmatmul.mubr.bf16.vlgmr.msra.gmra.mrb[0].mxu1 %v7439_v60 }
 0x154   : > { %4941 = vmatmul.mubr.bf16.vlgmr.msra.gmra.mrb[0].mxu0 %v7443_v61  ;;  %4540 = vmatpush1.bf16.msra.mxu1 %v6463_v62  ;;  %v898_v62 = vcombine.high %v6946_v59, %v6946_v59  ;;  %v6631_v59 = vld [vmem:[%s7010_s22 + $0x10b4] ss:$8 sps:$4 sm:$0xff]  }
 0x155   : > { %4950 = vmatpush1.bf16.msra.mxu0 %v6467_v63  ;;  %4541 = vmatprep.subr.bf16.mxu1 %v6472_v0  ;;  %v6548_v63 = vld [vmem:[%s7010_s22 + $0x5e0] ss:$8 sps:$4 sm:$0xff]  }
 0x156   : > { %4951 = vmatprep.subr.bf16.mxu0 %v6475_v1  ;;  %4571 = vmatprep.mubr.bf16.mxu1 %v945_v42  ;;  %v6551_v0 = vld [vmem:[%s7010_s22 + $0xfe0] ss:$8 sps:$4 sm:$0xff]   ;;  %v6556_v1 = vld [vmem:[%s7010_s22 + $0x5f4] ss:$8 sps:$4 sm:$0xff]  }
 0x157   : > { %4981 = vmatprep.mubr.bf16.mxu0 %v1044_v2  ;;  %v6559_v42 = vld [vmem:[%s7010_s22 + $0xff4] ss:$8 sps:$4 sm:$0xff]   ;;  %v7520_v2 = vrot.slane %v898_v62, %v7005_v8  ;;  %v6626_v62 = vld [vmem:[%s7010_s22 + $0x6b0] ss:$8 sps:$4 sm:$0xff]  }
 0x158   : > { %4542 = vmatpush1.bf16.msra.mxu1 %v6470_v30  ;;  %v7524_v30 = vrot.slane %v7510_v45, %v7005_v8 }
 0x159   : > { %4952 = vmatpush1.bf16.msra.mxu0 %v6473_v3  ;;  %4543 = vmatprep.subr.bf16.mxu1 %v6478_v58  ;;  %v6554_v3 = vld [vmem:[%s7010_s22 + $0x5f0] ss:$8 sps:$4 sm:$0xff]  }
 0x15a   : > { %4953 = vmatprep.subr.bf16.mxu0 %v6481_v5  ;;  %v6557_v58 = vld [vmem:[%s7010_s22 + $0xff0] ss:$8 sps:$4 sm:$0xff]   ;;  %v6562_v5 = vld [vmem:[%s7010_s22 + $0x604] ss:$8 sps:$4 sm:$0xff]  }
 0x15c   : > { %4544 = vmatpush1.bf16.msra.mxu1 %v6476_v44  ;;  %v6565_v44 = vld [vmem:[%s7010_s22 + $0x1004] ss:$8 sps:$4 sm:$0xff]  }
 0x15d   : > { %4954 = vmatpush1.bf16.msra.mxu0 %v6479_v6  ;;  %4545 = vmatprep.subr.bf16.mxu1 %v6484_v9  ;;  %v914_v6 = vcombine.high %v7520_v2, %v7520_v2  ;;  %v1060_v9 = vcombine.high %v7524_v30, %v7524_v30 }
 0x15e   : > { %4955 = vmatprep.subr.bf16.mxu0 %v6487_v12  ;;  %v943_v12 = vcombine.high %v7439_v60, %v7439_v60 }
 0x15f   : > { %v7546_v60 = vrot.slane %v1060_v9, %v7005_v8  ;;  %v6646_v9 = vld [vmem:[%s7010_s22 + $0x6e4] ss:$8 sps:$4 sm:$0xff]  }
 0x160   : > { %4546 = vmatpush1.bf16.msra.mxu1 %v6482_v13  ;;  %v1042_v13 = vcombine.high %v7443_v61, %v7443_v61  ;;  %v6566_v61 = vld [vmem:[%s7010_s22 + $0x610] ss:$8 sps:$4 sm:$0xff]  }
 0x161   : > { %4956 = vmatpush1.bf16.msra.mxu0 %v6485_v14  ;;  %4547 = vmatprep.subr.bf16.mxu1 %v6490_v15  ;;  %v6560_v14 = vld [vmem:[%s7010_s22 + $0x600] ss:$8 sps:$4 sm:$0xff]  }
 0x162   : > { %4957 = vmatprep.subr.bf16.mxu0 %v6493_v16  ;;  %v6563_v15 = vld [vmem:[%s7010_s22 + $0x1000] ss:$8 sps:$4 sm:$0xff]   ;;  %v6568_v16 = vld [vmem:[%s7010_s22 + $0x614] ss:$8 sps:$4 sm:$0xff]  }
 0x164   : > { %4548 = vmatpush1.bf16.msra.mxu1 %v6488_v17  ;;  %v6571_v17 = vld [vmem:[%s7010_s22 + $0x1014] ss:$8 sps:$4 sm:$0xff]  }
 0x165   : > { %4958 = vmatpush1.bf16.msra.mxu0 %v6491_v18  ;;  %4549 = vmatprep.subr.bf16.mxu1 %v6496_v19  ;;  %v7543_v18 = vrot.slane %v914_v6, %v7005_v8  ;;  %v6569_v19 = vld [vmem:[%s7010_s22 + $0x1010] ss:$8 sps:$4 sm:$0xff]  }
 0x166   : > { %4959 = vmatprep.subr.bf16.mxu0 %v6499_v22  ;;  %v6574_v22 = vld [vmem:[%s7010_s22 + $0x624] ss:$8 sps:$4 sm:$0xff]   ;;  %v6641_v6 = vld [vmem:[%s7010_s22 + $0x10d0] ss:$8 sps:$4 sm:$0xff]  }
 0x168   : > { %4550 = vmatpush1.bf16.msra.mxu1 %v6494_v23  ;;  %v6577_v23 = vld [vmem:[%s7010_s22 + $0x1024] ss:$8 sps:$4 sm:$0xff]  }
 0x169   : > { %4960 = vmatpush1.bf16.msra.mxu0 %v6497_v24  ;;  %4551 = vmatprep.subr.bf16.mxu1 %v6502_v25  ;;  %v6572_v24 = vld [vmem:[%s7010_s22 + $0x620] ss:$8 sps:$4 sm:$0xff]  }
 0x16a   : > { %4961 = vmatprep.subr.bf16.mxu0 %v6505_v28  ;;  %v6575_v25 = vld [vmem:[%s7010_s22 + $0x1020] ss:$8 sps:$4 sm:$0xff]   ;;  %v6580_v28 = vld [vmem:[%s7010_s22 + $0x634] ss:$8 sps:$4 sm:$0xff]  }
 0x16c   : > { %4552 = vmatpush1.bf16.msra.mxu1 %v6500_v29  ;;  %v6583_v29 = vld [vmem:[%s7010_s22 + $0x1034] ss:$8 sps:$4 sm:$0xff]  }
 0x16d   : > { %4962 = vmatpush1.bf16.msra.mxu0 %v6503_v10  ;;  %4553 = vmatprep.subr.bf16.mxu1 %v6508_v11  ;;  %v6578_v10 = vld [vmem:[%s7010_s22 + $0x630] ss:$8 sps:$4 sm:$0xff]  }
 0x16e   : > { %4963 = vmatprep.subr.bf16.mxu0 %v6511_v7  ;;  %v6581_v11 = vld [vmem:[%s7010_s22 + $0x1030] ss:$8 sps:$4 sm:$0xff]   ;;  %v6586_v7 = vld [vmem:[%s7010_s22 + $0x644] ss:$8 sps:$4 sm:$0xff]  }
 0x170   : > { %4554 = vmatpush1.bf16.msra.mxu1 %v6506_v31  ;;  %v6589_v31 = vld [vmem:[%s7010_s22 + $0x1044] ss:$8 sps:$4 sm:$0xff]  }
 0x171   : > { %4964 = vmatpush1.bf16.msra.mxu0 %v6509_v32  ;;  %4555 = vmatprep.subr.bf16.mxu1 %v6514_v20  ;;  %v6584_v32 = vld [vmem:[%s7010_s22 + $0x640] ss:$8 sps:$4 sm:$0xff]  }
 0x172   : > { %4965 = vmatprep.subr.bf16.mxu0 %v6517_v21  ;;  %v6587_v20 = vld [vmem:[%s7010_s22 + $0x1040] ss:$8 sps:$4 sm:$0xff]   ;;  %v6592_v21 = vld [vmem:[%s7010_s22 + $0x654] ss:$8 sps:$4 sm:$0xff]  }
 0x174   : > { %4556 = vmatpush1.bf16.msra.mxu1 %v6512_v33  ;;  %v6595_v33 = vld [vmem:[%s7010_s22 + $0x1054] ss:$8 sps:$4 sm:$0xff]  }
 0x175   : > { %4966 = vmatpush1.bf16.msra.mxu0 %v6515_v34  ;;  %4557 = vmatprep.subr.bf16.mxu1 %v6520_v35  ;;  %v6590_v34 = vld [vmem:[%s7010_s22 + $0x650] ss:$8 sps:$4 sm:$0xff]  }
 0x176   : > { %4967 = vmatprep.subr.bf16.mxu0 %v6523_v36  ;;  %v6593_v35 = vld [vmem:[%s7010_s22 + $0x1050] ss:$8 sps:$4 sm:$0xff]   ;;  %v6598_v36 = vld [vmem:[%s7010_s22 + $0x664] ss:$8 sps:$4 sm:$0xff]  }
 0x178   : > { %4558 = vmatpush1.bf16.msra.mxu1 %v6518_v38  ;;  %v6601_v38 = vld [vmem:[%s7010_s22 + $0x1064] ss:$8 sps:$4 sm:$0xff]  }
 0x179   : > { %4968 = vmatpush1.bf16.msra.mxu0 %v6521_v39  ;;  %4559 = vmatprep.subr.bf16.mxu1 %v6526_v40  ;;  %v6596_v39 = vld [vmem:[%s7010_s22 + $0x660] ss:$8 sps:$4 sm:$0xff]  }
 0x17a   : > { %4969 = vmatprep.subr.bf16.mxu0 %v6529_v41  ;;  %v6599_v40 = vld [vmem:[%s7010_s22 + $0x1060] ss:$8 sps:$4 sm:$0xff]   ;;  %v6604_v41 = vld [vmem:[%s7010_s22 + $0x674] ss:$8 sps:$4 sm:$0xff]  }
 0x17c   : > { %4560 = vmatpush1.bf16.msra.mxu1 %v6524_v46  ;;  %v6607_v46 = vld [vmem:[%s7010_s22 + $0x1074] ss:$8 sps:$4 sm:$0xff]  }
 0x17d   : > { %4970 = vmatpush1.bf16.msra.mxu0 %v6527_v47  ;;  %4561 = vmatprep.subr.bf16.mxu1 %v6532_v48  ;;  %v6602_v47 = vld [vmem:[%s7010_s22 + $0x670] ss:$8 sps:$4 sm:$0xff]  }
 0x17e   : > { %4971 = vmatprep.subr.bf16.mxu0 %v6535_v49  ;;  %v6605_v48 = vld [vmem:[%s7010_s22 + $0x1070] ss:$8 sps:$4 sm:$0xff]   ;;  %v6610_v49 = vld [vmem:[%s7010_s22 + $0x684] ss:$8 sps:$4 sm:$0xff]  }
 0x180   : > { %4562 = vmatpush1.bf16.msra.mxu1 %v6530_v37  ;;  %v6613_v37 = vld [vmem:[%s7010_s22 + $0x1084] ss:$8 sps:$4 sm:$0xff]  }
 0x181   : > { %4972 = vmatpush1.bf16.msra.mxu0 %v6533_v27  ;;  %4563 = vmatprep.subr.bf16.mxu1 %v6538_v50  ;;  %v6608_v27 = vld [vmem:[%s7010_s22 + $0x680] ss:$8 sps:$4 sm:$0xff]  }
 0x182   : > { %4973 = vmatprep.subr.bf16.mxu0 %v6541_v51  ;;  %v6611_v50 = vld [vmem:[%s7010_s22 + $0x1080] ss:$8 sps:$4 sm:$0xff]   ;;  %v6616_v51 = vld [vmem:[%s7010_s22 + $0x694] ss:$8 sps:$4 sm:$0xff]  }
 0x184   : > { %4564 = vmatpush1.bf16.msra.mxu1 %v6536_v26  ;;  %v6619_v26 = vld [vmem:[%s7010_s22 + $0x1094] ss:$8 sps:$4 sm:$0xff]  }
 0x185   : > { %4974 = vmatpush1.bf16.msra.mxu0 %v6539_v43  ;;  %4565 = vmatprep.subr.bf16.mxu1 %v6544_v52  ;;  %v6614_v43 = vld [vmem:[%s7010_s22 + $0x690] ss:$8 sps:$4 sm:$0xff]  }
 0x186   : > { %4975 = vmatprep.subr.bf16.mxu0 %v6547_v53  ;;  %v6617_v52 = vld [vmem:[%s7010_s22 + $0x1090] ss:$8 sps:$4 sm:$0xff]   ;;  %v6622_v53 = vld [vmem:[%s7010_s22 + $0x6a4] ss:$8 sps:$4 sm:$0xff]  }
 0x188   : > { %4566 = vmatpush1.bf16.msra.mxu1 %v6542_v54  ;;  %v6625_v54 = vld [vmem:[%s7010_s22 + $0x10a4] ss:$8 sps:$4 sm:$0xff]  }
 0x189   : > { %4976 = vmatpush1.bf16.msra.mxu0 %v6545_v55  ;;  %4567 = vmatprep.subr.bf16.mxu1 %v6550_v56  ;;  %v6620_v55 = vld [vmem:[%s7010_s22 + $0x6a0] ss:$8 sps:$4 sm:$0xff]  }
 0x18a   : > { %4977 = vmatprep.subr.bf16.mxu0 %v6553_v57  ;;  %v6623_v56 = vld [vmem:[%s7010_s22 + $0x10a0] ss:$8 sps:$4 sm:$0xff]   ;;  %v6628_v57 = vld [vmem:[%s7010_s22 + $0x6b4] ss:$8 sps:$4 sm:$0xff]  }
 0x18c   : > { %4568 = vmatpush1.bf16.msra.mxu1 %v6548_v63  ;;  %v6629_v63 = vld [vmem:[%s7010_s22 + $0x10b0] ss:$8 sps:$4 sm:$0xff]  }
 0x18d   : > { %4978 = vmatpush1.bf16.msra.mxu0 %v6551_v0  ;;  %4569 = vmatprep.subr.bf16.mxu1 %v6556_v1  ;;  %v6634_v0 = vld [vmem:[%s7010_s22 + $0x6c4] ss:$8 sps:$4 sm:$0xff]  }
 0x18e   : > { %4979 = vmatprep.subr.bf16.mxu0 %v6559_v42  ;;  %v6637_v1 = vld [vmem:[%s7010_s22 + $0x10c4] ss:$8 sps:$4 sm:$0xff]   ;;  %v6632_v42 = vld [vmem:[%s7010_s22 + $0x6c0] ss:$8 sps:$4 sm:$0xff]  }
 0x190   : > { %4570 = vmatpush1.bf16.msra.mxu1 %v6554_v3  ;;  %v6635_v3 = vld [vmem:[%s7010_s22 + $0x10c0] ss:$8 sps:$4 sm:$0xff]  }
 0x191   : > { %4980 = vmatpush1.bf16.msra.mxu0 %v6557_v58  ;;  %4580 = vmatprep.subr.bf16.mxu1 %v6562_v5  ;;  %v6640_v58 = vld [vmem:[%s7010_s22 + $0x6d4] ss:$8 sps:$4 sm:$0xff]  }
 0x192   : > { %4990 = vmatprep.subr.bf16.mxu0 %v6565_v44  ;;  %v6643_v5 = vld [vmem:[%s7010_s22 + $0x10d4] ss:$8 sps:$4 sm:$0xff]   ;;  %v6638_v44 = vld [vmem:[%s7010_s22 + $0x6d0] ss:$8 sps:$4 sm:$0xff]  }
 0x193   : > { %4572 = vmatmul.mubr.bf16.vlgmr.msra.gmra.mrb[0].mxu1 %v943_v12  ;;  %v6649_v12 = vld [vmem:[%s7010_s22 + $0x10e4] ss:$8 sps:$4 sm:$0xff]  }
 0x194   : > { %4982 = vmatmul.mubr.bf16.vlgmr.msra.gmra.mrb[0].mxu0 %v1042_v13  ;;  %4581 = vmatpush1.bf16.msra.mxu1 %v6560_v14  ;;  %v6644_v13 = vld [vmem:[%s7010_s22 + $0x6e0] ss:$8 sps:$4 sm:$0xff]  }
 0x195   : > { %4991 = vmatpush1.bf16.msra.mxu0 %v6563_v15  ;;  %4582 = vmatprep.subr.bf16.mxu1 %v6568_v16  ;;  %v6647_v14 = vld [vmem:[%s7010_s22 + $0x10e0] ss:$8 sps:$4 sm:$0xff]   ;;  %v6652_v15 = vld [vmem:[%s7010_s22 + $0x6f4] ss:$8 sps:$4 sm:$0xff]  }
 0x196   : > { %4992 = vmatprep.subr.bf16.mxu0 %v6571_v17  ;;  %4612 = vmatprep.mubr.bf16.mxu1 %v7543_v18  ;;  %v6655_v16 = vld [vmem:[%s7010_s22 + $0x10f4] ss:$8 sps:$4 sm:$0xff]   ;;  %v6650_v17 = vld [vmem:[%s7010_s22 + $0x6f0] ss:$8 sps:$4 sm:$0xff]  }
 0x197   : > { %5022 = vmatprep.mubr.bf16.mxu0 %v7546_v60 }
 0x198   : > { %4583 = vmatpush1.bf16.msra.mxu1 %v6566_v61  ;;  %v6653_v61 = vld [vmem:[%s7010_s22 + $0x10f0] ss:$8 sps:$4 sm:$0xff]  }
 0x199   : > { %4993 = vmatpush1.bf16.msra.mxu0 %v6569_v19  ;;  %4584 = vmatprep.subr.bf16.mxu1 %v6574_v22  ;;  %v6659_v19 = vld [vmem:[%s7010_s22 + $0x704] ss:$8 sps:$4 sm:$0xff]  }
 0x19a   : > { %4994 = vmatprep.subr.bf16.mxu0 %v6577_v23  ;;  %v6662_v22 = vld [vmem:[%s7010_s22 + $0x1104] ss:$8 sps:$4 sm:$0xff]   ;;  %v7612_v23 = vrot.slane %v7520_v2, %v7005_v8  ;;  %v946_v2 = vcombine.high %v7543_v18, %v7543_v18 }
 0x19b   : > { %v6671_v18 = vld [vmem:[%s7010_s22 + $0x724] ss:$8 sps:$4 sm:$0xff]  }
 0x19c   : > { %4585 = vmatpush1.bf16.msra.mxu1 %v6572_v24  ;;  %v7616_v24 = vrot.slane %v7524_v30, %v7005_v8  ;;  %v6663_v30 = vld [vmem:[%s7010_s22 + $0x710] ss:$8 sps:$4 sm:$0xff]  }
 0x19d   : > { %4995 = vmatpush1.bf16.msra.mxu0 %v6575_v25  ;;  %4586 = vmatprep.subr.bf16.mxu1 %v6580_v28  ;;  %v6657_v25 = vld [vmem:[%s7010_s22 + $0x700] ss:$8 sps:$4 sm:$0xff]  }
 0x19e   : > { %4996 = vmatprep.subr.bf16.mxu0 %v6583_v29  ;;  %v6660_v28 = vld [vmem:[%s7010_s22 + $0x1100] ss:$8 sps:$4 sm:$0xff]   ;;  %v6665_v29 = vld [vmem:[%s7010_s22 + $0x714] ss:$8 sps:$4 sm:$0xff]  }
 0x1a0   : > { %4587 = vmatpush1.bf16.msra.mxu1 %v6578_v10  ;;  %v6668_v10 = vld [vmem:[%s7010_s22 + $0x1114] ss:$8 sps:$4 sm:$0xff]  }
 0x1a1   : > { %4997 = vmatpush1.bf16.msra.mxu0 %v6581_v11  ;;  %4588 = vmatprep.subr.bf16.mxu1 %v6586_v7  ;;  %v1092_v11 = vcombine.high %v7546_v60, %v7546_v60  ;;  %v6666_v7 = vld [vmem:[%s7010_s22 + $0x1110] ss:$8 sps:$4 sm:$0xff]   ;;  %v6669_v60 = vld [vmem:[%s7010_s22 + $0x720] ss:$8 sps:$4 sm:$0xff]  }
 0x1a2   : > { %4998 = vmatprep.subr.bf16.mxu0 %v6589_v31  ;;  %v6674_v31 = vld [vmem:[%s7010_s22 + $0x1124] ss:$8 sps:$4 sm:$0xff]  }
 0x1a4   : > { %4589 = vmatpush1.bf16.msra.mxu1 %v6584_v32  ;;  %v6672_v32 = vld [vmem:[%s7010_s22 + $0x1120] ss:$8 sps:$4 sm:$0xff]  }
 0x1a5   : > { %4999 = vmatpush1.bf16.msra.mxu0 %v6587_v20  ;;  %4590 = vmatprep.subr.bf16.mxu1 %v6592_v21  ;;  %v6677_v20 = vld [vmem:[%s7010_s22 + $0x734] ss:$8 sps:$4 sm:$0xff]  }
 0x1a6   : > { %5000 = vmatprep.subr.bf16.mxu0 %v6595_v33  ;;  %v6680_v21 = vld [vmem:[%s7010_s22 + $0x1134] ss:$8 sps:$4 sm:$0xff]   ;;  %v6675_v33 = vld [vmem:[%s7010_s22 + $0x730] ss:$8 sps:$4 sm:$0xff]  }
 0x1a8   : > { %4591 = vmatpush1.bf16.msra.mxu1 %v6590_v34  ;;  %v6678_v34 = vld [vmem:[%s7010_s22 + $0x1130] ss:$8 sps:$4 sm:$0xff]  }
 0x1a9   : > { %5001 = vmatpush1.bf16.msra.mxu0 %v6593_v35  ;;  %4592 = vmatprep.subr.bf16.mxu1 %v6598_v36  ;;  %v6683_v35 = vld [vmem:[%s7010_s22 + $0x744] ss:$8 sps:$4 sm:$0xff]  }
 0x1aa   : > { %5002 = vmatprep.subr.bf16.mxu0 %v6601_v38  ;;  %v6686_v36 = vld [vmem:[%s7010_s22 + $0x1144] ss:$8 sps:$4 sm:$0xff]   ;;  %v6681_v38 = vld [vmem:[%s7010_s22 + $0x740] ss:$8 sps:$4 sm:$0xff]  }
 0x1ac   : > { %4593 = vmatpush1.bf16.msra.mxu1 %v6596_v39  ;;  %v6684_v39 = vld [vmem:[%s7010_s22 + $0x1140] ss:$8 sps:$4 sm:$0xff]  }
 0x1ad   : > { %5003 = vmatpush1.bf16.msra.mxu0 %v6599_v40  ;;  %4594 = vmatprep.subr.bf16.mxu1 %v6604_v41  ;;  %v6689_v40 = vld [vmem:[%s7010_s22 + $0x754] ss:$8 sps:$4 sm:$0xff]  }
 0x1ae   : > { %5004 = vmatprep.subr.bf16.mxu0 %v6607_v46  ;;  %v6692_v41 = vld [vmem:[%s7010_s22 + $0x1154] ss:$8 sps:$4 sm:$0xff]   ;;  %v6687_v46 = vld [vmem:[%s7010_s22 + $0x750] ss:$8 sps:$4 sm:$0xff]  }
 0x1b0   : > { %4595 = vmatpush1.bf16.msra.mxu1 %v6602_v47  ;;  %v6690_v47 = vld [vmem:[%s7010_s22 + $0x1150] ss:$8 sps:$4 sm:$0xff]  }
 0x1b1   : > { %5005 = vmatpush1.bf16.msra.mxu0 %v6605_v48  ;;  %4596 = vmatprep.subr.bf16.mxu1 %v6610_v49  ;;  %v6695_v48 = vld [vmem:[%s7010_s22 + $0x764] ss:$8 sps:$4 sm:$0xff]  }
 0x1b2   : > { %5006 = vmatprep.subr.bf16.mxu0 %v6613_v37  ;;  %v6698_v49 = vld [vmem:[%s7010_s22 + $0x1164] ss:$8 sps:$4 sm:$0xff]   ;;  %v6693_v37 = vld [vmem:[%s7010_s22 + $0x760] ss:$8 sps:$4 sm:$0xff]  }
 0x1b4   : > { %4597 = vmatpush1.bf16.msra.mxu1 %v6608_v27  ;;  %v6696_v27 = vld [vmem:[%s7010_s22 + $0x1160] ss:$8 sps:$4 sm:$0xff]  }
 0x1b5   : > { %5007 = vmatpush1.bf16.msra.mxu0 %v6611_v50  ;;  %4598 = vmatprep.subr.bf16.mxu1 %v6616_v51  ;;  %v6701_v50 = vld [vmem:[%s7010_s22 + $0x774] ss:$8 sps:$4 sm:$0xff]  }
 0x1b6   : > { %5008 = vmatprep.subr.bf16.mxu0 %v6619_v26  ;;  %v6704_v51 = vld [vmem:[%s7010_s22 + $0x1174] ss:$8 sps:$4 sm:$0xff]   ;;  %v6699_v26 = vld [vmem:[%s7010_s22 + $0x770] ss:$8 sps:$4 sm:$0xff]  }
 0x1b8   : > { %4599 = vmatpush1.bf16.msra.mxu1 %v6614_v43  ;;  %v6702_v43 = vld [vmem:[%s7010_s22 + $0x1170] ss:$8 sps:$4 sm:$0xff]  }
 0x1b9   : > { %5009 = vmatpush1.bf16.msra.mxu0 %v6617_v52  ;;  %4600 = vmatprep.subr.bf16.mxu1 %v6622_v53  ;;  %v6707_v52 = vld [vmem:[%s7010_s22 + $0x784] ss:$8 sps:$4 sm:$0xff]  }
 0x1ba   : > { %5010 = vmatprep.subr.bf16.mxu0 %v6625_v54  ;;  %v6710_v53 = vld [vmem:[%s7010_s22 + $0x1184] ss:$8 sps:$4 sm:$0xff]   ;;  %v6705_v54 = vld [vmem:[%s7010_s22 + $0x780] ss:$8 sps:$4 sm:$0xff]  }
 0x1bc   : > { %4601 = vmatpush1.bf16.msra.mxu1 %v6620_v55  ;;  %v6708_v55 = vld [vmem:[%s7010_s22 + $0x1180] ss:$8 sps:$4 sm:$0xff]  }
 0x1bd   : > { %5011 = vmatpush1.bf16.msra.mxu0 %v6623_v56  ;;  %4602 = vmatprep.subr.bf16.mxu1 %v6628_v57  ;;  %v6713_v56 = vld [vmem:[%s7010_s22 + $0x794] ss:$8 sps:$4 sm:$0xff]  }
 0x1be   : > { %5012 = vmatprep.subr.bf16.mxu0 %v6631_v59  ;;  %v6716_v57 = vld [vmem:[%s7010_s22 + $0x1194] ss:$8 sps:$4 sm:$0xff]   ;;  %v6711_v59 = vld [vmem:[%s7010_s22 + $0x790] ss:$8 sps:$4 sm:$0xff]  }
 0x1c0   : > { %4603 = vmatpush1.bf16.msra.mxu1 %v6626_v62  ;;  %v6714_v62 = vld [vmem:[%s7010_s22 + $0x1190] ss:$8 sps:$4 sm:$0xff]  }
 0x1c1   : > { %5013 = vmatpush1.bf16.msra.mxu0 %v6629_v63  ;;  %4604 = vmatprep.subr.bf16.mxu1 %v6634_v0  ;;  %v6719_v63 = vld [vmem:[%s7010_s22 + $0x7a4] ss:$8 sps:$4 sm:$0xff]  }
 0x1c2   : > { %5014 = vmatprep.subr.bf16.mxu0 %v6637_v1  ;;  %v6722_v0 = vld [vmem:[%s7010_s22 + $0x11a4] ss:$8 sps:$4 sm:$0xff]   ;;  %v6717_v1 = vld [vmem:[%s7010_s22 + $0x7a0] ss:$8 sps:$4 sm:$0xff]  }
 0x1c4   : > { %4605 = vmatpush1.bf16.msra.mxu1 %v6632_v42  ;;  %v6720_v42 = vld [vmem:[%s7010_s22 + $0x11a0] ss:$8 sps:$4 sm:$0xff]  }
 0x1c5   : > { %5015 = vmatpush1.bf16.msra.mxu0 %v6635_v3  ;;  %4606 = vmatprep.subr.bf16.mxu1 %v6640_v58  ;;  %v6725_v3 = vld [vmem:[%s7010_s22 + $0x7b4] ss:$8 sps:$4 sm:$0xff]  }
 0x1c6   : > { %5016 = vmatprep.subr.bf16.mxu0 %v6643_v5  ;;  %v6728_v58 = vld [vmem:[%s7010_s22 + $0x11b4] ss:$8 sps:$4 sm:$0xff]   ;;  %v6723_v5 = vld [vmem:[%s7010_s22 + $0x7b0] ss:$8 sps:$4 sm:$0xff]  }
 0x1c8   : > { %4607 = vmatpush1.bf16.msra.mxu1 %v6638_v44  ;;  %v6726_v44 = vld [vmem:[%s7010_s22 + $0x11b0] ss:$8 sps:$4 sm:$0xff]  }
 0x1c9   : > { %5017 = vmatpush1.bf16.msra.mxu0 %v6641_v6  ;;  %4608 = vmatprep.subr.bf16.mxu1 %v6646_v9  ;;  %v6731_v6 = vld [vmem:[%s7010_s22 + $0x7c4] ss:$8 sps:$4 sm:$0xff]  }
 0x1ca   : > { %5018 = vmatprep.subr.bf16.mxu0 %v6649_v12  ;;  %v6734_v9 = vld [vmem:[%s7010_s22 + $0x11c4] ss:$8 sps:$4 sm:$0xff]   ;;  %v6729_v12 = vld [vmem:[%s7010_s22 + $0x7c0] ss:$8 sps:$4 sm:$0xff]  }
 0x1cc   : > { %4609 = vmatpush1.bf16.msra.mxu1 %v6644_v13  ;;  %v6732_v13 = vld [vmem:[%s7010_s22 + $0x11c0] ss:$8 sps:$4 sm:$0xff]  }
 0x1cd   : > { %5019 = vmatpush1.bf16.msra.mxu0 %v6647_v14  ;;  %4610 = vmatprep.subr.bf16.mxu1 %v6652_v15  ;;  %v6737_v14 = vld [vmem:[%s7010_s22 + $0x7d4] ss:$8 sps:$4 sm:$0xff]  }
 0x1ce   : > { %5020 = vmatprep.subr.bf16.mxu0 %v6655_v16  ;;  %v6740_v15 = vld [vmem:[%s7010_s22 + $0x11d4] ss:$8 sps:$4 sm:$0xff]   ;;  %v6735_v16 = vld [vmem:[%s7010_s22 + $0x7d0] ss:$8 sps:$4 sm:$0xff]  }
 0x1d0   : > { %4611 = vmatpush1.bf16.msra.mxu1 %v6650_v17  ;;  %v6738_v17 = vld [vmem:[%s7010_s22 + $0x11d0] ss:$8 sps:$4 sm:$0xff]  }
 0x1d1   : > { %5021 = vmatpush1.bf16.msra.mxu0 %v6653_v61  ;;  %4621 = vmatprep.subr.bf16.mxu1 %v6659_v19  ;;  %v6743_v61 = vld [vmem:[%s7010_s22 + $0x7e4] ss:$8 sps:$4 sm:$0xff]  }
 0x1d2   : > { %5031 = vmatprep.subr.bf16.mxu0 %v6662_v22  ;;  %v6746_v19 = vld [vmem:[%s7010_s22 + $0x11e4] ss:$8 sps:$4 sm:$0xff]   ;;  %v1045_v22 = vcombine.high %v7510_v45, %v7510_v45  ;;  %v6747_v45 = vld [vmem:[%s7010_s22 + $0x7f0] ss:$8 sps:$4 sm:$0xff]  }
 0x1d3   : > { %4613 = vmatmul.mubr.bf16.vlgmr.msra.gmra.mrb[0].mxu1 %v7612_v23 }
 0x1d4   : > { %5023 = vmatmul.mubr.bf16.vlgmr.msra.gmra.mrb[0].mxu0 %v7616_v24  ;;  %4622 = vmatpush1.bf16.msra.mxu1 %v6657_v25  ;;  %v6741_v25 = vld [vmem:[%s7010_s22 + $0x7e0] ss:$8 sps:$4 sm:$0xff]  }
 0x1d5   : > { %5032 = vmatpush1.bf16.msra.mxu0 %v6660_v28  ;;  %4623 = vmatprep.subr.bf16.mxu1 %v6665_v29  ;;  %v6744_v28 = vld [vmem:[%s7010_s22 + $0x11e0] ss:$8 sps:$4 sm:$0xff]   ;;  %v6749_v29 = vld [vmem:[%s7010_s22 + $0x7f4] ss:$8 sps:$4 sm:$0xff]  }
 0x1d6   : > { %5033 = vmatprep.subr.bf16.mxu0 %v6668_v10  ;;  %4653 = vmatprep.mubr.bf16.mxu1 %v946_v2  ;;  %v6752_v10 = vld [vmem:[%s7010_s22 + $0x11f4] ss:$8 sps:$4 sm:$0xff]  }
 0x1d7   : > { %5063 = vmatprep.mubr.bf16.mxu0 %v1092_v11  ;;  %v7689_v2 = vld.sshfl [vmem:[%s7872_s0 + $0x10] sm:$0xff pattern:$0x75316420]  ;;  %v7692_v11 = vrot.slane %v1045_v22, %v7005_v8 }
 0x1d8   : > { %4624 = vmatpush1.bf16.msra.mxu1 %v6663_v30  ;;  %v6750_v30 = vld [vmem:[%s7010_s22 + $0x11f0] ss:$8 sps:$4 sm:$0xff]  }
 0x1d9   : > { %5034 = vmatpush1.bf16.msra.mxu0 %v6666_v7  ;;  %4625 = vmatprep.subr.bf16.mxu1 %v6671_v18  ;;  %v6755_v7 = vld [vmem:[%s7010_s22 + $0x804] ss:$8 sps:$4 sm:$0xff]   ;;  %v6822_v22 = vld [vmem:[%s7010_s22 + $0x12b0] ss:$8 sps:$4 sm:$0xff]  }
 0x1da   : > { %5035 = vmatprep.subr.bf16.mxu0 %v6674_v31  ;;  %v6758_v18 = vld [vmem:[%s7010_s22 + $0x1204] ss:$8 sps:$4 sm:$0xff]   ;;  %v962_v31 = vcombine.high %v7689_v2, %v7689_v2 }
 0x1dc   : > { %4626 = vmatpush1.bf16.msra.mxu1 %v6669_v60  ;;  %v1061_v60 = vcombine.high %v7692_v11, %v7692_v11 }
 0x1dd   : > { %5036 = vmatpush1.bf16.msra.mxu0 %v6672_v32  ;;  %4627 = vmatprep.subr.bf16.mxu1 %v6677_v20  ;;  %v944_v32 = vcombine.high %v7612_v23, %v7612_v23  ;;  %v1090_v20 = vcombine.high %v7616_v24, %v7616_v24  ;;  %v6759_v24 = vld [vmem:[%s7010_s22 + $0x810] ss:$8 sps:$4 sm:$0xff]  }
 0x1de   : > { %5037 = vmatprep.subr.bf16.mxu0 %v6680_v21  ;;  %v6753_v21 = vld [vmem:[%s7010_s22 + $0x800] ss:$8 sps:$4 sm:$0xff]   ;;  %v7714_v23 = vrot.slane %v1061_v60, %v7005_v8  ;;  %v6842_v60 = vld [vmem:[%s7010_s22 + $0x12e4] ss:$8 sps:$4 sm:$0xff]  }
 0x1e0   : > { %4628 = vmatpush1.bf16.msra.mxu1 %v6675_v33  ;;  %v6756_v33 = vld [vmem:[%s7010_s22 + $0x1200] ss:$8 sps:$4 sm:$0xff]  }
 0x1e1   : > { %5038 = vmatpush1.bf16.msra.mxu0 %v6678_v34  ;;  %4629 = vmatprep.subr.bf16.mxu1 %v6683_v35  ;;  %v6761_v34 = vld [vmem:[%s7010_s22 + $0x814] ss:$8 sps:$4 sm:$0xff]  }
 0x1e2   : > { %5039 = vmatprep.subr.bf16.mxu0 %v6686_v36  ;;  %v6764_v35 = vld [vmem:[%s7010_s22 + $0x1214] ss:$8 sps:$4 sm:$0xff]   ;;  %v7711_v36 = vrot.slane %v962_v31, %v7005_v8  ;;  %v6839_v31 = vld [vmem:[%s7010_s22 + $0x8e4] ss:$8 sps:$4 sm:$0xff]  }
 0x1e4   : > { %4630 = vmatpush1.bf16.msra.mxu1 %v6681_v38  ;;  %v6762_v38 = vld [vmem:[%s7010_s22 + $0x1210] ss:$8 sps:$4 sm:$0xff]  }
 0x1e5   : > { %5040 = vmatpush1.bf16.msra.mxu0 %v6684_v39  ;;  %4631 = vmatprep.subr.bf16.mxu1 %v6689_v40  ;;  %v6767_v39 = vld [vmem:[%s7010_s22 + $0x824] ss:$8 sps:$4 sm:$0xff]  }
 0x1e6   : > { %5041 = vmatprep.subr.bf16.mxu0 %v6692_v41  ;;  %v6770_v40 = vld [vmem:[%s7010_s22 + $0x1224] ss:$8 sps:$4 sm:$0xff]   ;;  %v6765_v41 = vld [vmem:[%s7010_s22 + $0x820] ss:$8 sps:$4 sm:$0xff]  }
 0x1e8   : > { %4632 = vmatpush1.bf16.msra.mxu1 %v6687_v46  ;;  %v6768_v46 = vld [vmem:[%s7010_s22 + $0x1220] ss:$8 sps:$4 sm:$0xff]  }
 0x1e9   : > { %5042 = vmatpush1.bf16.msra.mxu0 %v6690_v47  ;;  %4633 = vmatprep.subr.bf16.mxu1 %v6695_v48  ;;  %v6773_v47 = vld [vmem:[%s7010_s22 + $0x834] ss:$8 sps:$4 sm:$0xff]  }
 0x1ea   : > { %5043 = vmatprep.subr.bf16.mxu0 %v6698_v49  ;;  %v6776_v48 = vld [vmem:[%s7010_s22 + $0x1234] ss:$8 sps:$4 sm:$0xff]   ;;  %v6771_v49 = vld [vmem:[%s7010_s22 + $0x830] ss:$8 sps:$4 sm:$0xff]  }
 0x1ec   : > { %4634 = vmatpush1.bf16.msra.mxu1 %v6693_v37  ;;  %v6774_v37 = vld [vmem:[%s7010_s22 + $0x1230] ss:$8 sps:$4 sm:$0xff]  }
 0x1ed   : > { %5044 = vmatpush1.bf16.msra.mxu0 %v6696_v27  ;;  %4635 = vmatprep.subr.bf16.mxu1 %v6701_v50  ;;  %v6779_v27 = vld [vmem:[%s7010_s22 + $0x844] ss:$8 sps:$4 sm:$0xff]  }
 0x1ee   : > { %5045 = vmatprep.subr.bf16.mxu0 %v6704_v51  ;;  %v6782_v50 = vld [vmem:[%s7010_s22 + $0x1244] ss:$8 sps:$4 sm:$0xff]   ;;  %v6777_v51 = vld [vmem:[%s7010_s22 + $0x840] ss:$8 sps:$4 sm:$0xff]  }
 0x1f0   : > { %4636 = vmatpush1.bf16.msra.mxu1 %v6699_v26  ;;  %v6780_v26 = vld [vmem:[%s7010_s22 + $0x1240] ss:$8 sps:$4 sm:$0xff]  }
 0x1f1   : > { %5046 = vmatpush1.bf16.msra.mxu0 %v6702_v43  ;;  %4637 = vmatprep.subr.bf16.mxu1 %v6707_v52  ;;  %v6785_v43 = vld [vmem:[%s7010_s22 + $0x854] ss:$8 sps:$4 sm:$0xff]  }
 0x1f2   : > { %5047 = vmatprep.subr.bf16.mxu0 %v6710_v53  ;;  %v6788_v52 = vld [vmem:[%s7010_s22 + $0x1254] ss:$8 sps:$4 sm:$0xff]   ;;  %v6783_v53 = vld [vmem:[%s7010_s22 + $0x850] ss:$8 sps:$4 sm:$0xff]  }
 0x1f4   : > { %4638 = vmatpush1.bf16.msra.mxu1 %v6705_v54  ;;  %v6786_v54 = vld [vmem:[%s7010_s22 + $0x1250] ss:$8 sps:$4 sm:$0xff]  }
 0x1f5   : > { %5048 = vmatpush1.bf16.msra.mxu0 %v6708_v55  ;;  %4639 = vmatprep.subr.bf16.mxu1 %v6713_v56  ;;  %v6791_v55 = vld [vmem:[%s7010_s22 + $0x864] ss:$8 sps:$4 sm:$0xff]  }
 0x1f6   : > { %5049 = vmatprep.subr.bf16.mxu0 %v6716_v57  ;;  %v6794_v56 = vld [vmem:[%s7010_s22 + $0x1264] ss:$8 sps:$4 sm:$0xff]   ;;  %v6789_v57 = vld [vmem:[%s7010_s22 + $0x860] ss:$8 sps:$4 sm:$0xff]  }
 0x1f8   : > { %4640 = vmatpush1.bf16.msra.mxu1 %v6711_v59  ;;  %v6792_v59 = vld [vmem:[%s7010_s22 + $0x1260] ss:$8 sps:$4 sm:$0xff]  }
 0x1f9   : > { %5050 = vmatpush1.bf16.msra.mxu0 %v6714_v62  ;;  %4641 = vmatprep.subr.bf16.mxu1 %v6719_v63  ;;  %v6797_v62 = vld [vmem:[%s7010_s22 + $0x874] ss:$8 sps:$4 sm:$0xff]  }
 0x1fa   : > { %5051 = vmatprep.subr.bf16.mxu0 %v6722_v0  ;;  %v6800_v63 = vld [vmem:[%s7010_s22 + $0x1274] ss:$8 sps:$4 sm:$0xff]   ;;  %v6795_v0 = vld [vmem:[%s7010_s22 + $0x870] ss:$8 sps:$4 sm:$0xff]  }
 0x1fc   : > { %4642 = vmatpush1.bf16.msra.mxu1 %v6717_v1  ;;  %v6798_v1 = vld [vmem:[%s7010_s22 + $0x1270] ss:$8 sps:$4 sm:$0xff]  }
 0x1fd   : > { %5052 = vmatpush1.bf16.msra.mxu0 %v6720_v42  ;;  %4643 = vmatprep.subr.bf16.mxu1 %v6725_v3  ;;  %v6803_v42 = vld [vmem:[%s7010_s22 + $0x884] ss:$8 sps:$4 sm:$0xff]  }
 0x1fe   : > { %5053 = vmatprep.subr.bf16.mxu0 %v6728_v58  ;;  %v6806_v3 = vld [vmem:[%s7010_s22 + $0x1284] ss:$8 sps:$4 sm:$0xff]   ;;  %v6801_v58 = vld [vmem:[%s7010_s22 + $0x880] ss:$8 sps:$4 sm:$0xff]  }
 0x200   : > { %4644 = vmatpush1.bf16.msra.mxu1 %v6723_v5  ;;  %v6804_v5 = vld [vmem:[%s7010_s22 + $0x1280] ss:$8 sps:$4 sm:$0xff]  }
 0x201   : > { %5054 = vmatpush1.bf16.msra.mxu0 %v6726_v44  ;;  %4645 = vmatprep.subr.bf16.mxu1 %v6731_v6  ;;  %v6809_v44 = vld [vmem:[%s7010_s22 + $0x894] ss:$8 sps:$4 sm:$0xff]  }
 0x202   : > { %5055 = vmatprep.subr.bf16.mxu0 %v6734_v9  ;;  %v6812_v6 = vld [vmem:[%s7010_s22 + $0x1294] ss:$8 sps:$4 sm:$0xff]   ;;  %v6807_v9 = vld [vmem:[%s7010_s22 + $0x890] ss:$8 sps:$4 sm:$0xff]  }
 0x204   : > { %4646 = vmatpush1.bf16.msra.mxu1 %v6729_v12  ;;  %v6810_v12 = vld [vmem:[%s7010_s22 + $0x1290] ss:$8 sps:$4 sm:$0xff]  }
 0x205   : > { %5056 = vmatpush1.bf16.msra.mxu0 %v6732_v13  ;;  %4647 = vmatprep.subr.bf16.mxu1 %v6737_v14  ;;  %v6815_v13 = vld [vmem:[%s7010_s22 + $0x8a4] ss:$8 sps:$4 sm:$0xff]  }
 0x206   : > { %5057 = vmatprep.subr.bf16.mxu0 %v6740_v15  ;;  %v6818_v14 = vld [vmem:[%s7010_s22 + $0x12a4] ss:$8 sps:$4 sm:$0xff]   ;;  %v6813_v15 = vld [vmem:[%s7010_s22 + $0x8a0] ss:$8 sps:$4 sm:$0xff]  }
 0x208   : > { %4648 = vmatpush1.bf16.msra.mxu1 %v6735_v16  ;;  %v6816_v16 = vld [vmem:[%s7010_s22 + $0x12a0] ss:$8 sps:$4 sm:$0xff]  }
 0x209   : > { %5058 = vmatpush1.bf16.msra.mxu0 %v6738_v17  ;;  %4649 = vmatprep.subr.bf16.mxu1 %v6743_v61  ;;  %v6821_v17 = vld [vmem:[%s7010_s22 + $0x8b4] ss:$8 sps:$4 sm:$0xff]  }
 0x20a   : > { %5059 = vmatprep.subr.bf16.mxu0 %v6746_v19  ;;  %v6824_v61 = vld [vmem:[%s7010_s22 + $0x12b4] ss:$8 sps:$4 sm:$0xff]   ;;  %v6819_v19 = vld [vmem:[%s7010_s22 + $0x8b0] ss:$8 sps:$4 sm:$0xff]  }
 0x20c   : > { %4650 = vmatpush1.bf16.msra.mxu1 %v6741_v25  ;;  %v6827_v25 = vld [vmem:[%s7010_s22 + $0x8c4] ss:$8 sps:$4 sm:$0xff]  }
 0x20d   : > { %5060 = vmatpush1.bf16.msra.mxu0 %v6744_v28  ;;  %4651 = vmatprep.subr.bf16.mxu1 %v6749_v29  ;;  %v6830_v28 = vld [vmem:[%s7010_s22 + $0x12c4] ss:$8 sps:$4 sm:$0xff]   ;;  %v6825_v29 = vld [vmem:[%s7010_s22 + $0x8c0] ss:$8 sps:$4 sm:$0xff]  }
 0x20e   : > { %5061 = vmatprep.subr.bf16.mxu0 %v6752_v10  ;;  %v6828_v10 = vld [vmem:[%s7010_s22 + $0x12c0] ss:$8 sps:$4 sm:$0xff]  }
 0x210   : > { %4652 = vmatpush1.bf16.msra.mxu1 %v6747_v45  ;;  %v6833_v45 = vld [vmem:[%s7010_s22 + $0x8d4] ss:$8 sps:$4 sm:$0xff]  }
 0x211   : > { %5062 = vmatpush1.bf16.msra.mxu0 %v6750_v30  ;;  %4662 = vmatprep.subr.bf16.mxu1 %v6755_v7  ;;  %v6836_v30 = vld [vmem:[%s7010_s22 + $0x12d4] ss:$8 sps:$4 sm:$0xff]   ;;  %v6831_v7 = vld [vmem:[%s7010_s22 + $0x8d0] ss:$8 sps:$4 sm:$0xff]  }
 0x212   : > { %5072 = vmatprep.subr.bf16.mxu0 %v6758_v18  ;;  %v6834_v18 = vld [vmem:[%s7010_s22 + $0x12d0] ss:$8 sps:$4 sm:$0xff]  }
 0x213   : > { %4654 = vmatmul.mubr.bf16.vlgmr.msra.gmra.mrb[0].mxu1 %v944_v32  ;;  %v6837_v32 = vld [vmem:[%s7010_s22 + $0x8e0] ss:$8 sps:$4 sm:$0xff]  }
 0x214   : > { %5064 = vmatmul.mubr.bf16.vlgmr.msra.gmra.mrb[0].mxu0 %v1090_v20  ;;  %4663 = vmatpush1.bf16.msra.mxu1 %v6753_v21  ;;  %v6840_v20 = vld [vmem:[%s7010_s22 + $0x12e0] ss:$8 sps:$4 sm:$0xff]   ;;  %v6845_v21 = vld [vmem:[%s7010_s22 + $0x8f4] ss:$8 sps:$4 sm:$0xff]  }
 0x215   : > { %5073 = vmatpush1.bf16.msra.mxu0 %v6756_v33  ;;  %4664 = vmatprep.subr.bf16.mxu1 %v6761_v34  ;;  %v6848_v33 = vld [vmem:[%s7010_s22 + $0x12f4] ss:$8 sps:$4 sm:$0xff]   ;;  %v6843_v34 = vld [vmem:[%s7010_s22 + $0x8f0] ss:$8 sps:$4 sm:$0xff]  }
 0x216   : > { %5074 = vmatprep.subr.bf16.mxu0 %v6764_v35  ;;  %4694 = vmatprep.mubr.bf16.mxu1 %v7711_v36  ;;  %v6846_v35 = vld [vmem:[%s7010_s22 + $0x12f0] ss:$8 sps:$4 sm:$0xff]  }
 0x217   : > { %5104 = vmatprep.mubr.bf16.mxu0 %v7714_v23 }
 0x218   : > { %4665 = vmatpush1.bf16.msra.mxu1 %v6759_v24  ;;  %v6851_v24 = vld [vmem:[%s7010_s22 + $0x904] ss:$8 sps:$4 sm:$0xff]  }
 0x219   : > { %5075 = vmatpush1.bf16.msra.mxu0 %v6762_v38  ;;  %4666 = vmatprep.subr.bf16.mxu1 %v6767_v39  ;;  %v6855_v38 = vld [vmem:[%s7010_s22 + $0x1304] ss:$8 sps:$4 sm:$0xff]   ;;  %v7780_v39 = vrot.slane %v7689_v2, %v7005_v8  ;;  %v994_v2 = vcombine.high %v7711_v36, %v7711_v36 }
 0x21a   : > { %5076 = vmatprep.subr.bf16.mxu0 %v6770_v40  ;;  %v7784_v40 = vrot.slane %v7692_v11, %v7005_v8  ;;  %v6856_v11 = vld [vmem:[%s7010_s22 + $0x910] ss:$8 sps:$4 sm:$0xff]   ;;  %v6864_v36 = vld [vmem:[%s7010_s22 + $0x924] ss:$8 sps:$4 sm:$0xff]  }
 0x21c   : > { %4667 = vmatpush1.bf16.msra.mxu1 %v6765_v41  ;;  %v6849_v41 = vld [vmem:[%s7010_s22 + $0x900] ss:$8 sps:$4 sm:$0xff]  }
 0x21d   : > { %5077 = vmatpush1.bf16.msra.mxu0 %v6768_v46  ;;  %4668 = vmatprep.subr.bf16.mxu1 %v6773_v47  ;;  %v6853_v46 = vld [vmem:[%s7010_s22 + $0x1300] ss:$8 sps:$4 sm:$0xff]   ;;  %v6858_v47 = vld [vmem:[%s7010_s22 + $0x914] ss:$8 sps:$4 sm:$0xff]  }
 0x21e   : > { %5078 = vmatprep.subr.bf16.mxu0 %v6776_v48  ;;  %v6861_v48 = vld [vmem:[%s7010_s22 + $0x1314] ss:$8 sps:$4 sm:$0xff]  }
 0x220   : > { %4669 = vmatpush1.bf16.msra.mxu1 %v6771_v49  ;;  %v1093_v49 = vcombine.high %v7714_v23, %v7714_v23  ;;  %v6862_v23 = vld [vmem:[%s7010_s22 + $0x920] ss:$8 sps:$4 sm:$0xff]  }
 0x221   : > { %5079 = vmatpush1.bf16.msra.mxu0 %v6774_v37  ;;  %4670 = vmatprep.subr.bf16.mxu1 %v6779_v27  ;;  %v6859_v37 = vld [vmem:[%s7010_s22 + $0x1310] ss:$8 sps:$4 sm:$0xff]   ;;  %v6867_v27 = vld [vmem:[%s7010_s22 + $0x1324] ss:$8 sps:$4 sm:$0xff]  }
 0x222   : > { %5080 = vmatprep.subr.bf16.mxu0 %v6782_v50  ;;  %v6865_v50 = vld [vmem:[%s7010_s22 + $0x1320] ss:$8 sps:$4 sm:$0xff]  }
 0x224   : > { %4671 = vmatpush1.bf16.msra.mxu1 %v6777_v51  ;;  %v6870_v51 = vld [vmem:[%s7010_s22 + $0x934] ss:$8 sps:$4 sm:$0xff]  }
 0x225   : > { %5081 = vmatpush1.bf16.msra.mxu0 %v6780_v26  ;;  %4672 = vmatprep.subr.bf16.mxu1 %v6785_v43  ;;  %v6873_v26 = vld [vmem:[%s7010_s22 + $0x1334] ss:$8 sps:$4 sm:$0xff]   ;;  %v6868_v43 = vld [vmem:[%s7010_s22 + $0x930] ss:$8 sps:$4 sm:$0xff]  }
 0x226   : > { %5082 = vmatprep.subr.bf16.mxu0 %v6788_v52  ;;  %v6871_v52 = vld [vmem:[%s7010_s22 + $0x1330] ss:$8 sps:$4 sm:$0xff]  }
 0x228   : > { %4673 = vmatpush1.bf16.msra.mxu1 %v6783_v53  ;;  %v6876_v53 = vld [vmem:[%s7010_s22 + $0x944] ss:$8 sps:$4 sm:$0xff]  }
 0x229   : > { %5083 = vmatpush1.bf16.msra.mxu0 %v6786_v54  ;;  %4674 = vmatprep.subr.bf16.mxu1 %v6791_v55  ;;  %v6879_v54 = vld [vmem:[%s7010_s22 + $0x1344] ss:$8 sps:$4 sm:$0xff]   ;;  %v6874_v55 = vld [vmem:[%s7010_s22 + $0x940] ss:$8 sps:$4 sm:$0xff]  }
 0x22a   : > { %5084 = vmatprep.subr.bf16.mxu0 %v6794_v56  ;;  %v6877_v56 = vld [vmem:[%s7010_s22 + $0x1340] ss:$8 sps:$4 sm:$0xff]  }
 0x22c   : > { %4675 = vmatpush1.bf16.msra.mxu1 %v6789_v57  ;;  %v6882_v57 = vld [vmem:[%s7010_s22 + $0x954] ss:$8 sps:$4 sm:$0xff]  }
 0x22d   : > { %5085 = vmatpush1.bf16.msra.mxu0 %v6792_v59  ;;  %4676 = vmatprep.subr.bf16.mxu1 %v6797_v62  ;;  %v6885_v59 = vld [vmem:[%s7010_s22 + $0x1354] ss:$8 sps:$4 sm:$0xff]   ;;  %v6880_v62 = vld [vmem:[%s7010_s22 + $0x950] ss:$8 sps:$4 sm:$0xff]  }
 0x22e   : > { %5086 = vmatprep.subr.bf16.mxu0 %v6800_v63  ;;  %v6883_v63 = vld [vmem:[%s7010_s22 + $0x1350] ss:$8 sps:$4 sm:$0xff]  }
 0x230   : > { %4677 = vmatpush1.bf16.msra.mxu1 %v6795_v0  ;;  %v6888_v0 = vld [vmem:[%s7010_s22 + $0x964] ss:$8 sps:$4 sm:$0xff]  }
 0x231   : > { %5087 = vmatpush1.bf16.msra.mxu0 %v6798_v1  ;;  %4678 = vmatprep.subr.bf16.mxu1 %v6803_v42  ;;  %v6891_v1 = vld [vmem:[%s7010_s22 + $0x1364] ss:$8 sps:$4 sm:$0xff]   ;;  %v6886_v42 = vld [vmem:[%s7010_s22 + $0x960] ss:$8 sps:$4 sm:$0xff]  }
 0x232   : > { %5088 = vmatprep.subr.bf16.mxu0 %v6806_v3  ;;  %v6889_v3 = vld [vmem:[%s7010_s22 + $0x1360] ss:$8 sps:$4 sm:$0xff]  }
 0x234   : > { %4679 = vmatpush1.bf16.msra.mxu1 %v6801_v58  ;;  %v6894_v58 = vld [vmem:[%s7010_s22 + $0x974] ss:$8 sps:$4 sm:$0xff]  }
 0x235   : > { %5089 = vmatpush1.bf16.msra.mxu0 %v6804_v5  ;;  %4680 = vmatprep.subr.bf16.mxu1 %v6809_v44  ;;  %v6897_v5 = vld [vmem:[%s7010_s22 + $0x1374] ss:$8 sps:$4 sm:$0xff]   ;;  %v6892_v44 = vld [vmem:[%s7010_s22 + $0x970] ss:$8 sps:$4 sm:$0xff]  }
 0x236   : > { %5090 = vmatprep.subr.bf16.mxu0 %v6812_v6  ;;  %v6895_v6 = vld [vmem:[%s7010_s22 + $0x1370] ss:$8 sps:$4 sm:$0xff]  }
 0x238   : > { %4681 = vmatpush1.bf16.msra.mxu1 %v6807_v9  ;;  %v6900_v9 = vld [vmem:[%s7010_s22 + $0x984] ss:$8 sps:$4 sm:$0xff]  }
 0x239   : > { %5091 = vmatpush1.bf16.msra.mxu0 %v6810_v12  ;;  %4682 = vmatprep.subr.bf16.mxu1 %v6815_v13  ;;  %v6903_v12 = vld [vmem:[%s7010_s22 + $0x1384] ss:$8 sps:$4 sm:$0xff]   ;;  %v6898_v13 = vld [vmem:[%s7010_s22 + $0x980] ss:$8 sps:$4 sm:$0xff]  }
 0x23a   : > { %5092 = vmatprep.subr.bf16.mxu0 %v6818_v14  ;;  %v6901_v14 = vld [vmem:[%s7010_s22 + $0x1380] ss:$8 sps:$4 sm:$0xff]  }
 0x23c   : > { %4683 = vmatpush1.bf16.msra.mxu1 %v6813_v15  ;;  %v6906_v15 = vld [vmem:[%s7010_s22 + $0x994] ss:$8 sps:$4 sm:$0xff]  }
 0x23d   : > { %5093 = vmatpush1.bf16.msra.mxu0 %v6816_v16  ;;  %4684 = vmatprep.subr.bf16.mxu1 %v6821_v17  ;;  %v6909_v16 = vld [vmem:[%s7010_s22 + $0x1394] ss:$8 sps:$4 sm:$0xff]   ;;  %v6904_v17 = vld [vmem:[%s7010_s22 + $0x990] ss:$8 sps:$4 sm:$0xff]  }
 0x23e   : > { %5094 = vmatprep.subr.bf16.mxu0 %v6824_v61  ;;  %v6907_v61 = vld [vmem:[%s7010_s22 + $0x1390] ss:$8 sps:$4 sm:$0xff]  }
 0x240   : > { %4685 = vmatpush1.bf16.msra.mxu1 %v6819_v19  ;;  %v6912_v19 = vld [vmem:[%s7010_s22 + $0x9a4] ss:$8 sps:$4 sm:$0xff]  }
 0x241   : > { %5095 = vmatpush1.bf16.msra.mxu0 %v6822_v22  ;;  %4686 = vmatprep.subr.bf16.mxu1 %v6827_v25  ;;  %v6915_v22 = vld [vmem:[%s7010_s22 + $0x13a4] ss:$8 sps:$4 sm:$0xff]   ;;  %v6910_v25 = vld [vmem:[%s7010_s22 + $0x9a0] ss:$8 sps:$4 sm:$0xff]  }
 0x242   : > { %5096 = vmatprep.subr.bf16.mxu0 %v6830_v28  ;;  %v6913_v28 = vld [vmem:[%s7010_s22 + $0x13a0] ss:$8 sps:$4 sm:$0xff]  }
 0x244   : > { %4687 = vmatpush1.bf16.msra.mxu1 %v6825_v29  ;;  %v6918_v29 = vld [vmem:[%s7010_s22 + $0x9b4] ss:$8 sps:$4 sm:$0xff]  }
 0x245   : > { %5097 = vmatpush1.bf16.msra.mxu0 %v6828_v10  ;;  %4688 = vmatprep.subr.bf16.mxu1 %v6833_v45  ;;  %v6921_v10 = vld [vmem:[%s7010_s22 + $0x13b4] ss:$8 sps:$4 sm:$0xff]   ;;  %v6916_v45 = vld [vmem:[%s7010_s22 + $0x9b0] ss:$8 sps:$4 sm:$0xff]  }
 0x246   : > { %5098 = vmatprep.subr.bf16.mxu0 %v6836_v30  ;;  %v6919_v30 = vld [vmem:[%s7010_s22 + $0x13b0] ss:$8 sps:$4 sm:$0xff]  }
 0x248   : > { %4689 = vmatpush1.bf16.msra.mxu1 %v6831_v7  ;;  %v6924_v7 = vld [vmem:[%s7010_s22 + $0x9c4] ss:$8 sps:$4 sm:$0xff]  }
 0x249   : > { %5099 = vmatpush1.bf16.msra.mxu0 %v6834_v18  ;;  %4690 = vmatprep.subr.bf16.mxu1 %v6839_v31  ;;  %v6927_v18 = vld [vmem:[%s7010_s22 + $0x13c4] ss:$8 sps:$4 sm:$0xff]   ;;  %v6922_v31 = vld [vmem:[%s7010_s22 + $0x9c0] ss:$8 sps:$4 sm:$0xff]  }
 0x24a   : > { %5100 = vmatprep.subr.bf16.mxu0 %v6842_v60  ;;  %v6925_v60 = vld [vmem:[%s7010_s22 + $0x13c0] ss:$8 sps:$4 sm:$0xff]  }
 0x24c   : > { %4691 = vmatpush1.bf16.msra.mxu1 %v6837_v32  ;;  %v6930_v32 = vld [vmem:[%s7010_s22 + $0x9d4] ss:$8 sps:$4 sm:$0xff]  }
 0x24d   : > { %5101 = vmatpush1.bf16.msra.mxu0 %v6840_v20  ;;  %4692 = vmatprep.subr.bf16.mxu1 %v6845_v21  ;;  %v6933_v20 = vld [vmem:[%s7010_s22 + $0x13d4] ss:$8 sps:$4 sm:$0xff]   ;;  %v6928_v21 = vld [vmem:[%s7010_s22 + $0x9d0] ss:$8 sps:$4 sm:$0xff]  }
 0x24e   : > { %5102 = vmatprep.subr.bf16.mxu0 %v6848_v33  ;;  %v6931_v33 = vld [vmem:[%s7010_s22 + $0x13d0] ss:$8 sps:$4 sm:$0xff]  }
 0x250   : > { %4693 = vmatpush1.bf16.msra.mxu1 %v6843_v34  ;;  %v6936_v34 = vld [vmem:[%s7010_s22 + $0x9e4] ss:$8 sps:$4 sm:$0xff]  }
 0x251   : > { %5103 = vmatpush1.bf16.msra.mxu0 %v6846_v35  ;;  %4703 = vmatprep.subr.bf16.mxu1 %v6851_v24  ;;  %v6939_v35 = vld [vmem:[%s7010_s22 + $0x13e4] ss:$8 sps:$4 sm:$0xff]   ;;  %v6934_v24 = vld [vmem:[%s7010_s22 + $0x9e0] ss:$8 sps:$4 sm:$0xff]  }
 0x252   : > { %5113 = vmatprep.subr.bf16.mxu0 %v6855_v38  ;;  %v6937_v38 = vld [vmem:[%s7010_s22 + $0x13e0] ss:$8 sps:$4 sm:$0xff]  }
 0x253   : > { %4695 = vmatmul.mubr.bf16.vlgmr.msra.gmra.mrb[0].mxu1 %v7780_v39 }
 0x254   : > { %5105 = vmatmul.mubr.bf16.vlgmr.msra.gmra.mrb[0].mxu0 %v7784_v40  ;;  %4704 = vmatpush1.bf16.msra.mxu1 %v6849_v41  ;;  %v6942_v41 = vld [vmem:[%s7010_s22 + $0x9f4] ss:$8 sps:$4 sm:$0xff]  }
 0x255   : > { %5114 = vmatpush1.bf16.msra.mxu0 %v6853_v46  ;;  %4705 = vmatprep.subr.bf16.mxu1 %v6858_v47  ;;  %v6945_v46 = vld [vmem:[%s7010_s22 + $0x13f4] ss:$8 sps:$4 sm:$0xff]   ;;  %v6940_v47 = vld [vmem:[%s7010_s22 + $0x9f0] ss:$8 sps:$4 sm:$0xff]  }
 0x256   : > { %5115 = vmatprep.subr.bf16.mxu0 %v6861_v48  ;;  %4735 = vmatprep.mubr.bf16.mxu1 %v994_v2  ;;  %v6943_v48 = vld [vmem:[%s7010_s22 + $0x13f0] ss:$8 sps:$4 sm:$0xff]   ;;  %v992_v2 = vcombine.high %v7780_v39, %v7780_v39 }
 0x257   : > { %5145 = vmatprep.mubr.bf16.mxu0 %v1093_v49  ;;  %v1091_v49 = vcombine.high %v7784_v40, %v7784_v40 }
 0x258   : > { %4706 = vmatpush1.bf16.msra.mxu1 %v6856_v11  ;;  %v836_v11 = vsub.s32 0, %v6996_v4 }
 0x259   : > { %5116 = vmatpush1.bf16.msra.mxu0 %v6859_v37  ;;  %4707 = vmatprep.subr.bf16.mxu1 %v6864_v36  ;;  %v832_v37 = vld [vmem:[%s181_s9] sm:$0x3]  ;;  %v840_v36 = vsub.s32 1, %v6996_v4 }
 0x25a   : > { %5117 = vmatprep.subr.bf16.mxu0 %v6867_v27  ;;  %v837_v27 = vrot.slane %v832_v37, %v836_v11 }
 0x25c   : > { %4708 = vmatpush1.bf16.msra.mxu1 %v6862_v23  ;;  %v841_v23 = vrot.slane %v832_v37, %v840_v36 }
 0x25d   : > { %5118 = vmatpush1.bf16.msra.mxu0 %v6865_v50  ;;  %4709 = vmatprep.subr.bf16.mxu1 %v6870_v51 }
 0x25e   : > { %5119 = vmatprep.subr.bf16.mxu0 %v6873_v26 }
 0x260   : > { %4710 = vmatpush1.bf16.msra.mxu1 %v6868_v43 }
 0x261   : > { %5120 = vmatpush1.bf16.msra.mxu0 %v6871_v52  ;;  %4711 = vmatprep.subr.bf16.mxu1 %v6876_v53 }
 0x262   : > { %5121 = vmatprep.subr.bf16.mxu0 %v6879_v54 }
 0x264   : > { %4712 = vmatpush1.bf16.msra.mxu1 %v6874_v55 }
 0x265   : > { %5122 = vmatpush1.bf16.msra.mxu0 %v6877_v56  ;;  %4713 = vmatprep.subr.bf16.mxu1 %v6882_v57 }
 0x266   : > { %5123 = vmatprep.subr.bf16.mxu0 %v6885_v59 }
 0x268   : > { %4714 = vmatpush1.bf16.msra.mxu1 %v6880_v62 }
 0x269   : > { %5124 = vmatpush1.bf16.msra.mxu0 %v6883_v63  ;;  %4715 = vmatprep.subr.bf16.mxu1 %v6888_v0 }
 0x26a   : > { %5125 = vmatprep.subr.bf16.mxu0 %v6891_v1 }
 0x26c   : > { %4716 = vmatpush1.bf16.msra.mxu1 %v6886_v42 }
 0x26d   : > { %5126 = vmatpush1.bf16.msra.mxu0 %v6889_v3  ;;  %4717 = vmatprep.subr.bf16.mxu1 %v6894_v58 }
 0x26e   : > { %5127 = vmatprep.subr.bf16.mxu0 %v6897_v5 }
 0x270   : > { %4718 = vmatpush1.bf16.msra.mxu1 %v6892_v44 }
 0x271   : > { %5128 = vmatpush1.bf16.msra.mxu0 %v6895_v6  ;;  %4719 = vmatprep.subr.bf16.mxu1 %v6900_v9 }
 0x272   : > { %5129 = vmatprep.subr.bf16.mxu0 %v6903_v12 }
 0x274   : > { %4720 = vmatpush1.bf16.msra.mxu1 %v6898_v13 }
 0x275   : > { %5130 = vmatpush1.bf16.msra.mxu0 %v6901_v14  ;;  %4721 = vmatprep.subr.bf16.mxu1 %v6906_v15 }
 0x276   : > { %5131 = vmatprep.subr.bf16.mxu0 %v6909_v16 }
 0x278   : > { %4722 = vmatpush1.bf16.msra.mxu1 %v6904_v17 }
 0x279   : > { %5132 = vmatpush1.bf16.msra.mxu0 %v6907_v61  ;;  %4723 = vmatprep.subr.bf16.mxu1 %v6912_v19 }
 0x27a   : > { %5133 = vmatprep.subr.bf16.mxu0 %v6915_v22 }
 0x27c   : > { %4724 = vmatpush1.bf16.msra.mxu1 %v6910_v25 }
 0x27d   : > { %5134 = vmatpush1.bf16.msra.mxu0 %v6913_v28  ;;  %4725 = vmatprep.subr.bf16.mxu1 %v6918_v29 }
 0x27e   : > { %5135 = vmatprep.subr.bf16.mxu0 %v6921_v10 }
 0x280   : > { %4726 = vmatpush1.bf16.msra.mxu1 %v6916_v45 }
 0x281   : > { %5136 = vmatpush1.bf16.msra.mxu0 %v6919_v30  ;;  %4727 = vmatprep.subr.bf16.mxu1 %v6924_v7 }
 0x282   : > { %5137 = vmatprep.subr.bf16.mxu0 %v6927_v18 }
 0x284   : > { %4728 = vmatpush1.bf16.msra.mxu1 %v6922_v31 }
 0x285   : > { %5138 = vmatpush1.bf16.msra.mxu0 %v6925_v60  ;;  %4729 = vmatprep.subr.bf16.mxu1 %v6930_v32 }
 0x286   : > { %5139 = vmatprep.subr.bf16.mxu0 %v6933_v20 }
 0x288   : > { %4730 = vmatpush1.bf16.msra.mxu1 %v6928_v21 }
 0x289   : > { %5140 = vmatpush1.bf16.msra.mxu0 %v6931_v33  ;;  %4731 = vmatprep.subr.bf16.mxu1 %v6936_v34 }
 0x28a   : > { %5141 = vmatprep.subr.bf16.mxu0 %v6939_v35 }
 0x28c   : > { %4732 = vmatpush1.bf16.msra.mxu1 %v6934_v24 }
 0x28d   : > { %5142 = vmatpush1.bf16.msra.mxu0 %v6937_v38  ;;  %4733 = vmatprep.subr.bf16.mxu1 %v6942_v41 }
 0x28e   : > { %5143 = vmatprep.subr.bf16.mxu0 %v6945_v46 }
 0x290   : > { %4734 = vmatpush1.bf16.msra.mxu1 %v6940_v47 }
 0x291   : > { %5144 = vmatpush1.bf16.msra.mxu0 %v6943_v48 }
 0x293   : > { %4736 = vmatmul.mubr.bf16.vlgmr.msra.gmra.mrb[0].mxu1 %v992_v2 }
 0x294   : > { %5146 = vmatmul.mubr.bf16.vlgmr.msra.gmra.mrb[0].mxu0 %v1091_v49 }
 0x366   : > { %v4737_v39 = vpop.f32.mrb[0].mxu1 }
 0x367   : > { %v5147_v50 = vpop.f32.mrb[0].mxu0  ;;  %v5895_v40 = vadd.f32 %v4737_v39, %v837_v27  ;;  %v4739_v51 = vpop.f32.mrb[1].mxu1 }
 0x368   : > { %v5149_v26 = vpop.f32.mrb[1].mxu0  ;;  %v5897_v43 = vadd.f32 %v4739_v51, %v841_v23  ;;  %v4741_v52 = vpop.f32.mrb[2].mxu1 }
 0x369   : > { %v5151_v53 = vpop.f32.mrb[2].mxu0  ;;  %v5896_v54 = vadd.f32 %v5895_v40, %v5147_v50  ;;  %v4742_v55 = vpop.f32.mrb[3].mxu1 }
 0x36a   : > { %v5152_v56 = vpop.f32.mrb[3].mxu0  ;;  %v5898_v57 = vadd.f32 %v5897_v43, %v5149_v26 }
 0x36b   : > { %vm5154_vm0 = vcmp.gt.f32.partialorder %v5896_v54, 0.0  ;;  %v5156_v59 = vmul.f32 0.1, %v5896_v54 }
 0x36c   : > { %vm5155_vm1 = vcmp.gt.f32.partialorder %v5898_v57, 0.0  ;;  %v5157_v4 = vmul.f32 0.1, %v5898_v57 }
 0x36d   : > { %v5158_v62 = vsel %vm5154_vm0, %v5896_v54, %v5156_v59 }
 0x36e   : > { %v5159_v63 = vsel %vm5155_vm1, %v5898_v57, %v5157_v4 }
 0x36f   : > { %v5891_v0 = vpack.c.bf16 %v5159_v63, %v5158_v62 }
 0x371   : > { %v5171_v1 = vrot.slane %v5891_v0, %v7005_v8 }
 0x373   : > { %5892 = vst.sshfl [vmem:[%s185_s14] sm:$0x5 pattern:$0x73625140] %v5171_v1 }
 0x374 PF: > { %s13_s12 = sadd.s32 1, %s6956_s12  }
 0x375   : > { %p10_p5 = scmp.ge.s32.totalorder %s13_s12, 6  }
 0x377   :  { %12 = sbr.rel (!%p10_p5) target bundleno = 1 (0x1), region = 65 }

</bundles_post_ra>
